<compile_context>
chip_gen: v7x
topology: tpu7x:2x2x1
jax: 0.10.0
libtpu: 0.0.40
codegen_flags: <defaults>
</compile_context>

<pallas_src>
import functools

import jax
import jax.numpy as jnp
from jax.experimental import pallas as pl
from jax.experimental.pallas import tpu as pltpu


def _cnn_kernel(x_ref, w1_ref, wmid_ref, b_ref, g_ref, be_ref, gmat_ref,
                mask_ref, w11_ref, b11_ref, o_ref, ys_ref, pad_ref, cv_ref,
                *, dims, gsize, eps, nb):
    """Fused forward of the CNN for `nb` samples (one grid step).

    x_ref    : (nb, R1, Cin) bf16  zero-padded layer-1 input, spatial rows
                                   flattened with row stride Wp = W + 2.
    w1_ref   : (Cin, 9*C) bf16     layer-1 tap-stacked conv weight.
    wmid_ref : (4, C, 9*C) bf16    tap-stacked weights of layers 2, 3, 4, 10.
    b_ref / g_ref / be_ref : (5, C)  conv bias / GN gamma / GN beta per layer.
    gmat_ref : (C, C)              1.0 where two channels share a GN group.
    mask_ref : (maxr, 5)           per-layer 0/1 validity masks (flat rows).
    w11_ref  : (C, 2), b11_ref : (1, 2)  final 1x1 conv.
    o_ref    : (nb, Hh*Wh, 2) head output.
    ys_ref   : (maxr, C) f32       post-GN/ReLU activation of current layer.
    pad_ref  : (PADR, C) f32       zero-padded flat input of the next conv.
    cv_ref   : (CVR, 9*C) f32      staged wide conv-matmul result.
    """
    C = g_ref.shape[1]

    def conv_gn_relu(li, H, W, slab, wst):
        """3x3 conv + GroupNorm + ReLU; result rows are written to ys_ref."""
        Wp = W + 2
        HWp = H * Wp
        nrows = HWp + 2 * Wp + 2            # rows consumed by all 9 tap shifts
        # One wide bf16 MXU matmul; tap t's channels live in lanes [t*C,(t+1)*C).
        cv_ref[0:nrows, :] = jnp.dot(slab, wst,
                                     preferred_element_type=jnp.float32)
        # Sum the 9 shifted slices on the VPU (bias folded into the first add).
        acc = b_ref[li:li + 1, :] + cv_ref[0:HWp, 0:C]          # tap (0, 0)
        for t in range(1, 9):
            dy, dx = t // 3, t % 3
            off = dy * Wp + dx
            acc = acc + cv_ref[off:off + HWp, t * C:(t + 1) * C]
        # ---- GroupNorm: one-pass stats over valid rows, one tiny gmat matmul.
        mask = mask_ref[0:HWp, li:li + 1]     # 0 on junk (pad-column) rows
        am = acc * mask
        s = jnp.sum(am, axis=0, keepdims=True)                        # (1, C)
        ssq = jnp.sum(am * acc, axis=0, keepdims=True)                # (1, C)
        stats = jnp.dot(jnp.concatenate([s, ssq], axis=0), gmat_ref[...],
                        preferred_element_type=jnp.float32)           # (2, C)
        inv_n = 1.0 / float(H * W * gsize)
        mean_c = stats[0:1, :] * inv_n
        var_c = jnp.maximum(stats[1:2, :] * inv_n - mean_c * mean_c, 0.0)
        scale = jax.lax.rsqrt(var_c + eps) * g_ref[li:li + 1, :]      # (1, C)
        shift = be_ref[li:li + 1, :] - mean_c * scale                 # (1, C)
        ys_ref[0:HWp, :] = jnp.maximum(acc * scale + shift, 0.0)      # ReLU

    def pool_into_pad(H, W, H_next, W_next):
        """2x2 stride-2 max pool of ys_ref into the next conv's padded input."""
        Wp, Wp_next = W + 2, W_next + 2
        Ho, Wo = H // 2, W // 2
        # Zero only the rows the next conv actually reads (padded region plus
        # the 2 slack rows hit by the largest tap shift, rounded up to 8).
        zrows = (H_next + 2) * Wp_next + 8
        pad_ref[0:zrows, :] = jnp.zeros((zrows, C), jnp.float32)

        def rd(start):
            if Wo == 1:
                return ys_ref[start:start + 1, :]
            return ys_ref[pl.ds(start, Wo, 2), :]    # stride-2 sublane read

        for ho in range(Ho):
            r0 = (2 * ho) * Wp
            r1 = (2 * ho + 1) * Wp
            row = jnp.maximum(jnp.maximum(rd(r0), rd(r0 + 1)),
                              jnp.maximum(rd(r1), rd(r1 + 1)))
            dst = (ho + 1) * Wp_next + 1             # interior offset (+1, +1)
            pad_ref[dst:dst + Wo, :] = row

    for s_idx in range(nb):
        # ---- layer 1: conv(164 -> C) + GN + ReLU + pool, slab straight from
        #      the (already bf16) HBM block.
        H0, W0 = dims[0]
        n0 = (H0 + 2) * (W0 + 2) + 2
        conv_gn_relu(0, H0, W0, x_ref[s_idx, 0:n0, :], w1_ref[...])
        pool_into_pad(H0, W0, dims[1][0], dims[1][1])

        # ---- layers 2..4: conv(C -> C) + GN + ReLU + pool from VMEM scratch.
        for li in range(1, 4):
            Hl, Wl = dims[li]
            nl = (Hl + 2) * (Wl + 2) + 2
            conv_gn_relu(li, Hl, Wl, pad_ref[0:nl, :].astype(jnp.bfloat16),
                         wmid_ref[li - 1])
            pool_into_pad(Hl, Wl, dims[li + 1][0], dims[li + 1][1])

        # ---- layer10 head: conv3x3 + GN + ReLU, then one 1x1-conv matmul.
        Hh, Wh = dims[4]
        Wph = Wh + 2
        nh = (Hh + 2) * Wph + 2
        conv_gn_relu(4, Hh, Wh, pad_ref[0:nh, :].astype(jnp.bfloat16),
                     wmid_ref[3])
        res = jnp.dot(ys_ref[0:Hh * Wph, :], w11_ref[...],
                      preferred_element_type=jnp.float32) + b11_ref[...]
        for h in range(Hh):                     # store only the valid columns
            o_ref[s_idx, h * Wh:(h + 1) * Wh, :] = res[h * Wph:h * Wph + Wh, :]


# ---------------------------------------------------------------------------
# Wrapper: weight / mask packing and the single pallas_call.
# ---------------------------------------------------------------------------

def cnn_forward(x_nchw, params, nb=None):
    """NCHW float32 input -> NCHW float32 output, matching CNN.forward."""
    C = params["C"]
    gsize = C // params["groups"]
    x = jnp.transpose(x_nchw, (0, 2, 3, 1)).astype(jnp.float32)       # NHWC
    N, H, W, Cin = x.shape
    assert H % 16 == 0 and W % 16 == 0, "four 2x2 max-pools need spatial % 16 == 0"
    dims = ((H, W), (H // 2, W // 2), (H // 4, W // 4),
            (H // 8, W // 8), (H // 16, W // 16))

    # Samples per grid step: amortize per-step overhead on v5e/v6e while
    # keeping >= 2 grid blocks so v7x's two TensorCores split the batch.
    if nb is None:
        if N % 8 == 0 and N >= 16:
            nb = 8
        elif N % 4 == 0 and N >= 8:
            nb = 4
        elif N % 2 == 0 and N >= 4:
            nb = 2
        else:
            nb = 1
    assert N % nb == 0

    # Layer-1 input: zero pad, flatten spatial rows (stride W+2), add slack
    # rows so every tap window is in-bounds, and cast to bf16 for the DMA.
    Wp1 = W + 2
    xflat = jnp.pad(x, ((0, 0), (1, 1), (1, 1), (0, 0)))
    xflat = xflat.reshape(N, (H + 2) * Wp1, Cin)
    xflat = jnp.pad(xflat, ((0, 0), (0, 8), (0, 0))).astype(jnp.bfloat16)
    R1 = xflat.shape[1]

    # Tap-stacked conv weights: (3,3,cin,C) -> (cin, 9*C) with t = ky*3 + kx.
    def stack_taps(w):
        cin = w.shape[2]
        return jnp.transpose(w.reshape(9, cin, C), (1, 0, 2)).reshape(cin, 9 * C)

    w1s = stack_taps(params["layers"][0]["w"]).astype(jnp.bfloat16)    # (164, 9C)
    wmid = jnp.stack([stack_taps(params["layers"][i]["w"])
                      for i in range(1, 5)]).astype(jnp.bfloat16)      # (4, C, 9C)
    biases = jnp.stack([params["layers"][i]["b"] for i in range(5)])   # (5, C)
    gammas = jnp.stack([params["layers"][i]["gamma"] for i in range(5)])
    betas = jnp.stack([params["layers"][i]["beta"] for i in range(5)])
    w11 = params["w11"].astype(jnp.float32)                            # (C, 2)
    b11 = params["b11"].reshape(1, 2).astype(jnp.float32)

    # GroupNorm group-indicator matrix (same group structure for all layers).
    c = jnp.arange(C)
    gmat = ((c[:, None] // gsize) == (c[None, :] // gsize)).astype(jnp.float32)

    # Per-layer row-validity masks for the flattened-slab conv layout.
    maxr = max(h * (w + 2) for h, w in dims)
    cols = []
    for (h, w) in dims:
        wp = w + 2
        r = jnp.arange(h * wp)
        m = (r % wp < w).astype(jnp.float32)
        cols.append(jnp.pad(m, (0, maxr - h * wp)))
    maskpack = jnp.stack(cols, axis=1)                                 # (maxr, 5)

    Hh, Wh = dims[4]
    PADR = (dims[1][0] + 2) * (dims[1][1] + 2) + 8   # largest flat padded input
    CVR = (H + 2) * (W + 2) + 2                      # largest conv-matmul M

    kern = functools.partial(_cnn_kernel, dims=dims, gsize=gsize, eps=1e-5,
                             nb=nb)
    out = pl.pallas_call(
        kern,
        out_shape=jax.ShapeDtypeStruct((N, Hh * Wh, 2), jnp.float32),
        grid_spec=pltpu.PrefetchScalarGridSpec(
            num_scalar_prefetch=0,
            grid=(N // nb,),
            in_specs=[
                pl.BlockSpec((nb, R1, Cin), lambda n: (n, 0, 0)),
                pl.BlockSpec((Cin, 9 * C), lambda n: (0, 0)),
                pl.BlockSpec((4, C, 9 * C), lambda n: (0, 0, 0)),
                pl.BlockSpec((5, C), lambda n: (0, 0)),
                pl.BlockSpec((5, C), lambda n: (0, 0)),
                pl.BlockSpec((5, C), lambda n: (0, 0)),
                pl.BlockSpec((C, C), lambda n: (0, 0)),
                pl.BlockSpec((maxr, 5), lambda n: (0, 0)),
                pl.BlockSpec((C, 2), lambda n: (0, 0)),
                pl.BlockSpec((1, 2), lambda n: (0, 0)),
            ],
            out_specs=pl.BlockSpec((nb, Hh * Wh, 2), lambda n: (n, 0, 0)),
            scratch_shapes=[
                pltpu.VMEM((maxr, C), jnp.float32),     # ys: current activation
                pltpu.VMEM((PADR, C), jnp.float32),     # next conv's padded input
                pltpu.VMEM((CVR, 9 * C), jnp.float32),  # staged wide conv result
            ],
        ),
        compiler_params=pltpu.CompilerParams(
            dimension_semantics=("parallel",)),          # split batch on v7x TCs
    )(xflat, w1s, wmid, biases, gammas, betas, gmat, maskpack, w11, b11)

    out = out.reshape(N, Hh, Wh, 2)
    return jnp.transpose(out, (0, 3, 1, 2))                            # NCHW


# ---------------------------------------------------------------------------
# Parameter init (deterministic, in-script) + demo run.
# ---------------------------------------------------------------------------

def init_params(key, input_dim=32):
    C = input_dim
    assert C % 8 == 0, "GroupNorm uses num_groups = C // 8"
    cins = [164, C, C, C, C]                 # layer1..4 + layer10 3x3 conv
    keys = jax.random.split(key, 2 * 5 + 2)
    layers = []
    for i, cin in enumerate(cins):
        w = 0.05 * jax.random.normal(keys[2 * i], (3, 3, cin, C), jnp.float32)
        b = 0.05 * jax.random.normal(keys[2 * i + 1], (C,), jnp.float32)
        layers.append({"w": w, "b": b,
                       "gamma": jnp.ones((C,), jnp.float32),
                       "beta": jnp.zeros((C,), jnp.float32)})
    w11 = 0.05 * jax.random.normal(keys[10], (C, 2), jnp.float32)
    b11 = 0.05 * jax.random.normal(keys[11], (2,), jnp.float32)
    return {"C": C, "groups": C // 8, "layers": layers, "w11": w11, "b11": b11}


if __name__ == "__main__":
    key = jax.random.PRNGKey(0)
    kx, kp = jax.random.split(key)
    # batch=2, in-channels fixed at 164 by the module, 16x16 spatial,
    # hidden width input_dim=32 (divisible by 8 for the GroupNorm groups).
    x = jax.random.normal(kx, (2, 164, 16, 16), jnp.float32)
    params = init_params(kp, input_dim=32)
    out = cnn_forward(x, params)
    out = jax.block_until_ready(out)
    assert out.shape == (2, 2, 1, 1), out.shape
    assert bool(jnp.all(jnp.isfinite(out)))
    print("KERNEL_OK")
</pallas_src>

<mosaic_0001>
module attributes {stable_mosaic.version = 11 : i64} {
  func.func @_cnn_kernel(%arg0: i32, %arg1: memref<1x332x164xbf16, #tpu.memory_space<vmem>>, %arg2: memref<164x288xbf16, #tpu.memory_space<vmem>>, %arg3: memref<4x32x288xbf16, #tpu.memory_space<vmem>>, %arg4: memref<5x32xf32, #tpu.memory_space<vmem>>, %arg5: memref<5x32xf32, #tpu.memory_space<vmem>>, %arg6: memref<5x32xf32, #tpu.memory_space<vmem>>, %arg7: memref<32x32xf32, #tpu.memory_space<vmem>>, %arg8: memref<288x5xf32, #tpu.memory_space<vmem>>, %arg9: memref<32x2xf32, #tpu.memory_space<vmem>>, %arg10: memref<1x2xf32, #tpu.memory_space<vmem>>, %arg11: memref<1x1x2xf32, #tpu.memory_space<vmem>>, %arg12: memref<288x32xf32, #tpu.memory_space<vmem>>, %arg13: memref<108x32xf32, #tpu.memory_space<vmem>>, %arg14: memref<326x288xf32, #tpu.memory_space<vmem>>) attributes {dimension_semantics = [#tpu.dimension_semantics<parallel>], iteration_bounds = array<i64: 2>, scalar_prefetch = 0 : i64, scratch_operands = 3 : i64, tpu.core_type = #tpu.core_type<tc>, window_params = [{transform_indices = @transform_0, window_bounds = array<i64: 1, 332, 164>}, {pipeline_mode = #tpu.pipeline_mode<synchronous>, transform_indices = @transform_1, window_bounds = array<i64: 164, 288>}, {pipeline_mode = #tpu.pipeline_mode<synchronous>, transform_indices = @transform_2, window_bounds = array<i64: 4, 32, 288>}, {pipeline_mode = #tpu.pipeline_mode<synchronous>, transform_indices = @transform_3, window_bounds = array<i64: 5, 32>}, {pipeline_mode = #tpu.pipeline_mode<synchronous>, transform_indices = @transform_4, window_bounds = array<i64: 5, 32>}, {pipeline_mode = #tpu.pipeline_mode<synchronous>, transform_indices = @transform_5, window_bounds = array<i64: 5, 32>}, {pipeline_mode = #tpu.pipeline_mode<synchronous>, transform_indices = @transform_6, window_bounds = array<i64: 32, 32>}, {pipeline_mode = #tpu.pipeline_mode<synchronous>, transform_indices = @transform_7, window_bounds = array<i64: 288, 5>}, {pipeline_mode = #tpu.pipeline_mode<synchronous>, transform_indices = @transform_8, window_bounds = array<i64: 32, 2>}, {pipeline_mode = #tpu.pipeline_mode<synchronous>, transform_indices = @transform_9, window_bounds = array<i64: 1, 2>}, {transform_indices = @transform_10, window_bounds = array<i64: 1, 1, 2>}]} {
    %c0 = arith.constant 0 : index
    %c0_0 = arith.constant 0 : index
    %c0_1 = arith.constant 0 : index
    %0 = vector.load %arg1[%c0, %c0_0, %c0_1] : memref<1x332x164xbf16, #tpu.memory_space<vmem>>, vector<1x326x164xbf16>
    %1 = vector.shape_cast %0 : vector<1x326x164xbf16> to vector<326x164xbf16>
    %c0_2 = arith.constant 0 : index
    %c0_3 = arith.constant 0 : index
    %2 = vector.load %arg2[%c0_2, %c0_3] : memref<164x288xbf16, #tpu.memory_space<vmem>>, vector<164x288xbf16>
    %cst = arith.constant dense<0.000000e+00> : vector<326x288xf32>
    %3 = tpu.matmul %1, %2, %cst {dimension_numbers = #tpu.dot_dimension_numbers<[1], [0], [0], [1], [0, 0, 1, 1], [], []>} : vector<326x164xbf16>, vector<164x288xbf16>, vector<326x288xf32> -> vector<326x288xf32>
    %c0_4 = arith.constant 0 : index
    %c0_5 = arith.constant 0 : index
    %4 = vector.load %arg14[%c0_4, %c0_5] : memref<326x288xf32, #tpu.memory_space<vmem>>, vector<326x288xf32>
    tpu.vector_store %arg14[%c0_4, %c0_5], %3 {strides = array<i32>} : memref<326x288xf32, #tpu.memory_space<vmem>>, vector<326x288xf32>,
    %c0_6 = arith.constant 0 : index
    %c0_7 = arith.constant 0 : index
    %5 = vector.load %arg4[%c0_6, %c0_7] : memref<5x32xf32, #tpu.memory_space<vmem>>, vector<1x32xf32>
    %c0_8 = arith.constant 0 : index
    %c0_9 = arith.constant 0 : index
    %6 = vector.load %arg14[%c0_8, %c0_9] : memref<326x288xf32, #tpu.memory_space<vmem>>, vector<288x32xf32>
    %7 = vector.broadcast %5 : vector<1x32xf32> to vector<288x32xf32>
    %8 = arith.addf %7, %6 : vector<288x32xf32>
    %c1 = arith.constant 1 : index
    %c32 = arith.constant 32 : index
    %9 = vector.load %arg14[%c1, %c32] : memref<326x288xf32, #tpu.memory_space<vmem>>, vector<288x32xf32>
    %10 = arith.addf %8, %9 : vector<288x32xf32>
    %c2 = arith.constant 2 : index
    %c64 = arith.constant 64 : index
    %11 = vector.load %arg14[%c2, %c64] : memref<326x288xf32, #tpu.memory_space<vmem>>, vector<288x32xf32>
    %12 = arith.addf %10, %11 : vector<288x32xf32>
    %c18 = arith.constant 18 : index
    %c96 = arith.constant 96 : index
    %13 = vector.load %arg14[%c18, %c96] : memref<326x288xf32, #tpu.memory_space<vmem>>, vector<288x32xf32>
    %14 = arith.addf %12, %13 : vector<288x32xf32>
    %c19 = arith.constant 19 : index
    %c128 = arith.constant 128 : index
    %15 = vector.load %arg14[%c19, %c128] : memref<326x288xf32, #tpu.memory_space<vmem>>, vector<288x32xf32>
    %16 = arith.addf %14, %15 : vector<288x32xf32>
    %c20 = arith.constant 20 : index
    %c160 = arith.constant 160 : index
    %17 = vector.load %arg14[%c20, %c160] : memref<326x288xf32, #tpu.memory_space<vmem>>, vector<288x32xf32>
    %18 = arith.addf %16, %17 : vector<288x32xf32>
    %c36 = arith.constant 36 : index
    %c192 = arith.constant 192 : index
    %19 = vector.load %arg14[%c36, %c192] : memref<326x288xf32, #tpu.memory_space<vmem>>, vector<288x32xf32>
    %20 = arith.addf %18, %19 : vector<288x32xf32>
    %c37 = arith.constant 37 : index
    %c224 = arith.constant 224 : index
    %21 = vector.load %arg14[%c37, %c224] : memref<326x288xf32, #tpu.memory_space<vmem>>, vector<288x32xf32>
    %22 = arith.addf %20, %21 : vector<288x32xf32>
    %c38 = arith.constant 38 : index
    %c256 = arith.constant 256 : index
    %23 = vector.load %arg14[%c38, %c256] : memref<326x288xf32, #tpu.memory_space<vmem>>, vector<288x32xf32>
    %24 = arith.addf %22, %23 : vector<288x32xf32>
    %c0_10 = arith.constant 0 : index
    %c0_11 = arith.constant 0 : index
    %25 = vector.load %arg8[%c0_10, %c0_11] : memref<288x5xf32, #tpu.memory_space<vmem>>, vector<288x1xf32>
    %26 = vector.broadcast %25 : vector<288x1xf32> to vector<288x32xf32>
    %27 = arith.mulf %24, %26 : vector<288x32xf32>
    %cst_12 = arith.constant dense<0.000000e+00> : vector<32xf32>
    %28 = vector.multi_reduction <add>, %27, %cst_12 [0] : vector<288x32xf32> to vector<32xf32>
    %29 = vector.shape_cast %28 : vector<32xf32> to vector<1x32xf32>
    %30 = arith.mulf %27, %24 : vector<288x32xf32>
    %cst_13 = arith.constant dense<0.000000e+00> : vector<32xf32>
    %31 = vector.multi_reduction <add>, %30, %cst_13 [0] : vector<288x32xf32> to vector<32xf32>
    %32 = vector.shape_cast %31 : vector<32xf32> to vector<1x32xf32>
    %33 = tpu.concatenate %29, %32 in 0 : vector<1x32xf32>, vector<1x32xf32> -> vector<2x32xf32>
    %c0_14 = arith.constant 0 : index
    %c0_15 = arith.constant 0 : index
    %34 = vector.load %arg7[%c0_14, %c0_15] : memref<32x32xf32, #tpu.memory_space<vmem>>, vector<32x32xf32>
    %cst_16 = arith.constant dense<0.000000e+00> : vector<2x32xf32>
    %35 = tpu.matmul %33, %34, %cst_16 {dimension_numbers = #tpu.dot_dimension_numbers<[1], [0], [0], [1], [0, 0, 1, 1], [], []>} : vector<2x32xf32>, vector<32x32xf32>, vector<2x32xf32> -> vector<2x32xf32>
    %36 = vector.extract_strided_slice %35 {offsets = [0, 0], sizes = [1, 32], strides = [1, 1]} : vector<2x32xf32> to vector<1x32xf32>
    %cst_17 = arith.constant 4.8828125E-4 : f32
    %37 = vector.broadcast %cst_17 : f32 to vector<1x32xf32>
    %38 = arith.mulf %36, %37 : vector<1x32xf32>
    %39 = vector.extract_strided_slice %35 {offsets = [1, 0], sizes = [1, 32], strides = [1, 1]} : vector<2x32xf32> to vector<1x32xf32>
    %cst_18 = arith.constant 4.8828125E-4 : f32
    %40 = vector.broadcast %cst_18 : f32 to vector<1x32xf32>
    %41 = arith.mulf %39, %40 : vector<1x32xf32>
    %42 = arith.mulf %38, %38 : vector<1x32xf32>
    %43 = arith.subf %41, %42 : vector<1x32xf32>
    %cst_19 = arith.constant 0.000000e+00 : f32
    %44 = vector.broadcast %cst_19 : f32 to vector<1x32xf32>
    %45 = arith.maximumf %43, %44 : vector<1x32xf32>
    %cst_20 = arith.constant 9.99999974E-6 : f32
    %46 = vector.broadcast %cst_20 : f32 to vector<1x32xf32>
    %47 = arith.addf %45, %46 : vector<1x32xf32>
    %48 = math.rsqrt %47 : vector<1x32xf32>
    %c0_21 = arith.constant 0 : index
    %c0_22 = arith.constant 0 : index
    %49 = vector.load %arg5[%c0_21, %c0_22] : memref<5x32xf32, #tpu.memory_space<vmem>>, vector<1x32xf32>
    %50 = arith.mulf %48, %49 : vector<1x32xf32>
    %c0_23 = arith.constant 0 : index
    %c0_24 = arith.constant 0 : index
    %51 = vector.load %arg6[%c0_23, %c0_24] : memref<5x32xf32, #tpu.memory_space<vmem>>, vector<1x32xf32>
    %52 = arith.mulf %38, %50 : vector<1x32xf32>
    %53 = arith.subf %51, %52 : vector<1x32xf32>
    %54 = vector.broadcast %50 : vector<1x32xf32> to vector<288x32xf32>
    %55 = arith.mulf %24, %54 : vector<288x32xf32>
    %56 = vector.broadcast %53 : vector<1x32xf32> to vector<288x32xf32>
    %57 = arith.addf %55, %56 : vector<288x32xf32>
    %cst_25 = arith.constant 0.000000e+00 : f32
    %58 = vector.broadcast %cst_25 : f32 to vector<288x32xf32>
    %59 = arith.maximumf %57, %58 : vector<288x32xf32>
    %c0_26 = arith.constant 0 : index
    %c0_27 = arith.constant 0 : index
    %60 = vector.load %arg12[%c0_26, %c0_27] : memref<288x32xf32, #tpu.memory_space<vmem>>, vector<288x32xf32>
    tpu.vector_store %arg12[%c0_26, %c0_27], %59 {strides = array<i32>} : memref<288x32xf32, #tpu.memory_space<vmem>>, vector<288x32xf32>,
    %cst_28 = arith.constant 0.000000e+00 : f32
    %61 = vector.broadcast %cst_28 : f32 to vector<108x32xf32>
    %c0_29 = arith.constant 0 : index
    %c0_30 = arith.constant 0 : index
    %62 = vector.load %arg13[%c0_29, %c0_30] : memref<108x32xf32, #tpu.memory_space<vmem>>, vector<108x32xf32>
    tpu.vector_store %arg13[%c0_29, %c0_30], %61 {strides = array<i32>} : memref<108x32xf32, #tpu.memory_space<vmem>>, vector<108x32xf32>,
    %c0_31 = arith.constant 0 : index
    %c0_32 = arith.constant 0 : index
    %63 = tpu.strided_load %arg12[%c0_31, %c0_32] {strides = array<i32: 2, 1>} : memref<288x32xf32, #tpu.memory_space<vmem>>, vector<8x32xf32>
    %c1_33 = arith.constant 1 : index
    %c0_34 = arith.constant 0 : index
    %64 = tpu.strided_load %arg12[%c1_33, %c0_34] {strides = array<i32: 2, 1>} : memref<288x32xf32, #tpu.memory_space<vmem>>, vector<8x32xf32>
    %65 = arith.maximumf %63, %64 : vector<8x32xf32>
    %c18_35 = arith.constant 18 : index
    %c0_36 = arith.constant 0 : index
    %66 = tpu.strided_load %arg12[%c18_35, %c0_36] {strides = array<i32: 2, 1>} : memref<288x32xf32, #tpu.memory_space<vmem>>, vector<8x32xf32>
    %c19_37 = arith.constant 19 : index
    %c0_38 = arith.constant 0 : index
    %67 = tpu.strided_load %arg12[%c19_37, %c0_38] {strides = array<i32: 2, 1>} : memref<288x32xf32, #tpu.memory_space<vmem>>, vector<8x32xf32>
    %68 = arith.maximumf %66, %67 : vector<8x32xf32>
    %69 = arith.maximumf %65, %68 : vector<8x32xf32>
    %c11 = arith.constant 11 : index
    %c0_39 = arith.constant 0 : index
    %70 = vector.load %arg13[%c11, %c0_39] : memref<108x32xf32, #tpu.memory_space<vmem>>, vector<8x32xf32>
    tpu.vector_store %arg13[%c11, %c0_39], %69 {strides = array<i32>} : memref<108x32xf32, #tpu.memory_space<vmem>>, vector<8x32xf32>,
    %c36_40 = arith.constant 36 : index
    %c0_41 = arith.constant 0 : index
    %71 = tpu.strided_load %arg12[%c36_40, %c0_41] {strides = array<i32: 2, 1>} : memref<288x32xf32, #tpu.memory_space<vmem>>, vector<8x32xf32>
    %c37_42 = arith.constant 37 : index
    %c0_43 = arith.constant 0 : index
    %72 = tpu.strided_load %arg12[%c37_42, %c0_43] {strides = array<i32: 2, 1>} : memref<288x32xf32, #tpu.memory_space<vmem>>, vector<8x32xf32>
    %73 = arith.maximumf %71, %72 : vector<8x32xf32>
    %c54 = arith.constant 54 : index
    %c0_44 = arith.constant 0 : index
    %74 = tpu.strided_load %arg12[%c54, %c0_44] {strides = array<i32: 2, 1>} : memref<288x32xf32, #tpu.memory_space<vmem>>, vector<8x32xf32>
    %c55 = arith.constant 55 : index
    %c0_45 = arith.constant 0 : index
    %75 = tpu.strided_load %arg12[%c55, %c0_45] {strides = array<i32: 2, 1>} : memref<288x32xf32, #tpu.memory_space<vmem>>, vector<8x32xf32>
    %76 = arith.maximumf %74, %75 : vector<8x32xf32>
    %77 = arith.maximumf %73, %76 : vector<8x32xf32>
    %c21 = arith.constant 21 : index
    %c0_46 = arith.constant 0 : index
    %78 = vector.load %arg13[%c21, %c0_46] : memref<108x32xf32, #tpu.memory_space<vmem>>, vector<8x32xf32>
    tpu.vector_store %arg13[%c21, %c0_46], %77 {strides = array<i32>} : memref<108x32xf32, #tpu.memory_space<vmem>>, vector<8x32xf32>,
    %c72 = arith.constant 72 : index
    %c0_47 = arith.constant 0 : index
    %79 = tpu.strided_load %arg12[%c72, %c0_47] {strides = array<i32: 2, 1>} : memref<288x32xf32, #tpu.memory_space<vmem>>, vector<8x32xf32>
    %c73 = arith.constant 73 : index
    %c0_48 = arith.constant 0 : index
    %80 = tpu.strided_load %arg12[%c73, %c0_48] {strides = array<i32: 2, 1>} : memref<288x32xf32, #tpu.memory_space<vmem>>, vector<8x32xf32>
    %81 = arith.maximumf %79, %80 : vector<8x32xf32>
    %c90 = arith.constant 90 : index
    %c0_49 = arith.constant 0 : index
    %82 = tpu.strided_load %arg12[%c90, %c0_49] {strides = array<i32: 2, 1>} : memref<288x32xf32, #tpu.memory_space<vmem>>, vector<8x32xf32>
    %c91 = arith.constant 91 : index
    %c0_50 = arith.constant 0 : index
    %83 = tpu.strided_load %arg12[%c91, %c0_50] {strides = array<i32: 2, 1>} : memref<288x32xf32, #tpu.memory_space<vmem>>, vector<8x32xf32>
    %84 = arith.maximumf %82, %83 : vector<8x32xf32>
    %85 = arith.maximumf %81, %84 : vector<8x32xf32>
    %c31 = arith.constant 31 : index
    %c0_51 = arith.constant 0 : index
    %86 = vector.load %arg13[%c31, %c0_51] : memref<108x32xf32, #tpu.memory_space<vmem>>, vector<8x32xf32>
    tpu.vector_store %arg13[%c31, %c0_51], %85 {strides = array<i32>} : memref<108x32xf32, #tpu.memory_space<vmem>>, vector<8x32xf32>,
    %c108 = arith.constant 108 : index
    %c0_52 = arith.constant 0 : index
    %87 = tpu.strided_load %arg12[%c108, %c0_52] {strides = array<i32: 2, 1>} : memref<288x32xf32, #tpu.memory_space<vmem>>, vector<8x32xf32>
    %c109 = arith.constant 109 : index
    %c0_53 = arith.constant 0 : index
    %88 = tpu.strided_load %arg12[%c109, %c0_53] {strides = array<i32: 2, 1>} : memref<288x32xf32, #tpu.memory_space<vmem>>, vector<8x32xf32>
    %89 = arith.maximumf %87, %88 : vector<8x32xf32>
    %c126 = arith.constant 126 : index
    %c0_54 = arith.constant 0 : index
    %90 = tpu.strided_load %arg12[%c126, %c0_54] {strides = array<i32: 2, 1>} : memref<288x32xf32, #tpu.memory_space<vmem>>, vector<8x32xf32>
    %c127 = arith.constant 127 : index
    %c0_55 = arith.constant 0 : index
    %91 = tpu.strided_load %arg12[%c127, %c0_55] {strides = array<i32: 2, 1>} : memref<288x32xf32, #tpu.memory_space<vmem>>, vector<8x32xf32>
    %92 = arith.maximumf %90, %91 : vector<8x32xf32>
    %93 = arith.maximumf %89, %92 : vector<8x32xf32>
    %c41 = arith.constant 41 : index
    %c0_56 = arith.constant 0 : index
    %94 = vector.load %arg13[%c41, %c0_56] : memref<108x32xf32, #tpu.memory_space<vmem>>, vector<8x32xf32>
    tpu.vector_store %arg13[%c41, %c0_56], %93 {strides = array<i32>} : memref<108x32xf32, #tpu.memory_space<vmem>>, vector<8x32xf32>,
    %c144 = arith.constant 144 : index
    %c0_57 = arith.constant 0 : index
    %95 = tpu.strided_load %arg12[%c144, %c0_57] {strides = array<i32: 2, 1>} : memref<288x32xf32, #tpu.memory_space<vmem>>, vector<8x32xf32>
    %c145 = arith.constant 145 : index
    %c0_58 = arith.constant 0 : index
    %96 = tpu.strided_load %arg12[%c145, %c0_58] {strides = array<i32: 2, 1>} : memref<288x32xf32, #tpu.memory_space<vmem>>, vector<8x32xf32>
    %97 = arith.maximumf %95, %96 : vector<8x32xf32>
    %c162 = arith.constant 162 : index
    %c0_59 = arith.constant 0 : index
    %98 = tpu.strided_load %arg12[%c162, %c0_59] {strides = array<i32: 2, 1>} : memref<288x32xf32, #tpu.memory_space<vmem>>, vector<8x32xf32>
    %c163 = arith.constant 163 : index
    %c0_60 = arith.constant 0 : index
    %99 = tpu.strided_load %arg12[%c163, %c0_60] {strides = array<i32: 2, 1>} : memref<288x32xf32, #tpu.memory_space<vmem>>, vector<8x32xf32>
    %100 = arith.maximumf %98, %99 : vector<8x32xf32>
    %101 = arith.maximumf %97, %100 : vector<8x32xf32>
    %c51 = arith.constant 51 : index
    %c0_61 = arith.constant 0 : index
    %102 = vector.load %arg13[%c51, %c0_61] : memref<108x32xf32, #tpu.memory_space<vmem>>, vector<8x32xf32>
    tpu.vector_store %arg13[%c51, %c0_61], %101 {strides = array<i32>} : memref<108x32xf32, #tpu.memory_space<vmem>>, vector<8x32xf32>,
    %c180 = arith.constant 180 : index
    %c0_62 = arith.constant 0 : index
    %103 = tpu.strided_load %arg12[%c180, %c0_62] {strides = array<i32: 2, 1>} : memref<288x32xf32, #tpu.memory_space<vmem>>, vector<8x32xf32>
    %c181 = arith.constant 181 : index
    %c0_63 = arith.constant 0 : index
    %104 = tpu.strided_load %arg12[%c181, %c0_63] {strides = array<i32: 2, 1>} : memref<288x32xf32, #tpu.memory_space<vmem>>, vector<8x32xf32>
    %105 = arith.maximumf %103, %104 : vector<8x32xf32>
    %c198 = arith.constant 198 : index
    %c0_64 = arith.constant 0 : index
    %106 = tpu.strided_load %arg12[%c198, %c0_64] {strides = array<i32: 2, 1>} : memref<288x32xf32, #tpu.memory_space<vmem>>, vector<8x32xf32>
    %c199 = arith.constant 199 : index
    %c0_65 = arith.constant 0 : index
    %107 = tpu.strided_load %arg12[%c199, %c0_65] {strides = array<i32: 2, 1>} : memref<288x32xf32, #tpu.memory_space<vmem>>, vector<8x32xf32>
    %108 = arith.maximumf %106, %107 : vector<8x32xf32>
    %109 = arith.maximumf %105, %108 : vector<8x32xf32>
    %c61 = arith.constant 61 : index
    %c0_66 = arith.constant 0 : index
    %110 = vector.load %arg13[%c61, %c0_66] : memref<108x32xf32, #tpu.memory_space<vmem>>, vector<8x32xf32>
    tpu.vector_store %arg13[%c61, %c0_66], %109 {strides = array<i32>} : memref<108x32xf32, #tpu.memory_space<vmem>>, vector<8x32xf32>,
    %c216 = arith.constant 216 : index
    %c0_67 = arith.constant 0 : index
    %111 = tpu.strided_load %arg12[%c216, %c0_67] {strides = array<i32: 2, 1>} : memref<288x32xf32, #tpu.memory_space<vmem>>, vector<8x32xf32>
    %c217 = arith.constant 217 : index
    %c0_68 = arith.constant 0 : index
    %112 = tpu.strided_load %arg12[%c217, %c0_68] {strides = array<i32: 2, 1>} : memref<288x32xf32, #tpu.memory_space<vmem>>, vector<8x32xf32>
    %113 = arith.maximumf %111, %112 : vector<8x32xf32>
    %c234 = arith.constant 234 : index
    %c0_69 = arith.constant 0 : index
    %114 = tpu.strided_load %arg12[%c234, %c0_69] {strides = array<i32: 2, 1>} : memref<288x32xf32, #tpu.memory_space<vmem>>, vector<8x32xf32>
    %c235 = arith.constant 235 : index
    %c0_70 = arith.constant 0 : index
    %115 = tpu.strided_load %arg12[%c235, %c0_70] {strides = array<i32: 2, 1>} : memref<288x32xf32, #tpu.memory_space<vmem>>, vector<8x32xf32>
    %116 = arith.maximumf %114, %115 : vector<8x32xf32>
    %117 = arith.maximumf %113, %116 : vector<8x32xf32>
    %c71 = arith.constant 71 : index
    %c0_71 = arith.constant 0 : index
    %118 = vector.load %arg13[%c71, %c0_71] : memref<108x32xf32, #tpu.memory_space<vmem>>, vector<8x32xf32>
    tpu.vector_store %arg13[%c71, %c0_71], %117 {strides = array<i32>} : memref<108x32xf32, #tpu.memory_space<vmem>>, vector<8x32xf32>,
    %c252 = arith.constant 252 : index
    %c0_72 = arith.constant 0 : index
    %119 = tpu.strided_load %arg12[%c252, %c0_72] {strides = array<i32: 2, 1>} : memref<288x32xf32, #tpu.memory_space<vmem>>, vector<8x32xf32>
    %c253 = arith.constant 253 : index
    %c0_73 = arith.constant 0 : index
    %120 = tpu.strided_load %arg12[%c253, %c0_73] {strides = array<i32: 2, 1>} : memref<288x32xf32, #tpu.memory_space<vmem>>, vector<8x32xf32>
    %121 = arith.maximumf %119, %120 : vector<8x32xf32>
    %c270 = arith.constant 270 : index
    %c0_74 = arith.constant 0 : index
    %122 = tpu.strided_load %arg12[%c270, %c0_74] {strides = array<i32: 2, 1>} : memref<288x32xf32, #tpu.memory_space<vmem>>, vector<8x32xf32>
    %c271 = arith.constant 271 : index
    %c0_75 = arith.constant 0 : index
    %123 = tpu.strided_load %arg12[%c271, %c0_75] {strides = array<i32: 2, 1>} : memref<288x32xf32, #tpu.memory_space<vmem>>, vector<8x32xf32>
    %124 = arith.maximumf %122, %123 : vector<8x32xf32>
    %125 = arith.maximumf %121, %124 : vector<8x32xf32>
    %c81 = arith.constant 81 : index
    %c0_76 = arith.constant 0 : index
    %126 = vector.load %arg13[%c81, %c0_76] : memref<108x32xf32, #tpu.memory_space<vmem>>, vector<8x32xf32>
    tpu.vector_store %arg13[%c81, %c0_76], %125 {strides = array<i32>} : memref<108x32xf32, #tpu.memory_space<vmem>>, vector<8x32xf32>,
    %c0_77 = arith.constant 0 : index
    %c0_78 = arith.constant 0 : index
    %127 = vector.load %arg13[%c0_77, %c0_78] : memref<108x32xf32, #tpu.memory_space<vmem>>, vector<102x32xf32>
    %128 = arith.truncf %127 : vector<102x32xf32> to vector<102x32xbf16>
    %c0_79 = arith.constant 0 : index
    %c0_80 = arith.constant 0 : index
    %c0_81 = arith.constant 0 : index
    %129 = vector.load %arg3[%c0_79, %c0_80, %c0_81] : memref<4x32x288xbf16, #tpu.memory_space<vmem>>, vector<1x32x288xbf16>
    %130 = vector.shape_cast %129 : vector<1x32x288xbf16> to vector<32x288xbf16>
    %cst_82 = arith.constant dense<0.000000e+00> : vector<102x288xf32>
    %131 = tpu.matmul %128, %130, %cst_82 {dimension_numbers = #tpu.dot_dimension_numbers<[1], [0], [0], [1], [0, 0, 1, 1], [], []>} : vector<102x32xbf16>, vector<32x288xbf16>, vector<102x288xf32> -> vector<102x288xf32>
    %c0_83 = arith.constant 0 : index
    %c0_84 = arith.constant 0 : index
    %132 = vector.load %arg14[%c0_83, %c0_84] : memref<326x288xf32, #tpu.memory_space<vmem>>, vector<102x288xf32>
    tpu.vector_store %arg14[%c0_83, %c0_84], %131 {strides = array<i32>} : memref<326x288xf32, #tpu.memory_space<vmem>>, vector<102x288xf32>,
    %c1_85 = arith.constant 1 : index
    %c0_86 = arith.constant 0 : index
    %133 = vector.load %arg4[%c1_85, %c0_86] : memref<5x32xf32, #tpu.memory_space<vmem>>, vector<1x32xf32>
    %c0_87 = arith.constant 0 : index
    %c0_88 = arith.constant 0 : index
    %134 = vector.load %arg14[%c0_87, %c0_88] : memref<326x288xf32, #tpu.memory_space<vmem>>, vector<80x32xf32>
    %135 = vector.broadcast %133 : vector<1x32xf32> to vector<80x32xf32>
    %136 = arith.addf %135, %134 : vector<80x32xf32>
    %c1_89 = arith.constant 1 : index
    %c32_90 = arith.constant 32 : index
    %137 = vector.load %arg14[%c1_89, %c32_90] : memref<326x288xf32, #tpu.memory_space<vmem>>, vector<80x32xf32>
    %138 = arith.addf %136, %137 : vector<80x32xf32>
    %c2_91 = arith.constant 2 : index
    %c64_92 = arith.constant 64 : index
    %139 = vector.load %arg14[%c2_91, %c64_92] : memref<326x288xf32, #tpu.memory_space<vmem>>, vector<80x32xf32>
    %140 = arith.addf %138, %139 : vector<80x32xf32>
    %c10 = arith.constant 10 : index
    %c96_93 = arith.constant 96 : index
    %141 = vector.load %arg14[%c10, %c96_93] : memref<326x288xf32, #tpu.memory_space<vmem>>, vector<80x32xf32>
    %142 = arith.addf %140, %141 : vector<80x32xf32>
    %c11_94 = arith.constant 11 : index
    %c128_95 = arith.constant 128 : index
    %143 = vector.load %arg14[%c11_94, %c128_95] : memref<326x288xf32, #tpu.memory_space<vmem>>, vector<80x32xf32>
    %144 = arith.addf %142, %143 : vector<80x32xf32>
    %c12 = arith.constant 12 : index
    %c160_96 = arith.constant 160 : index
    %145 = vector.load %arg14[%c12, %c160_96] : memref<326x288xf32, #tpu.memory_space<vmem>>, vector<80x32xf32>
    %146 = arith.addf %144, %145 : vector<80x32xf32>
    %c20_97 = arith.constant 20 : index
    %c192_98 = arith.constant 192 : index
    %147 = vector.load %arg14[%c20_97, %c192_98] : memref<326x288xf32, #tpu.memory_space<vmem>>, vector<80x32xf32>
    %148 = arith.addf %146, %147 : vector<80x32xf32>
    %c21_99 = arith.constant 21 : index
    %c224_100 = arith.constant 224 : index
    %149 = vector.load %arg14[%c21_99, %c224_100] : memref<326x288xf32, #tpu.memory_space<vmem>>, vector<80x32xf32>
    %150 = arith.addf %148, %149 : vector<80x32xf32>
    %c22 = arith.constant 22 : index
    %c256_101 = arith.constant 256 : index
    %151 = vector.load %arg14[%c22, %c256_101] : memref<326x288xf32, #tpu.memory_space<vmem>>, vector<80x32xf32>
    %152 = arith.addf %150, %151 : vector<80x32xf32>
    %c0_102 = arith.constant 0 : index
    %c1_103 = arith.constant 1 : index
    %153 = vector.load %arg8[%c0_102, %c1_103] : memref<288x5xf32, #tpu.memory_space<vmem>>, vector<80x1xf32>
    %154 = vector.broadcast %153 : vector<80x1xf32> to vector<80x32xf32>
    %155 = arith.mulf %152, %154 : vector<80x32xf32>
    %cst_104 = arith.constant dense<0.000000e+00> : vector<32xf32>
    %156 = vector.multi_reduction <add>, %155, %cst_104 [0] : vector<80x32xf32> to vector<32xf32>
    %157 = vector.shape_cast %156 : vector<32xf32> to vector<1x32xf32>
    %158 = arith.mulf %155, %152 : vector<80x32xf32>
    %cst_105 = arith.constant dense<0.000000e+00> : vector<32xf32>
    %159 = vector.multi_reduction <add>, %158, %cst_105 [0] : vector<80x32xf32> to vector<32xf32>
    %160 = vector.shape_cast %159 : vector<32xf32> to vector<1x32xf32>
    %161 = tpu.concatenate %157, %160 in 0 : vector<1x32xf32>, vector<1x32xf32> -> vector<2x32xf32>
    %c0_106 = arith.constant 0 : index
    %c0_107 = arith.constant 0 : index
    %162 = vector.load %arg7[%c0_106, %c0_107] : memref<32x32xf32, #tpu.memory_space<vmem>>, vector<32x32xf32>
    %cst_108 = arith.constant dense<0.000000e+00> : vector<2x32xf32>
    %163 = tpu.matmul %161, %162, %cst_108 {dimension_numbers = #tpu.dot_dimension_numbers<[1], [0], [0], [1], [0, 0, 1, 1], [], []>} : vector<2x32xf32>, vector<32x32xf32>, vector<2x32xf32> -> vector<2x32xf32>
    %164 = vector.extract_strided_slice %163 {offsets = [0, 0], sizes = [1, 32], strides = [1, 1]} : vector<2x32xf32> to vector<1x32xf32>
    %cst_109 = arith.constant 0.001953125 : f32
    %165 = vector.broadcast %cst_109 : f32 to vector<1x32xf32>
    %166 = arith.mulf %164, %165 : vector<1x32xf32>
    %167 = vector.extract_strided_slice %163 {offsets = [1, 0], sizes = [1, 32], strides = [1, 1]} : vector<2x32xf32> to vector<1x32xf32>
    %cst_110 = arith.constant 0.001953125 : f32
    %168 = vector.broadcast %cst_110 : f32 to vector<1x32xf32>
    %169 = arith.mulf %167, %168 : vector<1x32xf32>
    %170 = arith.mulf %166, %166 : vector<1x32xf32>
    %171 = arith.subf %169, %170 : vector<1x32xf32>
    %cst_111 = arith.constant 0.000000e+00 : f32
    %172 = vector.broadcast %cst_111 : f32 to vector<1x32xf32>
    %173 = arith.maximumf %171, %172 : vector<1x32xf32>
    %cst_112 = arith.constant 9.99999974E-6 : f32
    %174 = vector.broadcast %cst_112 : f32 to vector<1x32xf32>
    %175 = arith.addf %173, %174 : vector<1x32xf32>
    %176 = math.rsqrt %175 : vector<1x32xf32>
    %c1_113 = arith.constant 1 : index
    %c0_114 = arith.constant 0 : index
    %177 = vector.load %arg5[%c1_113, %c0_114] : memref<5x32xf32, #tpu.memory_space<vmem>>, vector<1x32xf32>
    %178 = arith.mulf %176, %177 : vector<1x32xf32>
    %c1_115 = arith.constant 1 : index
    %c0_116 = arith.constant 0 : index
    %179 = vector.load %arg6[%c1_115, %c0_116] : memref<5x32xf32, #tpu.memory_space<vmem>>, vector<1x32xf32>
    %180 = arith.mulf %166, %178 : vector<1x32xf32>
    %181 = arith.subf %179, %180 : vector<1x32xf32>
    %182 = vector.broadcast %178 : vector<1x32xf32> to vector<80x32xf32>
    %183 = arith.mulf %152, %182 : vector<80x32xf32>
    %184 = vector.broadcast %181 : vector<1x32xf32> to vector<80x32xf32>
    %185 = arith.addf %183, %184 : vector<80x32xf32>
    %cst_117 = arith.constant 0.000000e+00 : f32
    %186 = vector.broadcast %cst_117 : f32 to vector<80x32xf32>
    %187 = arith.maximumf %185, %186 : vector<80x32xf32>
    %c0_118 = arith.constant 0 : index
    %c0_119 = arith.constant 0 : index
    %188 = vector.load %arg12[%c0_118, %c0_119] : memref<288x32xf32, #tpu.memory_space<vmem>>, vector<80x32xf32>
    tpu.vector_store %arg12[%c0_118, %c0_119], %187 {strides = array<i32>} : memref<288x32xf32, #tpu.memory_space<vmem>>, vector<80x32xf32>,
    %cst_120 = arith.constant 0.000000e+00 : f32
    %189 = vector.broadcast %cst_120 : f32 to vector<44x32xf32>
    %c0_121 = arith.constant 0 : index
    %c0_122 = arith.constant 0 : index
    %190 = vector.load %arg13[%c0_121, %c0_122] : memref<108x32xf32, #tpu.memory_space<vmem>>, vector<44x32xf32>
    tpu.vector_store %arg13[%c0_121, %c0_122], %189 {strides = array<i32>} : memref<108x32xf32, #tpu.memory_space<vmem>>, vector<44x32xf32>,
    %c0_123 = arith.constant 0 : index
    %c0_124 = arith.constant 0 : index
    %191 = tpu.strided_load %arg12[%c0_123, %c0_124] {strides = array<i32: 2, 1>} : memref<288x32xf32, #tpu.memory_space<vmem>>, vector<4x32xf32>
    %c1_125 = arith.constant 1 : index
    %c0_126 = arith.constant 0 : index
    %192 = tpu.strided_load %arg12[%c1_125, %c0_126] {strides = array<i32: 2, 1>} : memref<288x32xf32, #tpu.memory_space<vmem>>, vector<4x32xf32>
    %193 = arith.maximumf %191, %192 : vector<4x32xf32>
    %c10_127 = arith.constant 10 : index
    %c0_128 = arith.constant 0 : index
    %194 = tpu.strided_load %arg12[%c10_127, %c0_128] {strides = array<i32: 2, 1>} : memref<288x32xf32, #tpu.memory_space<vmem>>, vector<4x32xf32>
    %c11_129 = arith.constant 11 : index
    %c0_130 = arith.constant 0 : index
    %195 = tpu.strided_load %arg12[%c11_129, %c0_130] {strides = array<i32: 2, 1>} : memref<288x32xf32, #tpu.memory_space<vmem>>, vector<4x32xf32>
    %196 = arith.maximumf %194, %195 : vector<4x32xf32>
    %197 = arith.maximumf %193, %196 : vector<4x32xf32>
    %c7 = arith.constant 7 : index
    %c0_131 = arith.constant 0 : index
    %198 = vector.load %arg13[%c7, %c0_131] : memref<108x32xf32, #tpu.memory_space<vmem>>, vector<4x32xf32>
    tpu.vector_store %arg13[%c7, %c0_131], %197 {strides = array<i32>} : memref<108x32xf32, #tpu.memory_space<vmem>>, vector<4x32xf32>,
    %c20_132 = arith.constant 20 : index
    %c0_133 = arith.constant 0 : index
    %199 = tpu.strided_load %arg12[%c20_132, %c0_133] {strides = array<i32: 2, 1>} : memref<288x32xf32, #tpu.memory_space<vmem>>, vector<4x32xf32>
    %c21_134 = arith.constant 21 : index
    %c0_135 = arith.constant 0 : index
    %200 = tpu.strided_load %arg12[%c21_134, %c0_135] {strides = array<i32: 2, 1>} : memref<288x32xf32, #tpu.memory_space<vmem>>, vector<4x32xf32>
    %201 = arith.maximumf %199, %200 : vector<4x32xf32>
    %c30 = arith.constant 30 : index
    %c0_136 = arith.constant 0 : index
    %202 = tpu.strided_load %arg12[%c30, %c0_136] {strides = array<i32: 2, 1>} : memref<288x32xf32, #tpu.memory_space<vmem>>, vector<4x32xf32>
    %c31_137 = arith.constant 31 : index
    %c0_138 = arith.constant 0 : index
    %203 = tpu.strided_load %arg12[%c31_137, %c0_138] {strides = array<i32: 2, 1>} : memref<288x32xf32, #tpu.memory_space<vmem>>, vector<4x32xf32>
    %204 = arith.maximumf %202, %203 : vector<4x32xf32>
    %205 = arith.maximumf %201, %204 : vector<4x32xf32>
    %c13 = arith.constant 13 : index
    %c0_139 = arith.constant 0 : index
    %206 = vector.load %arg13[%c13, %c0_139] : memref<108x32xf32, #tpu.memory_space<vmem>>, vector<4x32xf32>
    tpu.vector_store %arg13[%c13, %c0_139], %205 {strides = array<i32>} : memref<108x32xf32, #tpu.memory_space<vmem>>, vector<4x32xf32>,
    %c40 = arith.constant 40 : index
    %c0_140 = arith.constant 0 : index
    %207 = tpu.strided_load %arg12[%c40, %c0_140] {strides = array<i32: 2, 1>} : memref<288x32xf32, #tpu.memory_space<vmem>>, vector<4x32xf32>
    %c41_141 = arith.constant 41 : index
    %c0_142 = arith.constant 0 : index
    %208 = tpu.strided_load %arg12[%c41_141, %c0_142] {strides = array<i32: 2, 1>} : memref<288x32xf32, #tpu.memory_space<vmem>>, vector<4x32xf32>
    %209 = arith.maximumf %207, %208 : vector<4x32xf32>
    %c50 = arith.constant 50 : index
    %c0_143 = arith.constant 0 : index
    %210 = tpu.strided_load %arg12[%c50, %c0_143] {strides = array<i32: 2, 1>} : memref<288x32xf32, #tpu.memory_space<vmem>>, vector<4x32xf32>
    %c51_144 = arith.constant 51 : index
    %c0_145 = arith.constant 0 : index
    %211 = tpu.strided_load %arg12[%c51_144, %c0_145] {strides = array<i32: 2, 1>} : memref<288x32xf32, #tpu.memory_space<vmem>>, vector<4x32xf32>
    %212 = arith.maximumf %210, %211 : vector<4x32xf32>
    %213 = arith.maximumf %209, %212 : vector<4x32xf32>
    %c19_146 = arith.constant 19 : index
    %c0_147 = arith.constant 0 : index
    %214 = vector.load %arg13[%c19_146, %c0_147] : memref<108x32xf32, #tpu.memory_space<vmem>>, vector<4x32xf32>
    tpu.vector_store %arg13[%c19_146, %c0_147], %213 {strides = array<i32>} : memref<108x32xf32, #tpu.memory_space<vmem>>, vector<4x32xf32>,
    %c60 = arith.constant 60 : index
    %c0_148 = arith.constant 0 : index
    %215 = tpu.strided_load %arg12[%c60, %c0_148] {strides = array<i32: 2, 1>} : memref<288x32xf32, #tpu.memory_space<vmem>>, vector<4x32xf32>
    %c61_149 = arith.constant 61 : index
    %c0_150 = arith.constant 0 : index
    %216 = tpu.strided_load %arg12[%c61_149, %c0_150] {strides = array<i32: 2, 1>} : memref<288x32xf32, #tpu.memory_space<vmem>>, vector<4x32xf32>
    %217 = arith.maximumf %215, %216 : vector<4x32xf32>
    %c70 = arith.constant 70 : index
    %c0_151 = arith.constant 0 : index
    %218 = tpu.strided_load %arg12[%c70, %c0_151] {strides = array<i32: 2, 1>} : memref<288x32xf32, #tpu.memory_space<vmem>>, vector<4x32xf32>
    %c71_152 = arith.constant 71 : index
    %c0_153 = arith.constant 0 : index
    %219 = tpu.strided_load %arg12[%c71_152, %c0_153] {strides = array<i32: 2, 1>} : memref<288x32xf32, #tpu.memory_space<vmem>>, vector<4x32xf32>
    %220 = arith.maximumf %218, %219 : vector<4x32xf32>
    %221 = arith.maximumf %217, %220 : vector<4x32xf32>
    %c25 = arith.constant 25 : index
    %c0_154 = arith.constant 0 : index
    %222 = vector.load %arg13[%c25, %c0_154] : memref<108x32xf32, #tpu.memory_space<vmem>>, vector<4x32xf32>
    tpu.vector_store %arg13[%c25, %c0_154], %221 {strides = array<i32>} : memref<108x32xf32, #tpu.memory_space<vmem>>, vector<4x32xf32>,
    %c0_155 = arith.constant 0 : index
    %c0_156 = arith.constant 0 : index
    %223 = vector.load %arg13[%c0_155, %c0_156] : memref<108x32xf32, #tpu.memory_space<vmem>>, vector<38x32xf32>
    %224 = arith.truncf %223 : vector<38x32xf32> to vector<38x32xbf16>
    %c1_157 = arith.constant 1 : index
    %c0_158 = arith.constant 0 : index
    %c0_159 = arith.constant 0 : index
    %225 = vector.load %arg3[%c1_157, %c0_158, %c0_159] : memref<4x32x288xbf16, #tpu.memory_space<vmem>>, vector<1x32x288xbf16>
    %226 = vector.shape_cast %225 : vector<1x32x288xbf16> to vector<32x288xbf16>
    %cst_160 = arith.constant dense<0.000000e+00> : vector<38x288xf32>
    %227 = tpu.matmul %224, %226, %cst_160 {dimension_numbers = #tpu.dot_dimension_numbers<[1], [0], [0], [1], [0, 0, 1, 1], [], []>} : vector<38x32xbf16>, vector<32x288xbf16>, vector<38x288xf32> -> vector<38x288xf32>
    %c0_161 = arith.constant 0 : index
    %c0_162 = arith.constant 0 : index
    %228 = vector.load %arg14[%c0_161, %c0_162] : memref<326x288xf32, #tpu.memory_space<vmem>>, vector<38x288xf32>
    tpu.vector_store %arg14[%c0_161, %c0_162], %227 {strides = array<i32>} : memref<326x288xf32, #tpu.memory_space<vmem>>, vector<38x288xf32>,
    %c2_163 = arith.constant 2 : index
    %c0_164 = arith.constant 0 : index
    %229 = vector.load %arg4[%c2_163, %c0_164] : memref<5x32xf32, #tpu.memory_space<vmem>>, vector<1x32xf32>
    %c0_165 = arith.constant 0 : index
    %c0_166 = arith.constant 0 : index
    %230 = vector.load %arg14[%c0_165, %c0_166] : memref<326x288xf32, #tpu.memory_space<vmem>>, vector<24x32xf32>
    %231 = vector.broadcast %229 : vector<1x32xf32> to vector<24x32xf32>
    %232 = arith.addf %231, %230 : vector<24x32xf32>
    %c1_167 = arith.constant 1 : index
    %c32_168 = arith.constant 32 : index
    %233 = vector.load %arg14[%c1_167, %c32_168] : memref<326x288xf32, #tpu.memory_space<vmem>>, vector<24x32xf32>
    %234 = arith.addf %232, %233 : vector<24x32xf32>
    %c2_169 = arith.constant 2 : index
    %c64_170 = arith.constant 64 : index
    %235 = vector.load %arg14[%c2_169, %c64_170] : memref<326x288xf32, #tpu.memory_space<vmem>>, vector<24x32xf32>
    %236 = arith.addf %234, %235 : vector<24x32xf32>
    %c6 = arith.constant 6 : index
    %c96_171 = arith.constant 96 : index
    %237 = vector.load %arg14[%c6, %c96_171] : memref<326x288xf32, #tpu.memory_space<vmem>>, vector<24x32xf32>
    %238 = arith.addf %236, %237 : vector<24x32xf32>
    %c7_172 = arith.constant 7 : index
    %c128_173 = arith.constant 128 : index
    %239 = vector.load %arg14[%c7_172, %c128_173] : memref<326x288xf32, #tpu.memory_space<vmem>>, vector<24x32xf32>
    %240 = arith.addf %238, %239 : vector<24x32xf32>
    %c8 = arith.constant 8 : index
    %c160_174 = arith.constant 160 : index
    %241 = vector.load %arg14[%c8, %c160_174] : memref<326x288xf32, #tpu.memory_space<vmem>>, vector<24x32xf32>
    %242 = arith.addf %240, %241 : vector<24x32xf32>
    %c12_175 = arith.constant 12 : index
    %c192_176 = arith.constant 192 : index
    %243 = vector.load %arg14[%c12_175, %c192_176] : memref<326x288xf32, #tpu.memory_space<vmem>>, vector<24x32xf32>
    %244 = arith.addf %242, %243 : vector<24x32xf32>
    %c13_177 = arith.constant 13 : index
    %c224_178 = arith.constant 224 : index
    %245 = vector.load %arg14[%c13_177, %c224_178] : memref<326x288xf32, #tpu.memory_space<vmem>>, vector<24x32xf32>
    %246 = arith.addf %244, %245 : vector<24x32xf32>
    %c14 = arith.constant 14 : index
    %c256_179 = arith.constant 256 : index
    %247 = vector.load %arg14[%c14, %c256_179] : memref<326x288xf32, #tpu.memory_space<vmem>>, vector<24x32xf32>
    %248 = arith.addf %246, %247 : vector<24x32xf32>
    %c0_180 = arith.constant 0 : index
    %c2_181 = arith.constant 2 : index
    %249 = vector.load %arg8[%c0_180, %c2_181] : memref<288x5xf32, #tpu.memory_space<vmem>>, vector<24x1xf32>
    %250 = vector.broadcast %249 : vector<24x1xf32> to vector<24x32xf32>
    %251 = arith.mulf %248, %250 : vector<24x32xf32>
    %cst_182 = arith.constant dense<0.000000e+00> : vector<32xf32>
    %252 = vector.multi_reduction <add>, %251, %cst_182 [0] : vector<24x32xf32> to vector<32xf32>
    %253 = vector.shape_cast %252 : vector<32xf32> to vector<1x32xf32>
    %254 = arith.mulf %251, %248 : vector<24x32xf32>
    %cst_183 = arith.constant dense<0.000000e+00> : vector<32xf32>
    %255 = vector.multi_reduction <add>, %254, %cst_183 [0] : vector<24x32xf32> to vector<32xf32>
    %256 = vector.shape_cast %255 : vector<32xf32> to vector<1x32xf32>
    %257 = tpu.concatenate %253, %256 in 0 : vector<1x32xf32>, vector<1x32xf32> -> vector<2x32xf32>
    %c0_184 = arith.constant 0 : index
    %c0_185 = arith.constant 0 : index
    %258 = vector.load %arg7[%c0_184, %c0_185] : memref<32x32xf32, #tpu.memory_space<vmem>>, vector<32x32xf32>
    %cst_186 = arith.constant dense<0.000000e+00> : vector<2x32xf32>
    %259 = tpu.matmul %257, %258, %cst_186 {dimension_numbers = #tpu.dot_dimension_numbers<[1], [0], [0], [1], [0, 0, 1, 1], [], []>} : vector<2x32xf32>, vector<32x32xf32>, vector<2x32xf32> -> vector<2x32xf32>
    %260 = vector.extract_strided_slice %259 {offsets = [0, 0], sizes = [1, 32], strides = [1, 1]} : vector<2x32xf32> to vector<1x32xf32>
    %cst_187 = arith.constant 7.812500e-03 : f32
    %261 = vector.broadcast %cst_187 : f32 to vector<1x32xf32>
    %262 = arith.mulf %260, %261 : vector<1x32xf32>
    %263 = vector.extract_strided_slice %259 {offsets = [1, 0], sizes = [1, 32], strides = [1, 1]} : vector<2x32xf32> to vector<1x32xf32>
    %cst_188 = arith.constant 7.812500e-03 : f32
    %264 = vector.broadcast %cst_188 : f32 to vector<1x32xf32>
    %265 = arith.mulf %263, %264 : vector<1x32xf32>
    %266 = arith.mulf %262, %262 : vector<1x32xf32>
    %267 = arith.subf %265, %266 : vector<1x32xf32>
    %cst_189 = arith.constant 0.000000e+00 : f32
    %268 = vector.broadcast %cst_189 : f32 to vector<1x32xf32>
    %269 = arith.maximumf %267, %268 : vector<1x32xf32>
    %cst_190 = arith.constant 9.99999974E-6 : f32
    %270 = vector.broadcast %cst_190 : f32 to vector<1x32xf32>
    %271 = arith.addf %269, %270 : vector<1x32xf32>
    %272 = math.rsqrt %271 : vector<1x32xf32>
    %c2_191 = arith.constant 2 : index
    %c0_192 = arith.constant 0 : index
    %273 = vector.load %arg5[%c2_191, %c0_192] : memref<5x32xf32, #tpu.memory_space<vmem>>, vector<1x32xf32>
    %274 = arith.mulf %272, %273 : vector<1x32xf32>
    %c2_193 = arith.constant 2 : index
    %c0_194 = arith.constant 0 : index
    %275 = vector.load %arg6[%c2_193, %c0_194] : memref<5x32xf32, #tpu.memory_space<vmem>>, vector<1x32xf32>
    %276 = arith.mulf %262, %274 : vector<1x32xf32>
    %277 = arith.subf %275, %276 : vector<1x32xf32>
    %278 = vector.broadcast %274 : vector<1x32xf32> to vector<24x32xf32>
    %279 = arith.mulf %248, %278 : vector<24x32xf32>
    %280 = vector.broadcast %277 : vector<1x32xf32> to vector<24x32xf32>
    %281 = arith.addf %279, %280 : vector<24x32xf32>
    %cst_195 = arith.constant 0.000000e+00 : f32
    %282 = vector.broadcast %cst_195 : f32 to vector<24x32xf32>
    %283 = arith.maximumf %281, %282 : vector<24x32xf32>
    %c0_196 = arith.constant 0 : index
    %c0_197 = arith.constant 0 : index
    %284 = vector.load %arg12[%c0_196, %c0_197] : memref<288x32xf32, #tpu.memory_space<vmem>>, vector<24x32xf32>
    tpu.vector_store %arg12[%c0_196, %c0_197], %283 {strides = array<i32>} : memref<288x32xf32, #tpu.memory_space<vmem>>, vector<24x32xf32>,
    %cst_198 = arith.constant 0.000000e+00 : f32
    %285 = vector.broadcast %cst_198 : f32 to vector<24x32xf32>
    %c0_199 = arith.constant 0 : index
    %c0_200 = arith.constant 0 : index
    %286 = vector.load %arg13[%c0_199, %c0_200] : memref<108x32xf32, #tpu.memory_space<vmem>>, vector<24x32xf32>
    tpu.vector_store %arg13[%c0_199, %c0_200], %285 {strides = array<i32>} : memref<108x32xf32, #tpu.memory_space<vmem>>, vector<24x32xf32>,
    %c0_201 = arith.constant 0 : index
    %c0_202 = arith.constant 0 : index
    %287 = tpu.strided_load %arg12[%c0_201, %c0_202] {strides = array<i32: 2, 1>} : memref<288x32xf32, #tpu.memory_space<vmem>>, vector<2x32xf32>
    %c1_203 = arith.constant 1 : index
    %c0_204 = arith.constant 0 : index
    %288 = tpu.strided_load %arg12[%c1_203, %c0_204] {strides = array<i32: 2, 1>} : memref<288x32xf32, #tpu.memory_space<vmem>>, vector<2x32xf32>
    %289 = arith.maximumf %287, %288 : vector<2x32xf32>
    %c6_205 = arith.constant 6 : index
    %c0_206 = arith.constant 0 : index
    %290 = tpu.strided_load %arg12[%c6_205, %c0_206] {strides = array<i32: 2, 1>} : memref<288x32xf32, #tpu.memory_space<vmem>>, vector<2x32xf32>
    %c7_207 = arith.constant 7 : index
    %c0_208 = arith.constant 0 : index
    %291 = tpu.strided_load %arg12[%c7_207, %c0_208] {strides = array<i32: 2, 1>} : memref<288x32xf32, #tpu.memory_space<vmem>>, vector<2x32xf32>
    %292 = arith.maximumf %290, %291 : vector<2x32xf32>
    %293 = arith.maximumf %289, %292 : vector<2x32xf32>
    %c5 = arith.constant 5 : index
    %c0_209 = arith.constant 0 : index
    %294 = vector.load %arg13[%c5, %c0_209] : memref<108x32xf32, #tpu.memory_space<vmem>>, vector<2x32xf32>
    tpu.vector_store %arg13[%c5, %c0_209], %293 {strides = array<i32>} : memref<108x32xf32, #tpu.memory_space<vmem>>, vector<2x32xf32>,
    %c12_210 = arith.constant 12 : index
    %c0_211 = arith.constant 0 : index
    %295 = tpu.strided_load %arg12[%c12_210, %c0_211] {strides = array<i32: 2, 1>} : memref<288x32xf32, #tpu.memory_space<vmem>>, vector<2x32xf32>
    %c13_212 = arith.constant 13 : index
    %c0_213 = arith.constant 0 : index
    %296 = tpu.strided_load %arg12[%c13_212, %c0_213] {strides = array<i32: 2, 1>} : memref<288x32xf32, #tpu.memory_space<vmem>>, vector<2x32xf32>
    %297 = arith.maximumf %295, %296 : vector<2x32xf32>
    %c18_214 = arith.constant 18 : index
    %c0_215 = arith.constant 0 : index
    %298 = tpu.strided_load %arg12[%c18_214, %c0_215] {strides = array<i32: 2, 1>} : memref<288x32xf32, #tpu.memory_space<vmem>>, vector<2x32xf32>
    %c19_216 = arith.constant 19 : index
    %c0_217 = arith.constant 0 : index
    %299 = tpu.strided_load %arg12[%c19_216, %c0_217] {strides = array<i32: 2, 1>} : memref<288x32xf32, #tpu.memory_space<vmem>>, vector<2x32xf32>
    %300 = arith.maximumf %298, %299 : vector<2x32xf32>
    %301 = arith.maximumf %297, %300 : vector<2x32xf32>
    %c9 = arith.constant 9 : index
    %c0_218 = arith.constant 0 : index
    %302 = vector.load %arg13[%c9, %c0_218] : memref<108x32xf32, #tpu.memory_space<vmem>>, vector<2x32xf32>
    tpu.vector_store %arg13[%c9, %c0_218], %301 {strides = array<i32>} : memref<108x32xf32, #tpu.memory_space<vmem>>, vector<2x32xf32>,
    %c0_219 = arith.constant 0 : index
    %c0_220 = arith.constant 0 : index
    %303 = vector.load %arg13[%c0_219, %c0_220] : memref<108x32xf32, #tpu.memory_space<vmem>>, vector<18x32xf32>
    %304 = arith.truncf %303 : vector<18x32xf32> to vector<18x32xbf16>
    %c2_221 = arith.constant 2 : index
    %c0_222 = arith.constant 0 : index
    %c0_223 = arith.constant 0 : index
    %305 = vector.load %arg3[%c2_221, %c0_222, %c0_223] : memref<4x32x288xbf16, #tpu.memory_space<vmem>>, vector<1x32x288xbf16>
    %306 = vector.shape_cast %305 : vector<1x32x288xbf16> to vector<32x288xbf16>
    %cst_224 = arith.constant dense<0.000000e+00> : vector<18x288xf32>
    %307 = tpu.matmul %304, %306, %cst_224 {dimension_numbers = #tpu.dot_dimension_numbers<[1], [0], [0], [1], [0, 0, 1, 1], [], []>} : vector<18x32xbf16>, vector<32x288xbf16>, vector<18x288xf32> -> vector<18x288xf32>
    %c0_225 = arith.constant 0 : index
    %c0_226 = arith.constant 0 : index
    %308 = vector.load %arg14[%c0_225, %c0_226] : memref<326x288xf32, #tpu.memory_space<vmem>>, vector<18x288xf32>
    tpu.vector_store %arg14[%c0_225, %c0_226], %307 {strides = array<i32>} : memref<326x288xf32, #tpu.memory_space<vmem>>, vector<18x288xf32>,
    %c3 = arith.constant 3 : index
    %c0_227 = arith.constant 0 : index
    %309 = vector.load %arg4[%c3, %c0_227] : memref<5x32xf32, #tpu.memory_space<vmem>>, vector<1x32xf32>
    %c0_228 = arith.constant 0 : index
    %c0_229 = arith.constant 0 : index
    %310 = vector.load %arg14[%c0_228, %c0_229] : memref<326x288xf32, #tpu.memory_space<vmem>>, vector<8x32xf32>
    %311 = vector.broadcast %309 : vector<1x32xf32> to vector<8x32xf32>
    %312 = arith.addf %311, %310 : vector<8x32xf32>
    %c1_230 = arith.constant 1 : index
    %c32_231 = arith.constant 32 : index
    %313 = vector.load %arg14[%c1_230, %c32_231] : memref<326x288xf32, #tpu.memory_space<vmem>>, vector<8x32xf32>
    %314 = arith.addf %312, %313 : vector<8x32xf32>
    %c2_232 = arith.constant 2 : index
    %c64_233 = arith.constant 64 : index
    %315 = vector.load %arg14[%c2_232, %c64_233] : memref<326x288xf32, #tpu.memory_space<vmem>>, vector<8x32xf32>
    %316 = arith.addf %314, %315 : vector<8x32xf32>
    %c4 = arith.constant 4 : index
    %c96_234 = arith.constant 96 : index
    %317 = vector.load %arg14[%c4, %c96_234] : memref<326x288xf32, #tpu.memory_space<vmem>>, vector<8x32xf32>
    %318 = arith.addf %316, %317 : vector<8x32xf32>
    %c5_235 = arith.constant 5 : index
    %c128_236 = arith.constant 128 : index
    %319 = vector.load %arg14[%c5_235, %c128_236] : memref<326x288xf32, #tpu.memory_space<vmem>>, vector<8x32xf32>
    %320 = arith.addf %318, %319 : vector<8x32xf32>
    %c6_237 = arith.constant 6 : index
    %c160_238 = arith.constant 160 : index
    %321 = vector.load %arg14[%c6_237, %c160_238] : memref<326x288xf32, #tpu.memory_space<vmem>>, vector<8x32xf32>
    %322 = arith.addf %320, %321 : vector<8x32xf32>
    %c8_239 = arith.constant 8 : index
    %c192_240 = arith.constant 192 : index
    %323 = vector.load %arg14[%c8_239, %c192_240] : memref<326x288xf32, #tpu.memory_space<vmem>>, vector<8x32xf32>
    %324 = arith.addf %322, %323 : vector<8x32xf32>
    %c9_241 = arith.constant 9 : index
    %c224_242 = arith.constant 224 : index
    %325 = vector.load %arg14[%c9_241, %c224_242] : memref<326x288xf32, #tpu.memory_space<vmem>>, vector<8x32xf32>
    %326 = arith.addf %324, %325 : vector<8x32xf32>
    %c10_243 = arith.constant 10 : index
    %c256_244 = arith.constant 256 : index
    %327 = vector.load %arg14[%c10_243, %c256_244] : memref<326x288xf32, #tpu.memory_space<vmem>>, vector<8x32xf32>
    %328 = arith.addf %326, %327 : vector<8x32xf32>
    %c0_245 = arith.constant 0 : index
    %c3_246 = arith.constant 3 : index
    %329 = vector.load %arg8[%c0_245, %c3_246] : memref<288x5xf32, #tpu.memory_space<vmem>>, vector<8x1xf32>
    %330 = vector.broadcast %329 : vector<8x1xf32> to vector<8x32xf32>
    %331 = arith.mulf %328, %330 : vector<8x32xf32>
    %cst_247 = arith.constant dense<0.000000e+00> : vector<32xf32>
    %332 = vector.multi_reduction <add>, %331, %cst_247 [0] : vector<8x32xf32> to vector<32xf32>
    %333 = vector.shape_cast %332 : vector<32xf32> to vector<1x32xf32>
    %334 = arith.mulf %331, %328 : vector<8x32xf32>
    %cst_248 = arith.constant dense<0.000000e+00> : vector<32xf32>
    %335 = vector.multi_reduction <add>, %334, %cst_248 [0] : vector<8x32xf32> to vector<32xf32>
    %336 = vector.shape_cast %335 : vector<32xf32> to vector<1x32xf32>
    %337 = tpu.concatenate %333, %336 in 0 : vector<1x32xf32>, vector<1x32xf32> -> vector<2x32xf32>
    %c0_249 = arith.constant 0 : index
    %c0_250 = arith.constant 0 : index
    %338 = vector.load %arg7[%c0_249, %c0_250] : memref<32x32xf32, #tpu.memory_space<vmem>>, vector<32x32xf32>
    %cst_251 = arith.constant dense<0.000000e+00> : vector<2x32xf32>
    %339 = tpu.matmul %337, %338, %cst_251 {dimension_numbers = #tpu.dot_dimension_numbers<[1], [0], [0], [1], [0, 0, 1, 1], [], []>} : vector<2x32xf32>, vector<32x32xf32>, vector<2x32xf32> -> vector<2x32xf32>
    %340 = vector.extract_strided_slice %339 {offsets = [0, 0], sizes = [1, 32], strides = [1, 1]} : vector<2x32xf32> to vector<1x32xf32>
    %cst_252 = arith.constant 3.125000e-02 : f32
    %341 = vector.broadcast %cst_252 : f32 to vector<1x32xf32>
    %342 = arith.mulf %340, %341 : vector<1x32xf32>
    %343 = vector.extract_strided_slice %339 {offsets = [1, 0], sizes = [1, 32], strides = [1, 1]} : vector<2x32xf32> to vector<1x32xf32>
    %cst_253 = arith.constant 3.125000e-02 : f32
    %344 = vector.broadcast %cst_253 : f32 to vector<1x32xf32>
    %345 = arith.mulf %343, %344 : vector<1x32xf32>
    %346 = arith.mulf %342, %342 : vector<1x32xf32>
    %347 = arith.subf %345, %346 : vector<1x32xf32>
    %cst_254 = arith.constant 0.000000e+00 : f32
    %348 = vector.broadcast %cst_254 : f32 to vector<1x32xf32>
    %349 = arith.maximumf %347, %348 : vector<1x32xf32>
    %cst_255 = arith.constant 9.99999974E-6 : f32
    %350 = vector.broadcast %cst_255 : f32 to vector<1x32xf32>
    %351 = arith.addf %349, %350 : vector<1x32xf32>
    %352 = math.rsqrt %351 : vector<1x32xf32>
    %c3_256 = arith.constant 3 : index
    %c0_257 = arith.constant 0 : index
    %353 = vector.load %arg5[%c3_256, %c0_257] : memref<5x32xf32, #tpu.memory_space<vmem>>, vector<1x32xf32>
    %354 = arith.mulf %352, %353 : vector<1x32xf32>
    %c3_258 = arith.constant 3 : index
    %c0_259 = arith.constant 0 : index
    %355 = vector.load %arg6[%c3_258, %c0_259] : memref<5x32xf32, #tpu.memory_space<vmem>>, vector<1x32xf32>
    %356 = arith.mulf %342, %354 : vector<1x32xf32>
    %357 = arith.subf %355, %356 : vector<1x32xf32>
    %358 = vector.broadcast %354 : vector<1x32xf32> to vector<8x32xf32>
    %359 = arith.mulf %328, %358 : vector<8x32xf32>
    %360 = vector.broadcast %357 : vector<1x32xf32> to vector<8x32xf32>
    %361 = arith.addf %359, %360 : vector<8x32xf32>
    %cst_260 = arith.constant 0.000000e+00 : f32
    %362 = vector.broadcast %cst_260 : f32 to vector<8x32xf32>
    %363 = arith.maximumf %361, %362 : vector<8x32xf32>
    %c0_261 = arith.constant 0 : index
    %c0_262 = arith.constant 0 : index
    %364 = vector.load %arg12[%c0_261, %c0_262] : memref<288x32xf32, #tpu.memory_space<vmem>>, vector<8x32xf32>
    tpu.vector_store %arg12[%c0_261, %c0_262], %363 {strides = array<i32>} : memref<288x32xf32, #tpu.memory_space<vmem>>, vector<8x32xf32>,
    %cst_263 = arith.constant 0.000000e+00 : f32
    %365 = vector.broadcast %cst_263 : f32 to vector<17x32xf32>
    %c0_264 = arith.constant 0 : index
    %c0_265 = arith.constant 0 : index
    %366 = vector.load %arg13[%c0_264, %c0_265] : memref<108x32xf32, #tpu.memory_space<vmem>>, vector<17x32xf32>
    tpu.vector_store %arg13[%c0_264, %c0_265], %365 {strides = array<i32>} : memref<108x32xf32, #tpu.memory_space<vmem>>, vector<17x32xf32>,
    %c0_266 = arith.constant 0 : index
    %c0_267 = arith.constant 0 : index
    %367 = vector.load %arg12[%c0_266, %c0_267] : memref<288x32xf32, #tpu.memory_space<vmem>>, vector<1x32xf32>
    %c1_268 = arith.constant 1 : index
    %c0_269 = arith.constant 0 : index
    %368 = vector.load %arg12[%c1_268, %c0_269] : memref<288x32xf32, #tpu.memory_space<vmem>>, vector<1x32xf32>
    %369 = arith.maximumf %367, %368 : vector<1x32xf32>
    %c4_270 = arith.constant 4 : index
    %c0_271 = arith.constant 0 : index
    %370 = vector.load %arg12[%c4_270, %c0_271] : memref<288x32xf32, #tpu.memory_space<vmem>>, vector<1x32xf32>
    %c5_272 = arith.constant 5 : index
    %c0_273 = arith.constant 0 : index
    %371 = vector.load %arg12[%c5_272, %c0_273] : memref<288x32xf32, #tpu.memory_space<vmem>>, vector<1x32xf32>
    %372 = arith.maximumf %370, %371 : vector<1x32xf32>
    %373 = arith.maximumf %369, %372 : vector<1x32xf32>
    %c4_274 = arith.constant 4 : index
    %c0_275 = arith.constant 0 : index
    %374 = vector.load %arg13[%c4_274, %c0_275] : memref<108x32xf32, #tpu.memory_space<vmem>>, vector<1x32xf32>
    tpu.vector_store %arg13[%c4_274, %c0_275], %373 {strides = array<i32>} : memref<108x32xf32, #tpu.memory_space<vmem>>, vector<1x32xf32>,
    %c0_276 = arith.constant 0 : index
    %c0_277 = arith.constant 0 : index
    %375 = vector.load %arg13[%c0_276, %c0_277] : memref<108x32xf32, #tpu.memory_space<vmem>>, vector<11x32xf32>
    %376 = arith.truncf %375 : vector<11x32xf32> to vector<11x32xbf16>
    %c3_278 = arith.constant 3 : index
    %c0_279 = arith.constant 0 : index
    %c0_280 = arith.constant 0 : index
    %377 = vector.load %arg3[%c3_278, %c0_279, %c0_280] : memref<4x32x288xbf16, #tpu.memory_space<vmem>>, vector<1x32x288xbf16>
    %378 = vector.shape_cast %377 : vector<1x32x288xbf16> to vector<32x288xbf16>
    %cst_281 = arith.constant dense<0.000000e+00> : vector<11x288xf32>
    %379 = tpu.matmul %376, %378, %cst_281 {dimension_numbers = #tpu.dot_dimension_numbers<[1], [0], [0], [1], [0, 0, 1, 1], [], []>} : vector<11x32xbf16>, vector<32x288xbf16>, vector<11x288xf32> -> vector<11x288xf32>
    %c0_282 = arith.constant 0 : index
    %c0_283 = arith.constant 0 : index
    %380 = vector.load %arg14[%c0_282, %c0_283] : memref<326x288xf32, #tpu.memory_space<vmem>>, vector<11x288xf32>
    tpu.vector_store %arg14[%c0_282, %c0_283], %379 {strides = array<i32>} : memref<326x288xf32, #tpu.memory_space<vmem>>, vector<11x288xf32>,
    %c4_284 = arith.constant 4 : index
    %c0_285 = arith.constant 0 : index
    %381 = vector.load %arg4[%c4_284, %c0_285] : memref<5x32xf32, #tpu.memory_space<vmem>>, vector<1x32xf32>
    %c0_286 = arith.constant 0 : index
    %c0_287 = arith.constant 0 : index
    %382 = vector.load %arg14[%c0_286, %c0_287] : memref<326x288xf32, #tpu.memory_space<vmem>>, vector<3x32xf32>
    %383 = vector.broadcast %381 : vector<1x32xf32> to vector<3x32xf32>
    %384 = arith.addf %383, %382 : vector<3x32xf32>
    %c1_288 = arith.constant 1 : index
    %c32_289 = arith.constant 32 : index
    %385 = vector.load %arg14[%c1_288, %c32_289] : memref<326x288xf32, #tpu.memory_space<vmem>>, vector<3x32xf32>
    %386 = arith.addf %384, %385 : vector<3x32xf32>
    %c2_290 = arith.constant 2 : index
    %c64_291 = arith.constant 64 : index
    %387 = vector.load %arg14[%c2_290, %c64_291] : memref<326x288xf32, #tpu.memory_space<vmem>>, vector<3x32xf32>
    %388 = arith.addf %386, %387 : vector<3x32xf32>
    %c3_292 = arith.constant 3 : index
    %c96_293 = arith.constant 96 : index
    %389 = vector.load %arg14[%c3_292, %c96_293] : memref<326x288xf32, #tpu.memory_space<vmem>>, vector<3x32xf32>
    %390 = arith.addf %388, %389 : vector<3x32xf32>
    %c4_294 = arith.constant 4 : index
    %c128_295 = arith.constant 128 : index
    %391 = vector.load %arg14[%c4_294, %c128_295] : memref<326x288xf32, #tpu.memory_space<vmem>>, vector<3x32xf32>
    %392 = arith.addf %390, %391 : vector<3x32xf32>
    %c5_296 = arith.constant 5 : index
    %c160_297 = arith.constant 160 : index
    %393 = vector.load %arg14[%c5_296, %c160_297] : memref<326x288xf32, #tpu.memory_space<vmem>>, vector<3x32xf32>
    %394 = arith.addf %392, %393 : vector<3x32xf32>
    %c6_298 = arith.constant 6 : index
    %c192_299 = arith.constant 192 : index
    %395 = vector.load %arg14[%c6_298, %c192_299] : memref<326x288xf32, #tpu.memory_space<vmem>>, vector<3x32xf32>
    %396 = arith.addf %394, %395 : vector<3x32xf32>
    %c7_300 = arith.constant 7 : index
    %c224_301 = arith.constant 224 : index
    %397 = vector.load %arg14[%c7_300, %c224_301] : memref<326x288xf32, #tpu.memory_space<vmem>>, vector<3x32xf32>
    %398 = arith.addf %396, %397 : vector<3x32xf32>
    %c8_302 = arith.constant 8 : index
    %c256_303 = arith.constant 256 : index
    %399 = vector.load %arg14[%c8_302, %c256_303] : memref<326x288xf32, #tpu.memory_space<vmem>>, vector<3x32xf32>
    %400 = arith.addf %398, %399 : vector<3x32xf32>
    %c0_304 = arith.constant 0 : index
    %c4_305 = arith.constant 4 : index
    %401 = vector.load %arg8[%c0_304, %c4_305] : memref<288x5xf32, #tpu.memory_space<vmem>>, vector<3x1xf32>
    %402 = vector.broadcast %401 : vector<3x1xf32> to vector<3x32xf32>
    %403 = arith.mulf %400, %402 : vector<3x32xf32>
    %cst_306 = arith.constant dense<0.000000e+00> : vector<32xf32>
    %404 = vector.multi_reduction <add>, %403, %cst_306 [0] : vector<3x32xf32> to vector<32xf32>
    %405 = vector.shape_cast %404 : vector<32xf32> to vector<1x32xf32>
    %406 = arith.mulf %403, %400 : vector<3x32xf32>
    %cst_307 = arith.constant dense<0.000000e+00> : vector<32xf32>
    %407 = vector.multi_reduction <add>, %406, %cst_307 [0] : vector<3x32xf32> to vector<32xf32>
    %408 = vector.shape_cast %407 : vector<32xf32> to vector<1x32xf32>
    %409 = tpu.concatenate %405, %408 in 0 : vector<1x32xf32>, vector<1x32xf32> -> vector<2x32xf32>
    %c0_308 = arith.constant 0 : index
    %c0_309 = arith.constant 0 : index
    %410 = vector.load %arg7[%c0_308, %c0_309] : memref<32x32xf32, #tpu.memory_space<vmem>>, vector<32x32xf32>
    %cst_310 = arith.constant dense<0.000000e+00> : vector<2x32xf32>
    %411 = tpu.matmul %409, %410, %cst_310 {dimension_numbers = #tpu.dot_dimension_numbers<[1], [0], [0], [1], [0, 0, 1, 1], [], []>} : vector<2x32xf32>, vector<32x32xf32>, vector<2x32xf32> -> vector<2x32xf32>
    %412 = vector.extract_strided_slice %411 {offsets = [0, 0], sizes = [1, 32], strides = [1, 1]} : vector<2x32xf32> to vector<1x32xf32>
    %cst_311 = arith.constant 1.250000e-01 : f32
    %413 = vector.broadcast %cst_311 : f32 to vector<1x32xf32>
    %414 = arith.mulf %412, %413 : vector<1x32xf32>
    %415 = vector.extract_strided_slice %411 {offsets = [1, 0], sizes = [1, 32], strides = [1, 1]} : vector<2x32xf32> to vector<1x32xf32>
    %cst_312 = arith.constant 1.250000e-01 : f32
    %416 = vector.broadcast %cst_312 : f32 to vector<1x32xf32>
    %417 = arith.mulf %415, %416 : vector<1x32xf32>
    %418 = arith.mulf %414, %414 : vector<1x32xf32>
    %419 = arith.subf %417, %418 : vector<1x32xf32>
    %cst_313 = arith.constant 0.000000e+00 : f32
    %420 = vector.broadcast %cst_313 : f32 to vector<1x32xf32>
    %421 = arith.maximumf %419, %420 : vector<1x32xf32>
    %cst_314 = arith.constant 9.99999974E-6 : f32
    %422 = vector.broadcast %cst_314 : f32 to vector<1x32xf32>
    %423 = arith.addf %421, %422 : vector<1x32xf32>
    %424 = math.rsqrt %423 : vector<1x32xf32>
    %c4_315 = arith.constant 4 : index
    %c0_316 = arith.constant 0 : index
    %425 = vector.load %arg5[%c4_315, %c0_316] : memref<5x32xf32, #tpu.memory_space<vmem>>, vector<1x32xf32>
    %426 = arith.mulf %424, %425 : vector<1x32xf32>
    %c4_317 = arith.constant 4 : index
    %c0_318 = arith.constant 0 : index
    %427 = vector.load %arg6[%c4_317, %c0_318] : memref<5x32xf32, #tpu.memory_space<vmem>>, vector<1x32xf32>
    %428 = arith.mulf %414, %426 : vector<1x32xf32>
    %429 = arith.subf %427, %428 : vector<1x32xf32>
    %430 = vector.broadcast %426 : vector<1x32xf32> to vector<3x32xf32>
    %431 = arith.mulf %400, %430 : vector<3x32xf32>
    %432 = vector.broadcast %429 : vector<1x32xf32> to vector<3x32xf32>
    %433 = arith.addf %431, %432 : vector<3x32xf32>
    %cst_319 = arith.constant 0.000000e+00 : f32
    %434 = vector.broadcast %cst_319 : f32 to vector<3x32xf32>
    %435 = arith.maximumf %433, %434 : vector<3x32xf32>
    %c0_320 = arith.constant 0 : index
    %c0_321 = arith.constant 0 : index
    %436 = vector.load %arg12[%c0_320, %c0_321] : memref<288x32xf32, #tpu.memory_space<vmem>>, vector<3x32xf32>
    tpu.vector_store %arg12[%c0_320, %c0_321], %435 {strides = array<i32>} : memref<288x32xf32, #tpu.memory_space<vmem>>, vector<3x32xf32>,
    %c0_322 = arith.constant 0 : index
    %c0_323 = arith.constant 0 : index
    %437 = vector.load %arg12[%c0_322, %c0_323] : memref<288x32xf32, #tpu.memory_space<vmem>>, vector<3x32xf32>
    %c0_324 = arith.constant 0 : index
    %c0_325 = arith.constant 0 : index
    %438 = vector.load %arg9[%c0_324, %c0_325] : memref<32x2xf32, #tpu.memory_space<vmem>>, vector<32x2xf32>
    %cst_326 = arith.constant dense<0.000000e+00> : vector<3x2xf32>
    %439 = tpu.matmul %437, %438, %cst_326 {dimension_numbers = #tpu.dot_dimension_numbers<[1], [0], [0], [1], [0, 0, 1, 1], [], []>} : vector<3x32xf32>, vector<32x2xf32>, vector<3x2xf32> -> vector<3x2xf32>
    %c0_327 = arith.constant 0 : index
    %c0_328 = arith.constant 0 : index
    %440 = vector.load %arg10[%c0_327, %c0_328] : memref<1x2xf32, #tpu.memory_space<vmem>>, vector<1x2xf32>
    %441 = vector.broadcast %440 : vector<1x2xf32> to vector<3x2xf32>
    %442 = arith.addf %439, %441 : vector<3x2xf32>
    %443 = vector.extract_strided_slice %442 {offsets = [0, 0], sizes = [1, 2], strides = [1, 1]} : vector<3x2xf32> to vector<1x2xf32>
    %c0_329 = arith.constant 0 : index
    %c0_330 = arith.constant 0 : index
    %c0_331 = arith.constant 0 : index
    %444 = vector.load %arg11[%c0_329, %c0_330, %c0_331] : memref<1x1x2xf32, #tpu.memory_space<vmem>>, vector<1x1x2xf32>
    %445 = vector.shape_cast %444 : vector<1x1x2xf32> to vector<1x2xf32>
    %446 = vector.shape_cast %443 : vector<1x2xf32> to vector<1x1x2xf32>
    tpu.vector_store %arg11[%c0_329, %c0_330, %c0_331], %446 {strides = array<i32>} : memref<1x1x2xf32, #tpu.memory_space<vmem>>, vector<1x1x2xf32>,
    return
  }
  func.func @transform_0(%arg0: i32) -> (i32, i32, i32) {
    %c0_i32 = arith.constant 0 : i32
    %c0_i32_0 = arith.constant 0 : i32
    %c0_i32_1 = arith.constant 0 : i32
    return %arg0, %c0_i32, %c0_i32_0 : i32, i32, i32
  }
  func.func @transform_1(%arg0: i32) -> (i32, i32) {
    %c0_i32 = arith.constant 0 : i32
    %c0_i32_0 = arith.constant 0 : i32
    %c0_i32_1 = arith.constant 0 : i32
    return %c0_i32, %c0_i32_0 : i32, i32
  }
  func.func @transform_2(%arg0: i32) -> (i32, i32, i32) {
    %c0_i32 = arith.constant 0 : i32
    %c0_i32_0 = arith.constant 0 : i32
    %c0_i32_1 = arith.constant 0 : i32
    %c0_i32_2 = arith.constant 0 : i32
    return %c0_i32, %c0_i32_0, %c0_i32_1 : i32, i32, i32
  }
  func.func @transform_3(%arg0: i32) -> (i32, i32) {
    %c0_i32 = arith.constant 0 : i32
    %c0_i32_0 = arith.constant 0 : i32
    %c0_i32_1 = arith.constant 0 : i32
    return %c0_i32, %c0_i32_0 : i32, i32
  }
  func.func @transform_4(%arg0: i32) -> (i32, i32) {
    %c0_i32 = arith.constant 0 : i32
    %c0_i32_0 = arith.constant 0 : i32
    %c0_i32_1 = arith.constant 0 : i32
    return %c0_i32, %c0_i32_0 : i32, i32
  }
  func.func @transform_5(%arg0: i32) -> (i32, i32) {
    %c0_i32 = arith.constant 0 : i32
    %c0_i32_0 = arith.constant 0 : i32
    %c0_i32_1 = arith.constant 0 : i32
    return %c0_i32, %c0_i32_0 : i32, i32
  }
  func.func @transform_6(%arg0: i32) -> (i32, i32) {
    %c0_i32 = arith.constant 0 : i32
    %c0_i32_0 = arith.constant 0 : i32
    %c0_i32_1 = arith.constant 0 : i32
    return %c0_i32, %c0_i32_0 : i32, i32
  }
  func.func @transform_7(%arg0: i32) -> (i32, i32) {
    %c0_i32 = arith.constant 0 : i32
    %c0_i32_0 = arith.constant 0 : i32
    %c0_i32_1 = arith.constant 0 : i32
    return %c0_i32, %c0_i32_0 : i32, i32
  }
  func.func @transform_8(%arg0: i32) -> (i32, i32) {
    %c0_i32 = arith.constant 0 : i32
    %c0_i32_0 = arith.constant 0 : i32
    %c0_i32_1 = arith.constant 0 : i32
    return %c0_i32, %c0_i32_0 : i32, i32
  }
  func.func @transform_9(%arg0: i32) -> (i32, i32) {
    %c0_i32 = arith.constant 0 : i32
    %c0_i32_0 = arith.constant 0 : i32
    %c0_i32_1 = arith.constant 0 : i32
    return %c0_i32, %c0_i32_0 : i32, i32
  }
  func.func @transform_10(%arg0: i32) -> (i32, i32, i32) {
    %c0_i32 = arith.constant 0 : i32
    %c0_i32_0 = arith.constant 0 : i32
    %c0_i32_1 = arith.constant 0 : i32
    return %arg0, %c0_i32, %c0_i32_0 : i32, i32, i32
  }
}

</mosaic_0001>

<bundles_post_ra>
// kernel: tpu_custom_call.1
= control target key start
LH: loop header
LB: loop body
LE: loop exit
PB: predicated region body
PF: predicated region fallthrough
CT: control target
= control target key end

     0   :  { %s11304_s0 = inlined_call_operand.vmem [shape: bf16[2,332,164], index: 0, kind: input, shape index: {}]   ;;  %s11305_s1 = inlined_call_operand.vmem [shape: bf16[164,288], index: 1, kind: input, shape index: {}]   ;;  %s11306_s2 = inlined_call_operand.vmem [shape: bf16[4,32,288], index: 2, kind: input, shape index: {}]   ;;  %s11307_s3 = inlined_call_operand.vmem [shape: f32[5,32], index: 3, kind: input, shape index: {}]   ;;  %s11308_s4 = inlined_call_operand.vmem [shape: f32[5,32], index: 4, kind: input, shape index: {}]   ;;  %s11309_s5 = inlined_call_operand.vmem [shape: f32[5,32], index: 5, kind: input, shape index: {}]   ;;  %s11310_s6 = inlined_call_operand.vmem [shape: f32[32,32], index: 6, kind: input, shape index: {}]   ;;  %s11311_s7 = inlined_call_operand.vmem [shape: f32[288,5], index: 7, kind: input, shape index: {}]   ;;  %s11312_s8 = inlined_call_operand.vmem [shape: f32[32,2], index: 8, kind: input, shape index: {}]   ;;  %s11313_s9 = inlined_call_operand.vmem [shape: f32[1,2], index: 9, kind: input, shape index: {}]   ;;  %s11314_s10 = inlined_call_operand.hbm [shape: f32[2,1,2], index: 10, kind: output, shape index: {}]  }
   0x1   :  { %11394 = sst [smem:[#allocation131_spill]] %s11304_s0 }
   0x2   :  { %15 = vsyncpa [#allocation6], 0 }
   0x3   :  { %17 = vsyncpa [#allocation6 + $0x1], 0  ;;  %s7392_s13 = smov 0   ;;  %s7394_s14 = smov 0  }
   0x4   :  { %s7396_s15 = smov 0   ;;  %s7398_s16 = smov 0  }
   0x5 LB: > { %s7413_s17 = sadd.s32 4294967295, %s7323_s16   ;;  %s6599_s18 = sadd.s32 4294967294, %s7323_s16   ;;  %s7323_s16 = sphi %s7398_s16, %s11871_s16   ;;  %s7319_s15 = sphi %s7396_s15, %s11870_s15   ;;  %s7315_s14 = sphi %s7394_s14, %s11869_s14   ;;  %s7311_s13 = sphi %s7392_s13, %s11868_s13  }
   0x6   : > { %s7417_s19 = sadd.s32 1, %s7323_s16   ;;  %s245_s20 = sadd.s32 1, %s7319_s15 }
   0x7   : > { %s242_s21 = ssub.s32 %s7323_s16, %s7417_s19  ;;  %p255_p0 = scmp.ne.s32.totalorder %s7319_s15, %s7315_s14 }
   0x8   : > { %p243_p1 = scmp.eq.s32.totalorder %s242_s21, 0  ;;  %p256_p2 = scmp.eq.s32.totalorder %s7413_s17, 1 }
   0x9   : > { %p261_p3 = scmp.ne.s32.totalorder %s7315_s14, %s7311_s13  ;;  %p262_p4 = scmp.eq.s32.totalorder %s6599_s18, 1 }
   0xa   : > { %s7428_s22 = scalar_select %p243_p1, %s7319_s15, %s245_s20  }
   0xb   : > { %p7430_p5 = por %p256_p2, %p255_p0  ;;  %p7434_p6 = por %p262_p4, %p261_p3 }
   0xc   : > { %p6602_p7 = scmp.ge.s32.totalorder %s7323_s16, 1  ;;  %p315_p8 = scmp.lt.s32.totalorder %s7323_s16, 3 }
   0xe   : > { %p316_p9 = pnand %p6602_p7, %p315_p8 }
  0x10   : > { %319 = sbr.rel (%p316_p9) target bundleno = 4134 (0x1026), region = 60 }
  0x17   : > { %v7087_v0 = vld [vmem:[%s11305_s1 + $0x4] ss:$12 sps:$4 sm:$0xff]   ;;  %p352_p10 = scmp.lt.s32.totalorder %s7413_s17, 1  ;;  %v7089_v1 = vld [vmem:[%s11305_s1] ss:$12 sps:$4 sm:$0xff]   ;;  %v11316_v3 = vmov 0  }
  0x18   : > { %869 = vmatprep.subr.bf16.mxu0 %v7087_v0  ;;  %v7090_v2 = vld [vmem:[%s11305_s1 + $0x1c] ss:$12 sps:$4 sm:$0xff]   ;;  %1110 = vmatprep.subr.bf16.mxu1 %v11316_v3  ;;  %v7092_v4 = vld [vmem:[%s11305_s1 + $0x18] ss:$12 sps:$4 sm:$0xff]   ;;  %v7093_v5 = vld [vmem:[%s11305_s1 + $0x34] ss:$12 sps:$4 sm:$0xff]  }
  0x19   : > { %870 = vmatpush1.bf16.msra.mxu0 %v7089_v1  ;;  %s353_s18 = scalar_select %p352_p10, %s7413_s17, 1  ;;  %7080 = vset.pattern.permute.xlu0 %v11316_v3  ;;  %v7095_v6 = vld [vmem:[%s11305_s1 + $0x30] ss:$12 sps:$4 sm:$0xff]   ;;  %v7096_v7 = vld [vmem:[%s11305_s1 + $0x4c] ss:$12 sps:$4 sm:$0xff]   ;;  %vm795_vm0 = vcmask 293888  }
  0x1a   : > { %871 = vmatprep.subr.bf16.mxu0 %v7090_v2  ;;  %7079 = vset.pattern.permute.xlu1 %v11316_v3  ;;  %v7098_v8 = vld [vmem:[%s11305_s1 + $0x48] ss:$12 sps:$4 sm:$0xff]   ;;  %s11397_s0 = sld [smem:[#allocation131_spill]]  ;;  %v7099_v9 = vld [vmem:[%s11305_s1 + $0x64] ss:$12 sps:$4 sm:$0xff]   ;;  %vm859_vm1 = vcmask 1041408  }
  0x1b   : > { %s7028_s27 = smul.u32 336, %s353_s18  ;;  %v7101_v11 = vld [vmem:[%s11305_s1 + $0x60] ss:$12 sps:$4 sm:$0xff]   ;;  %v7102_v12 = vld [vmem:[%s11305_s1 + $0x7c] ss:$12 sps:$4 sm:$0xff]   ;;  %v3196_v29 = vld [vmem:[%s11311_s7 + $0x10] sm:$0xff] }
  0x1c   : > { %v7104_v13 = vld [vmem:[%s11305_s1 + $0x78] ss:$12 sps:$4 sm:$0xff]   ;;  %v7105_v14 = vld [vmem:[%s11305_s1 + $0x94] ss:$12 sps:$4 sm:$0xff]   ;;  %v7107_v15 = vld [vmem:[%s11305_s1 + $0x90] ss:$12 sps:$4 sm:$0xff]  }
  0x1d   : > { %872 = vmatpush1.bf16.msra.mxu0 %v7092_v4  ;;  %v7140_v16 = vld [vmem:[%s11305_s1 + $0x8] ss:$12 sps:$4 sm:$0xff]   ;;  %v7108_v17 = vld [vmem:[%s11305_s1 + $0xac] ss:$12 sps:$4 sm:$0xff]   ;;  %v7111_v20 = vld [vmem:[%s11305_s1 + $0xc4] ss:$12 sps:$4 sm:$0xff]  }
  0x1e   : > { %873 = vmatprep.subr.bf16.mxu0 %v7093_v5  ;;  %1111 = vmatpush1.bf16.msra.mxu1 %v7140_v16  ;;  %v7141_v18 = vld [vmem:[%s11305_s1 + $0x20] ss:$12 sps:$4 sm:$0xff]   ;;  %v7110_v19 = vld [vmem:[%s11305_s1 + $0xa8] ss:$12 sps:$4 sm:$0xff]   ;;  %v7142_v21 = vld [vmem:[%s11305_s1 + $0x38] ss:$12 sps:$4 sm:$0xff]  }
  0x1f   : > { %1112 = vmatprep.subr.bf16.mxu1 %v11316_v3  ;;  %v7113_v22 = vld [vmem:[%s11305_s1 + $0xc0] ss:$12 sps:$4 sm:$0xff]   ;;  %v7114_v23 = vld [vmem:[%s11305_s1 + $0xdc] ss:$12 sps:$4 sm:$0xff]   ;;  %v439_v24 = vld [vmem:[%s11305_s1 + $0xf0] sm:$0x33] }
  0x20   : > { %s7472_s21 = scalar_lea.vmem %s11397_s0, %s7028_s27  ;;  %v7143_v25 = vld [vmem:[%s11305_s1 + $0x50] ss:$12 sps:$4 sm:$0xff]   ;;  %v3195_v26 = vld [vmem:[%s11311_s7 + $0x8] sm:$0xff]  ;;  %v3194_v27 = vld [vmem:[%s11311_s7] sm:$0xff]  ;;  %v6677_v30 = vcombine.high %v439_v24, %v439_v24  ;;  %v6676_v31 = vcombine.low %v439_v24, %v439_v24  ;;  %vm1773_vm2 = vcmask 1045504   ;;  %vm1551_vm3 = vcmask 1046528  }
  0x21   : > { %874 = vmatpush1.bf16.msra.mxu0 %v7095_v6  ;;  %v7121_v10 = vld [vmem:[%s7472_s21 + $0x4] ss:$8 sps:$4 sm:$0xff]   ;;  %3237 = vperm.xlu0 %7080, %v3195_v26   ;;  %v7144_v33 = vld [vmem:[%s11305_s1 + $0x68] ss:$12 sps:$4 sm:$0xff]   ;;  %v3197_v34 = vld [vmem:[%s11311_s7 + $0x18] sm:$0xff]  ;;  %s11390_s18 = smov 64  }
  0x22   : > { %875 = vmatprep.subr.bf16.mxu0 %v7096_v7  ;;  %6680 = vmatprep.mubr.msk.bf16.mxu0 %vm795_vm0, %v7121_v10  ;;  %v7116_v28 = vld [vmem:[%s11305_s1 + $0xd8] ss:$12 sps:$4 sm:$0xff]   ;;  %v861_v35 = vsel %vm859_vm1, %v6676_v31, 0  ;;  %v3200_v36 = vld [vmem:[%s11311_s7 + $0x30] sm:$0xff]  ;;  %v7145_v37 = vld [vmem:[%s11305_s1 + $0x80] ss:$12 sps:$4 sm:$0xff]  }
  0x23   : > { %6701 = vmatprep.mubr.msk.bf16.mxu1 %vm795_vm0, %v7121_v10  ;;  %1113 = vmatpush1.bf16.msra.mxu1 %v7141_v18  ;;  %v3198_v32 = vld [vmem:[%s11311_s7 + $0x20] sm:$0xff]  ;;  %v7122_v39 = vld [vmem:[%s7472_s21 + $0x14] ss:$8 sps:$4 sm:$0xff]   ;;  %v3199_v40 = vld [vmem:[%s11311_s7 + $0x28] sm:$0xff]  ;;  %s11392_s28 = smov 96   ;;  %vm2375_vm4 = vcmask 1043456  }
  0x24   : > { %1114 = vmatprep.subr.bf16.mxu1 %v11316_v3  ;;  %3232 = vperm.xlu1 %7079, %v3194_v27   ;;  %v7119_v38 = vld [vmem:[%s7472_s21] ss:$8 sps:$4 sm:$0xff]   ;;  %v7149_v41 = vld [vmem:[%s11305_s1 + $0x98] ss:$12 sps:$4 sm:$0xff]   ;;  %v7150_v43 = vld [vmem:[%s11305_s1 + $0xb0] ss:$12 sps:$4 sm:$0xff]  }
  0x25   : > { %876 = vmatpush1.bf16.msra.mxu0 %v7098_v8  ;;  %3242 = vperm.xlu0 %7080, %v3196_v29   ;;  %v3202_v42 = vld [vmem:[%s11311_s7 + $0x40] sm:$0xff]  ;;  %v3201_v44 = vld [vmem:[%s11311_s7 + $0x38] sm:$0xff]  ;;  %v3204_v46 = vld [vmem:[%s11311_s7 + $0x50] sm:$0xff]  ;;  %vm2225_vm5 = vcmask 1044480   ;;  %s11388_s29 = smov 32   ;;  %vm1312_vm6 = vcmask 261120  }
  0x26   : > { %877 = vmatprep.subr.bf16.mxu0 %v7099_v9  ;;  %v7124_v45 = vld [vmem:[%s7472_s21 + $0x10] ss:$8 sps:$4 sm:$0xff]   ;;  %v7125_v47 = vld [vmem:[%s7472_s21 + $0x24] ss:$8 sps:$4 sm:$0xff]   ;;  %v7151_v49 = vld [vmem:[%s11305_s1 + $0xc8] ss:$12 sps:$4 sm:$0xff]  }
  0x27   : > { %1115 = vmatpush1.bf16.msra.mxu1 %v7142_v21  ;;  %v3203_v48 = vld [vmem:[%s11311_s7 + $0x48] sm:$0xff]  ;;  %v3206_v50 = vld [vmem:[%s11311_s7 + $0x60] sm:$0xff]  ;;  %v3205_v51 = vld [vmem:[%s11311_s7 + $0x58] sm:$0xff]  ;;  %vm2757_vm7 = vcmask 1042432   ;;  %vm1433_vm8 = vcmask 259072   ;;  %vm7330_vm9 = vmmov 0  }
  0x28   : > { %1116 = vmatprep.subr.bf16.mxu1 %v11316_v3  ;;  %3252 = vperm.xlu1 %7079, %v3198_v32   ;;  %v7152_v52 = vld [vmem:[%s11305_s1 + $0xe0] ss:$12 sps:$4 sm:$0xff]   ;;  %v3208_v53 = vld [vmem:[%s11311_s7 + $0x70] sm:$0xff]  ;;  %v7153_v55 = vld [vmem:[%s11305_s1 + $0xf8] ss:$0 sps:$4 sm:$0x33]  }
  0x29   : > { %878 = vmatpush1.bf16.msra.mxu0 %v7101_v11  ;;  %3247 = vperm.xlu0 %7080, %v3197_v34   ;;  %v7127_v54 = vld [vmem:[%s7472_s21 + $0x20] ss:$8 sps:$4 sm:$0xff]   ;;  %v7128_v56 = vld [vmem:[%s7472_s21 + $0x34] ss:$8 sps:$4 sm:$0xff]   ;;  %v867_v59 = vsel %vm859_vm1, %v7153_v55, 0  ;;  %vm3636_vm10 = vcmask 1040384  }
  0x2a   : > { %879 = vmatprep.subr.bf16.mxu0 %v7102_v12  ;;  %v3207_v57 = vld [vmem:[%s11311_s7 + $0x68] sm:$0xff]  ;;  %v3210_v58 = vld [vmem:[%s11311_s7 + $0x80] sm:$0xff]  ;;  %v3209_v60 = vld [vmem:[%s11311_s7 + $0x78] sm:$0xff]  ;;  %vm3900_vm11 = vcmask 257024   ;;  %s11865_s25 = smov 64   ;;  %s11866_s26 = smov 32  }
  0x2b   : > { %1117 = vmatpush1.bf16.msra.mxu1 %v7143_v25  ;;  %v3212_v61 = vld [vmem:[%s11311_s7 + $0x90] sm:$0xff]  ;;  %v7131_v63 = vld [vmem:[%s7472_s21 + $0x44] ss:$8 sps:$4 sm:$0xff]   ;;  %v3213_v2 = vld [vmem:[%s11311_s7 + $0x98] sm:$0xff]  ;;  %vm6100_vm12 = vcmask 253952   ;;  %vm5708_vm13 = vcmask 254976  }
  0x2c   : > { %1118 = vmatprep.subr.bf16.mxu1 %v11316_v3  ;;  %3262 = vperm.xlu1 %7079, %v3200_v36   ;;  %v7130_v62 = vld [vmem:[%s7472_s21 + $0x30] ss:$8 sps:$4 sm:$0xff]   ;;  %v3211_v0 = vld [vmem:[%s11311_s7 + $0x88] sm:$0xff]  ;;  %v3214_v1 = vld [vmem:[%s11311_s7 + $0xa0] sm:$0xff]  ;;  %vm6246_vm14 = vcmask 256000   ;;  %s11867_s27 = smov 96  }
  0x2d   : > { %880 = vmatpush1.bf16.msra.mxu0 %v7104_v13  ;;  %3257 = vperm.xlu0 %7080, %v3199_v40   ;;  %v3216_v4 = vld [vmem:[%s11311_s7 + $0xb0] sm:$0xff]  ;;  %v7133_v5 = vld [vmem:[%s7472_s21 + $0x40] ss:$8 sps:$4 sm:$0xff]   ;;  %v3217_v9 = vld [vmem:[%s11311_s7 + $0xb8] sm:$0xff]  ;;  %s6808_s0 = sshll.u32 %s7413_s17, 4  ;;  %vm6529_vm15 = vcmask 8192  }
  0x2e   : > { %881 = vmatprep.subr.bf16.mxu0 %v7105_v14  ;;  %v7134_v6 = vld [vmem:[%s7472_s21 + $0x54] ss:$8 sps:$4 sm:$0xff]   ;;  %v3215_v7 = vld [vmem:[%s11311_s7 + $0xa8] sm:$0xff]  ;;  %v3218_v8 = vld [vmem:[%s11311_s7 + $0xc0] sm:$0xff]  ;;  %s7336_s17 = smov [#allocation5]  }
  0x2f   : > { %1119 = vmatpush1.bf16.msra.mxu1 %v7144_v33  ;;  %v3220_v10 = vld [vmem:[%s11311_s7 + $0xd0] sm:$0xff]  ;;  %v7137_v12 = vld [vmem:[%s7472_s21 + $0x64] ss:$8 sps:$4 sm:$0xff]   ;;  %v7139_v14 = vld [vmem:[%s7472_s21 + $0x60] ss:$8 sps:$4 sm:$0xff]   ;;  %s7265_s12 = sshll.u32 %s7336_s17, 4  ;;  %s7266_s12 = int_to_ptr.vmem [resolvable:$false] %s7265_s12 }
  0x30   : > { %1120 = vmatprep.subr.bf16.mxu1 %v11316_v3  ;;  %3272 = vperm.xlu1 %7079, %v3202_v42   ;;  %v7136_v11 = vld [vmem:[%s7472_s21 + $0x50] ss:$8 sps:$4 sm:$0xff]   ;;  %v3219_v13 = vld [vmem:[%s11311_s7 + $0xc8] sm:$0xff]  ;;  %v7169_v27 = vld [vmem:[%s7472_s21 + $0xd4] ss:$8 sps:$4 sm:$0xff]  }
  0x31   : > { %882 = vmatpush1.bf16.msra.mxu0 %v7107_v15  ;;  %3267 = vperm.xlu0 %7080, %v3201_v44   ;;  %v7146_v15 = vld [vmem:[%s7472_s21 + $0x74] ss:$8 sps:$4 sm:$0xff]   ;;  %v7148_v16 = vld [vmem:[%s7472_s21 + $0x70] ss:$8 sps:$4 sm:$0xff]   ;;  %v7156_v18 = vld [vmem:[%s7472_s21 + $0x80] ss:$8 sps:$4 sm:$0xff]  }
  0x32   : > { %883 = vmatprep.subr.bf16.mxu0 %v7108_v17  ;;  %v7154_v17 = vld [vmem:[%s7472_s21 + $0x84] ss:$8 sps:$4 sm:$0xff]   ;;  %v7165_v24 = vld [vmem:[%s7472_s21 + $0xb0] ss:$8 sps:$4 sm:$0xff]   ;;  %v7168_v26 = vld [vmem:[%s7472_s21 + $0xc0] ss:$8 sps:$4 sm:$0xff]  }
  0x33   : > { %1121 = vmatpush1.bf16.msra.mxu1 %v7145_v37  ;;  %v7160_v21 = vld [vmem:[%s7472_s21 + $0xa4] ss:$8 sps:$4 sm:$0xff]   ;;  %v7175_v31 = vld [vmem:[%s7472_s21 + $0xf4] ss:$8 sps:$4 sm:$0xff]   ;;  %v7177_v32 = vld [vmem:[%s7472_s21 + $0xf0] ss:$8 sps:$4 sm:$0xff]  }
  0x34   : > { %1122 = vmatprep.subr.bf16.mxu1 %v11316_v3  ;;  %3282 = vperm.xlu1 %7079, %v3204_v46   ;;  %v7166_v25 = vld [vmem:[%s7472_s21 + $0xc4] ss:$8 sps:$4 sm:$0xff]   ;;  %v7180_v34 = vld [vmem:[%s7472_s21 + $0x100] ss:$8 sps:$4 sm:$0xff]   ;;  %v7183_v36 = vld [vmem:[%s7472_s21 + $0x110] ss:$8 sps:$4 sm:$0xff]  }
  0x35   : > { %884 = vmatpush1.bf16.msra.mxu0 %v7110_v19  ;;  %3277 = vperm.xlu0 %7080, %v3203_v48   ;;  %v7157_v19 = vld [vmem:[%s7472_s21 + $0x94] ss:$8 sps:$4 sm:$0xff]   ;;  %v7172_v29 = vld [vmem:[%s7472_s21 + $0xe4] ss:$8 sps:$4 sm:$0xff]  }
  0x36   : > { %885 = vmatprep.subr.bf16.mxu0 %v7111_v20  ;;  %v7159_v20 = vld [vmem:[%s7472_s21 + $0x90] ss:$8 sps:$4 sm:$0xff]   ;;  %v7178_v33 = vld [vmem:[%s7472_s21 + $0x104] ss:$8 sps:$4 sm:$0xff]  }
  0x37   : > { %1123 = vmatpush1.bf16.msra.mxu1 %v7149_v41 }
  0x38   : > { %1124 = vmatprep.subr.bf16.mxu1 %v11316_v3  ;;  %3292 = vperm.xlu1 %7079, %v3206_v50  }
  0x39   : > { %886 = vmatpush1.bf16.msra.mxu0 %v7113_v22  ;;  %3287 = vperm.xlu0 %7080, %v3205_v51   ;;  %v7162_v22 = vld [vmem:[%s7472_s21 + $0xa0] ss:$8 sps:$4 sm:$0xff]  }
  0x3a   : > { %887 = vmatprep.subr.bf16.mxu0 %v7114_v23  ;;  %v7163_v23 = vld [vmem:[%s7472_s21 + $0xb4] ss:$8 sps:$4 sm:$0xff]  }
  0x3b   : > { %1125 = vmatpush1.bf16.msra.mxu1 %v7150_v43 }
  0x3c   : > { %1126 = vmatprep.subr.bf16.mxu1 %v11316_v3  ;;  %3302 = vperm.xlu1 %7079, %v3208_v53  }
  0x3d   : > { %888 = vmatpush1.bf16.msra.mxu0 %v7116_v28  ;;  %3297 = vperm.xlu0 %7080, %v3207_v57   ;;  %v7171_v28 = vld [vmem:[%s7472_s21 + $0xd0] ss:$8 sps:$4 sm:$0xff]  }
  0x3e   : > { %6679 = vmatprep.subr.msk.bf16.mxu0 %vm859_vm1, %v6677_v30  ;;  %v7174_v30 = vld [vmem:[%s7472_s21 + $0xe0] ss:$8 sps:$4 sm:$0xff]  }
  0x3f   : > { %1127 = vmatpush1.bf16.msra.mxu1 %v7151_v49 }
  0x40   : > { %1128 = vmatprep.subr.bf16.mxu1 %v11316_v3  ;;  %3312 = vperm.xlu1 %7079, %v3210_v58  }
  0x41   : > { %890 = vmatpush1.bf16.msra.mxu0 %v861_v35  ;;  %3307 = vperm.xlu0 %7080, %v3209_v60   ;;  %v7181_v35 = vld [vmem:[%s7472_s21 + $0x114] ss:$8 sps:$4 sm:$0xff]  }
  0x43   : > { %1129 = vmatpush1.bf16.msra.mxu1 %v7152_v52 }
  0x44   : > { %902 = vmatmul.mubr.bf16.vlgmr.msra.gmra.mrb[0].mxu0 %v7119_v38  ;;  %1130 = vmatprep.subr.bf16.mxu1 %v11316_v3 }
  0x45   : > { %6681 = vmatprep.mubr.msk.bf16.mxu0 %vm795_vm0, %v7122_v39  ;;  %3322 = vperm.xlu1 %7079, %v3212_v61  }
  0x46   : > { %3317 = vperm.xlu0 %7080, %v3211_v0  }
  0x47   : > { %1131 = vmatpush1.bf16.msra.mxu1 %v867_v59 }
  0x49   : > { %3332 = vperm.xlu1 %7079, %v3214_v1  }
  0x4a   : > { %1143 = vmatmul.mubr.bf16.vlgmr.msra.gmra.mrb[0].mxu1 %v7119_v38  ;;  %3327 = vperm.xlu0 %7080, %v3213_v2  }
  0x4b   : > { %6702 = vmatprep.mubr.msk.bf16.mxu1 %vm795_vm0, %v7122_v39 }
  0x4c   : > { %912 = vmatmul.mubr.bf16.gmra.mrb[4].mxu0 %v7124_v45 }
  0x4d   : > { %6682 = vmatprep.mubr.msk.bf16.mxu0 %vm795_vm0, %v7125_v47  ;;  %3342 = vperm.xlu1 %7079, %v3216_v4  }
  0x4e   : > { %3337 = vperm.xlu0 %7080, %v3215_v7  }
  0x51   : > { %3352 = vperm.xlu1 %7079, %v3218_v8  }
  0x52   : > { %1151 = vmatmul.mubr.bf16.gmra.mrb[4].mxu1 %v7124_v45  ;;  %3347 = vperm.xlu0 %7080, %v3217_v9  }
  0x53   : > { %6703 = vmatprep.mubr.msk.bf16.mxu1 %vm795_vm0, %v7125_v47 }
  0x54   : > { %922 = vmatmul.mubr.bf16.gmra.mrb[8].mxu0 %v7127_v54 }
  0x55   : > { %6683 = vmatprep.mubr.msk.bf16.mxu0 %vm795_vm0, %v7128_v56  ;;  %3362 = vperm.xlu1 %7079, %v3220_v10  }
  0x56   : > { %3357 = vperm.xlu0 %7080, %v3219_v13  }
  0x5a   : > { %1159 = vmatmul.mubr.bf16.gmra.mrb[8].mxu1 %v7127_v54 }
  0x5b   : > { %6704 = vmatprep.mubr.msk.bf16.mxu1 %vm795_vm0, %v7128_v56 }
  0x5c   : > { %932 = vmatmul.mubr.bf16.gmra.mrb[12].mxu0 %v7130_v62 }
  0x5d   : > { %6684 = vmatprep.mubr.msk.bf16.mxu0 %vm795_vm0, %v7131_v63 }
  0x62   : > { %1167 = vmatmul.mubr.bf16.gmra.mrb[12].mxu1 %v7130_v62 }
  0x63   : > { %6705 = vmatprep.mubr.msk.bf16.mxu1 %vm795_vm0, %v7131_v63 }
  0x64   : > { %942 = vmatmul.mubr.bf16.gmra.mrb[16].mxu0 %v7133_v5 }
  0x65   : > { %6685 = vmatprep.mubr.msk.bf16.mxu0 %vm795_vm0, %v7134_v6 }
  0x6a   : > { %1175 = vmatmul.mubr.bf16.gmra.mrb[16].mxu1 %v7133_v5 }
  0x6b   : > { %6706 = vmatprep.mubr.msk.bf16.mxu1 %vm795_vm0, %v7134_v6 }
  0x6c   : > { %952 = vmatmul.mubr.bf16.gmra.mrb[20].mxu0 %v7136_v11 }
  0x6d   : > { %6686 = vmatprep.mubr.msk.bf16.mxu0 %vm795_vm0, %v7137_v12 }
  0x72   : > { %1183 = vmatmul.mubr.bf16.gmra.mrb[20].mxu1 %v7136_v11 }
  0x73   : > { %6707 = vmatprep.mubr.msk.bf16.mxu1 %vm795_vm0, %v7137_v12 }
  0x74   : > { %962 = vmatmul.mubr.bf16.gmra.mrb[24].mxu0 %v7139_v14 }
  0x75   : > { %6687 = vmatprep.mubr.msk.bf16.mxu0 %vm795_vm0, %v7146_v15 }
  0x7a   : > { %1191 = vmatmul.mubr.bf16.gmra.mrb[24].mxu1 %v7139_v14 }
  0x7b   : > { %6708 = vmatprep.mubr.msk.bf16.mxu1 %vm795_vm0, %v7146_v15 }
  0x7c   : > { %972 = vmatmul.mubr.bf16.gmra.mrb[28].mxu0 %v7148_v16 }
  0x7d   : > { %6688 = vmatprep.mubr.msk.bf16.mxu0 %vm795_vm0, %v7154_v17 }
  0x82   : > { %1199 = vmatmul.mubr.bf16.gmra.mrb[28].mxu1 %v7148_v16 }
  0x83   : > { %6709 = vmatprep.mubr.msk.bf16.mxu1 %vm795_vm0, %v7154_v17 }
  0x84   : > { %982 = vmatmul.mubr.bf16.gmra.mrb[32].mxu0 %v7156_v18 }
  0x85   : > { %6689 = vmatprep.mubr.msk.bf16.mxu0 %vm795_vm0, %v7157_v19 }
  0x8a   : > { %1207 = vmatmul.mubr.bf16.gmra.mrb[32].mxu1 %v7156_v18 }
  0x8b   : > { %6710 = vmatprep.mubr.msk.bf16.mxu1 %vm795_vm0, %v7157_v19 }
  0x8c   : > { %992 = vmatmul.mubr.bf16.gmra.mrb[36].mxu0 %v7159_v20 }
  0x8d   : > { %6690 = vmatprep.mubr.msk.bf16.mxu0 %vm795_vm0, %v7160_v21 }
  0x92   : > { %1215 = vmatmul.mubr.bf16.gmra.mrb[36].mxu1 %v7159_v20 }
  0x93   : > { %6711 = vmatprep.mubr.msk.bf16.mxu1 %vm795_vm0, %v7160_v21 }
  0x94   : > { %1002 = vmatmul.mubr.bf16.gmra.mrb[40].mxu0 %v7162_v22 }
  0x95   : > { %6691 = vmatprep.mubr.msk.bf16.mxu0 %vm795_vm0, %v7163_v23 }
  0x9a   : > { %1223 = vmatmul.mubr.bf16.gmra.mrb[40].mxu1 %v7162_v22 }
  0x9b   : > { %6712 = vmatprep.mubr.msk.bf16.mxu1 %vm795_vm0, %v7163_v23 }
  0x9c   : > { %1012 = vmatmul.mubr.bf16.gmra.mrb[44].mxu0 %v7165_v24 }
  0x9d   : > { %6692 = vmatprep.mubr.msk.bf16.mxu0 %vm795_vm0, %v7166_v25 }
  0xa2   : > { %1231 = vmatmul.mubr.bf16.gmra.mrb[44].mxu1 %v7165_v24 }
  0xa3   : > { %6713 = vmatprep.mubr.msk.bf16.mxu1 %vm795_vm0, %v7166_v25 }
  0xa4   : > { %1022 = vmatmul.mubr.bf16.gmra.mrb[48].mxu0 %v7168_v26 }
  0xa5   : > { %6693 = vmatprep.mubr.msk.bf16.mxu0 %vm795_vm0, %v7169_v27 }
  0xaa   : > { %1239 = vmatmul.mubr.bf16.gmra.mrb[48].mxu1 %v7168_v26 }
  0xab   : > { %6714 = vmatprep.mubr.msk.bf16.mxu1 %vm795_vm0, %v7169_v27 }
  0xac   : > { %1032 = vmatmul.mubr.bf16.gmra.mrb[52].mxu0 %v7171_v28 }
  0xad   : > { %6694 = vmatprep.mubr.msk.bf16.mxu0 %vm795_vm0, %v7172_v29 }
  0xb2   : > { %1247 = vmatmul.mubr.bf16.gmra.mrb[52].mxu1 %v7171_v28 }
  0xb3   : > { %6715 = vmatprep.mubr.msk.bf16.mxu1 %vm795_vm0, %v7172_v29 }
  0xb4   : > { %1042 = vmatmul.mubr.bf16.gmra.mrb[56].mxu0 %v7174_v30 }
  0xb5   : > { %6695 = vmatprep.mubr.msk.bf16.mxu0 %vm795_vm0, %v7175_v31 }
  0xba   : > { %1255 = vmatmul.mubr.bf16.gmra.mrb[56].mxu1 %v7174_v30 }
  0xbb   : > { %6716 = vmatprep.mubr.msk.bf16.mxu1 %vm795_vm0, %v7175_v31 }
  0xbc   : > { %1052 = vmatmul.mubr.bf16.gmra.mrb[60].mxu0 %v7177_v32 }
  0xbd   : > { %6696 = vmatprep.mubr.msk.bf16.mxu0 %vm795_vm0, %v7178_v33 }
  0xc2   : > { %1263 = vmatmul.mubr.bf16.gmra.mrb[60].mxu1 %v7177_v32 }
  0xc3   : > { %6717 = vmatprep.mubr.msk.bf16.mxu1 %vm795_vm0, %v7178_v33 }
  0xc4   : > { %1062 = vmatmul.mubr.bf16.gmra.mrb[64].mxu0 %v7180_v34 }
  0xc5   : > { %6697 = vmatprep.mubr.msk.bf16.mxu0 %vm795_vm0, %v7181_v35 }
  0xca   : > { %1271 = vmatmul.mubr.bf16.gmra.mrb[64].mxu1 %v7180_v34 }
  0xcb   : > { %6718 = vmatprep.mubr.msk.bf16.mxu1 %vm795_vm0, %v7181_v35 }
  0xcc   : > { %1072 = vmatmul.mubr.bf16.gmra.mrb[68].mxu0 %v7183_v36 }
  0xd2   : > { %1279 = vmatmul.mubr.bf16.gmra.mrb[68].mxu1 %v7183_v36 }
 0x117   : > { %v7710_v37 = vpop.f32.mrb[0].mxu0 }
 0x118   : > { %1310 = vst [vmem:[#allocation4] sm:$0xff] %v7710_v37  ;;  %v905_v38 = vpop.f32.mrb[1].mxu0 }
 0x119   : > { %v7715_v39 = vpop.f32.mrb[2].mxu0 }
 0x11a   : > { %v909_v40 = vpop.f32.mrb[3].mxu0  ;;  %v1775_v41 = vrot.slane %v7715_v39, 2  ;;  %v1553_v45 = vrot.slane %v7715_v39, 1 }
 0x11d   : > { %v1144_v23 = vpop.f32.mrb[0].mxu1 }
 0x11e   : > { %v1146_v26 = vpop.f32.mrb[1].mxu1 }
 0x11f   : > { %v913_v42 = vpop.f32.mrb[4].mxu0  ;;  %v1769_v43 = vld [vmem:[#allocation4] sm:$0xfc]  ;;  %v1147_v28 = vpop.f32.mrb[2].mxu1 }
 0x120   : > { %v1512_v44 = vld [vmem:[#allocation4] sm:$0xfe]  ;;  %1317 = vst [vmem:[#allocation4 + $0x30] sm:$0xff] %v913_v42  ;;  %v915_v46 = vpop.f32.mrb[5].mxu0  ;;  %v1774_v47 = vrot.slane %v1769_v43, 2  ;;  %v1555_v49 = vrot.slane %v913_v42, 1 }
 0x121   : > { %v1552_v48 = vrot.slane %v1512_v44, 1  ;;  %v1777_v50 = vrot.slane %v913_v42, 2  ;;  %1318 = vst [vmem:[#allocation4 + $0x38] sm:$0xff] %v915_v46  ;;  %v7719_v51 = vpop.f32.mrb[6].mxu0  ;;  %1316 = vst.msk [vmem:[#allocation4 + $0x28] sm:$0xff] %vm1312_vm6, %v1147_v28  ;;  %v1149_v36 = vpop.f32.mrb[3].mxu1 }
 0x122   : > { %v7721_v52 = vpop.f32.mrb[7].mxu0  ;;  %v1776_v53 = vsel %vm1773_vm2, %v1774_v47, %v1775_v41  ;;  %v1556_v55 = vsel %vm1551_vm3, %v1553_v45, %v1555_v49  ;;  %v1557_v56 = vrot.slane %v7719_v51, 1  ;;  %v1779_v58 = vrot.slane %v7719_v51, 2  ;;  %v7184_v44 = vld [vmem:[%s7472_s21 + $0x124] ss:$8 sps:$4 sm:$0xff]  }
 0x123   : > { %v1554_v54 = vsel %vm1551_vm3, %v1552_v48, %v1553_v45  ;;  %1847 = vrot.lane.b32.xlu1 %v1776_v53, %s11390_s18  ;;  %v1778_v57 = vsel %vm1773_vm2, %v1775_v41, %v1777_v50  ;;  %v2377_v63 = vrot.slane %v7721_v52, 4  ;;  %v11315_v9 = vrot.slane %v7721_v52, 3  ;;  %v7186_v47 = vld [vmem:[%s7472_s21 + $0x120] ss:$8 sps:$4 sm:$0xff]   ;;  %6698 = vmatprep.mubr.msk.bf16.mxu0 %vm795_vm0, %v7184_v44 }
 0x124   : > { %1625 = vrot.lane.b32.xlu0 %v1554_v54, %s11392_s28  ;;  %v1558_v59 = vsel %vm1551_vm3, %v1555_v49, %v1557_v56  ;;  %v1780_v60 = vsel %vm1773_vm2, %v1777_v50, %v1779_v58  ;;  %1082 = vmatmul.mubr.bf16.gmra.mrb[72].mxu0 %v7186_v47 }
 0x125   : > { %6719 = vmatprep.mubr.msk.bf16.mxu1 %vm795_vm0, %v7184_v44 }
 0x126   : > { %1287 = vmatmul.mubr.bf16.gmra.mrb[72].mxu1 %v7186_v47 }
 0x127   : > { %v7733_v61 = vpop.f32.mrb[8].mxu0  ;;  %1629 = vrot.lane.b32.xlu1 %v1558_v59, %s11392_s28  ;;  %v1991_v62 = vld [vmem:[#allocation4 + $0x30] sm:$0xfc] }
 0x128   : > { %1627 = vrot.lane.b32.xlu0 %v1556_v55, %s11392_s28  ;;  %v925_v0 = vpop.f32.mrb[9].mxu0  ;;  %v1999_v1 = vrot.slane %v1991_v62, 2  ;;  %v2371_v2 = vld [vmem:[#allocation4 + $0x38] sm:$0xf0]  ;;  %v1781_v4 = vrot.slane %v7733_v61, 2  ;;  %v1559_v5 = vrot.slane %v7733_v61, 1 }
 0x129   : > { %1324 = vst [vmem:[#allocation4 + $0x68] sm:$0xff] %v925_v0  ;;  %v7740_v6 = vpop.f32.mrb[10].mxu0  ;;  %v2376_v7 = vrot.slane %v2371_v2, 4  ;;  %v2379_v8 = vrot.slane %v925_v0, 4  ;;  %v2229_v10 = vrot.slane %v925_v0, 3 }
 0x12a   : > { %11398 = vst [vmem:[#allocation8_spill] sm:$0xff] %v7740_v6  ;;  %v7743_v11 = vpop.f32.mrb[11].mxu0  ;;  %v2000_v12 = vsel %vm1773_vm2, %v1999_v1, %v1779_v58  ;;  %v1782_v13 = vsel %vm1773_vm2, %v1779_v58, %v1781_v4  ;;  %v1560_v14 = vsel %vm1551_vm3, %v1557_v56, %v1559_v5  ;;  %v1561_v15 = vrot.slane %v7740_v6, 1  ;;  %v1152_v56 = vpop.f32.mrb[4].mxu1 }
 0x12b   : > { %2007 = vrot.lane.b32.xlu1 %v2000_v12, %s11388_s29  ;;  %v7752_v16 = vsel %vm2375_vm4, %v2377_v63, %v2379_v8  ;;  %v1783_v17 = vrot.slane %v7740_v6, 2  ;;  %v7756_v18 = vrot.slane %v7743_v11, 4  ;;  %v7762_v20 = vsel %vm2225_vm5, %v11315_v9, %v2229_v10  ;;  %1319 = vst.msk [vmem:[#allocation4 + $0x40] sm:$0xff] %vm1312_vm6, %v1152_v56 }
 0x12c   : > { %1849 = vrot.lane.b32.xlu0 %v1778_v57, %s11390_s18  ;;  %v1562_v19 = vsel %vm1551_vm3, %v1559_v5, %v1561_v15  ;;  %v2231_v24 = vrot.slane %v7743_v11, 3  ;;  %v2378_v25 = vsel %vm2375_vm4, %v2376_v7, %v2377_v63  ;;  %v2759_v31 = vrot.slane %v7743_v11, 5 }
 0x12d   : > { %v7765_v21 = vsel %vm1773_vm2, %v1781_v4, %v1783_v17  ;;  %v7769_v22 = vsel %vm2375_vm4, %v2379_v8, %v7756_v18 }
 0x12e   : > { %v7778_v29 = vsel %vm2225_vm5, %v2229_v10, %v2231_v24 }
 0x12f   : > { %v7773_v27 = vpop.f32.mrb[12].mxu0  ;;  %2449 = vrot.lane.b32.xlu1 %v2378_v25, %s11392_s28 }
 0x130   : > { %11399 = vst [vmem:[#allocation9_spill] sm:$0xff] %v7773_v27  ;;  %1851 = vrot.lane.b32.xlu0 %v1780_v60, %s11390_s18  ;;  %v935_v30 = vpop.f32.mrb[13].mxu0  ;;  %v1563_v32 = vrot.slane %v7773_v27, 1  ;;  %v1785_v34 = vrot.slane %v7773_v27, 2  ;;  %v2593_v59 = vld [vmem:[#allocation4 + $0x68] sm:$0xf0] }
 0x131   : > { %v7783_v33 = vpop.f32.mrb[14].mxu0  ;;  %v2383_v35 = vrot.slane %v935_v30, 4  ;;  %v2761_v41 = vrot.slane %v935_v30, 5  ;;  %v2233_v57 = vrot.slane %v935_v30, 3  ;;  %v1154_v60 = vpop.f32.mrb[5].mxu1  ;;  %v2601_v10 = vrot.slane %v2593_v59, 4 }
 0x132   : > { %11400 = vst [vmem:[#allocation10_spill] sm:$0xff] %v7783_v33  ;;  %v939_v38 = vpop.f32.mrb[15].mxu0  ;;  %v7787_v40 = vsel %vm1551_vm3, %v1561_v15, %v1563_v32  ;;  %v1787_v42 = vrot.slane %v7783_v33, 2  ;;  %v1565_v43 = vrot.slane %v7783_v33, 1  ;;  %v7795_v45 = vsel %vm1773_vm2, %v1783_v17, %v1785_v34  ;;  %v1155_v0 = vpop.f32.mrb[6].mxu1 }
 0x133   : > { %1631 = vrot.lane.b32.xlu1 %v1560_v14, %s11392_s28  ;;  %v2385_v46 = vrot.slane %v939_v38, 4  ;;  %v7800_v48 = vsel %vm2375_vm4, %v7756_v18, %v2383_v35  ;;  %v7805_v49 = vsel %vm2757_vm7, %v2759_v31, %v2761_v41  ;;  %v2763_v55 = vrot.slane %v939_v38, 5  ;;  %1322 = vst.msk [vmem:[#allocation4 + $0x58] sm:$0xff] %vm1312_vm6, %v1155_v0  ;;  %v1157_v8 = vpop.f32.mrb[7].mxu1  ;;  %v2753_v17 = vld [vmem:[#allocation4 + $0x68] sm:$0xe0] }
 0x134   : > { %2009 = vrot.lane.b32.xlu0 %v1782_v13, %s11388_s29  ;;  %v7808_v50 = vsel %vm1773_vm2, %v1785_v34, %v1787_v42  ;;  %v7811_v53 = vsel %vm1551_vm3, %v1563_v32, %v1565_v43  ;;  %v2235_v58 = vrot.slane %v939_v38, 3  ;;  %v7827_v1 = vsel %vm2225_vm5, %v2231_v24, %v2233_v57 }
 0x135   : > { %v7815_v54 = vsel %vm2375_vm4, %v2383_v35, %v2385_v46  ;;  %v7824_v63 = vsel %vm2757_vm7, %v2761_v41, %v2763_v55 }
 0x136   : > { %v7830_v2 = vsel %vm2225_vm5, %v2233_v57, %v2235_v58 }
 0x137   : > { %1633 = vrot.lane.b32.xlu1 %v1562_v19, %s11392_s28  ;;  %v7821_v62 = vpop.f32.mrb[16].mxu0  ;;  %11402 = vst [vmem:[#allocation12_spill] sm:$0xff] %v7830_v2 }
 0x138   : > { %1853 = vrot.lane.b32.xlu0 %v1782_v13, %s11390_s18  ;;  %11401 = vst [vmem:[#allocation11_spill] sm:$0xff] %v7821_v62  ;;  %v945_v4 = vpop.f32.mrb[17].mxu0  ;;  %v1567_v5 = vrot.slane %v7821_v62, 1  ;;  %v1789_v7 = vrot.slane %v7821_v62, 2 }
 0x139   : > { %v7835_v12 = vpop.f32.mrb[18].mxu0  ;;  %v2387_v13 = vrot.slane %v945_v4, 4  ;;  %v2765_v14 = vrot.slane %v945_v4, 5  ;;  %v2237_v15 = vrot.slane %v945_v4, 3 }
 0x13a   : > { %11403 = vst [vmem:[#allocation13_spill] sm:$0xff] %v7835_v12  ;;  %v949_v19 = vpop.f32.mrb[19].mxu0  ;;  %v7838_v23 = vsel %vm1551_vm3, %v1565_v43, %v1567_v5  ;;  %v7841_v24 = vsel %vm1773_vm2, %v1787_v42, %v1789_v7  ;;  %v1569_v25 = vrot.slane %v7835_v12, 1  ;;  %v1791_v26 = vrot.slane %v7835_v12, 2  ;;  %v1160_v43 = vpop.f32.mrb[8].mxu1 }
 0x13b   : > { %2011 = vrot.lane.b32.xlu1 %v7765_v21, %s11388_s29  ;;  %v7850_v28 = vsel %vm2375_vm4, %v2385_v46, %v2387_v13  ;;  %v2389_v30 = vrot.slane %v949_v19, 4  ;;  %v7853_v32 = vsel %vm2757_vm7, %v2763_v55, %v2765_v14  ;;  %v2767_v34 = vrot.slane %v949_v19, 5  ;;  %1325 = vst.msk [vmem:[#allocation4 + $0x70] sm:$0xff] %vm1312_vm6, %v1160_v43  ;;  %v1162_v47 = vpop.f32.mrb[9].mxu1 }
 0x13c   : > { %2451 = vrot.lane.b32.xlu0 %v7752_v16, %s11392_s28  ;;  %v7856_v35 = vsel %vm1551_vm3, %v1567_v5, %v1569_v25  ;;  %v7859_v36 = vsel %vm1773_vm2, %v1789_v7, %v1791_v26  ;;  %v7862_v38 = vsel %vm2225_vm5, %v2235_v58, %v2237_v15  ;;  %v2758_v16 = vrot.slane %v2753_v17, 5  ;;  %v1163_v56 = vpop.f32.mrb[10].mxu1  ;;  %v7897_v17 = vpop.permute.xlu0 %3237 }
 0x13d   : > { %11404 = vst [vmem:[#allocation14_spill] sm:$0xff] %v7862_v38  ;;  %v7865_v41 = vsel %vm2375_vm4, %v2387_v13, %v2389_v30  ;;  %v7868_v42 = vsel %vm2757_vm7, %v2765_v14, %v2767_v34  ;;  %v2239_v44 = vrot.slane %v949_v19, 3  ;;  %v2602_v46 = vsel %vm2375_vm4, %v2601_v10, %v7756_v18  ;;  %1328 = vst.msk [vmem:[#allocation4 + $0x88] sm:$0xff] %vm1312_vm6, %v1163_v56  ;;  %v1165_v18 = vpop.f32.mrb[11].mxu1  ;;  %v7187_v56 = vld [vmem:[%s7472_s21 + $0x134] ss:$8 sps:$4 sm:$0xff]  }
 0x13e   : > { %v2760_v0 = vsel %vm2757_vm7, %v2758_v16, %v2759_v31  ;;  %11408 = vst [vmem:[#allocation18_spill] sm:$0xff] %v7897_v17  ;;  %6699 = vmatprep.mubr.msk.bf16.mxu0 %vm795_vm0, %v7187_v56  ;;  %6720 = vmatprep.mubr.msk.bf16.mxu1 %vm795_vm0, %v7187_v56 }
 0x13f   : > { %1855 = vrot.lane.b32.xlu1 %v7765_v21, %s11390_s18  ;;  %v7876_v55 = vpop.f32.mrb[20].mxu0  ;;  %v7879_v57 = vsel %vm2225_vm5, %v2237_v15, %v2239_v44 }
 0x140   : > { %2609 = vrot.lane.b32.xlu0 %v2602_v46, %s11390_s18  ;;  %11405 = vst [vmem:[#allocation15_spill] sm:$0xff] %v7876_v55  ;;  %11406 = vst [vmem:[#allocation16_spill] sm:$0xff] %v7879_v57  ;;  %v955_v58 = vpop.f32.mrb[21].mxu0  ;;  %v1571_v59 = vrot.slane %v7876_v55, 1  ;;  %v1793_v60 = vrot.slane %v7876_v55, 2  ;;  %v1168_v46 = vpop.f32.mrb[12].mxu1 }
 0x141   : > { %v7887_v4 = vpop.f32.mrb[22].mxu0  ;;  %v2391_v21 = vrot.slane %v955_v58, 4  ;;  %v2769_v5 = vrot.slane %v955_v58, 5  ;;  %v2241_v7 = vrot.slane %v955_v58, 3  ;;  %1331 = vst.msk [vmem:[#allocation4 + $0xa0] sm:$0xff] %vm1312_vm6, %v1168_v46 }
 0x142   : > { %11407 = vst [vmem:[#allocation17_spill] sm:$0xff] %v7887_v4  ;;  %v959_v8 = vpop.f32.mrb[23].mxu0  ;;  %v7890_v10 = vsel %vm1551_vm3, %v1569_v25, %v1571_v59  ;;  %v7893_v13 = vsel %vm1773_vm2, %v1791_v26, %v1793_v60  ;;  %v1573_v14 = vrot.slane %v7887_v4, 1  ;;  %v1795_v15 = vrot.slane %v7887_v4, 2  ;;  %v7189_v58 = vld [vmem:[%s7472_s21 + $0x130] ss:$8 sps:$4 sm:$0xff]  }
 0x143   : > { %2453 = vrot.lane.b32.xlu1 %v7769_v22, %s11392_s28  ;;  %v7903_v11 = vsel %vm2375_vm4, %v2389_v30, %v2391_v21  ;;  %v2393_v31 = vrot.slane %v959_v8, 4  ;;  %v7906_v19 = vsel %vm2757_vm7, %v2767_v34, %v2769_v5  ;;  %v2771_v25 = vrot.slane %v959_v8, 5  ;;  %v1170_v34 = vpop.f32.mrb[13].mxu1  ;;  %1092 = vmatmul.mubr.bf16.gmra.mrb[76].mxu0 %v7189_v58 }
 0x144   : > { %2831 = vrot.lane.b32.xlu0 %v2760_v0, %s11388_s29  ;;  %v7909_v26 = vsel %vm1551_vm3, %v1571_v59, %v1573_v14  ;;  %v7912_v16 = vsel %vm1773_vm2, %v1793_v60, %v1795_v15  ;;  %v7915_v43 = vsel %vm2225_vm5, %v2239_v44, %v2241_v7  ;;  %v2243_v47 = vrot.slane %v959_v8, 3  ;;  %v7933_v60 = vpop.permute.xlu1 %3232  ;;  %1295 = vmatmul.mubr.bf16.gmra.mrb[76].mxu1 %v7189_v58 }
 0x145   : > { %11409 = vst [vmem:[#allocation19_spill] sm:$0xff] %v7915_v43  ;;  %v7918_v22 = vsel %vm2375_vm4, %v2391_v21, %v2393_v31  ;;  %v7921_v30 = vsel %vm2757_vm7, %v2769_v5, %v2771_v25  ;;  %11411 = vst [vmem:[#allocation21_spill] sm:$0xff] %v7933_v60  ;;  %v7937_v5 = vpop.permute.xlu0 %3242 }
 0x146   : > { %v7931_v59 = vsel %vm2225_vm5, %v2241_v7, %v2243_v47  ;;  %11412 = vst [vmem:[#allocation22_spill] sm:$0xff] %v7937_v5  ;;  %v1171_v5 = vpop.f32.mrb[14].mxu1 }
 0x147   : > { %1857 = vrot.lane.b32.xlu1 %v7795_v45, %s11390_s18  ;;  %v963_v44 = vpop.f32.mrb[24].mxu0  ;;  %11410 = vst [vmem:[#allocation20_spill] sm:$0xff] %v7931_v59  ;;  %1334 = vst.msk [vmem:[#allocation4 + $0xb8] sm:$0xff] %vm1312_vm6, %v1171_v5 }
 0x148   : > { %1635 = vrot.lane.b32.xlu0 %v7787_v40, %s11392_s28  ;;  %1347 = vst [vmem:[#allocation4 + $0x120] sm:$0xff] %v963_v44  ;;  %v965_v18 = vpop.f32.mrb[25].mxu0  ;;  %v1575_v0 = vrot.slane %v963_v44, 1  ;;  %v1797_v21 = vrot.slane %v963_v44, 2  ;;  %v7971_v55 = vpop.permute.xlu1 %3252 }
 0x149   : > { %1348 = vst [vmem:[#allocation4 + $0x128] sm:$0xff] %v965_v18  ;;  %v967_v40 = vpop.f32.mrb[26].mxu0  ;;  %v2395_v8 = vrot.slane %v965_v18, 4  ;;  %v2773_v46 = vrot.slane %v965_v18, 5  ;;  %v2245_v34 = vrot.slane %v965_v18, 3  ;;  %11414 = vst [vmem:[#allocation24_spill] sm:$0xff] %v7971_v55 }
 0x14a   : > { %1350 = vst [vmem:[#allocation4 + $0x138] sm:$0xff] %v967_v40  ;;  %v969_v7 = vpop.f32.mrb[27].mxu0  ;;  %v7940_v9 = vsel %vm1551_vm3, %v1573_v14, %v1575_v0  ;;  %v7943_v44 = vsel %vm1773_vm2, %v1795_v15, %v1797_v21  ;;  %v1577_v3 = vrot.slane %v967_v40, 1  ;;  %v1799_v17 = vrot.slane %v967_v40, 2 }
 0x14b   : > { %2611 = vrot.lane.b32.xlu1 %v7800_v48, %s11390_s18  ;;  %v7950_v56 = vsel %vm2375_vm4, %v2393_v31, %v2395_v8  ;;  %v2397_v58 = vrot.slane %v969_v7, 4  ;;  %v7953_v18 = vsel %vm2757_vm7, %v2771_v25, %v2773_v46  ;;  %v2775_v14 = vrot.slane %v969_v7, 5 }
 0x14c   : > { %2013 = vrot.lane.b32.xlu0 %v7795_v45, %s11388_s29  ;;  %v7956_v15 = vsel %vm1551_vm3, %v1575_v0, %v1577_v3  ;;  %v7959_v40 = vsel %vm1773_vm2, %v1797_v21, %v1799_v17  ;;  %v1173_v45 = vpop.f32.mrb[15].mxu1  ;;  %v7963_v60 = vsel %vm2225_vm5, %v2243_v47, %v2245_v34  ;;  %v2247_v4 = vrot.slane %v969_v7, 3  ;;  %v7973_v0 = vpop.permute.xlu0 %3247 }
 0x14d   : > { %11413 = vst [vmem:[#allocation23_spill] sm:$0xff] %v7963_v60  ;;  %v7966_v31 = vsel %vm2375_vm4, %v2395_v8, %v2397_v58  ;;  %v7969_v25 = vsel %vm2757_vm7, %v2773_v46, %v2775_v14  ;;  %11415 = vst [vmem:[#allocation25_spill] sm:$0xff] %v7973_v0 }
 0x14e   : > { %v7980_v47 = vsel %vm2225_vm5, %v2245_v34, %v2247_v4 }
 0x14f   : > { %2833 = vrot.lane.b32.xlu1 %v7805_v49, %s11388_s29  ;;  %v973_v21 = vpop.f32.mrb[28].mxu0  ;;  %11416 = vst [vmem:[#allocation26_spill] sm:$0xff] %v7980_v47  ;;  %v7998_v47 = vpop.permute.xlu1 %3262 }
 0x150   : > { %2455 = vrot.lane.b32.xlu0 %v7800_v48, %s11392_s28  ;;  %1353 = vst [vmem:[#allocation4 + $0x150] sm:$0xff] %v973_v21  ;;  %v975_v5 = vpop.f32.mrb[29].mxu0  ;;  %v1579_v8 = vrot.slane %v973_v21, 1  ;;  %v1801_v46 = vrot.slane %v973_v21, 2  ;;  %11417 = vst [vmem:[#allocation27_spill] sm:$0xff] %v7998_v47 }
 0x151   : > { %v977_v45 = vpop.f32.mrb[30].mxu0  ;;  %v2399_v7 = vrot.slane %v975_v5, 4  ;;  %v2777_v60 = vrot.slane %v975_v5, 5  ;;  %v2249_v55 = vrot.slane %v975_v5, 3 }
 0x152   : > { %1356 = vst [vmem:[#allocation4 + $0x168] sm:$0xff] %v977_v45  ;;  %v979_v0 = vpop.f32.mrb[31].mxu0  ;;  %v7983_v59 = vsel %vm1551_vm3, %v1577_v3, %v1579_v8  ;;  %v7986_v48 = vsel %vm1773_vm2, %v1799_v17, %v1801_v46  ;;  %v1581_v49 = vrot.slane %v977_v45, 1  ;;  %v1803_v12 = vrot.slane %v977_v45, 2 }
 0x153   : > { %1637 = vrot.lane.b32.xlu1 %v7811_v53, %s11392_s28  ;;  %v7993_v34 = vsel %vm2375_vm4, %v2397_v58, %v2399_v7  ;;  %v2401_v21 = vrot.slane %v979_v0, 4  ;;  %v7996_v5 = vsel %vm2757_vm7, %v2775_v14, %v2777_v60  ;;  %v2779_v3 = vrot.slane %v979_v0, 5  ;;  %v8009_v53 = vpop.permute.xlu0 %3257 }
 0x154   : > { %2015 = vrot.lane.b32.xlu0 %v7808_v50, %s11388_s29  ;;  %v8001_v17 = vsel %vm1551_vm3, %v1579_v8, %v1581_v49  ;;  %v8004_v45 = vsel %vm1773_vm2, %v1801_v46, %v1803_v12  ;;  %v8007_v62 = vsel %vm2225_vm5, %v2247_v4, %v2249_v55  ;;  %11419 = vst [vmem:[#allocation29_spill] sm:$0xff] %v8009_v53  ;;  %v2251_v43 = vrot.slane %v979_v0, 3 }
 0x155   : > { %11418 = vst [vmem:[#allocation28_spill] sm:$0xff] %v8007_v62  ;;  %v8012_v58 = vsel %vm2375_vm4, %v2399_v7, %v2401_v21  ;;  %v8015_v14 = vsel %vm2757_vm7, %v2777_v60, %v2779_v3  ;;  %v1176_v7 = vpop.f32.mrb[16].mxu1 }
 0x156   : > { %v8022_v46 = vsel %vm2225_vm5, %v2249_v55, %v2251_v43  ;;  %1337 = vst.msk [vmem:[#allocation4 + $0xd0] sm:$0xff] %vm1312_vm6, %v1176_v7  ;;  %v1178_v0 = vpop.f32.mrb[17].mxu1 }
 0x157   : > { %2613 = vrot.lane.b32.xlu1 %v7815_v54, %s11390_s18  ;;  %v983_v8 = vpop.f32.mrb[32].mxu0  ;;  %11420 = vst [vmem:[#allocation30_spill] sm:$0xff] %v8022_v46  ;;  %v8035_v6 = vpop.permute.xlu0 %3267 }
 0x158   : > { %1859 = vrot.lane.b32.xlu0 %v7808_v50, %s11390_s18  ;;  %1359 = vst [vmem:[#allocation4 + $0x180] sm:$0xff] %v983_v8  ;;  %v985_v4 = vpop.f32.mrb[33].mxu0  ;;  %v1583_v47 = vrot.slane %v983_v8, 1  ;;  %v1805_v53 = vrot.slane %v983_v8, 2  ;;  %v8025_v50 = vpop.permute.xlu1 %3272  ;;  %11422 = vst [vmem:[#allocation32_spill] sm:$0xff] %v8035_v6 }
 0x159   : > { %v987_v62 = vpop.f32.mrb[34].mxu0  ;;  %v2403_v57 = vrot.slane %v985_v4, 4  ;;  %v2781_v60 = vrot.slane %v985_v4, 5  ;;  %v2253_v33 = vrot.slane %v985_v4, 3  ;;  %11421 = vst [vmem:[#allocation31_spill] sm:$0xff] %v8025_v50 }
 0x15a   : > { %1362 = vst [vmem:[#allocation4 + $0x198] sm:$0xff] %v987_v62  ;;  %v8027_v27 = vpop.f32.mrb[35].mxu0  ;;  %v8030_v55 = vsel %vm1551_vm3, %v1581_v49, %v1583_v47  ;;  %v8033_v46 = vsel %vm1773_vm2, %v1803_v12, %v1805_v53  ;;  %v1585_v8 = vrot.slane %v987_v62, 1  ;;  %v1807_v38 = vrot.slane %v987_v62, 2  ;;  %v1179_v62 = vpop.f32.mrb[18].mxu1 }
 0x15b   : > { %1639 = vrot.lane.b32.xlu1 %v7838_v23, %s11392_s28  ;;  %v8042_v4 = vsel %vm2375_vm4, %v2401_v21, %v2403_v57  ;;  %v2405_v49 = vrot.slane %v8027_v27, 4  ;;  %v8046_v7 = vsel %vm2757_vm7, %v2779_v3, %v2781_v60  ;;  %v2783_v12 = vrot.slane %v8027_v27, 5  ;;  %1340 = vst.msk [vmem:[#allocation4 + $0xe8] sm:$0xff] %vm1312_vm6, %v1179_v62  ;;  %v1181_v23 = vpop.f32.mrb[19].mxu1 }
 0x15c   : > { %2457 = vrot.lane.b32.xlu0 %v7815_v54, %s11392_s28  ;;  %11423 = vst [vmem:[#allocation33_spill] sm:$0xff] %v8046_v7  ;;  %v8050_v0 = vsel %vm1551_vm3, %v1583_v47, %v1585_v8  ;;  %v8053_v54 = vsel %vm1773_vm2, %v1805_v53, %v1807_v38  ;;  %v8057_v21 = vsel %vm2225_vm5, %v2251_v43, %v2253_v33  ;;  %v2255_v6 = vrot.slane %v8027_v27, 3  ;;  %v398_v53 = vld [vmem:[%s7472_s21 + $0x140] sm:$0x77]  ;;  %v8074_v43 = vpop.permute.xlu1 %3282 }
 0x15d   : > { %11424 = vst [vmem:[#allocation34_spill] sm:$0xff] %v8050_v0  ;;  %11425 = vst [vmem:[#allocation35_spill] sm:$0xff] %v8053_v54  ;;  %v8060_v50 = vsel %vm2375_vm4, %v2403_v57, %v2405_v49  ;;  %v8063_v3 = vsel %vm2757_vm7, %v2781_v60, %v2783_v12  ;;  %v8076_v54 = vpop.permute.xlu0 %3277 }
 0x15e   : > { %11426 = vst [vmem:[#allocation36_spill] sm:$0xff] %v8057_v21  ;;  %11427 = vst [vmem:[#allocation37_spill] sm:$0xff] %v8063_v3  ;;  %v8072_v62 = vsel %vm2225_vm5, %v2253_v33, %v2255_v6  ;;  %v6645_v21 = vcombine.high %v398_v53, %v398_v53  ;;  %v6644_v3 = vcombine.low %v398_v53, %v398_v53 }
 0x15f   : > { %2017 = vrot.lane.b32.xlu1 %v7841_v24, %s11388_s29  ;;  %v993_v47 = vpop.f32.mrb[36].mxu0  ;;  %11428 = vst [vmem:[#allocation38_spill] sm:$0xff] %v8072_v62  ;;  %11429 = vst [vmem:[#allocation39_spill] sm:$0xff] %v8074_v43 }
 0x160   : > { %2835 = vrot.lane.b32.xlu0 %v7824_v63, %s11388_s29  ;;  %1365 = vst [vmem:[#allocation4 + $0x1b0] sm:$0xff] %v993_v47  ;;  %v995_v57 = vpop.f32.mrb[37].mxu0  ;;  %v1587_v23 = vrot.slane %v993_v47, 1  ;;  %v1809_v60 = vrot.slane %v993_v47, 2  ;;  %11430 = vst [vmem:[#allocation40_spill] sm:$0xff] %v8076_v54  ;;  %6700 = vmatprep.mubr.msk.bf16.mxu0 %vm795_vm0, %v6645_v21 }
 0x161   : > { %v997_v27 = vpop.f32.mrb[38].mxu0  ;;  %v2407_v0 = vrot.slane %v995_v57, 4  ;;  %v2785_v63 = vrot.slane %v995_v57, 5  ;;  %6721 = vmatprep.mubr.msk.bf16.mxu1 %vm795_vm0, %v6645_v21  ;;  %1102 = vmatmul.mubr.bf16.gmra.mrb[80].mxu0 %v6644_v3 }
 0x162   : > { %1368 = vst [vmem:[#allocation4 + $0x1c8] sm:$0xff] %v997_v27  ;;  %v999_v7 = vpop.f32.mrb[39].mxu0  ;;  %v8079_v2 = vsel %vm1551_vm3, %v1585_v8, %v1587_v23  ;;  %v8082_v33 = vsel %vm1773_vm2, %v1807_v38, %v1809_v60  ;;  %v1589_v43 = vrot.slane %v997_v27, 1  ;;  %v1811_v62 = vrot.slane %v997_v27, 2  ;;  %1303 = vmatmul.mubr.bf16.gmra.mrb[80].mxu1 %v6644_v3 }
 0x163   : > { %11431 = vst [vmem:[#allocation41_spill] sm:$0xff] %v8082_v33  ;;  %2615 = vrot.lane.b32.xlu1 %v7850_v28, %s11390_s18  ;;  %v8091_v47 = vsel %vm2375_vm4, %v2405_v49, %v2407_v0  ;;  %v2409_v8 = vrot.slane %v999_v7, 4  ;;  %v8094_v53 = vsel %vm2757_vm7, %v2783_v12, %v2785_v63  ;;  %v2787_v38 = vrot.slane %v999_v7, 5 }
 0x164   : > { %1861 = vrot.lane.b32.xlu0 %v7841_v24, %s11390_s18  ;;  %11432 = vst [vmem:[#allocation42_spill] sm:$0xff] %v8091_v47  ;;  %11433 = vst [vmem:[#allocation43_spill] sm:$0xff] %v8094_v53  ;;  %v8097_v54 = vsel %vm1551_vm3, %v1587_v23, %v1589_v43  ;;  %v8100_v21 = vsel %vm1773_vm2, %v1809_v60, %v1811_v62  ;;  %v2257_v27 = vrot.slane %v995_v57, 3  ;;  %v2259_v33 = vrot.slane %v999_v7, 3  ;;  %v8106_v47 = vpop.permute.xlu1 %3292  ;;  %v8114_v23 = vpop.permute.xlu0 %3287 }
 0x165   : > { %v8103_v24 = vsel %vm2375_vm4, %v2407_v0, %v2409_v8  ;;  %v11434_v49 = vmov 0   ;;  %11435 = vst [vmem:[#allocation44_spill] sm:$0xff] %v8106_v47  ;;  %v8109_v12 = vsel %vm2757_vm7, %v2785_v63, %v2787_v38  ;;  %11437 = vst [vmem:[#allocation46_spill] sm:$0xff] %v8114_v23 }
 0x166   : > { %4110 = vmatprep.mubr.bf16.mxu1 %v11434_v49  ;;  %v8112_v53 = vsel %vm2225_vm5, %v2255_v6, %v2257_v27  ;;  %v8121_v7 = vsel %vm2225_vm5, %v2257_v27, %v2259_v33 }
 0x167   : > { %11436 = vst [vmem:[#allocation45_spill] sm:$0xff] %v8112_v53  ;;  %2459 = vrot.lane.b32.xlu1 %v7850_v28, %s11392_s28  ;;  %v1003_v0 = vpop.f32.mrb[40].mxu0  ;;  %11438 = vst [vmem:[#allocation47_spill] sm:$0xff] %v8121_v7 }
 0x168   : > { %2617 = vrot.lane.b32.xlu0 %v7865_v41, %s11390_s18  ;;  %1371 = vst [vmem:[#allocation4 + $0x1e0] sm:$0xff] %v1003_v0  ;;  %v1005_v3 = vpop.f32.mrb[41].mxu0  ;;  %v1591_v57 = vrot.slane %v1003_v0, 1  ;;  %v1813_v60 = vrot.slane %v1003_v0, 2  ;;  %v8144_v7 = vpop.permute.xlu0 %3297 }
 0x169   : > { %v2411_v63 = vrot.slane %v1005_v3, 4  ;;  %v2789_v49 = vrot.slane %v1005_v3, 5  ;;  %v2261_v6 = vrot.slane %v1005_v3, 3  ;;  %v1007_v28 = vpop.f32.mrb[42].mxu0  ;;  %11444 = vst [vmem:[#allocation53_spill] sm:$0xff] %v8144_v7 }
 0x16a   : > { %v8124_v47 = vsel %vm1551_vm3, %v1589_v43, %v1591_v57  ;;  %v8127_v23 = vsel %vm1773_vm2, %v1811_v62, %v1813_v60  ;;  %v8142_v43 = vpop.permute.xlu1 %3302  ;;  %1374 = vst [vmem:[#allocation4 + $0x1f8] sm:$0xff] %v1007_v28  ;;  %v1009_v62 = vpop.f32.mrb[43].mxu0  ;;  %v1593_v53 = vrot.slane %v1007_v28, 1 }
 0x16b   : > { %11439 = vst [vmem:[#allocation48_spill] sm:$0xff] %v8127_v23  ;;  %2837 = vrot.lane.b32.xlu1 %v7853_v32, %s11388_s29  ;;  %v8134_v27 = vsel %vm2375_vm4, %v2409_v8, %v2411_v63  ;;  %v8137_v0 = vsel %vm2757_vm7, %v2787_v38, %v2789_v49  ;;  %v8140_v3 = vsel %vm2225_vm5, %v2259_v33, %v2261_v6  ;;  %11443 = vst [vmem:[#allocation52_spill] sm:$0xff] %v8142_v43 }
 0x16c   : > { %2461 = vrot.lane.b32.xlu0 %v7865_v41, %s11392_s28  ;;  %11440 = vst [vmem:[#allocation49_spill] sm:$0xff] %v8134_v27  ;;  %11441 = vst [vmem:[#allocation50_spill] sm:$0xff] %v8137_v0  ;;  %v1184_v41 = vpop.f32.mrb[20].mxu1  ;;  %v8160_v0 = vpop.permute.xlu0 %3307 }
 0x16d   : > { %11442 = vst [vmem:[#allocation51_spill] sm:$0xff] %v8140_v3  ;;  %1343 = vst.msk [vmem:[#allocation4 + $0x100] sm:$0xff] %vm1312_vm6, %v1184_v41  ;;  %v1186_v8 = vpop.f32.mrb[21].mxu1  ;;  %v2413_v3 = vrot.slane %v1009_v62, 4  ;;  %v1815_v41 = vrot.slane %v1007_v28, 2 }
 0x16e   : > { %v1187_v38 = vpop.f32.mrb[22].mxu1  ;;  %v8157_v7 = vpop.permute.xlu1 %3312  ;;  %11446 = vst [vmem:[#allocation55_spill] sm:$0xff] %v8160_v0  ;;  %v8176_v0 = vsel %vm1551_vm3, %v1591_v57, %v1593_v53 }
 0x16f   : > { %1641 = vrot.lane.b32.xlu1 %v7856_v35, %s11392_s28  ;;  %v8150_v32 = vpop.f32.mrb[44].mxu0  ;;  %1346 = vst.msk [vmem:[#allocation4 + $0x118] sm:$0xff] %vm1312_vm6, %v1187_v38  ;;  %v1189_v43 = vpop.f32.mrb[23].mxu1  ;;  %11445 = vst [vmem:[#allocation54_spill] sm:$0xff] %v8157_v7  ;;  %v8170_v7 = vsel %vm2375_vm4, %v2411_v63, %v2413_v3  ;;  %v8184_v28 = vsel %vm1773_vm2, %v1813_v60, %v1815_v41 }
 0x170   : > { %2839 = vrot.lane.b32.xlu0 %v7868_v42, %s11388_s29  ;;  %1377 = vst [vmem:[#allocation4 + $0x210] sm:$0xff] %v8150_v32  ;;  %v8154_v33 = vpop.f32.mrb[45].mxu0  ;;  %v2791_v42 = vrot.slane %v1009_v62, 5  ;;  %v1817_v8 = vrot.slane %v8150_v32, 2 }
 0x171   : > { %v2415_v43 = vrot.slane %v8154_v33, 4  ;;  %v2793_v38 = vrot.slane %v8154_v33, 5  ;;  %v2265_v57 = vrot.slane %v8154_v33, 3 }
 0x172   : > { %v8173_v35 = vsel %vm2757_vm7, %v2789_v49, %v2791_v42  ;;  %v8187_v23 = vsel %vm1773_vm2, %v1815_v41, %v1817_v8  ;;  %v8208_v41 = vpop.permute.xlu0 %3317 }
 0x173   : > { %2019 = vrot.lane.b32.xlu1 %v7859_v36, %s11388_s29  ;;  %11447 = vst [vmem:[#allocation56_spill] sm:$0xff] %v8173_v35  ;;  %v8190_v63 = vsel %vm2375_vm4, %v2413_v3, %v2415_v43  ;;  %v8193_v49 = vsel %vm2757_vm7, %v2791_v42, %v2793_v38  ;;  %v2263_v35 = vrot.slane %v1009_v62, 3  ;;  %11452 = vst [vmem:[#allocation60_spill] sm:$0xff] %v8208_v41 }
 0x174   : > { %1643 = vrot.lane.b32.xlu0 %v7890_v10, %s11392_s28  ;;  %v11448_v10 = vrot.slane %v8150_v32, 1 }
 0x175   : > { %v8203_v60 = vsel %vm2225_vm5, %v2261_v6, %v2263_v35  ;;  %v8206_v3 = vsel %vm2225_vm5, %v2263_v35, %v2265_v57 }
 0x176   : > { %v8181_v27 = vsel %vm1551_vm3, %v1593_v53, %v11448_v10  ;;  %v8200_v53 = vpop.permute.xlu1 %3322  ;;  %11450 = vst [vmem:[#allocation58_spill] sm:$0xff] %v8203_v60  ;;  %11451 = vst [vmem:[#allocation59_spill] sm:$0xff] %v8206_v3  ;;  %v8216_v33 = vpop.permute.xlu0 %3327 }
 0x177   : > { %1863 = vrot.lane.b32.xlu1 %v7859_v36, %s11390_s18  ;;  %11449 = vst [vmem:[#allocation57_spill] sm:$0xff] %v8200_v53  ;;  %11454 = vst [vmem:[#allocation62_spill] sm:$0xff] %v8216_v33  ;;  %v1017_v36 = vpop.f32.mrb[46].mxu0  ;;  %v11459_v53 = vrot.slane %v8150_v32, 1 }
 0x178   : > { %2021 = vrot.lane.b32.xlu0 %v7893_v13, %s11388_s29  ;;  %1380 = vst [vmem:[#allocation4 + $0x228] sm:$0xff] %v1017_v36  ;;  %v1019_v6 = vpop.f32.mrb[47].mxu0  ;;  %v1597_v33 = vrot.slane %v1017_v36, 1 }
 0x179   : > { %v8230_v35 = vpop.f32.mrb[48].mxu0 }
 0x17a   : > { %v8214_v62 = vpop.permute.xlu1 %3332  ;;  %v8228_v42 = vpop.permute.xlu0 %3337  ;;  %1383 = vst [vmem:[#allocation4 + $0x240] sm:$0xff] %v8230_v35 }
 0x17b   : > { %2619 = vrot.lane.b32.xlu1 %v7903_v11, %s11390_s18  ;;  %11453 = vst [vmem:[#allocation61_spill] sm:$0xff] %v8214_v62  ;;  %11456 = vst [vmem:[#allocation64_spill] sm:$0xff] %v8228_v42  ;;  %v8233_v10 = vpop.f32.mrb[49].mxu0  ;;  %v2417_v42 = vrot.slane %v1019_v6, 4  ;;  %v2795_v62 = vrot.slane %v1019_v6, 5 }
 0x17c   : > { %1865 = vrot.lane.b32.xlu0 %v7893_v13, %s11390_s18 }
 0x17e   : > { %v8226_v13 = vpop.permute.xlu1 %3342  ;;  %v8244_v3 = vpop.permute.xlu0 %3347 }
 0x17f   : > { %2463 = vrot.lane.b32.xlu1 %v7903_v11, %s11392_s28  ;;  %11455 = vst [vmem:[#allocation63_spill] sm:$0xff] %v8226_v13  ;;  %v1192_v11 = vpop.f32.mrb[24].mxu1  ;;  %11458 = vst [vmem:[#allocation66_spill] sm:$0xff] %v8244_v3 }
 0x180   : > { %2621 = vrot.lane.b32.xlu0 %v7918_v22, %s11390_s18  ;;  %1349 = vst.msk [vmem:[#allocation4 + $0x130] sm:$0xff] %vm1312_vm6, %v1192_v11  ;;  %v11332_v11 = vrot.slane %v8233_v10, 5 }
 0x182   : > { %v8242_v41 = vpop.permute.xlu1 %3352 }
 0x183   : > { %2841 = vrot.lane.b32.xlu1 %v7906_v19, %s11388_s29  ;;  %v1194_v19 = vpop.f32.mrb[25].mxu1  ;;  %11457 = vst [vmem:[#allocation65_spill] sm:$0xff] %v8242_v41  ;;  %v11460_v41 = vrot.slane %v8230_v35, 1 }
 0x184   : > { %2465 = vrot.lane.b32.xlu0 %v7918_v22, %s11392_s28  ;;  %v1195_v22 = vpop.f32.mrb[26].mxu1  ;;  %v8254_v19 = vsel %vm2375_vm4, %v2415_v43, %v2417_v42 }
 0x185   : > { %1352 = vst.msk [vmem:[#allocation4 + $0x148] sm:$0xff] %vm1312_vm6, %v1195_v22  ;;  %v1197_v13 = vpop.f32.mrb[27].mxu1  ;;  %v8257_v22 = vsel %vm2757_vm7, %v2793_v38, %v2795_v62  ;;  %v11461_v38 = vrot.slane %v8233_v10, 4 }
 0x187   : > { %1645 = vrot.lane.b32.xlu1 %v7909_v26, %s11392_s28  ;;  %v1819_v26 = vrot.slane %v1017_v36, 2  ;;  %v8267_v36 = vsel %vm1551_vm3, %v1597_v33, %v11460_v41  ;;  %v8280_v32 = vsel %vm2375_vm4, %v2417_v42, %v11461_v38  ;;  %v2267_v41 = vrot.slane %v1019_v6, 3  ;;  %v8307_v6 = vld [vmem:[%s11307_s3] ss:$0 sm:$0xff] }
 0x188   : > { %2843 = vrot.lane.b32.xlu0 %v7921_v30, %s11388_s29  ;;  %v11331_v30 = vrot.slane %v8230_v35, 2  ;;  %v1476_v38 = vadd.f32 %v8307_v6, %v7710_v37 }
 0x189   : > { %v8270_v13 = vsel %vm1773_vm2, %v1817_v8, %v1819_v26  ;;  %v8293_v8 = vsel %vm2225_vm5, %v2265_v57, %v2267_v41 }
 0x18a   : > { %v8275_v43 = vsel %vm1773_vm2, %v1819_v26, %v11331_v30  ;;  %11462 = vst [vmem:[#allocation67_spill] sm:$0xff] %v8293_v8  ;;  %v8300_v26 = vpop.permute.xlu1 %3362  ;;  %v1200_v8 = vpop.f32.mrb[28].mxu1 }
 0x18b   : > { %2023 = vrot.lane.b32.xlu1 %v7912_v16, %s11388_s29  ;;  %11464 = vst [vmem:[#allocation69_spill] sm:$0xff] %v8300_v26  ;;  %v1027_v26 = vpop.f32.mrb[50].mxu0  ;;  %1355 = vst.msk [vmem:[#allocation4 + $0x160] sm:$0xff] %vm1312_vm6, %v1200_v8 }
 0x18c   : > { %1647 = vrot.lane.b32.xlu0 %v7940_v9, %s11392_s28  ;;  %v8262_v9 = vsel %vm1551_vm3, %v11459_v53, %v1597_v33  ;;  %v8285_v53 = vsel %vm2757_vm7, %v2795_v62, %v11332_v11  ;;  %v11330_v33 = vrot.slane %v8233_v10, 3  ;;  %v8302_v62 = vpop.permute.xlu0 %3357  ;;  %1386 = vst [vmem:[#allocation4 + $0x258] sm:$0xff] %v1027_v26  ;;  %v1029_v37 = vpop.f32.mrb[51].mxu0  ;;  %v1601_v8 = vrot.slane %v1027_v26, 1 }
 0x18d   : > { %11465 = vst [vmem:[#allocation70_spill] sm:$0xff] %v8302_v62  ;;  %v2799_v60 = vrot.slane %v1029_v37, 5 }
 0x18e   : > { %v8298_v42 = vsel %vm2225_vm5, %v2267_v41, %v11330_v33  ;;  %v2151_v33 = vld [vmem:[#allocation4 + $0x38] sm:$0xf8] }
 0x18f   : > { %1867 = vrot.lane.b32.xlu1 %v7912_v16, %s11390_s18  ;;  %11463 = vst [vmem:[#allocation68_spill] sm:$0xff] %v8298_v42 }
 0x190   : > { %2025 = vrot.lane.b32.xlu0 %v7943_v44, %s11388_s29 }
 0x193   : > { %2623 = vrot.lane.b32.xlu1 %v7950_v56, %s11390_s18 }
 0x194   : > { %1869 = vrot.lane.b32.xlu0 %v7943_v44, %s11390_s18  ;;  %v2226_v44 = vrot.slane %v2151_v33, 3 }
 0x195   : > { %v1848_v16 = vpop.permute.xlu1 %1847 }
 0x196   : > { %v1626_v57 = vpop.permute.xlu0 %1625 }
 0x197   : > { %2467 = vrot.lane.b32.xlu1 %v7950_v56, %s11392_s28  ;;  %v1733_v41 = vadd.f32 %v1626_v57, %v1476_v38  ;;  %v1477_v56 = vadd.f32 %v8307_v6, %v7715_v39  ;;  %v8325_v38 = vpop.f32.mrb[52].mxu0  ;;  %v1202_v39 = vpop.f32.mrb[29].mxu1 }
 0x198   : > { %2625 = vrot.lane.b32.xlu0 %v7966_v31, %s11390_s18  ;;  %1389 = vst [vmem:[#allocation4 + $0x270] sm:$0xff] %v8325_v38  ;;  %v8335_v33 = vpop.f32.mrb[53].mxu0 }
 0x199   : > { %v1630_v11 = vpop.permute.xlu1 %1629  ;;  %v1955_v62 = vadd.f32 %v1848_v16, %v1733_v41  ;;  %v1203_v16 = vpop.f32.mrb[30].mxu1 }
 0x19a   : > { %v1628_v30 = vpop.permute.xlu0 %1627  ;;  %1358 = vst.msk [vmem:[#allocation4 + $0x178] sm:$0xff] %vm1312_vm6, %v1203_v16 }
 0x19b   : > { %2845 = vrot.lane.b32.xlu1 %v7953_v18, %s11388_s29  ;;  %v11466_v18 = vrot.slane %v7721_v52, 3  ;;  %v2421_v52 = vrot.slane %v1029_v37, 4 }
 0x19c   : > { %2469 = vrot.lane.b32.xlu0 %v7966_v31, %s11392_s28 }
 0x19d   : > { %v2008_v42 = vpop.permute.xlu1 %2007  ;;  %v2228_v31 = vsel %vm2225_vm5, %v2226_v44, %v11466_v18  ;;  %v1205_v44 = vpop.f32.mrb[31].mxu1  ;;  %v11469_v18 = vrot.slane %v8233_v10, 4 }
 0x19e   : > { %v1850_v3 = vpop.permute.xlu0 %1849  ;;  %v2115_v57 = vadd.f32 %v2008_v42, %v1955_v62  ;;  %v1734_v42 = vadd.f32 %v1628_v30, %v1477_v56  ;;  %v11334_v30 = vrot.slane %v8325_v38, 1  ;;  %v1823_v56 = vrot.slane %v1027_v26, 2 }
 0x19f   : > { %1649 = vrot.lane.b32.xlu1 %v7956_v15, %s11392_s28  ;;  %v11472_v26 = vrot.slane %v8230_v35, 1 }
 0x1a0   : > { %2847 = vrot.lane.b32.xlu0 %v7969_v25, %s11388_s29  ;;  %v8338_v62 = vadd.f32 %v2228_v31, %v2115_v57  ;;  %v1956_v15 = vadd.f32 %v1850_v3, %v1734_v42  ;;  %v8352_v31 = vsel %vm2375_vm4, %v11469_v18, %v2421_v52  ;;  %v11470_v3 = vrot.slane %v8233_v10, 5 }
 0x1a1   : > { %v8340_v25 = vpop.permute.xlu1 %2449  ;;  %v8364_v57 = vsel %vm1551_vm3, %v11472_v26, %v1601_v8  ;;  %v8369_v18 = vsel %vm1551_vm3, %v1601_v8, %v11334_v30 }
 0x1a2   : > { %11467 = vst [vmem:[#allocation71_spill] sm:$0xff] %v8338_v62  ;;  %v1852_v41 = vpop.permute.xlu0 %1851  ;;  %11468 = vst [vmem:[#allocation72_spill] sm:$0xff] %v8340_v25  ;;  %v8357_v39 = vsel %vm2757_vm7, %v11470_v3, %v2799_v60  ;;  %v11474_v25 = vrot.slane %v8230_v35, 2  ;;  %v2271_v35 = vrot.slane %v1029_v37, 3 }
 0x1a3   : > { %2027 = vrot.lane.b32.xlu1 %v7959_v40, %s11388_s29  ;;  %11471 = vst [vmem:[#allocation73_spill] sm:$0xff] %v8357_v39  ;;  %11473 = vst [vmem:[#allocation74_spill] sm:$0xff] %v8364_v57  ;;  %v11476_v39 = vrot.slane %v8335_v33, 4  ;;  %v11477_v57 = vrot.slane %v8335_v33, 5 }
 0x1a4   : > { %1651 = vrot.lane.b32.xlu0 %v7983_v59, %s11392_s28  ;;  %v8374_v3 = vsel %vm1773_vm2, %v11474_v25, %v1823_v56  ;;  %v11475_v59 = vrot.slane %v8325_v38, 2  ;;  %v7234_v25 = vld [vmem:[#allocation4 + $0x30] sm:$0xff] }
 0x1a5   : > { %v1632_v44 = vpop.permute.xlu1 %1631  ;;  %v8384_v26 = vsel %vm2375_vm4, %v2421_v52, %v11476_v39  ;;  %v8389_v8 = vsel %vm2757_vm7, %v2799_v60, %v11477_v57  ;;  %v11333_v52 = vrot.slane %v8335_v33, 3  ;;  %v11479_v60 = vrot.slane %v8233_v10, 3 }
 0x1a6   : > { %v2010_v16 = vpop.permute.xlu0 %2009  ;;  %v8379_v42 = vsel %vm1773_vm2, %v1823_v56, %v11475_v59 }
 0x1a7   : > { %v2116_v62 = vadd.f32 %v2010_v16, %v1956_v15  ;;  %1871 = vrot.lane.b32.xlu1 %v7959_v40, %s11390_s18  ;;  %v1478_v15 = vadd.f32 %v7234_v25, %v8307_v6  ;;  %v8405_v57 = vsel %vm2225_vm5, %v11479_v60, %v2271_v35  ;;  %v8410_v40 = vsel %vm2225_vm5, %v2271_v35, %v11333_v52 }
 0x1a8   : > { %2029 = vrot.lane.b32.xlu0 %v7986_v48, %s11388_s29  ;;  %11480 = vst [vmem:[#allocation76_spill] sm:$0xff] %v8405_v57  ;;  %11481 = vst [vmem:[#allocation77_spill] sm:$0xff] %v8410_v40 }
 0x1a9   : > { %v8397_v56 = vadd.f32 %v7762_v20, %v2116_v62  ;;  %v8400_v59 = vpop.permute.xlu1 %1633  ;;  %v1735_v16 = vadd.f32 %v1630_v11, %v1478_v15 }
 0x1aa   : > { %v1854_v39 = vpop.permute.xlu0 %1853 }
 0x1ab   : > { %11478 = vst [vmem:[#allocation75_spill] sm:$0xff] %v8397_v56  ;;  %2627 = vrot.lane.b32.xlu1 %v7993_v34, %s11390_s18  ;;  %v1957_v20 = vadd.f32 %v1852_v41, %v1735_v16  ;;  %v1037_v41 = vpop.f32.mrb[54].mxu0  ;;  %v1479_v16 = vadd.f32 %v8307_v6, %v7719_v51 }
 0x1ac   : > { %1873 = vrot.lane.b32.xlu0 %v7986_v48, %s11390_s18  ;;  %1392 = vst [vmem:[#allocation4 + $0x288] sm:$0xff] %v1037_v41  ;;  %v1039_v25 = vpop.f32.mrb[55].mxu0  ;;  %v1827_v51 = vrot.slane %v1037_v41, 2 }
 0x1ad   : > { %v2012_v62 = vpop.permute.xlu1 %2011  ;;  %v2425_v52 = vrot.slane %v1039_v25, 4  ;;  %v2803_v30 = vrot.slane %v1039_v25, 5 }
 0x1ae   : > { %v8416_v37 = vpop.permute.xlu0 %2451  ;;  %v2117_v10 = vadd.f32 %v2012_v62, %v1957_v20 }
 0x1af   : > { %11482 = vst [vmem:[#allocation78_spill] sm:$0xff] %v8416_v37  ;;  %2471 = vrot.lane.b32.xlu1 %v7993_v34, %s11392_s28  ;;  %v8435_v34 = vpop.f32.mrb[56].mxu0 }
 0x1b0   : > { %2629 = vrot.lane.b32.xlu0 %v8012_v58, %s11390_s18  ;;  %v8423_v11 = vadd.f32 %v7778_v29, %v2117_v10  ;;  %v1208_v29 = vpop.f32.mrb[32].mxu1  ;;  %1395 = vst [vmem:[#allocation4 + $0x2a0] sm:$0xff] %v8435_v34 }
 0x1b1   : > { %v1856_v48 = vpop.permute.xlu1 %1855  ;;  %1361 = vst.msk [vmem:[#allocation4 + $0x190] sm:$0xff] %vm1312_vm6, %v1208_v29  ;;  %v1605_v29 = vrot.slane %v1037_v41, 1 }
 0x1b2   : > { %11483 = vst [vmem:[#allocation79_spill] sm:$0xff] %v8423_v11  ;;  %v8425_v35 = vpop.permute.xlu0 %2609  ;;  %v11487_v11 = vrot.slane %v8335_v33, 4 }
 0x1b3   : > { %11484 = vst [vmem:[#allocation80_spill] sm:$0xff] %v8425_v35  ;;  %2849 = vrot.lane.b32.xlu1 %v7996_v5, %s11388_s29  ;;  %v1210_v5 = vpop.f32.mrb[33].mxu1  ;;  %v11490_v35 = vrot.slane %v8325_v38, 1 }
 0x1b4   : > { %2473 = vrot.lane.b32.xlu0 %v8012_v58, %s11392_s28  ;;  %v8442_v58 = vpop.f32.mrb[57].mxu0  ;;  %v1211_v20 = vpop.f32.mrb[34].mxu1  ;;  %v11335_v5 = vrot.slane %v8435_v34, 1 }
 0x1b5   : > { %v8433_v60 = vpop.permute.xlu1 %2453  ;;  %1364 = vst.msk [vmem:[#allocation4 + $0x1a8] sm:$0xff] %vm1312_vm6, %v1211_v20  ;;  %v8471_v41 = vsel %vm1551_vm3, %v11490_v35, %v1605_v29  ;;  %v2427_v35 = vrot.slane %v8442_v58, 4 }
 0x1b6   : > { %v8431_v15 = vpop.permute.xlu0 %2831  ;;  %11486 = vst [vmem:[#allocation82_spill] sm:$0xff] %v8433_v60 }
 0x1b7   : > { %11485 = vst [vmem:[#allocation81_spill] sm:$0xff] %v8431_v15  ;;  %1653 = vrot.lane.b32.xlu1 %v8001_v17, %s11392_s28  ;;  %v1213_v17 = vpop.f32.mrb[35].mxu1 }
 0x1b8   : > { %2851 = vrot.lane.b32.xlu0 %v8015_v14, %s11388_s29  ;;  %v1736_v14 = vadd.f32 %v1632_v44, %v1479_v16  ;;  %v8459_v44 = vsel %vm2375_vm4, %v11487_v11, %v2425_v52  ;;  %v11491_v11 = vrot.slane %v8325_v38, 2  ;;  %v1480_v38 = vadd.f32 %v8307_v6, %v7733_v61 }
 0x1b9   : > { %v8447_v10 = vpop.permute.xlu1 %1857  ;;  %v11496_v61 = vrot.slane %v8335_v33, 3 }
 0x1ba   : > { %v1636_v62 = vpop.permute.xlu0 %1635  ;;  %v1958_v60 = vadd.f32 %v1854_v39, %v1736_v14  ;;  %v8476_v39 = vsel %vm1551_vm3, %v1605_v29, %v11335_v5  ;;  %v8481_v14 = vsel %vm1773_vm2, %v11491_v11, %v1827_v51  ;;  %v2805_v29 = vrot.slane %v8442_v58, 5 }
 0x1bb   : > { %2031 = vrot.lane.b32.xlu1 %v8004_v45, %s11388_s29  ;;  %v8505_v5 = vsel %vm2375_vm4, %v2425_v52, %v2427_v35  ;;  %v1737_v37 = vadd.f32 %v8400_v59, %v1480_v38 }
 0x1bc   : > { %1655 = vrot.lane.b32.xlu0 %v8030_v55, %s11392_s28  ;;  %v11489_v55 = vrot.slane %v8335_v33, 5  ;;  %v11499_v33 = vld [vmem:[#allocation12_spill] sm:$0xff] }
 0x1bd   : > { %v8461_v20 = vpop.permute.xlu1 %2611 }
 0x1be   : > { %v2014_v16 = vpop.permute.xlu0 %2013  ;;  %11488 = vst [vmem:[#allocation83_spill] sm:$0xff] %v8461_v20  ;;  %v8466_v17 = vsel %vm2757_vm7, %v11489_v55, %v2803_v30  ;;  %v11492_v20 = vrot.slane %v8435_v34, 2 }
 0x1bf   : > { %v2118_v15 = vadd.f32 %v2014_v16, %v1958_v60  ;;  %1875 = vrot.lane.b32.xlu1 %v8004_v45, %s11390_s18  ;;  %v2275_v16 = vrot.slane %v1039_v25, 3  ;;  %v8508_v45 = vsel %vm2757_vm7, %v2803_v30, %v2805_v29  ;;  %v1959_v30 = vadd.f32 %v1856_v48, %v1737_v37  ;;  %v11503_v48 = vld [vmem:[#allocation33_spill] sm:$0xff] }
 0x1c0   : > { %v8486_v55 = vsel %vm1773_vm2, %v1827_v51, %v11492_v20  ;;  %2033 = vrot.lane.b32.xlu0 %v8033_v46, %s11388_s29  ;;  %v11336_v51 = vrot.slane %v8442_v58, 3 }
 0x1c1   : > { %v8497_v60 = vadd.f32 %v7827_v1, %v2118_v15  ;;  %v8502_v11 = vpop.permute.xlu1 %2833  ;;  %v8514_v1 = vsel %vm2225_vm5, %v11496_v61, %v2275_v16  ;;  %v11502_v61 = vld [vmem:[#allocation8_spill] sm:$0xff] }
 0x1c2   : > { %v8500_v20 = vpop.permute.xlu0 %2455  ;;  %11495 = vst [vmem:[#allocation86_spill] sm:$0xff] %v8502_v11  ;;  %11497 = vst [vmem:[#allocation87_spill] sm:$0xff] %v8514_v1  ;;  %v8519_v25 = vsel %vm2225_vm5, %v2275_v16, %v11336_v51  ;;  %v1481_v37 = vadd.f32 %v8307_v6, %v11502_v61  ;;  %v11506_v61 = vld [vmem:[#allocation34_spill] sm:$0xff] }
 0x1c3   : > { %11493 = vst [vmem:[#allocation84_spill] sm:$0xff] %v8497_v60  ;;  %11494 = vst [vmem:[#allocation85_spill] sm:$0xff] %v8500_v20  ;;  %2631 = vrot.lane.b32.xlu1 %v8042_v4, %s11390_s18  ;;  %v11505_v20 = vld [vmem:[#allocation37_spill] sm:$0xff] }
 0x1c4   : > { %11498 = vst [vmem:[#allocation88_spill] sm:$0xff] %v8519_v25  ;;  %1877 = vrot.lane.b32.xlu0 %v8033_v46, %s11390_s18 }
 0x1c5   : > { %v8525_v15 = vpop.permute.xlu1 %1637 }
 0x1c6   : > { %v2016_v52 = vpop.permute.xlu0 %2015 }
 0x1c7   : > { %v2119_v59 = vadd.f32 %v2016_v52, %v1959_v30  ;;  %2475 = vrot.lane.b32.xlu1 %v8042_v4, %s11392_s28  ;;  %v1047_v30 = vpop.f32.mrb[58].mxu0  ;;  %v1738_v52 = vadd.f32 %v1636_v62, %v1481_v37 }
 0x1c8   : > { %2633 = vrot.lane.b32.xlu0 %v8060_v50, %s11390_s18  ;;  %1398 = vst [vmem:[#allocation4 + $0x2b8] sm:$0xff] %v1047_v30  ;;  %v1049_v4 = vpop.f32.mrb[59].mxu0 }
 0x1c9   : > { %v8532_v38 = vadd.f32 %v11499_v33, %v2119_v59  ;;  %v8536_v46 = vpop.permute.xlu1 %2613  ;;  %v8548_v33 = vpop.f32.mrb[60].mxu0  ;;  %v1960_v37 = vadd.f32 %v8447_v10, %v1738_v52  ;;  %v2807_v11 = vrot.slane %v1049_v4, 5  ;;  %v1831_v10 = vrot.slane %v1047_v30, 2 }
 0x1ca   : > { %v8534_v16 = vpop.permute.xlu0 %1859  ;;  %11501 = vst [vmem:[#allocation89_spill] sm:$0xff] %v8536_v46  ;;  %1401 = vst [vmem:[#allocation4 + $0x2d0] sm:$0xff] %v8548_v33  ;;  %v11338_v52 = vrot.slane %v8548_v33, 2 }
 0x1cb   : > { %11500 = vst [vmem:[#allocation12_spill] sm:$0xff] %v8532_v38  ;;  %2853 = vrot.lane.b32.xlu1 %v11503_v48, %s11388_s29  ;;  %v1216_v38 = vpop.f32.mrb[36].mxu1 }
 0x1cc   : > { %2477 = vrot.lane.b32.xlu0 %v8060_v50, %s11392_s28  ;;  %v8555_v50 = vpop.f32.mrb[61].mxu0  ;;  %1367 = vst.msk [vmem:[#allocation4 + $0x1c0] sm:$0xff] %vm1312_vm6, %v1216_v38  ;;  %v1218_v62 = vpop.f32.mrb[37].mxu1  ;;  %v1609_v38 = vrot.slane %v1047_v30, 1 }
 0x1cd   : > { %v8546_v59 = vpop.permute.xlu1 %1639  ;;  %v1219_v48 = vpop.f32.mrb[38].mxu1  ;;  %v11337_v62 = vrot.slane %v8548_v33, 1 }
 0x1ce   : > { %v8544_v51 = vpop.permute.xlu0 %2457  ;;  %1370 = vst.msk [vmem:[#allocation4 + $0x1d8] sm:$0xff] %vm1312_vm6, %v1219_v48  ;;  %v1221_v56 = vpop.f32.mrb[39].mxu1  ;;  %v11512_v48 = vrot.slane %v8435_v34, 1 }
 0x1cf   : > { %11504 = vst [vmem:[#allocation8_spill] sm:$0xff] %v8544_v51  ;;  %1657 = vrot.lane.b32.xlu1 %v11506_v61, %s11392_s28  ;;  %v11508_v61 = vld [vmem:[#allocation35_spill] sm:$0xff]  ;;  %v8575_v56 = vsel %vm2757_vm7, %v2805_v29, %v2807_v11  ;;  %v8587_v30 = vsel %vm1551_vm3, %v1609_v38, %v11337_v62  ;;  %v8597_v29 = vsel %vm1773_vm2, %v1831_v10, %v11338_v52 }
 0x1d0   : > { %2855 = vrot.lane.b32.xlu0 %v11505_v20, %s11388_s29  ;;  %v2429_v20 = vrot.slane %v1049_v4, 4  ;;  %v8582_v1 = vsel %vm1551_vm3, %v11512_v48, %v1609_v38  ;;  %v11514_v48 = vld [vmem:[#allocation41_spill] sm:$0xff]  ;;  %v11339_v38 = vrot.slane %v8555_v50, 5 }
 0x1d1   : > { %v2018_v60 = vpop.permute.xlu1 %2017 }
 0x1d2   : > { %v8559_v51 = vpop.permute.xlu0 %2835  ;;  %v2120_v46 = vadd.f32 %v2018_v60, %v1960_v37  ;;  %v8572_v60 = vsel %vm2375_vm4, %v2427_v35, %v2429_v20  ;;  %v8617_v52 = vsel %vm2757_vm7, %v2807_v11, %v11339_v38 }
 0x1d3   : > { %11507 = vst [vmem:[#allocation33_spill] sm:$0xff] %v8559_v51  ;;  %2035 = vrot.lane.b32.xlu1 %v11508_v61, %s11388_s29  ;;  %v11509_v51 = vld [vmem:[#allocation14_spill] sm:$0xff]  ;;  %11517 = vst [vmem:[#allocation41_spill] sm:$0xff] %v8617_v52  ;;  %v11539_v52 = vrot.slane %v8555_v50, 4 }
 0x1d4   : > { %1659 = vrot.lane.b32.xlu0 %v8079_v2, %s11392_s28  ;;  %v8569_v25 = vadd.f32 %v11509_v51, %v2120_v46  ;;  %v11513_v51 = vrot.slane %v8435_v34, 2  ;;  %v11340_v46 = vrot.slane %v8555_v50, 4 }
 0x1d5   : > { %v8577_v2 = vpop.permute.xlu1 %2615 }
 0x1d6   : > { %11510 = vst [vmem:[#allocation37_spill] sm:$0xff] %v8569_v25  ;;  %v1862_v37 = vpop.permute.xlu0 %1861  ;;  %11511 = vst [vmem:[#allocation34_spill] sm:$0xff] %v8577_v2  ;;  %v8592_v35 = vsel %vm1773_vm2, %v11513_v51, %v1831_v10  ;;  %v8608_v34 = vsel %vm2375_vm4, %v2429_v20, %v11340_v46  ;;  %v2279_v51 = vrot.slane %v1049_v4, 3  ;;  %v11341_v25 = vrot.slane %v8555_v50, 3  ;;  %v11520_v4 = vld [vmem:[#allocation42_spill] sm:$0xff] }
 0x1d7   : > { %1879 = vrot.lane.b32.xlu1 %v11508_v61, %s11390_s18  ;;  %v11518_v61 = vrot.slane %v8442_v58, 3  ;;  %v11524_v58 = vld [vmem:[#allocation9_spill] sm:$0xff] }
 0x1d8   : > { %2037 = vrot.lane.b32.xlu0 %v11514_v48, %s11388_s29  ;;  %v8632_v20 = vsel %vm2225_vm5, %v2279_v51, %v11341_v25  ;;  %v11526_v25 = vld [vmem:[#allocation43_spill] sm:$0xff] }
 0x1d9   : > { %v8612_v10 = vpop.permute.xlu1 %2459  ;;  %v8623_v2 = vsel %vm2225_vm5, %v11518_v61, %v2279_v51  ;;  %11521 = vst [vmem:[#allocation42_spill] sm:$0xff] %v8632_v20 }
 0x1da   : > { %v8610_v62 = vpop.permute.xlu0 %2617  ;;  %11516 = vst [vmem:[#allocation14_spill] sm:$0xff] %v8612_v10  ;;  %11519 = vst [vmem:[#allocation90_spill] sm:$0xff] %v8623_v2  ;;  %v11527_v10 = vld [vmem:[#allocation10_spill] sm:$0xff] }
 0x1db   : > { %11515 = vst [vmem:[#allocation35_spill] sm:$0xff] %v8610_v62  ;;  %2635 = vrot.lane.b32.xlu1 %v11520_v4, %s11390_s18 }
 0x1dc   : > { %1881 = vrot.lane.b32.xlu0 %v11514_v48, %s11390_s18  ;;  %v1482_v48 = vadd.f32 %v8307_v6, %v11524_v58 }
 0x1dd   : > { %v8636_v38 = vpop.permute.xlu1 %2837 }
 0x1de   : > { %v8634_v11 = vpop.permute.xlu0 %2461  ;;  %11523 = vst [vmem:[#allocation92_spill] sm:$0xff] %v8636_v38  ;;  %v1739_v51 = vadd.f32 %v8525_v15, %v1482_v48 }
 0x1df   : > { %11522 = vst [vmem:[#allocation91_spill] sm:$0xff] %v8634_v11  ;;  %2479 = vrot.lane.b32.xlu1 %v11520_v4, %s11392_s28  ;;  %v1057_v11 = vpop.f32.mrb[62].mxu0  ;;  %v1483_v4 = vadd.f32 %v8307_v6, %v11527_v10 }
 0x1e0   : > { %2637 = vrot.lane.b32.xlu0 %v8103_v24, %s11390_s18  ;;  %v1961_v38 = vadd.f32 %v8534_v16, %v1739_v51  ;;  %1404 = vst [vmem:[#allocation4 + $0x2e8] sm:$0xff] %v1057_v11  ;;  %v1059_v58 = vpop.f32.mrb[63].mxu0  ;;  %v11528_v51 = vld [vmem:[#allocation16_spill] sm:$0xff] }
 0x1e1   : > { %v8646_v46 = vpop.permute.xlu1 %1641  ;;  %v1740_v20 = vadd.f32 %v8546_v59, %v1483_v4  ;;  %v8659_v48 = vpop.f32.mrb[64].mxu0 }
 0x1e2   : > { %v8644_v61 = vpop.permute.xlu0 %2839  ;;  %1407 = vst [vmem:[#allocation4 + $0x300] sm:$0xff] %v8659_v48 }
 0x1e3   : > { %11525 = vst [vmem:[#allocation9_spill] sm:$0xff] %v8644_v61  ;;  %2857 = vrot.lane.b32.xlu1 %v11526_v25, %s11388_s29  ;;  %v8666_v25 = vpop.f32.mrb[65].mxu0  ;;  %v1962_v10 = vadd.f32 %v1862_v37, %v1740_v20  ;;  %v1613_v37 = vrot.slane %v1057_v11, 1  ;;  %v1615_v20 = vrot.slane %v8659_v48, 1 }
 0x1e4   : > { %2481 = vrot.lane.b32.xlu0 %v8103_v24, %s11392_s28  ;;  %v1224_v24 = vpop.f32.mrb[40].mxu1 }
 0x1e5   : > { %v2020_v61 = vpop.permute.xlu1 %2019  ;;  %1373 = vst.msk [vmem:[#allocation4 + $0x1f0] sm:$0xff] %vm1312_vm6, %v1224_v24  ;;  %v1226_v16 = vpop.f32.mrb[41].mxu1  ;;  %v11530_v24 = vld [vmem:[#allocation19_spill] sm:$0xff] }
 0x1e6   : > { %v8656_v62 = vpop.permute.xlu0 %1643  ;;  %v2121_v15 = vadd.f32 %v2020_v61, %v1961_v38  ;;  %v1067_v38 = vpop.f32.mrb[66].mxu0 }
 0x1e7   : > { %1661 = vrot.lane.b32.xlu1 %v8097_v54, %s11392_s28  ;;  %v1227_v61 = vpop.f32.mrb[42].mxu1  ;;  %1410 = vst [vmem:[#allocation4 + $0x318] sm:$0xff] %v1067_v38 }
 0x1e8   : > { %2859 = vrot.lane.b32.xlu0 %v8109_v12, %s11388_s29  ;;  %v8670_v59 = vadd.f32 %v11528_v51, %v2121_v15  ;;  %1376 = vst.msk [vmem:[#allocation4 + $0x208] sm:$0xff] %vm1312_vm6, %v1227_v61  ;;  %v8675_v12 = vpop.f32.mrb[67].mxu0  ;;  %v1229_v40 = vpop.f32.mrb[43].mxu1  ;;  %v1835_v15 = vrot.slane %v1057_v11, 2  ;;  %v2433_v61 = vrot.slane %v1059_v58, 4  ;;  %v11534_v11 = vrot.slane %v8548_v33, 1 }
 0x1e9   : > { %v8672_v2 = vpop.permute.xlu1 %1863  ;;  %v8685_v51 = vpop.f32.mrb[68].mxu0 }
 0x1ea   : > { %11529 = vst [vmem:[#allocation43_spill] sm:$0xff] %v8670_v59  ;;  %v2022_v4 = vpop.permute.xlu0 %2021  ;;  %1413 = vst [vmem:[#allocation4 + $0x330] sm:$0xff] %v8685_v51  ;;  %v8707_v57 = vpop.f32.mrb[69].mxu0 }
 0x1eb   : > { %v2122_v54 = vadd.f32 %v2022_v4, %v1962_v10  ;;  %2039 = vrot.lane.b32.xlu1 %v8100_v21, %s11388_s29  ;;  %v1837_v10 = vrot.slane %v8659_v48, 2  ;;  %v2811_v4 = vrot.slane %v1059_v58, 5 }
 0x1ec   : > { %1663 = vrot.lane.b32.xlu0 %v8124_v47, %s11392_s28  ;;  %v8694_v47 = vsel %vm1551_vm3, %v1613_v37, %v1615_v20 }
 0x1ed   : > { %v8683_v16 = vadd.f32 %v11530_v24, %v2122_v54  ;;  %v8690_v59 = vpop.permute.xlu1 %2619  ;;  %11533 = vst [vmem:[#allocation19_spill] sm:$0xff] %v8694_v47  ;;  %v8699_v54 = vsel %vm1551_vm3, %v11534_v11, %v1613_v37  ;;  %v11536_v24 = vrot.slane %v8548_v33, 2  ;;  %v8715_v47 = vsel %vm2375_vm4, %v11539_v52, %v2433_v61  ;;  %v11541_v37 = vld [vmem:[#allocation48_spill] sm:$0xff] }
 0x1ee   : > { %v8688_v40 = vpop.permute.xlu0 %1865  ;;  %11532 = vst [vmem:[#allocation16_spill] sm:$0xff] %v8690_v59  ;;  %11535 = vst [vmem:[#allocation93_spill] sm:$0xff] %v8699_v54  ;;  %v8710_v59 = vsel %vm1773_vm2, %v1835_v15, %v1837_v10  ;;  %v11542_v33 = vrot.slane %v8555_v50, 5  ;;  %v2285_v52 = vrot.slane %v8666_v25, 3 }
 0x1ef   : > { %11531 = vst [vmem:[#allocation10_spill] sm:$0xff] %v8683_v16  ;;  %v8704_v48 = vsel %vm1773_vm2, %v11536_v24, %v1835_v15  ;;  %v2435_v16 = vrot.slane %v8666_v25, 4  ;;  %11538 = vst [vmem:[#allocation95_spill] sm:$0xff] %v8710_v59  ;;  %1883 = vrot.lane.b32.xlu1 %v8100_v21, %s11390_s18  ;;  %v2813_v15 = vrot.slane %v8666_v25, 5  ;;  %v11547_v21 = vrot.slane %v8555_v50, 3 }
 0x1f0   : > { %11537 = vst [vmem:[#allocation94_spill] sm:$0xff] %v8704_v48  ;;  %11540 = vst [vmem:[#allocation96_spill] sm:$0xff] %v8715_v47  ;;  %2041 = vrot.lane.b32.xlu0 %v11541_v37, %s11388_s29  ;;  %v8724_v11 = vsel %vm2757_vm7, %v11542_v33, %v2811_v4  ;;  %v2283_v48 = vrot.slane %v1059_v58, 3  ;;  %v11550_v58 = vld [vmem:[#allocation49_spill] sm:$0xff]  ;;  %v11347_v50 = vrot.slane %v8685_v51, 1 }
 0x1f1   : > { %v8727_v24 = vsel %vm2375_vm4, %v2433_v61, %v2435_v16  ;;  %v8733_v59 = vpop.permute.xlu1 %2463  ;;  %v8736_v54 = vsel %vm2757_vm7, %v2811_v4, %v2813_v15  ;;  %v1617_v4 = vrot.slane %v1067_v38, 1 }
 0x1f2   : > { %11543 = vst [vmem:[#allocation48_spill] sm:$0xff] %v8727_v24  ;;  %v8731_v47 = vpop.permute.xlu0 %2621  ;;  %11545 = vst [vmem:[#allocation98_spill] sm:$0xff] %v8733_v59  ;;  %v8741_v33 = vsel %vm2225_vm5, %v11547_v21, %v2283_v48  ;;  %v8744_v61 = vsel %vm2225_vm5, %v2283_v48, %v2285_v52  ;;  %v2815_v21 = vrot.slane %v8675_v12, 5 }
 0x1f3   : > { %11544 = vst [vmem:[#allocation97_spill] sm:$0xff] %v8731_v47  ;;  %11546 = vst [vmem:[#allocation99_spill] sm:$0xff] %v8736_v54  ;;  %2639 = vrot.lane.b32.xlu1 %v11550_v58, %s11390_s18  ;;  %v1839_v47 = vrot.slane %v1067_v38, 2  ;;  %v11556_v54 = vrot.slane %v8685_v51, 2 }
 0x1f4   : > { %11548 = vst [vmem:[#allocation100_spill] sm:$0xff] %v8741_v33  ;;  %11549 = vst [vmem:[#allocation101_spill] sm:$0xff] %v8744_v61  ;;  %1885 = vrot.lane.b32.xlu0 %v11541_v37, %s11390_s18  ;;  %v2437_v37 = vrot.slane %v8675_v12, 4  ;;  %v11553_v61 = vld [vmem:[#allocation11_spill] sm:$0xff]  ;;  %v8773_v33 = vsel %vm1551_vm3, %v1617_v4, %v11347_v50  ;;  %v11557_v50 = vld [vmem:[#allocation50_spill] sm:$0xff] }
 0x1f5   : > { %v8752_v59 = vpop.permute.xlu1 %2841  ;;  %v8768_v38 = vsel %vm1773_vm2, %v1837_v10, %v1839_v47  ;;  %v8780_v24 = vsel %vm1773_vm2, %v1839_v47, %v11556_v54  ;;  %v11348_v10 = vrot.slane %v8707_v57, 4  ;;  %v2287_v47 = vrot.slane %v8675_v12, 3  ;;  %v11559_v54 = vld [vmem:[#allocation13_spill] sm:$0xff] }
 0x1f6   : > { %v8750_v25 = vpop.permute.xlu0 %2465  ;;  %11552 = vst [vmem:[#allocation102_spill] sm:$0xff] %v8752_v59  ;;  %v8765_v59 = vsel %vm1551_vm3, %v1615_v20, %v1617_v4  ;;  %11554 = vst [vmem:[#allocation11_spill] sm:$0xff] %v8768_v38  ;;  %v8786_v20 = vsel %vm2757_vm7, %v2813_v15, %v2815_v21  ;;  %v11351_v4 = vrot.slane %v8707_v57, 5  ;;  %v1485_v15 = vadd.f32 %v8307_v6, %v11559_v54  ;;  %v11561_v54 = vld [vmem:[#allocation56_spill] sm:$0xff] }
 0x1f7   : > { %11551 = vst [vmem:[#allocation49_spill] sm:$0xff] %v8750_v25  ;;  %2483 = vrot.lane.b32.xlu1 %v11550_v58, %s11392_s28  ;;  %v1484_v25 = vadd.f32 %v8307_v6, %v11553_v61  ;;  %v8783_v61 = vsel %vm2375_vm4, %v2435_v16, %v2437_v37  ;;  %v8798_v16 = vsel %vm2375_vm4, %v2437_v37, %v11348_v10  ;;  %v11350_v37 = vrot.slane %v8707_v57, 3 }
 0x1f8   : > { %2641 = vrot.lane.b32.xlu0 %v8170_v7, %s11390_s18  ;;  %11558 = vst [vmem:[#allocation50_spill] sm:$0xff] %v8798_v16  ;;  %v1742_v10 = vadd.f32 %v8656_v62, %v1485_v15  ;;  %v1232_v16 = vpop.f32.mrb[44].mxu1 }
 0x1f9   : > { %v1646_v48 = vpop.permute.xlu1 %1645  ;;  %v1741_v38 = vadd.f32 %v8646_v46, %v1484_v25  ;;  %v8807_v25 = vsel %vm2757_vm7, %v2815_v21, %v11351_v4  ;;  %1379 = vst.msk [vmem:[#allocation4 + $0x220] sm:$0xff] %vm1312_vm6, %v1232_v16  ;;  %v8833_v16 = vpop.f32.mrb[70].mxu0 }
 0x1fa   : > { %v8775_v58 = vpop.permute.xlu0 %2843  ;;  %v1964_v21 = vadd.f32 %v8688_v40, %v1742_v10  ;;  %1416 = vst [vmem:[#allocation4 + $0x348] sm:$0xff] %v8833_v16  ;;  %v11352_v4 = vrot.slane %v8833_v16, 1 }
 0x1fb   : > { %11555 = vst [vmem:[#allocation103_spill] sm:$0xff] %v8775_v58  ;;  %2861 = vrot.lane.b32.xlu1 %v11557_v50, %s11388_s29  ;;  %v1963_v46 = vadd.f32 %v8672_v2, %v1741_v38  ;;  %v8810_v50 = vsel %vm2225_vm5, %v2285_v52, %v2287_v47  ;;  %v1234_v2 = vpop.f32.mrb[45].mxu1  ;;  %v8822_v52 = vsel %vm2225_vm5, %v2287_v47, %v11350_v37  ;;  %v11563_v38 = vld [vmem:[#allocation20_spill] sm:$0xff]  ;;  %v11565_v47 = vld [vmem:[#allocation23_spill] sm:$0xff] }
 0x1fc   : > { %2485 = vrot.lane.b32.xlu0 %v8170_v7, %s11392_s28  ;;  %11560 = vst [vmem:[#allocation13_spill] sm:$0xff] %v8810_v50  ;;  %11562 = vst [vmem:[#allocation56_spill] sm:$0xff] %v8822_v52  ;;  %v8841_v2 = vpop.f32.mrb[71].mxu0  ;;  %v11587_v50 = vrot.slane %v8707_v57, 3 }
 0x1fd   : > { %v2024_v58 = vpop.permute.xlu1 %2023 }
 0x1fe   : > { %v1648_v7 = vpop.permute.xlu0 %1647  ;;  %v2123_v12 = vadd.f32 %v2024_v58, %v1963_v46  ;;  %v1235_v58 = vpop.f32.mrb[46].mxu1 }
 0x1ff   : > { %1665 = vrot.lane.b32.xlu1 %v8176_v0, %s11392_s28  ;;  %1382 = vst.msk [vmem:[#allocation4 + $0x238] sm:$0xff] %vm1312_vm6, %v1235_v58  ;;  %v1237_v0 = vpop.f32.mrb[47].mxu1 }
 0x200   : > { %2863 = vrot.lane.b32.xlu0 %v11561_v54, %s11388_s29  ;;  %v8826_v62 = vadd.f32 %v11563_v38, %v2123_v12 }
 0x201   : > { %v1868_v46 = vpop.permute.xlu1 %1867 }
 0x202   : > { %11564 = vst [vmem:[#allocation20_spill] sm:$0xff] %v8826_v62  ;;  %v2026_v15 = vpop.permute.xlu0 %2025 }
 0x203   : > { %v2124_v54 = vadd.f32 %v2026_v15, %v1964_v21  ;;  %2043 = vrot.lane.b32.xlu1 %v8184_v28, %s11388_s29 }
 0x204   : > { %1667 = vrot.lane.b32.xlu0 %v8181_v27, %s11392_s28  ;;  %v8847_v27 = vpop.f32.mrb[72].mxu0 }
 0x205   : > { %v8836_v40 = vadd.f32 %v11565_v47, %v2124_v54  ;;  %v8839_v12 = vpop.permute.xlu1 %2623  ;;  %1419 = vst [vmem:[#allocation4 + $0x360] sm:$0xff] %v8847_v27  ;;  %v11572_v54 = vld [vmem:[#allocation15_spill] sm:$0xff] }
 0x206   : > { %v1870_v10 = vpop.permute.xlu0 %1869  ;;  %11567 = vst [vmem:[#allocation104_spill] sm:$0xff] %v8839_v12  ;;  %v1486_v0 = vadd.f32 %v8307_v6, %v11572_v54  ;;  %v2441_v54 = vrot.slane %v8841_v2, 4 }
 0x207   : > { %11566 = vst [vmem:[#allocation23_spill] sm:$0xff] %v8836_v40  ;;  %1887 = vrot.lane.b32.xlu1 %v8184_v28, %s11390_s18  ;;  %v8866_v28 = vpop.f32.mrb[73].mxu0 }
 0x208   : > { %2045 = vrot.lane.b32.xlu0 %v8187_v23, %s11388_s29  ;;  %v1743_v37 = vadd.f32 %v1646_v48, %v1486_v0  ;;  %v11575_v48 = vrot.slane %v8685_v51, 1 }
 0x209   : > { %v8851_v38 = vpop.permute.xlu1 %2467 }
 0x20a   : > { %v8849_v21 = vpop.permute.xlu0 %2625  ;;  %11569 = vst [vmem:[#allocation106_spill] sm:$0xff] %v8851_v38  ;;  %v1965_v40 = vadd.f32 %v1868_v46, %v1743_v37 }
 0x20b   : > { %11568 = vst [vmem:[#allocation105_spill] sm:$0xff] %v8849_v21  ;;  %2643 = vrot.lane.b32.xlu1 %v8190_v63, %s11390_s18  ;;  %v1240_v21 = vpop.f32.mrb[48].mxu1 }
 0x20c   : > { %1889 = vrot.lane.b32.xlu0 %v8187_v23, %s11390_s18  ;;  %1385 = vst.msk [vmem:[#allocation4 + $0x250] sm:$0xff] %vm1312_vm6, %v1240_v21  ;;  %v2821_v21 = vrot.slane %v8866_v28, 5 }
 0x20d   : > { %v8860_v15 = vpop.permute.xlu1 %2845 }
 0x20e   : > { %v8858_v58 = vpop.permute.xlu0 %2469  ;;  %11571 = vst [vmem:[#allocation108_spill] sm:$0xff] %v8860_v15  ;;  %v11577_v15 = vrot.slane %v8847_v27, 2 }
 0x20f   : > { %11570 = vst [vmem:[#allocation107_spill] sm:$0xff] %v8858_v58  ;;  %2487 = vrot.lane.b32.xlu1 %v8190_v63, %s11392_s28  ;;  %v8880_v63 = vrot.slane %v8833_v16, 2  ;;  %v11574_v58 = vld [vmem:[#allocation17_spill] sm:$0xff] }
 0x210   : > { %2645 = vrot.lane.b32.xlu0 %v8254_v19, %s11390_s18  ;;  %v1487_v38 = vadd.f32 %v8307_v6, %v11574_v58 }
 0x211   : > { %v8872_v23 = vpop.permute.xlu1 %1649  ;;  %v8905_v37 = vsel %vm1773_vm2, %v8880_v63, %v11577_v15  ;;  %v2443_v15 = vrot.slane %v8866_v28, 4 }
 0x212   : > { %v8870_v47 = vpop.permute.xlu0 %2847  ;;  %v1744_v46 = vadd.f32 %v1648_v7, %v1487_v38  ;;  %v11579_v7 = vld [vmem:[#allocation26_spill] sm:$0xff] }
 0x213   : > { %11573 = vst [vmem:[#allocation15_spill] sm:$0xff] %v8870_v47  ;;  %2865 = vrot.lane.b32.xlu1 %v8193_v49, %s11388_s29  ;;  %v11576_v47 = vrot.slane %v8685_v51, 2  ;;  %v1242_v51 = vpop.f32.mrb[49].mxu1 }
 0x214   : > { %2489 = vrot.lane.b32.xlu0 %v8254_v19, %s11392_s28  ;;  %v8891_v19 = vsel %vm1551_vm3, %v11575_v48, %v11352_v4  ;;  %v1966_v4 = vadd.f32 %v1870_v10, %v1744_v46  ;;  %v1243_v38 = vpop.f32.mrb[50].mxu1  ;;  %v11582_v46 = vrot.slane %v8707_v57, 5 }
 0x215   : > { %v2028_v49 = vpop.permute.xlu1 %2027  ;;  %v8899_v52 = vsel %vm1773_vm2, %v11576_v47, %v8880_v63  ;;  %v11578_v47 = vrot.slane %v8707_v57, 4  ;;  %1388 = vst.msk [vmem:[#allocation4 + $0x268] sm:$0xff] %vm1312_vm6, %v1243_v38  ;;  %v1245_v12 = vpop.f32.mrb[51].mxu1 }
 0x216   : > { %v8893_v0 = vpop.permute.xlu0 %1651  ;;  %v2125_v58 = vadd.f32 %v2028_v49, %v1965_v40 }
 0x217   : > { %1669 = vrot.lane.b32.xlu1 %v8262_v9, %s11392_s28  ;;  %v8915_v48 = vsel %vm2375_vm4, %v11578_v47, %v2441_v54  ;;  %v8924_v9 = vsel %vm2375_vm4, %v2441_v54, %v2443_v15  ;;  %v8927_v47 = vpop.f32.mrb[74].mxu0 }
 0x218   : > { %2867 = vrot.lane.b32.xlu0 %v8257_v22, %s11388_s29  ;;  %v8919_v40 = vadd.f32 %v11579_v7, %v2125_v58  ;;  %v2819_v22 = vrot.slane %v8841_v2, 5  ;;  %v8933_v10 = vpop.f32.mrb[75].mxu0  ;;  %v11584_v7 = vld [vmem:[#allocation28_spill] sm:$0xff] }
 0x219   : > { %v1872_v62 = vpop.permute.xlu1 %1871  ;;  %11581 = vst [vmem:[#allocation26_spill] sm:$0xff] %v8933_v10  ;;  %v1093_v38 = vpop.f32.mrb[76].mxu0 }
 0x21a   : > { %11580 = vst [vmem:[#allocation17_spill] sm:$0xff] %v8919_v40  ;;  %v2030_v49 = vpop.permute.xlu0 %2029  ;;  %v8938_v58 = vsel %vm2757_vm7, %v11582_v46, %v2819_v22  ;;  %v8941_v54 = vsel %vm2757_vm7, %v2819_v22, %v2821_v21  ;;  %1425 = vst [vmem:[#allocation4 + $0x390] sm:$0xff] %v1093_v38 }
 0x21b   : > { %v2126_v51 = vadd.f32 %v2030_v49, %v1966_v4  ;;  %2047 = vrot.lane.b32.xlu1 %v8270_v13, %s11388_s29  ;;  %11583 = vst [vmem:[#allocation109_spill] sm:$0xff] %v8938_v58  ;;  %v2291_v4 = vrot.slane %v8841_v2, 3  ;;  %v8955_v58 = vpop.f32.mrb[77].mxu0 }
 0x21c   : > { %1671 = vrot.lane.b32.xlu0 %v8267_v36, %s11392_s28  ;;  %v2293_v36 = vrot.slane %v8866_v28, 3  ;;  %1426 = vst [vmem:[#allocation4 + $0x398] sm:$0xff] %v8955_v58 }
 0x21d   : > { %v8945_v12 = vadd.f32 %v11584_v7, %v2126_v51  ;;  %v8948_v40 = vpop.permute.xlu1 %2627  ;;  %v8953_v46 = vsel %vm2225_vm5, %v11587_v50, %v2291_v4  ;;  %v11353_v51 = vrot.slane %v8927_v47, 2  ;;  %v7235_v7 = vld [vmem:[#allocation4 + $0x120] sm:$0xff] }
 0x21e   : > { %v1874_v49 = vpop.permute.xlu0 %1873  ;;  %11586 = vst [vmem:[#allocation110_spill] sm:$0xff] %v8948_v40  ;;  %11588 = vst [vmem:[#allocation111_spill] sm:$0xff] %v8953_v46  ;;  %v8958_v22 = vsel %vm2225_vm5, %v2291_v4, %v2293_v36  ;;  %v11354_v4 = vrot.slane %v8955_v58, 4  ;;  %v1488_v38 = vadd.f32 %v7235_v7, %v8307_v6  ;;  %v1248_v40 = vpop.f32.mrb[52].mxu1 }
 0x21f   : > { %11585 = vst [vmem:[#allocation28_spill] sm:$0xff] %v8945_v12  ;;  %11589 = vst [vmem:[#allocation112_spill] sm:$0xff] %v8958_v22  ;;  %1891 = vrot.lane.b32.xlu1 %v8270_v13, %s11390_s18  ;;  %v8979_v13 = vrot.slane %v8933_v10, 4  ;;  %v11594_v22 = vrot.slane %v8847_v27, 2  ;;  %v2825_v27 = vrot.slane %v8955_v58, 5 }
 0x220   : > { %2049 = vrot.lane.b32.xlu0 %v8275_v43, %s11388_s29  ;;  %1391 = vst.msk [vmem:[#allocation4 + $0x280] sm:$0xff] %vm1312_vm6, %v1248_v40 }
 0x221   : > { %v8967_v28 = vpop.permute.xlu1 %2471  ;;  %v8993_v46 = vsel %vm1773_vm2, %v11594_v22, %v11353_v51  ;;  %v9008_v7 = vsel %vm2375_vm4, %v8979_v13, %v11354_v4  ;;  %v1745_v22 = vadd.f32 %v8872_v23, %v1488_v38  ;;  %v11356_v51 = vrot.slane %v8933_v10, 3 }
 0x222   : > { %v8965_v2 = vpop.permute.xlu0 %2629  ;;  %11591 = vst [vmem:[#allocation114_spill] sm:$0xff] %v8967_v28 }
 0x223   : > { %11590 = vst [vmem:[#allocation113_spill] sm:$0xff] %v8965_v2  ;;  %2647 = vrot.lane.b32.xlu1 %v8280_v32, %s11390_s18  ;;  %v1967_v4 = vadd.f32 %v1872_v62, %v1745_v22  ;;  %v1250_v62 = vpop.f32.mrb[53].mxu1 }
 0x224   : > { %1893 = vrot.lane.b32.xlu0 %v8275_v43, %s11390_s18  ;;  %v2823_v43 = vrot.slane %v8933_v10, 5 }
 0x225   : > { %v8975_v50 = vpop.permute.xlu1 %2849 }
 0x226   : > { %v8973_v57 = vpop.permute.xlu0 %2473  ;;  %11593 = vst [vmem:[#allocation116_spill] sm:$0xff] %v8975_v50  ;;  %v9002_v12 = vsel %vm2757_vm7, %v2821_v21, %v2823_v43  ;;  %v7236_v21 = vld [vmem:[#allocation4 + $0x138] sm:$0xff]  ;;  %v9024_v50 = vsel %vm2225_vm5, %v2293_v36, %v11356_v51  ;;  %v1251_v36 = vpop.f32.mrb[54].mxu1 }
 0x227   : > { %11592 = vst [vmem:[#allocation115_spill] sm:$0xff] %v8973_v57  ;;  %2491 = vrot.lane.b32.xlu1 %v8280_v32, %s11392_s28  ;;  %v8997_v57 = vsel %vm2375_vm4, %v2443_v15, %v8979_v13  ;;  %v9018_v15 = vsel %vm2757_vm7, %v2823_v43, %v2825_v27  ;;  %11596 = vst [vmem:[#allocation118_spill] sm:$0xff] %v9024_v50  ;;  %v11598_v43 = vld [vmem:[#allocation74_spill] sm:$0xff] }
 0x228   : > { %2649 = vrot.lane.b32.xlu0 %v8352_v31, %s11390_s18  ;;  %1394 = vst.msk [vmem:[#allocation4 + $0x298] sm:$0xff] %vm1312_vm6, %v1251_v36 }
 0x229   : > { %v1654_v32 = vpop.permute.xlu1 %1653 }
 0x22a   : > { %v8999_v28 = vpop.permute.xlu0 %2851 }
 0x22b   : > { %11595 = vst [vmem:[#allocation117_spill] sm:$0xff] %v8999_v28  ;;  %2869 = vrot.lane.b32.xlu1 %v8285_v53, %s11388_s29  ;;  %v1489_v28 = vadd.f32 %v7236_v21, %v8307_v6  ;;  %v11597_v53 = vld [vmem:[#allocation73_spill] sm:$0xff]  ;;  %v11599_v21 = vld [vmem:[#allocation30_spill] sm:$0xff] }
 0x22c   : > { %2493 = vrot.lane.b32.xlu0 %v8352_v31, %s11392_s28 }
 0x22d   : > { %v2032_v38 = vpop.permute.xlu1 %2031  ;;  %v1746_v2 = vadd.f32 %v8893_v0, %v1489_v28  ;;  %v1253_v28 = vpop.f32.mrb[55].mxu1 }
 0x22e   : > { %v1656_v23 = vpop.permute.xlu0 %1655  ;;  %v2127_v31 = vadd.f32 %v2032_v38, %v1967_v4  ;;  %v11600_v4 = vld [vmem:[#allocation36_spill] sm:$0xff] }
 0x22f   : > { %1673 = vrot.lane.b32.xlu1 %v11598_v43, %s11392_s28  ;;  %v1968_v22 = vadd.f32 %v1874_v49, %v1746_v2  ;;  %v1097_v49 = vpop.f32.mrb[78].mxu0 }
 0x230   : > { %2871 = vrot.lane.b32.xlu0 %v11597_v53, %s11388_s29  ;;  %v9033_v10 = vadd.f32 %v11599_v21, %v2127_v31  ;;  %v9045_v31 = vpop.f32.mrb[79].mxu0 }
 0x231   : > { %v1876_v50 = vpop.permute.xlu1 %1875  ;;  %v11357_v28 = vrot.slane %v9045_v31, 4 }
 0x232   : > { %v2034_v51 = vpop.permute.xlu0 %2033 }
 0x233   : > { %v2128_v0 = vadd.f32 %v2034_v51, %v1968_v22  ;;  %2051 = vrot.lane.b32.xlu1 %v8374_v3, %s11388_s29 }
 0x234   : > { %1675 = vrot.lane.b32.xlu0 %v8369_v18, %s11392_s28  ;;  %v1103_v51 = vpop.f32.mrb[80].mxu0 }
 0x235   : > { %v9041_v40 = vadd.f32 %v11600_v4, %v2128_v0  ;;  %v9043_v38 = vpop.permute.xlu1 %2631  ;;  %v1105_v18 = vpop.f32.mrb[81].mxu0 }
 0x236   : > { %v1878_v2 = vpop.permute.xlu0 %1877  ;;  %1432 = vst [vmem:[#allocation4 + $0x3c8] sm:$0x3f] %v1105_v18  ;;  %v1107_v62 = vpop.f32.mrb[82].mxu0  ;;  %v11602_v18 = vrot.slane %v8955_v58, 4 }
 0x237   : > { %1895 = vrot.lane.b32.xlu1 %v8374_v3, %s11390_s18  ;;  %v1108_v22 = vpop.f32.mrb[83].mxu0  ;;  %v7237_v3 = vld [vmem:[#allocation4 + $0x150] sm:$0xff] }
 0x238   : > { %2053 = vrot.lane.b32.xlu0 %v8379_v42, %s11388_s29  ;;  %v1490_v0 = vadd.f32 %v7237_v3, %v8307_v6  ;;  %v9077_v62 = vsel %vm2375_vm4, %v11602_v18, %v11357_v28  ;;  %v7238_v22 = vld [vmem:[#allocation4 + $0x168] sm:$0xff]  ;;  %v1256_v28 = vpop.f32.mrb[56].mxu1 }
 0x239   : > { %v9053_v43 = vpop.permute.xlu1 %2475  ;;  %1397 = vst.msk [vmem:[#allocation4 + $0x2b0] sm:$0xff] %vm1312_vm6, %v1256_v28 }
 0x23a   : > { %v9051_v53 = vpop.permute.xlu0 %2633  ;;  %v1747_v51 = vadd.f32 %v1654_v32, %v1490_v0  ;;  %v1491_v32 = vadd.f32 %v7238_v22, %v8307_v6 }
 0x23b   : > { %2651 = vrot.lane.b32.xlu1 %v8384_v26, %s11390_s18 }
 0x23c   : > { %1897 = vrot.lane.b32.xlu0 %v8379_v42, %s11390_s18  ;;  %v11358_v42 = vrot.slane %v9045_v31, 5  ;;  %v1969_v3 = vadd.f32 %v1876_v50, %v1747_v51 }
 0x23d   : > { %v9061_v36 = vpop.permute.xlu1 %2853 }
 0x23e   : > { %v9059_v21 = vpop.permute.xlu0 %2477 }
 0x23f   : > { %11601 = vst [vmem:[#allocation73_spill] sm:$0xff] %v9059_v21  ;;  %2495 = vrot.lane.b32.xlu1 %v8384_v26, %s11392_s28  ;;  %v9086_v26 = vsel %vm2757_vm7, %v2825_v27, %v11358_v42  ;;  %v1748_v21 = vadd.f32 %v1656_v23, %v1491_v32  ;;  %v11603_v27 = vld [vmem:[#allocation38_spill] sm:$0xff] }
 0x240   : > { %2653 = vrot.lane.b32.xlu0 %v8459_v44, %s11390_s18 }
 0x241   : > { %v1658_v49 = vpop.permute.xlu1 %1657 }
 0x242   : > { %v9070_v4 = vpop.permute.xlu0 %2855 }
 0x243   : > { %2873 = vrot.lane.b32.xlu1 %v8389_v8, %s11388_s29  ;;  %v1258_v8 = vpop.f32.mrb[57].mxu1 }
 0x244   : > { %2497 = vrot.lane.b32.xlu0 %v8459_v44, %s11392_s28  ;;  %v1970_v44 = vadd.f32 %v1878_v2, %v1748_v21  ;;  %v1259_v6 = vpop.f32.mrb[58].mxu1 }
 0x245   : > { %v2036_v58 = vpop.permute.xlu1 %2035  ;;  %1400 = vst.msk [vmem:[#allocation4 + $0x2c8] sm:$0xff] %vm1312_vm6, %v1259_v6  ;;  %v1261_v22 = vpop.f32.mrb[59].mxu1  ;;  %v7241_v6 = vld [vmem:[#allocation4 + $0x198] sm:$0xff] }
 0x246   : > { %v1660_v0 = vpop.permute.xlu0 %1659  ;;  %v2129_v18 = vadd.f32 %v2036_v58, %v1969_v3  ;;  %v9130_v58 = vld [vmem:[%s11307_s3] ss:$0 sm:$0xff]  ;;  %v11359_v22 = vmov 0.0|0.0  }
 0x247   : > { %1677 = vrot.lane.b32.xlu1 %v8471_v41, %s11392_s28  ;;  %6992 = vmatprep.subr.bf16.mxu0 %v11359_v22 }
 0x248   : > { %2875 = vrot.lane.b32.xlu0 %v8466_v17, %s11388_s29  ;;  %v9095_v42 = vadd.f32 %v11603_v27, %v2129_v18  ;;  %v11604_v17 = vld [vmem:[#allocation45_spill] sm:$0xff]  ;;  %v3639_v27 = vld [vmem:[%s11310_s6 + $0x8] sm:$0xff] }
 0x249   : > { %v1880_v51 = vpop.permute.xlu1 %1879 }
 0x24a   : > { %v2038_v50 = vpop.permute.xlu0 %2037 }
 0x24b   : > { %v2130_v23 = vadd.f32 %v2038_v50, %v1970_v44  ;;  %2055 = vrot.lane.b32.xlu1 %v8481_v14, %s11388_s29  ;;  %v1493_v50 = vadd.f32 %v7241_v6, %v9130_v58 }
 0x24c   : > { %1679 = vrot.lane.b32.xlu0 %v8476_v39, %s11392_s28 }
 0x24d   : > { %v9103_v41 = vadd.f32 %v11604_v17, %v2130_v23  ;;  %v9105_v21 = vpop.permute.xlu1 %2635 }
 0x24e   : > { %v1882_v2 = vpop.permute.xlu0 %1881 }
 0x24f   : > { %1899 = vrot.lane.b32.xlu1 %v8481_v14, %s11390_s18  ;;  %v7239_v14 = vld [vmem:[#allocation4 + $0x180] sm:$0xff] }
 0x250   : > { %2057 = vrot.lane.b32.xlu0 %v8486_v55, %s11388_s29 }
 0x251   : > { %v9113_v32 = vpop.permute.xlu1 %2479 }
 0x252   : > { %v9111_v28 = vpop.permute.xlu0 %2637 }
 0x253   : > { %2655 = vrot.lane.b32.xlu1 %v8505_v5, %s11390_s18 }
 0x254   : > { %1901 = vrot.lane.b32.xlu0 %v8486_v55, %s11390_s18  ;;  %v1492_v55 = vadd.f32 %v9130_v58, %v7239_v14  ;;  %v1750_v14 = vadd.f32 %v1660_v0, %v1493_v50  ;;  %v11608_v0 = vld [vmem:[#allocation51_spill] sm:$0xff] }
 0x255   : > { %v9121_v3 = vpop.permute.xlu1 %2857 }
 0x256   : > { %v9119_v39 = vpop.permute.xlu0 %2481  ;;  %v1749_v44 = vadd.f32 %v1658_v49, %v1492_v55  ;;  %v1972_v55 = vadd.f32 %v1882_v2, %v1750_v14 }
 0x257   : > { %11605 = vst [vmem:[#allocation74_spill] sm:$0xff] %v9119_v39  ;;  %2499 = vrot.lane.b32.xlu1 %v8505_v5, %s11392_s28  ;;  %v3638_v5 = vld [vmem:[%s11310_s6] sm:$0xff] }
 0x258   : > { %2657 = vrot.lane.b32.xlu0 %v8572_v60, %s11390_s18  ;;  %v1971_v23 = vadd.f32 %v1880_v51, %v1749_v44  ;;  %v6993_v49 = vpack.c.bf16 %v3639_v27, %v3638_v5  ;;  %v11607_v39 = vld [vmem:[#allocation47_spill] sm:$0xff] }
 0x259   : > { %v1662_v8 = vpop.permute.xlu1 %1661 }
 0x25a   : > { %v9133_v18 = vpop.permute.xlu0 %2859  ;;  %6994 = vmatpush3.bf16.msra.mxu0 %v6993_v49  ;;  %v11612_v49 = vld [vmem:[#allocation93_spill] sm:$0xff] }
 0x25b   : > { %11606 = vst [vmem:[#allocation30_spill] sm:$0xff] %v9133_v18  ;;  %2877 = vrot.lane.b32.xlu1 %v8508_v45, %s11388_s29  ;;  %6995 = vmatprep.subr.bf16.mxu0 %v11359_v22 }
 0x25c   : > { %2501 = vrot.lane.b32.xlu0 %v8572_v60, %s11392_s28 }
 0x25d   : > { %v2040_v17 = vpop.permute.xlu1 %2039 }
 0x25e   : > { %v1664_v60 = vpop.permute.xlu0 %1663  ;;  %v2131_v45 = vadd.f32 %v2040_v17, %v1971_v23  ;;  %v7242_v17 = vld [vmem:[#allocation4 + $0x1b0] sm:$0xff] }
 0x25f   : > { %1681 = vrot.lane.b32.xlu1 %v8582_v1, %s11392_s28  ;;  %v1494_v14 = vadd.f32 %v7242_v17, %v9130_v58  ;;  %v11616_v17 = vld [vmem:[#allocation96_spill] sm:$0xff] }
 0x260   : > { %2879 = vrot.lane.b32.xlu0 %v8575_v56, %s11388_s29  ;;  %v9152_v18 = vadd.f32 %v11607_v39, %v2131_v45 }
 0x261   : > { %v1884_v44 = vpop.permute.xlu1 %1883 }
 0x262   : > { %v2042_v51 = vpop.permute.xlu0 %2041 }
 0x263   : > { %v2132_v5 = vadd.f32 %v2042_v51, %v1972_v55  ;;  %2059 = vrot.lane.b32.xlu1 %v8592_v35, %s11388_s29  ;;  %v1751_v55 = vadd.f32 %v1662_v8, %v1494_v14  ;;  %v11614_v51 = vld [vmem:[#allocation95_spill] sm:$0xff]  ;;  %v11617_v14 = vld [vmem:[#allocation58_spill] sm:$0xff] }
 0x264   : > { %1683 = vrot.lane.b32.xlu0 %v8587_v30, %s11392_s28  ;;  %v1264_v30 = vpop.f32.mrb[60].mxu1 }
 0x265   : > { %v9160_v56 = vadd.f32 %v11608_v0, %v2132_v5  ;;  %v9162_v1 = vpop.permute.xlu1 %2639  ;;  %1403 = vst.msk [vmem:[#allocation4 + $0x2e0] sm:$0xff] %vm1312_vm6, %v1264_v30  ;;  %v1266_v6 = vpop.f32.mrb[61].mxu1  ;;  %v11615_v5 = vld [vmem:[#allocation94_spill] sm:$0xff] }
 0x266   : > { %v1886_v27 = vpop.permute.xlu0 %1885  ;;  %v7243_v0 = vld [vmem:[#allocation4 + $0x1c8] sm:$0xff]  ;;  %v1973_v6 = vadd.f32 %v1884_v44, %v1751_v55 }
 0x267   : > { %1903 = vrot.lane.b32.xlu1 %v8592_v35, %s11390_s18  ;;  %v11611_v35 = vld [vmem:[#allocation19_spill] sm:$0xff]  ;;  %v1495_v30 = vadd.f32 %v7243_v0, %v9130_v58 }
 0x268   : > { %2061 = vrot.lane.b32.xlu0 %v8597_v29, %s11388_s29 }
 0x269   : > { %v9170_v39 = vpop.permute.xlu1 %2483 }
 0x26a   : > { %v9168_v2 = vpop.permute.xlu0 %2641 }
 0x26b   : > { %11609 = vst [vmem:[#allocation36_spill] sm:$0xff] %v9168_v2  ;;  %2659 = vrot.lane.b32.xlu1 %v8608_v34, %s11390_s18  ;;  %v3221_v2 = vld [vmem:[%s11311_s7 + $0xd8] sm:$0xff] }
 0x26c   : > { %1905 = vrot.lane.b32.xlu0 %v8597_v29, %s11390_s18 }
 0x26d   : > { %v9179_v23 = vpop.permute.xlu1 %2861 }
 0x26e   : > { %v9177_v50 = vpop.permute.xlu0 %2485 }
 0x26f   : > { %11610 = vst [vmem:[#allocation38_spill] sm:$0xff] %v9177_v50  ;;  %1685 = vrot.lane.b32.xlu1 %v11612_v49, %s11392_s28  ;;  %v1752_v49 = vadd.f32 %v1664_v60, %v1495_v30  ;;  %v11619_v60 = vld [vmem:[#allocation59_spill] sm:$0xff] }
 0x270   : > { %1687 = vrot.lane.b32.xlu0 %v11611_v35, %s11392_s28 }
 0x271   : > { %v1666_v45 = vpop.permute.xlu1 %1665  ;;  %v1974_v8 = vadd.f32 %v1886_v27, %v1752_v49 }
 0x272   : > { %v9186_v29 = vpop.permute.xlu0 %2863 }
 0x273   : > { %11613 = vst [vmem:[#allocation45_spill] sm:$0xff] %v9186_v29  ;;  %2063 = vrot.lane.b32.xlu1 %v11615_v5, %s11388_s29 }
 0x274   : > { %2065 = vrot.lane.b32.xlu0 %v11614_v51, %s11388_s29 }
 0x275   : > { %v2044_v22 = vpop.permute.xlu1 %2043 }
 0x276   : > { %v1668_v35 = vpop.permute.xlu0 %1667  ;;  %v2133_v50 = vadd.f32 %v2044_v22, %v1973_v6  ;;  %v1267_v22 = vpop.f32.mrb[62].mxu1  ;;  %v11621_v6 = vld [vmem:[#allocation41_spill] sm:$0xff] }
 0x277   : > { %1907 = vrot.lane.b32.xlu1 %v11615_v5, %s11390_s18  ;;  %1406 = vst.msk [vmem:[#allocation4 + $0x2f8] sm:$0xff] %vm1312_vm6, %v1267_v22  ;;  %v1269_v27 = vpop.f32.mrb[63].mxu1 }
 0x278   : > { %2661 = vrot.lane.b32.xlu0 %v11616_v17, %s11390_s18  ;;  %v9198_v29 = vadd.f32 %v11617_v14, %v2133_v50  ;;  %v7244_v14 = vld [vmem:[#allocation4 + $0x1e0] sm:$0xff] }
 0x279   : > { %v1888_v44 = vpop.permute.xlu1 %1887 }
 0x27a   : > { %11618 = vst [vmem:[#allocation47_spill] sm:$0xff] %v9198_v29  ;;  %v2046_v0 = vpop.permute.xlu0 %2045  ;;  %v11746_v29 = vld [vmem:[#allocation56_spill] sm:$0xff] }
 0x27b   : > { %v2134_v55 = vadd.f32 %v2046_v0, %v1974_v8  ;;  %2503 = vrot.lane.b32.xlu1 %v8608_v34, %s11392_s28  ;;  %v1496_v0 = vadd.f32 %v7244_v14, %v9130_v58 }
 0x27c   : > { %3367 = vperm.xlu0 %7080, %v3221_v2  }
 0x27d   : > { %v9206_v30 = vadd.f32 %v11619_v60, %v2134_v55  ;;  %v9209_v5 = vpop.permute.xlu1 %2643  ;;  %v7245_v60 = vld [vmem:[#allocation4 + $0x1f8] sm:$0xff] }
 0x27e   : > { %v1890_v50 = vpop.permute.xlu0 %1889  ;;  %v1497_v27 = vadd.f32 %v7245_v60, %v9130_v58 }
 0x27f   : > { %11620 = vst [vmem:[#allocation51_spill] sm:$0xff] %v9206_v30  ;;  %2881 = vrot.lane.b32.xlu1 %v11621_v6, %s11388_s29  ;;  %v3222_v6 = vld [vmem:[%s11311_s7 + $0xe0] sm:$0xff] }
 0x280   : > { %1909 = vrot.lane.b32.xlu0 %v11614_v51, %s11390_s18  ;;  %v11625_v51 = vld [vmem:[#allocation11_spill] sm:$0xff] }
 0x281   : > { %v9217_v49 = vpop.permute.xlu1 %2487 }
 0x282   : > { %v9215_v2 = vpop.permute.xlu0 %2645  ;;  %11623 = vst [vmem:[#allocation93_spill] sm:$0xff] %v9217_v49  ;;  %v1754_v49 = vadd.f32 %v1668_v35, %v1497_v27  ;;  %v3223_v35 = vld [vmem:[%s11311_s7 + $0xe8] sm:$0xff] }
 0x283   : > { %11622 = vst [vmem:[#allocation19_spill] sm:$0xff] %v9215_v2  ;;  %1689 = vrot.lane.b32.xlu1 %v8765_v59, %s11392_s28  ;;  %v11627_v59 = vld [vmem:[#allocation48_spill] sm:$0xff] }
 0x284   : > { %2505 = vrot.lane.b32.xlu0 %v11616_v17, %s11392_s28  ;;  %v1753_v17 = vadd.f32 %v1666_v45, %v1496_v0  ;;  %v11628_v45 = vld [vmem:[#allocation67_spill] sm:$0xff] }
 0x285   : > { %v9225_v8 = vpop.permute.xlu1 %2865 }
 0x286   : > { %v9223_v34 = vpop.permute.xlu0 %2489 }
 0x287   : > { %11624 = vst [vmem:[#allocation95_spill] sm:$0xff] %v9223_v34  ;;  %2067 = vrot.lane.b32.xlu1 %v11625_v51, %s11388_s29 }
 0x288   : > { %2883 = vrot.lane.b32.xlu0 %v8724_v11, %s11388_s29  ;;  %v1975_v11 = vadd.f32 %v1888_v44, %v1753_v17  ;;  %v1272_v44 = vpop.f32.mrb[64].mxu1  ;;  %v11630_v17 = vld [vmem:[#allocation68_spill] sm:$0xff] }
 0x289   : > { %v1670_v22 = vpop.permute.xlu1 %1669  ;;  %1409 = vst.msk [vmem:[#allocation4 + $0x310] sm:$0xff] %vm1312_vm6, %v1272_v44 }
 0x28a   : > { %v9232_v55 = vpop.permute.xlu0 %2867 }
 0x28b   : > { %11626 = vst [vmem:[#allocation94_spill] sm:$0xff] %v9232_v55  ;;  %2663 = vrot.lane.b32.xlu1 %v11627_v59, %s11390_s18 }
 0x28c   : > { %1691 = vrot.lane.b32.xlu0 %v8773_v33, %s11392_s28  ;;  %v1976_v33 = vadd.f32 %v1890_v50, %v1754_v49  ;;  %v1274_v50 = vpop.f32.mrb[65].mxu1 }
 0x28d   : > { %v2048_v14 = vpop.permute.xlu1 %2047 }
 0x28e   : > { %v1672_v34 = vpop.permute.xlu0 %1671  ;;  %v2135_v55 = vadd.f32 %v2048_v14, %v1975_v11  ;;  %v11635_v14 = vld [vmem:[#allocation99_spill] sm:$0xff] }
 0x28f   : > { %3372 = vperm.xlu1 %7079, %v3222_v6  }
 0x290   : > { %2069 = vrot.lane.b32.xlu0 %v8780_v24, %s11388_s29  ;;  %v9245_v0 = vadd.f32 %v11628_v45, %v2135_v55 }
 0x291   : > { %v1892_v2 = vpop.permute.xlu1 %1891 }
 0x292   : > { %11629 = vst [vmem:[#allocation96_spill] sm:$0xff] %v9245_v0  ;;  %v2050_v30 = vpop.permute.xlu0 %2049 }
 0x293   : > { %v2136_v60 = vadd.f32 %v2050_v30, %v1976_v33  ;;  %1911 = vrot.lane.b32.xlu1 %v11625_v51, %s11390_s18  ;;  %v1275_v30 = vpop.f32.mrb[66].mxu1 }
 0x294   : > { %2665 = vrot.lane.b32.xlu0 %v8783_v61, %s11390_s18  ;;  %1412 = vst.msk [vmem:[#allocation4 + $0x328] sm:$0xff] %vm1312_vm6, %v1275_v30  ;;  %v1277_v51 = vpop.f32.mrb[67].mxu1  ;;  %v7247_v30 = vld [vmem:[#allocation4 + $0x228] sm:$0xff] }
 0x295   : > { %v9255_v27 = vadd.f32 %v11630_v17, %v2136_v60  ;;  %v9258_v55 = vpop.permute.xlu1 %2647  ;;  %v7246_v60 = vld [vmem:[#allocation4 + $0x210] sm:$0xff] }
 0x296   : > { %v1894_v49 = vpop.permute.xlu0 %1893  ;;  %11632 = vst [vmem:[#allocation59_spill] sm:$0xff] %v9258_v55  ;;  %v1498_v44 = vadd.f32 %v7246_v60, %v9130_v58  ;;  %v11639_v60 = vrot.slane %v8833_v16, 1  ;;  %v11643_v16 = vld [vmem:[#allocation77_spill] sm:$0xff]  ;;  %v2991_v55 = vld [vmem:[#allocation4 + $0x1f0] sm:$0xff] }
 0x297   : > { %11631 = vst [vmem:[#allocation58_spill] sm:$0xff] %v9255_v27  ;;  %2507 = vrot.lane.b32.xlu1 %v11627_v59, %s11392_s28  ;;  %v1513_v59 = vld [vmem:[#allocation4 + $0x360] sm:$0x1]  ;;  %v11716_v27 = vld [vmem:[#allocation98_spill] sm:$0xff] }
 0x298   : > { %3377 = vperm.xlu0 %7080, %v3223_v35   ;;  %v1755_v17 = vadd.f32 %v1670_v22, %v1498_v44  ;;  %v1623_v50 = vrot.slane %v1513_v59, 1  ;;  %v11640_v22 = vld [vmem:[#allocation50_spill] sm:$0xff]  ;;  %v11641_v59 = vld [vmem:[#allocation76_spill] sm:$0xff] }
 0x299   : > { %v9265_v6 = vpop.permute.xlu1 %2491 }
 0x29a   : > { %v9263_v11 = vpop.permute.xlu0 %2649  ;;  %11634 = vst [vmem:[#allocation11_spill] sm:$0xff] %v9265_v6  ;;  %v1977_v51 = vadd.f32 %v1892_v2, %v1755_v17  ;;  %v3224_v2 = vld [vmem:[%s11311_s7 + $0xf0] sm:$0xff] }
 0x29b   : > { %11633 = vst [vmem:[#allocation41_spill] sm:$0xff] %v9263_v11  ;;  %2885 = vrot.lane.b32.xlu1 %v11635_v14, %s11388_s29 }
 0x29c   : > { %1913 = vrot.lane.b32.xlu0 %v8780_v24, %s11390_s18 }
 0x29d   : > { %v9273_v45 = vpop.permute.xlu1 %2869 }
 0x29e   : > { %v9271_v33 = vpop.permute.xlu0 %2493  ;;  %11637 = vst [vmem:[#allocation67_spill] sm:$0xff] %v9273_v45 }
 0x29f   : > { %11636 = vst [vmem:[#allocation48_spill] sm:$0xff] %v9271_v33  ;;  %1693 = vrot.lane.b32.xlu1 %v8891_v19, %s11392_s28 }
 0x2a0   : > { %2509 = vrot.lane.b32.xlu0 %v8783_v61, %s11392_s28  ;;  %v1499_v61 = vadd.f32 %v7247_v30, %v9130_v58 }
 0x2a1   : > { %v1674_v24 = vpop.permute.xlu1 %1673 }
 0x2a2   : > { %v9280_v35 = vpop.permute.xlu0 %2871  ;;  %v1756_v33 = vadd.f32 %v1672_v34, %v1499_v61 }
 0x2a3   : > { %11638 = vst [vmem:[#allocation68_spill] sm:$0xff] %v9280_v35  ;;  %2071 = vrot.lane.b32.xlu1 %v8899_v52, %s11388_s29  ;;  %v1624_v35 = vsel %vm1551_vm3, %v11639_v60, %v1623_v50 }
 0x2a4   : > { %2887 = vrot.lane.b32.xlu0 %v8786_v20, %s11388_s29  ;;  %v1978_v20 = vadd.f32 %v1894_v49, %v1756_v33  ;;  %v3640_v49 = vld [vmem:[%s11310_s6 + $0x10] sm:$0xff] }
 0x2a5   : > { %v2052_v14 = vpop.permute.xlu1 %2051 }
 0x2a6   : > { %v1676_v19 = vpop.permute.xlu0 %1675  ;;  %v2137_v6 = vadd.f32 %v2052_v14, %v1977_v51  ;;  %v3225_v51 = vld [vmem:[%s11311_s7 + $0xf8] sm:$0xff] }
 0x2a7   : > { %2667 = vrot.lane.b32.xlu1 %v11640_v22, %s11390_s18 }
 0x2a8   : > { %1695 = vrot.lane.b32.xlu0 %v1624_v35, %s11392_s28  ;;  %v9294_v44 = vadd.f32 %v11641_v59, %v2137_v6  ;;  %v3641_v6 = vld [vmem:[%s11310_s6 + $0x18] sm:$0xff]  ;;  %v1770_v59 = vld [vmem:[#allocation4 + $0x360] sm:$0x3] }
 0x2a9   : > { %v1896_v34 = vpop.permute.xlu1 %1895  ;;  %v6996_v61 = vpack.c.bf16 %v3641_v6, %v3640_v49 }
 0x2aa   : > { %11642 = vst [vmem:[#allocation99_spill] sm:$0xff] %v9294_v44  ;;  %v2054_v17 = vpop.permute.xlu0 %2053 }
 0x2ab   : > { %v2138_v30 = vadd.f32 %v2054_v17, %v1978_v20  ;;  %3382 = vperm.xlu1 %7079, %v3224_v2   ;;  %6997 = vmatpush3.bf16.msra.mxu0 %v6996_v61  ;;  %v1845_v17 = vrot.slane %v1770_v59, 2 }
 0x2ac   : > { %2073 = vrot.lane.b32.xlu0 %v8905_v37, %s11388_s29  ;;  %v1280_v37 = vpop.f32.mrb[68].mxu1 }
 0x2ad   : > { %v9302_v35 = vadd.f32 %v11643_v16, %v2138_v30  ;;  %v9310_v50 = vpop.permute.xlu1 %2651  ;;  %1415 = vst.msk [vmem:[#allocation4 + $0x340] sm:$0xff] %vm1312_vm6, %v1280_v37  ;;  %v1282_v14 = vpop.f32.mrb[69].mxu1  ;;  %v7248_v30 = vld [vmem:[#allocation4 + $0x240] sm:$0xff]  ;;  %v7249_v37 = vld [vmem:[#allocation4 + $0x258] sm:$0xff] }
 0x2ae   : > { %v1898_v33 = vpop.permute.xlu0 %1897  ;;  %11645 = vst [vmem:[#allocation76_spill] sm:$0xff] %v9310_v50  ;;  %v1500_v16 = vadd.f32 %v7248_v30, %v9130_v58 }
 0x2af   : > { %11644 = vst [vmem:[#allocation50_spill] sm:$0xff] %v9302_v35  ;;  %1915 = vrot.lane.b32.xlu1 %v8899_v52, %s11390_s18  ;;  %v11697_v35 = vld [vmem:[#allocation13_spill] sm:$0xff] }
 0x2b0   : > { %2669 = vrot.lane.b32.xlu0 %v8915_v48, %s11390_s18  ;;  %v1757_v61 = vadd.f32 %v1674_v24, %v1500_v16  ;;  %v1283_v16 = vpop.f32.mrb[70].mxu1 }
 0x2b1   : > { %v9322_v20 = vpop.permute.xlu1 %2495  ;;  %1418 = vst.msk [vmem:[#allocation4 + $0x358] sm:$0xff] %vm1312_vm6, %v1283_v16 }
 0x2b2   : > { %v9320_v60 = vpop.permute.xlu0 %2653  ;;  %11647 = vst [vmem:[#allocation119_spill] sm:$0xff] %v9322_v20 }
 0x2b3   : > { %11646 = vst [vmem:[#allocation77_spill] sm:$0xff] %v9320_v60  ;;  %2511 = vrot.lane.b32.xlu1 %v11640_v22, %s11392_s28  ;;  %v1846_v22 = vsel %vm1773_vm2, %v8880_v63, %v1845_v17  ;;  %v1994_v63 = vld [vmem:[#allocation4 + $0x390] sm:$0x3]  ;;  %v1285_v17 = vpop.f32.mrb[71].mxu1 }
 0x2b4   : > { %3387 = vperm.xlu0 %7080, %v3225_v51   ;;  %v1979_v51 = vadd.f32 %v1896_v34, %v1757_v61  ;;  %v1288_v61 = vpop.f32.mrb[72].mxu1  ;;  %v2372_v17 = vld [vmem:[#allocation4 + $0x398] sm:$0xf] }
 0x2b5   : > { %v9328_v52 = vpop.permute.xlu1 %2873  ;;  %1421 = vst.msk [vmem:[#allocation4 + $0x370] sm:$0xff] %vm1312_vm6, %v1288_v61  ;;  %v2447_v61 = vrot.slane %v2372_v17, 4 }
 0x2b6   : > { %v9326_v2 = vpop.permute.xlu0 %2497  ;;  %11649 = vst [vmem:[#allocation121_spill] sm:$0xff] %v9328_v52  ;;  %v7195_v52 = vld [vmem:[%s11306_s2 + $0x18] ss:$12 sps:$4 sm:$0xff]  }
 0x2b7   : > { %11648 = vst [vmem:[#allocation120_spill] sm:$0xff] %v9326_v2  ;;  %2889 = vrot.lane.b32.xlu1 %v8807_v25, %s11388_s29  ;;  %v3226_v25 = vld [vmem:[%s11311_s7 + $0x100] sm:$0xff] }
 0x2b8   : > { %2075 = vrot.lane.b32.xlu0 %v8993_v46, %s11388_s29  ;;  %v1501_v46 = vadd.f32 %v7249_v37, %v9130_v58  ;;  %v11651_v37 = vld [vmem:[#allocation87_spill] sm:$0xff] }
 0x2b9   : > { %v1678_v6 = vpop.permute.xlu1 %1677 }
 0x2ba   : > { %v9335_v49 = vpop.permute.xlu0 %2875  ;;  %v1758_v30 = vadd.f32 %v1676_v19, %v1501_v46  ;;  %v2005_v46 = vrot.slane %v1994_v63, 2 }
 0x2bb   : > { %11650 = vst [vmem:[#allocation122_spill] sm:$0xff] %v9335_v49  ;;  %1917 = vrot.lane.b32.xlu1 %v1846_v22, %s11390_s18 }
 0x2bc   : > { %2671 = vrot.lane.b32.xlu0 %v8924_v9, %s11390_s18  ;;  %v1980_v22 = vadd.f32 %v1898_v33, %v1758_v30 }
 0x2bd   : > { %v2056_v59 = vpop.permute.xlu1 %2055 }
 0x2be   : > { %v1680_v14 = vpop.permute.xlu0 %1679  ;;  %v2139_v24 = vadd.f32 %v2056_v59, %v1979_v51  ;;  %v1290_v51 = vpop.f32.mrb[73].mxu1 }
 0x2bf   : > { %2513 = vrot.lane.b32.xlu1 %v8915_v48, %s11392_s28  ;;  %v11653_v48 = vld [vmem:[#allocation109_spill] sm:$0xff]  ;;  %v1291_v63 = vpop.f32.mrb[74].mxu1 }
 0x2c0   : > { %3392 = vperm.xlu0 %7080, %v3226_v25   ;;  %v9350_v34 = vadd.f32 %v11651_v37, %v2139_v24  ;;  %v11654_v25 = vld [vmem:[#allocation88_spill] sm:$0xff]  ;;  %v11657_v24 = vrot.slane %v8927_v47, 2  ;;  %1424 = vst.msk [vmem:[#allocation4 + $0x388] sm:$0xff] %vm1312_vm6, %v1291_v63  ;;  %v1293_v47 = vpop.f32.mrb[75].mxu1  ;;  %v7251_v63 = vld [vmem:[#allocation4 + $0x288] sm:$0xff] }
 0x2c1   : > { %v1900_v20 = vpop.permute.xlu1 %1899  ;;  %v1503_v17 = vadd.f32 %v7251_v63, %v9130_v58 }
 0x2c2   : > { %11652 = vst [vmem:[#allocation87_spill] sm:$0xff] %v9350_v34  ;;  %v2058_v2 = vpop.permute.xlu0 %2057  ;;  %v2006_v16 = vsel %vm1773_vm2, %v11657_v24, %v2005_v46  ;;  %v7250_v46 = vld [vmem:[#allocation4 + $0x270] sm:$0xff]  ;;  %v2981_v34 = vld [vmem:[#allocation4 + $0x100] sm:$0xff] }
 0x2c3   : > { %v2140_v19 = vadd.f32 %v2058_v2, %v1980_v22  ;;  %2891 = vrot.lane.b32.xlu1 %v11653_v48, %s11388_s29 }
 0x2c4   : > { %2515 = vrot.lane.b32.xlu0 %v8924_v9, %s11392_s28 }
 0x2c5   : > { %v9358_v59 = vadd.f32 %v11654_v25, %v2140_v19  ;;  %v9360_v30 = vpop.permute.xlu1 %2655  ;;  %v1296_v19 = vpop.f32.mrb[76].mxu1 }
 0x2c6   : > { %v1902_v33 = vpop.permute.xlu0 %1901  ;;  %11656 = vst [vmem:[#allocation88_spill] sm:$0xff] %v9360_v30  ;;  %1427 = vst.msk [vmem:[#allocation4 + $0x3a0] sm:$0xff] %vm1312_vm6, %v1296_v19  ;;  %v1298_v51 = vpop.f32.mrb[77].mxu1  ;;  %v2985_v30 = vld [vmem:[#allocation4 + $0x160] sm:$0xff] }
 0x2c7   : > { %11655 = vst [vmem:[#allocation109_spill] sm:$0xff] %v9358_v59  ;;  %2077 = vrot.lane.b32.xlu1 %v2006_v16, %s11388_s29  ;;  %v2448_v16 = vsel %vm2375_vm4, %v8979_v13, %v2447_v61  ;;  %v1299_v13 = vpop.f32.mrb[78].mxu1  ;;  %v3068_v49 = vrot.slane %v2985_v30, 6 }
 0x2c8   : > { %2893 = vrot.lane.b32.xlu0 %v8941_v54, %s11388_s29  ;;  %v3227_v54 = vld [vmem:[%s11311_s7 + $0x108] sm:$0xff]  ;;  %1430 = vst.msk [vmem:[#allocation4 + $0x3b8] sm:$0xff] %vm1312_vm6, %v1299_v13  ;;  %v1301_v61 = vpop.f32.mrb[79].mxu1 }
 0x2c9   : > { %v9370_v9 = vpop.permute.xlu1 %2499  ;;  %v1304_v63 = vpop.f32.mrb[80].mxu1 }
 0x2ca   : > { %v9368_v2 = vpop.permute.xlu0 %2657  ;;  %11659 = vst [vmem:[#allocation124_spill] sm:$0xff] %v9370_v9  ;;  %1434 = vst.msk [vmem:[#allocation4 + $0x3d0] sm:$0x3f] %vm1433_vm8, %v1304_v63 }
 0x2cb   : > { %11658 = vst [vmem:[#allocation123_spill] sm:$0xff] %v9368_v2  ;;  %2673 = vrot.lane.b32.xlu1 %v8997_v57, %s11390_s18 }
 0x2cc   : > { %2517 = vrot.lane.b32.xlu0 %v8997_v57, %s11392_s28  ;;  %v1502_v57 = vadd.f32 %v7250_v46, %v9130_v58 }
 0x2cd   : > { %v9382_v37 = vpop.permute.xlu1 %2877 }
 0x2ce   : > { %v9380_v22 = vpop.permute.xlu0 %2501  ;;  %11661 = vst [vmem:[#allocation126_spill] sm:$0xff] %v9382_v37  ;;  %v1759_v24 = vadd.f32 %v1678_v6, %v1502_v57  ;;  %v1760_v6 = vadd.f32 %v1680_v14, %v1503_v17 }
 0x2cf   : > { %11660 = vst [vmem:[#allocation125_spill] sm:$0xff] %v9380_v22  ;;  %3397 = vperm.xlu1 %7079, %v3227_v54   ;;  %v3228_v54 = vld [vmem:[%s11311_s7 + $0x110] sm:$0xff] }
 0x2d0   : > { %2895 = vrot.lane.b32.xlu0 %v9002_v12, %s11388_s29  ;;  %v2596_v12 = vld [vmem:[#allocation4 + $0x3c8] sm:$0xf]  ;;  %v1981_v47 = vadd.f32 %v1900_v20, %v1759_v24  ;;  %v1982_v20 = vadd.f32 %v1902_v33, %v1760_v6 }
 0x2d1   : > { %v1682_v25 = vpop.permute.xlu1 %1681  ;;  %v2607_v51 = vrot.slane %v2596_v12, 4  ;;  %v11663_v24 = vld [vmem:[#allocation90_spill] sm:$0xff]  ;;  %v11665_v12 = vrot.slane %v9045_v31, 4 }
 0x2d2   : > { %v9388_v48 = vpop.permute.xlu0 %2879 }
 0x2d3   : > { %11662 = vst [vmem:[#allocation127_spill] sm:$0xff] %v9388_v48  ;;  %2675 = vrot.lane.b32.xlu1 %v9008_v7, %s11390_s18  ;;  %v2754_v7 = vld [vmem:[#allocation4 + $0x3c8] sm:$0x1f] }
 0x2d4   : > { %2519 = vrot.lane.b32.xlu0 %v2448_v16, %s11392_s28  ;;  %v2829_v17 = vrot.slane %v2754_v7, 5 }
 0x2d5   : > { %v2060_v46 = vpop.permute.xlu1 %2059 }
 0x2d6   : > { %v1684_v19 = vpop.permute.xlu0 %1683  ;;  %v2141_v57 = vadd.f32 %v2060_v46, %v1981_v47  ;;  %v1306_v47 = vpop.f32.mrb[81].mxu1  ;;  %v11666_v46 = vld [vmem:[#allocation42_spill] sm:$0xff] }
 0x2d7   : > { %3402 = vperm.xlu1 %7079, %v3228_v54   ;;  %v1307_v33 = vpop.f32.mrb[82].mxu1  ;;  %v3229_v54 = vld [vmem:[%s11311_s7 + $0x118] sm:$0xff] }
 0x2d8   : > { %2897 = vrot.lane.b32.xlu0 %v9018_v15, %s11388_s29  ;;  %v9403_v16 = vadd.f32 %v11663_v24, %v2141_v57  ;;  %v2608_v15 = vsel %vm2375_vm4, %v11665_v12, %v2607_v51  ;;  %v11669_v51 = vrot.slane %v9045_v31, 5 }
 0x2d9   : > { %v1904_v9 = vpop.permute.xlu1 %1903 }
 0x2da   : > { %11664 = vst [vmem:[#allocation90_spill] sm:$0xff] %v9403_v16  ;;  %v2062_v22 = vpop.permute.xlu0 %2061  ;;  %v2830_v7 = vsel %vm2757_vm7, %v11669_v51, %v2829_v17 }
 0x2db   : > { %v2142_v14 = vadd.f32 %v2062_v22, %v1982_v20  ;;  %2677 = vrot.lane.b32.xlu1 %v9077_v62, %s11390_s18  ;;  %v1308_v22 = vpop.f32.mrb[83].mxu1  ;;  %v7252_v62 = vld [vmem:[#allocation4 + $0x2a0] sm:$0xff]  ;;  %v7253_v20 = vld [vmem:[#allocation4 + $0x2b8] sm:$0xff] }
 0x2dc   : > { %2679 = vrot.lane.b32.xlu0 %v2608_v15, %s11390_s18  ;;  %v1504_v61 = vadd.f32 %v7252_v62, %v9130_v58  ;;  %v1505_v24 = vadd.f32 %v7253_v20, %v9130_v58  ;;  %v11670_v22 = vld [vmem:[#allocation100_spill] sm:$0xff] }
 0x2dd   : > { %v9416_v6 = vadd.f32 %v11666_v46, %v2142_v14  ;;  %v9418_v13 = vpop.permute.xlu1 %2659 }
 0x2de   : > { %v1906_v57 = vpop.permute.xlu0 %1905  ;;  %11668 = vst [vmem:[#allocation128_spill] sm:$0xff] %v9418_v13  ;;  %v1761_v12 = vadd.f32 %v1682_v25, %v1504_v61  ;;  %v1762_v15 = vadd.f32 %v1684_v19, %v1505_v24  ;;  %v2975_v25 = vld [vmem:[#allocation4 + $0x70] sm:$0xc0]  ;;  %v2976_v19 = vld [vmem:[#allocation4 + $0x88] sm:$0xff]  ;;  %v2977_v61 = vld [vmem:[#allocation4 + $0xa0] sm:$0xff] }
 0x2df   : > { %11667 = vst [vmem:[#allocation42_spill] sm:$0xff] %v9416_v6  ;;  %3407 = vperm.xlu1 %7079, %v3229_v54   ;;  %v2979_v13 = vld [vmem:[#allocation4 + $0xd0] sm:$0xff] }
 0x2e0   : > { %2901 = vrot.lane.b32.xlu0 %v2830_v7, %s11388_s29  ;;  %v1983_v31 = vadd.f32 %v1904_v9, %v1761_v12  ;;  %v1984_v47 = vadd.f32 %v1906_v57, %v1762_v15  ;;  %v11672_v7 = vld [vmem:[#allocation101_spill] sm:$0xff]  ;;  %v11677_v9 = vld [vmem:[#allocation72_spill] sm:$0xff]  ;;  %v11678_v12 = vld [vmem:[#allocation75_spill] sm:$0xff]  ;;  %v3056_v2 = vrot.slane %v2979_v13, 6 }
 0x2e1   : > { %v1686_v14 = vpop.permute.xlu1 %1685  ;;  %v11679_v15 = vld [vmem:[#allocation78_spill] sm:$0xff] }
 0x2e2   : > { %v9426_v63 = vpop.permute.xlu0 %1687 }
 0x2e3   : > { %2899 = vrot.lane.b32.xlu1 %v9086_v26, %s11388_s29  ;;  %v11676_v26 = vld [vmem:[#allocation71_spill] sm:$0xff] }
 0x2e4   : > { %v2557_v57 = vadd.f32 %v11677_v9, %v11676_v26  ;;  %v11681_v26 = vld [vmem:[#allocation79_spill] sm:$0xff]  ;;  %v11682_v9 = vld [vmem:[#allocation82_spill] sm:$0xff] }
 0x2e5   : > { %v2064_v33 = vpop.permute.xlu1 %2063 }
 0x2e6   : > { %v2066_v17 = vpop.permute.xlu0 %2065  ;;  %v2143_v54 = vadd.f32 %v2064_v33, %v1983_v31  ;;  %v2558_v31 = vadd.f32 %v11679_v15, %v11678_v12  ;;  %v2978_v33 = vld [vmem:[#allocation4 + $0xb8] sm:$0xff]  ;;  %v2559_v12 = vadd.f32 %v11682_v9, %v11681_v26  ;;  %v2980_v26 = vld [vmem:[#allocation4 + $0xe8] sm:$0xff] }
 0x2e7   : > { %v2144_v46 = vadd.f32 %v2066_v17, %v1984_v47  ;;  %v3049_v47 = vrot.slane %v2975_v25, 6  ;;  %v3050_v17 = vrot.slane %v2976_v19, 6  ;;  %v7254_v25 = vld [vmem:[#allocation4 + $0x2d0] sm:$0xff]  ;;  %v3054_v16 = vrot.slane %v2978_v33, 6 }
 0x2e8   : > { %v9431_v51 = vadd.f32 %v11670_v22, %v2143_v54  ;;  %v11680_v54 = vld [vmem:[#allocation80_spill] sm:$0xff]  ;;  %v1506_v19 = vadd.f32 %v7254_v25, %v9130_v58  ;;  %v11683_v15 = vld [vmem:[#allocation83_spill] sm:$0xff] }
 0x2e9   : > { %v9434_v62 = vadd.f32 %v11672_v7, %v2144_v46  ;;  %v1908_v20 = vpop.permute.xlu1 %1907  ;;  %v11361_v46 = vmov 0.0   ;;  %v2717_v22 = vadd.f32 %v11680_v54, %v2557_v57  ;;  %v3052_v7 = vrot.slane %v2977_v61, 6  ;;  %v11686_v61 = vld [vmem:[#allocation86_spill] sm:$0xff] }
 0x2ea   : > { %11671 = vst [vmem:[#allocation100_spill] sm:$0xff] %v9431_v51  ;;  %6870 = vmatprep.mubr.msk.f32.mxu0 %vm7330_vm9, %v11361_v46  ;;  %3887 = vst.msk [vmem:[#allocation3] sm:$0xff] %vm1312_vm6, %v11361_v46  ;;  %6873 = vmatprep.subr.bf16.mxu0 %v11361_v46  ;;  %v1763_v59 = vadd.f32 %v1686_v14, %v1506_v19  ;;  %v9481_v48 = vpop.permute.xlu0 %2661  ;;  %v3051_v57 = vsel %vm859_vm1, %v3049_v47, %v3050_v17  ;;  %v11690_v14 = vld [vmem:[#allocation84_spill] sm:$0xff] }
 0x2eb   : > { %11673 = vst [vmem:[#allocation101_spill] sm:$0xff] %v9434_v62  ;;  %3888 = vst.msk [vmem:[#allocation3 + $0x8] sm:$0xff] %vm1312_vm6, %v11361_v46  ;;  %v2718_v62 = vadd.f32 %v11683_v15, %v2558_v31  ;;  %v3053_v37 = vsel %vm859_vm1, %v3050_v17, %v3052_v7  ;;  %v11688_v31 = vld [vmem:[#allocation33_spill] sm:$0xff]  ;;  %v3055_v47 = vsel %vm859_vm1, %v3052_v7, %v3054_v16 }
 0x2ec   : > { %3889 = vst.msk [vmem:[#allocation3 + $0x10] sm:$0xff] %vm1312_vm6, %v11361_v46  ;;  %3890 = vst.msk [vmem:[#allocation3 + $0x18] sm:$0xff] %vm1312_vm6, %v11361_v46  ;;  %v1985_v9 = vadd.f32 %v1908_v20, %v1763_v59  ;;  %v3058_v59 = vrot.slane %v2980_v26, 6  ;;  %v11694_v20 = vld [vmem:[#allocation12_spill] sm:$0xff] }
 0x2ed   : > { %v9436_v6 = vpop.permute.xlu1 %2503  ;;  %3891 = vst.msk [vmem:[#allocation3 + $0x20] sm:$0xff] %vm1312_vm6, %v11361_v46  ;;  %3892 = vst.msk [vmem:[#allocation3 + $0x28] sm:$0xff] %vm1312_vm6, %v11361_v46  ;;  %v2940_v54 = vadd.f32 %v11686_v61, %v2718_v62  ;;  %v2983_v62 = vld [vmem:[#allocation4 + $0x130] sm:$0xff] }
 0x2ee   : > { %11674 = vst [vmem:[#allocation129_spill] sm:$0xff] %v9436_v6  ;;  %3893 = vst.msk [vmem:[#allocation3 + $0x30] sm:$0xff] %vm1312_vm6, %v11361_v46 }
 0x2ef   : > { %3894 = vst.msk [vmem:[#allocation3 + $0x38] sm:$0xff] %vm1312_vm6, %v11361_v46  ;;  %3895 = vst.msk [vmem:[#allocation3 + $0x40] sm:$0xff] %vm1312_vm6, %v11361_v46  ;;  %v9495_v17 = vadd.f32 %v3053_v37, %v2940_v54  ;;  %v7192_v37 = vld [vmem:[%s11306_s2] ss:$12 sps:$4 sm:$0xff]   ;;  %v7194_v54 = vld [vmem:[%s11306_s2 + $0x4] ss:$12 sps:$4 sm:$0xff]  }
 0x2f0   : > { %3896 = vst.msk [vmem:[#allocation3 + $0x48] sm:$0xff] %vm1312_vm6, %v11361_v46  ;;  %3897 = vst.msk [vmem:[#allocation3 + $0x50] sm:$0xff] %vm1312_vm6, %v11361_v46  ;;  %4078 = vmatprep.subr.bf16.mxu1 %v7194_v54 }
 0x2f1   : > { %v9438_v24 = vpop.permute.xlu1 %2881  ;;  %3898 = vst.msk [vmem:[#allocation3 + $0x58] sm:$0xff] %vm1312_vm6, %v11361_v46  ;;  %3899 = vst.msk [vmem:[#allocation3 + $0x60] sm:$0xff] %vm1312_vm6, %v11361_v46  ;;  %v11687_v46 = vld [vmem:[#allocation89_spill] sm:$0xff]  ;;  %4079 = vmatpush1.bf16.msra.mxu1 %v7192_v37 }
 0x2f2   : > { %11675 = vst [vmem:[#allocation130_spill] sm:$0xff] %v9438_v24  ;;  %v11684_v24 = vld [vmem:[#allocation81_spill] sm:$0xff]  ;;  %11685 = vst [vmem:[#allocation71_spill] sm:$0xff] %v9481_v48  ;;  %v2719_v25 = vadd.f32 %v11687_v46, %v2559_v12  ;;  %v2982_v48 = vld [vmem:[#allocation4 + $0x118] sm:$0xff] }
 0x2f3   : > { %v2939_v6 = vadd.f32 %v11684_v24, %v2717_v22  ;;  %v11691_v22 = vld [vmem:[#allocation85_spill] sm:$0xff]  ;;  %11693 = vst [vmem:[#allocation78_spill] sm:$0xff] %v9495_v17  ;;  %v11695_v12 = vld [vmem:[#allocation8_spill] sm:$0xff] }
 0x2f4   : > { %v2941_v15 = vadd.f32 %v11688_v31, %v2719_v25  ;;  %v2560_v19 = vadd.f32 %v11691_v22, %v11690_v14  ;;  %v2561_v13 = vadd.f32 %v11695_v12, %v11694_v20  ;;  %v11696_v25 = vld [vmem:[#allocation34_spill] sm:$0xff]  ;;  %v3057_v22 = vsel %vm859_vm1, %v3054_v16, %v3056_v2  ;;  %v11712_v37 = vld [vmem:[#allocation97_spill] sm:$0xff] }
 0x2f5   : > { %v9478_v51 = vpop.permute.xlu1 %1689  ;;  %v9488_v33 = vadd.f32 %v3051_v57, %v2939_v6  ;;  %v3060_v6 = vrot.slane %v2981_v34, 6  ;;  %v2984_v57 = vld [vmem:[#allocation4 + $0x148] sm:$0xff] }
 0x2f6   : > { %v2720_v31 = vadd.f32 %v11696_v25, %v2560_v19  ;;  %v9503_v7 = vadd.f32 %v3055_v47, %v2941_v15  ;;  %v11700_v34 = vld [vmem:[#allocation21_spill] sm:$0xff]  ;;  %v11703_v15 = vld [vmem:[#allocation14_spill] sm:$0xff] }
 0x2f7   : > { %11689 = vst [vmem:[#allocation72_spill] sm:$0xff] %v9488_v33  ;;  %v3410_v26 = vmul.f32 %v11700_v34, %v9488_v33  ;;  %v11702_v19 = vld [vmem:[#allocation37_spill] sm:$0xff]  ;;  %v7197_v20 = vld [vmem:[%s11306_s2 + $0x1c] ss:$12 sps:$4 sm:$0xff]   ;;  %v3066_v34 = vrot.slane %v2984_v57, 6  ;;  %v3061_v44 = vsel %vm859_vm1, %v3058_v59, %v3060_v6 }
 0x2f8   : > { %11699 = vst [vmem:[#allocation79_spill] sm:$0xff] %v9503_v7  ;;  %v2562_v47 = vadd.f32 %v11703_v15, %v11702_v19  ;;  %v11705_v12 = vld [vmem:[#allocation18_spill] sm:$0xff]  ;;  %v11707_v19 = vld [vmem:[#allocation16_spill] sm:$0xff]  ;;  %4080 = vmatprep.subr.bf16.mxu1 %v7197_v20 }
 0x2f9   : > { %v2068_v24 = vpop.permute.xlu1 %2067  ;;  %v3411_v25 = vmul.f32 %v11705_v12, %v9495_v17  ;;  %v11710_v12 = vld [vmem:[#allocation22_spill] sm:$0xff]  ;;  %v9552_v45 = vsel %vm859_vm1, %v3066_v34, %v3068_v49  ;;  %4081 = vmatpush1.bf16.msra.mxu1 %v7195_v52 }
 0x2fa   : > { %v2145_v46 = vadd.f32 %v2068_v24, %v1985_v9  ;;  %v3064_v9 = vrot.slane %v2983_v62, 6  ;;  %v11701_v24 = vld [vmem:[#allocation35_spill] sm:$0xff]  ;;  %v2722_v15 = vadd.f32 %v11707_v19, %v2562_v47  ;;  %v9538_v47 = vld [vmem:[#allocation4 + $0x1a8] sm:$0xff] }
 0x2fb   : > { %v9493_v61 = vpop.permute.xlu0 %3367 }
 0x2fc   : > { %11692 = vst [vmem:[#allocation75_spill] sm:$0xff] %v9493_v61  ;;  %v9501_v14 = vadd.f32 %v11697_v35, %v2145_v46  ;;  %v3062_v61 = vrot.slane %v2982_v48, 6  ;;  %v2721_v35 = vadd.f32 %v11701_v24, %v2561_v13  ;;  %v11704_v46 = vld [vmem:[#allocation92_spill] sm:$0xff]  ;;  %v11706_v13 = vld [vmem:[#allocation9_spill] sm:$0xff] }
 0x2fd   : > { %v2942_v16 = vadd.f32 %v11704_v46, %v2720_v31  ;;  %v2986_v48 = vld [vmem:[#allocation4 + $0x178] sm:$0xff] }
 0x2fe   : > { %11698 = vst [vmem:[#allocation80_spill] sm:$0xff] %v9501_v14  ;;  %v3059_v14 = vsel %vm859_vm1, %v3056_v2, %v3058_v59  ;;  %v2943_v24 = vadd.f32 %v11706_v13, %v2721_v35  ;;  %v11708_v31 = vld [vmem:[#allocation43_spill] sm:$0xff]  ;;  %v3412_v2 = vmul.f32 %v11710_v12, %v9503_v7  ;;  %v3063_v30 = vsel %vm859_vm1, %v3060_v6, %v3062_v61  ;;  %v11715_v6 = vld [vmem:[#allocation10_spill] sm:$0xff] }
 0x2ff   : > { %v9518_v62 = vpop.permute.xlu0 %1909  ;;  %v11709_v46 = vld [vmem:[#allocation91_spill] sm:$0xff]  ;;  %v3065_v57 = vsel %vm859_vm1, %v3062_v61, %v3064_v9  ;;  %v3070_v54 = vrot.slane %v2986_v48, 6  ;;  %v3523_v13 = vmul.f32 %v3410_v26, %v9488_v33  ;;  %v9541_v59 = vadd.f32 %v3057_v22, %v2942_v16 }
 0x300   : > { %v2563_v60 = vadd.f32 %v11709_v46, %v11708_v31  ;;  %v2987_v35 = vld [vmem:[#allocation4 + $0x190] sm:$0xff]  ;;  %v3524_v12 = vmul.f32 %v3411_v25, %v9495_v17  ;;  %v2564_v61 = vadd.f32 %v11716_v27, %v11715_v6  ;;  %v3067_v48 = vsel %vm859_vm1, %v3064_v9, %v3066_v34  ;;  %v11720_v17 = vld [vmem:[#allocation20_spill] sm:$0xff] }
 0x301   : > { %11711 = vst [vmem:[#allocation82_spill] sm:$0xff] %v9541_v59  ;;  %v11713_v31 = vld [vmem:[#allocation102_spill] sm:$0xff]  ;;  %v9554_v20 = vadd.f32 %v3059_v14, %v2943_v24  ;;  %v11718_v22 = vld [vmem:[#allocation103_spill] sm:$0xff]  ;;  %v3072_v33 = vrot.slane %v2987_v35, 6  ;;  %v9563_v9 = vsel %vm859_vm1, %v3068_v49, %v3070_v54  ;;  %v11722_v34 = vmov 0.0|0.0   ;;  %v11723_v35 = vld [vmem:[#allocation25_spill] sm:$0xff] }
 0x302   : > { %v2723_v19 = vadd.f32 %v11712_v37, %v2563_v60  ;;  %v2944_v46 = vadd.f32 %v11713_v31, %v2722_v15  ;;  %v3525_v15 = vmul.f32 %v3412_v2, %v9503_v7  ;;  %v11719_v37 = vld [vmem:[#allocation104_spill] sm:$0xff]  ;;  %6998 = vmatprep.subr.bf16.mxu1 %v11722_v34  ;;  %v3446_v14 = vsel %vm1312_vm6, %v3410_v26, 0.0 }
 0x303   : > { %v9545_v50 = vpop.permute.xlu0 %2505  ;;  %11717 = vst [vmem:[#allocation81_spill] sm:$0xff] %v9554_v20  ;;  %v2724_v31 = vadd.f32 %v11719_v37, %v2564_v61  ;;  %v3559_v24 = vsel %vm1312_vm6, %v3523_v13, 0.0  ;;  %v3447_v61 = vsel %vm1312_vm6, %v3411_v25, 0.0  ;;  %v11728_v60 = vld [vmem:[#allocation24_spill] sm:$0xff]  ;;  %v9583_v13 = vsel %vm859_vm1, %v3070_v54, %v3072_v33 }
 0x304   : > { %11714 = vst [vmem:[#allocation83_spill] sm:$0xff] %v9545_v50  ;;  %v2945_v16 = vadd.f32 %v11718_v22, %v2723_v19  ;;  %v11721_v50 = vld [vmem:[#allocation49_spill] sm:$0xff]  ;;  %v3413_v19 = vmul.f32 %v11723_v35, %v9541_v59  ;;  %v9570_v52 = vadd.f32 %v3061_v44, %v2944_v46  ;;  %v11727_v22 = vld [vmem:[#allocation108_spill] sm:$0xff]  ;;  %v3414_v26 = vmul.f32 %v11728_v60, %v9554_v20  ;;  %v11730_v35 = vld [vmem:[#allocation15_spill] sm:$0xff] }
 0x305   : > { %v2565_v27 = vadd.f32 %v11721_v50, %v11720_v17  ;;  %v3560_v50 = vsel %vm1312_vm6, %v3524_v12, 0.0  ;;  %v11726_v17 = vld [vmem:[#allocation105_spill] sm:$0xff]  ;;  %v2946_v37 = vadd.f32 %v11727_v22, %v2724_v31  ;;  %v11729_v44 = vrot.slane %v9538_v47, 6 }
 0x306   : > { %11724 = vst [vmem:[#allocation86_spill] sm:$0xff] %v9570_v52  ;;  %v9580_v34 = vadd.f32 %v3063_v30, %v2945_v16  ;;  %v2989_v25 = vld [vmem:[#allocation4 + $0x1c0] sm:$0xff]  ;;  %v3449_v12 = vsel %vm1312_vm6, %v3412_v2, 0.0  ;;  %v3448_v30 = vadd.f32 %v3447_v61, %v3446_v14  ;;  %v3561_v16 = vadd.f32 %v3560_v50, %v3559_v24  ;;  %v11734_v61 = vld [vmem:[#allocation27_spill] sm:$0xff] }
 0x307   : > { %v9572_v6 = vpop.permute.xlu0 %2883  ;;  %v2725_v49 = vadd.f32 %v11726_v17, %v2565_v27  ;;  %v9588_v46 = vsel %vm859_vm1, %v3072_v33, %v11729_v44  ;;  %v3562_v27 = vsel %vm1312_vm6, %v3525_v15, 0.0  ;;  %v7255_v17 = vld [vmem:[#allocation4 + $0x2e8] sm:$0xff]  ;;  %v3526_v54 = vmul.f32 %v3413_v19, %v9541_v59  ;;  %v9597_v33 = vpop.permute.xlu1 %2663 }
 0x308   : > { %11725 = vst [vmem:[#allocation89_spill] sm:$0xff] %v9572_v6  ;;  %v1507_v60 = vadd.f32 %v7255_v17, %v9130_v58  ;;  %v11731_v22 = vld [vmem:[#allocation29_spill] sm:$0xff]  ;;  %v2990_v6 = vld [vmem:[#allocation4 + $0x1d8] sm:$0xff]  ;;  %11732 = vst [vmem:[#allocation33_spill] sm:$0xff] %v9597_v33  ;;  %v3451_v2 = vsel %vm1312_vm6, %v3413_v19, 0.0  ;;  %v9602_v15 = vadd.f32 %v3065_v57, %v2946_v37  ;;  %v3450_v17 = vadd.f32 %v3449_v12, %v3448_v30 }
 0x309   : > { %v2947_v31 = vadd.f32 %v11730_v35, %v2725_v49  ;;  %v3415_v7 = vmul.f32 %v11731_v22, %v9570_v52  ;;  %v3076_v49 = vrot.slane %v2989_v25, 6  ;;  %v3563_v14 = vadd.f32 %v3562_v27, %v3561_v16  ;;  %v11735_v22 = vld [vmem:[#allocation23_spill] sm:$0xff]  ;;  %v11736_v59 = vld [vmem:[#allocation106_spill] sm:$0xff]  ;;  %v11741_v30 = vld [vmem:[#allocation17_spill] sm:$0xff] }
 0x30a   : > { %11733 = vst [vmem:[#allocation84_spill] sm:$0xff] %v9602_v15  ;;  %v1764_v35 = vadd.f32 %v9426_v63, %v1507_v60  ;;  %v3527_v24 = vmul.f32 %v3414_v26, %v9554_v20  ;;  %v3416_v50 = vmul.f32 %v11734_v61, %v9580_v34  ;;  %v2566_v11 = vadd.f32 %v11736_v59, %v11735_v22  ;;  %v9612_v19 = vld [vmem:[#allocation4 + $0x208] sm:$0xff]  ;;  %v11739_v59 = vld [vmem:[#allocation32_spill] sm:$0xff]  ;;  %v11742_v16 = vld [vmem:[#allocation107_spill] sm:$0xff] }
 0x30b   : > { %v9599_v44 = vpop.permute.xlu0 %1691  ;;  %v9610_v33 = vadd.f32 %v3067_v48, %v2947_v31  ;;  %v3078_v0 = vrot.slane %v2990_v6, 6  ;;  %v3452_v37 = vadd.f32 %v3451_v2, %v3450_v17  ;;  %v3564_v63 = vsel %vm1312_vm6, %v3526_v54, 0.0  ;;  %v11740_v31 = vld [vmem:[#allocation110_spill] sm:$0xff] }
 0x30c   : > { %v1986_v57 = vadd.f32 %v9518_v62, %v1764_v35  ;;  %v3453_v25 = vsel %vm1312_vm6, %v3414_v26, 0.0  ;;  %v3528_v12 = vmul.f32 %v3415_v7, %v9570_v52  ;;  %v3417_v48 = vmul.f32 %v11739_v59, %v9602_v15  ;;  %v11743_v35 = vld [vmem:[#allocation31_spill] sm:$0xff]  ;;  %v11744_v52 = vld [vmem:[#allocation113_spill] sm:$0xff] }
 0x30d   : > { %11737 = vst [vmem:[#allocation85_spill] sm:$0xff] %v9610_v33  ;;  %v2726_v6 = vadd.f32 %v11740_v31, %v2566_v11  ;;  %v2567_v61 = vadd.f32 %v11742_v16, %v11741_v30  ;;  %v3566_v62 = vsel %vm1312_vm6, %v3527_v24, 0.0  ;;  %v3529_v54 = vmul.f32 %v3416_v50, %v9580_v34  ;;  %v7256_v16 = vld [vmem:[#allocation4 + $0x300] sm:$0xff] }
 0x30e   : > { %v9618_v60 = vpop.permute.xlu1 %3372  ;;  %v3080_v2 = vrot.slane %v2991_v55, 6  ;;  %v3082_v26 = vrot.slane %v9612_v19, 6  ;;  %v3418_v17 = vmul.f32 %v11743_v35, %v9610_v33  ;;  %v3565_v31 = vadd.f32 %v3564_v63, %v3563_v14  ;;  %v11748_v14 = vld [vmem:[#allocation117_spill] sm:$0xff] }
 0x30f   : > { %v2070_v27 = vpop.permute.xlu0 %2069  ;;  %11738 = vst [vmem:[#allocation12_spill] sm:$0xff] %v9618_v60  ;;  %v2727_v20 = vadd.f32 %v11744_v52, %v2567_v61  ;;  %v11745_v60 = vld [vmem:[#allocation116_spill] sm:$0xff]  ;;  %v3454_v30 = vadd.f32 %v3453_v25, %v3452_v37  ;;  %v9641_v55 = vsel %vm859_vm1, %v3076_v49, %v3078_v0  ;;  %v3455_v52 = vsel %vm1312_vm6, %v3415_v7, 0.0 }
 0x310   : > { %v2146_v22 = vadd.f32 %v2070_v27, %v1986_v57  ;;  %v2948_v59 = vadd.f32 %v11745_v60, %v2726_v6  ;;  %v11747_v57 = vrot.slane %v9538_v47, 6  ;;  %v3568_v60 = vsel %vm1312_vm6, %v3528_v12, 0.0  ;;  %v2993_v63 = vld [vmem:[#allocation4 + $0x220] sm:$0xff]  ;;  %v2994_v6 = vld [vmem:[#allocation4 + $0x238] sm:$0xff] }
 0x311   : > { %v2949_v37 = vadd.f32 %v11748_v14, %v2727_v20  ;;  %v3567_v47 = vadd.f32 %v3566_v62, %v3565_v31  ;;  %v9652_v25 = vsel %vm859_vm1, %v3078_v0, %v3080_v2  ;;  %v1508_v61 = vadd.f32 %v7256_v16, %v9130_v58  ;;  %v11749_v0 = vld [vmem:[#allocation28_spill] sm:$0xff]  ;;  %v11750_v31 = vld [vmem:[#allocation114_spill] sm:$0xff] }
 0x312   : > { %v9633_v11 = vadd.f32 %v11746_v29, %v2146_v22  ;;  %v9638_v24 = vsel %vm859_vm1, %v11747_v57, %v3076_v49  ;;  %v9645_v27 = vpop.permute.xlu1 %1911  ;;  %v3530_v29 = vmul.f32 %v3417_v48, %v9602_v15  ;;  %v9655_v49 = vsel %vm859_vm1, %v3080_v2, %v3082_v26 }
 0x313   : > { %v9643_v19 = vpop.permute.xlu0 %2665  ;;  %v3457_v7 = vsel %vm1312_vm6, %v3416_v50, 0.0  ;;  %v3570_v12 = vsel %vm1312_vm6, %v3529_v54, 0.0  ;;  %v3531_v22 = vmul.f32 %v3418_v17, %v9610_v33  ;;  %v9662_v20 = vadd.f32 %v9552_v45, %v2948_v59 }
 0x314   : > { %v3456_v62 = vadd.f32 %v3455_v52, %v3454_v30  ;;  %v3569_v35 = vadd.f32 %v3568_v60, %v3567_v47  ;;  %v2568_v57 = vadd.f32 %v11750_v31, %v11749_v0  ;;  %v3084_v2 = vrot.slane %v2993_v63, 6  ;;  %v11751_v52 = vld [vmem:[#allocation115_spill] sm:$0xff] }
 0x315   : > { %v3459_v16 = vsel %vm1312_vm6, %v3417_v48, 0.0  ;;  %v3572_v50 = vsel %vm1312_vm6, %v3530_v29, 0.0  ;;  %v9673_v54 = vadd.f32 %v9563_v9, %v2949_v37  ;;  %v3086_v33 = vrot.slane %v2994_v6, 6  ;;  %v2995_v63 = vld [vmem:[#allocation4 + $0x250] sm:$0xff]  ;;  %v11752_v48 = vld [vmem:[#allocation40_spill] sm:$0xff] }
 0x316   : > { %v9668_v15 = vpop.permute.xlu1 %2507  ;;  %v3458_v45 = vadd.f32 %v3457_v7, %v3456_v62  ;;  %v3571_v59 = vadd.f32 %v3570_v12, %v3569_v35  ;;  %v2728_v30 = vadd.f32 %v9043_v38, %v2568_v57  ;;  %v2569_v60 = vadd.f32 %v11751_v52, %v9033_v10  ;;  %v7257_v29 = vld [vmem:[#allocation4 + $0x318] sm:$0xff]  ;;  %v9687_v12 = vld [vmem:[#allocation4 + $0x268] sm:$0xff]  ;;  %v7259_v52 = vld [vmem:[#allocation4 + $0x330] sm:$0xff] }
 0x317   : > { %v9666_v14 = vpop.permute.xlu0 %3377  ;;  %v3461_v47 = vsel %vm1312_vm6, %v3418_v17, 0.0  ;;  %v3574_v0 = vsel %vm1312_vm6, %v3531_v22, 0.0  ;;  %v3419_v31 = vmul.f32 %v11752_v48, %v9662_v20  ;;  %v9683_v9 = vadd.f32 %v7257_v29, %v9130_v58  ;;  %v2187_v22 = vld [vmem:[#allocation4 + $0x398] sm:$0x7] }
 0x318   : > { %v3460_v37 = vadd.f32 %v3459_v16, %v3458_v45  ;;  %v3573_v6 = vadd.f32 %v3572_v50, %v3571_v59  ;;  %v2729_v7 = vadd.f32 %v9051_v53, %v2569_v60  ;;  %v2950_v38 = vadd.f32 %v9061_v36, %v2728_v30  ;;  %v11753_v62 = vld [vmem:[#allocation39_spill] sm:$0xff] }
 0x319   : > { %v3420_v35 = vmul.f32 %v11753_v62, %v9673_v54  ;;  %v9696_v57 = vsel %vm859_vm1, %v3082_v26, %v3084_v2  ;;  %v9699_v58 = vsel %vm859_vm1, %v3084_v2, %v3086_v33  ;;  %v3088_v16 = vrot.slane %v2995_v63, 6  ;;  %v7258_v26 = vld [vmem:[%s11307_s3] ss:$0 sm:$0xff] }
 0x31a   : > { %v9691_v17 = vpop.permute.xlu1 %2885  ;;  %v3462_v53 = vadd.f32 %v3461_v47, %v3460_v37  ;;  %v3575_v50 = vadd.f32 %v3574_v0, %v3573_v6  ;;  %v2570_v36 = vadd.f32 %v9053_v43, %v9041_v40  ;;  %v2951_v45 = vadd.f32 %v9070_v4, %v2729_v7  ;;  %v11754_v43 = vld [vmem:[#allocation73_spill] sm:$0xff] }
 0x31b   : > { %v9689_v10 = vpop.permute.xlu0 %1913  ;;  %v3463_v59 = vsel %vm1312_vm6, %v3419_v31, 0.0  ;;  %v3090_v30 = vrot.slane %v9687_v12, 6  ;;  %v9709_v60 = vadd.f32 %v7259_v52, %v7258_v26  ;;  %v2297_v2 = vrot.slane %v2187_v22, 3 }
 0x31c   : > { %v3532_v63 = vmul.f32 %v3419_v31, %v9662_v20  ;;  %v9713_v47 = vadd.f32 %v9583_v13, %v2950_v38  ;;  %v2730_v40 = vadd.f32 %v9105_v21, %v2570_v36  ;;  %v2571_v4 = vadd.f32 %v11754_v43, %v9095_v42  ;;  %v7260_v31 = vld [vmem:[#allocation4 + $0x348] sm:$0xff] }
 0x31d   : > { %v3533_v29 = vmul.f32 %v3420_v35, %v9673_v54  ;;  %v9724_v37 = vsel %vm859_vm1, %v3086_v33, %v3088_v16  ;;  %v1765_v6 = vadd.f32 %v9478_v51, %v1508_v61  ;;  %v9727_v7 = vadd.f32 %v7260_v31, %v7258_v26  ;;  %v11756_v51 = vld [vmem:[#allocation26_spill] sm:$0xff]  ;;  %v11763_v31 = vld [vmem:[#allocation36_spill] sm:$0xff] }
 0x31e   : > { %v9720_v48 = vpop.permute.xlu1 %1693  ;;  %v9730_v13 = vadd.f32 %v9588_v46, %v2951_v45  ;;  %v2731_v21 = vadd.f32 %v9111_v28, %v2571_v4  ;;  %v2572_v42 = vadd.f32 %v9113_v32, %v9103_v41  ;;  %v2952_v38 = vadd.f32 %v9121_v3, %v2730_v40  ;;  %v11758_v28 = vld [vmem:[#allocation46_spill] sm:$0xff]  ;;  %v2997_v3 = vld [vmem:[#allocation4 + $0x280] sm:$0xff] }
 0x31f   : > { %v9718_v0 = vpop.permute.xlu0 %2509  ;;  %v3464_v12 = vadd.f32 %v3463_v59, %v3462_v53  ;;  %v9737_v22 = vsel %vm859_vm1, %v3088_v16, %v3090_v30  ;;  %v1987_v33 = vadd.f32 %v9645_v27, %v1765_v6  ;;  %v11757_v61 = vrot.slane %v11756_v51, 3  ;;  %v11759_v45 = vld [vmem:[#allocation30_spill] sm:$0xff] }
 0x320   : > { %11755 = vst [vmem:[#allocation8_spill] sm:$0xff] %v9730_v13  ;;  %v3576_v46 = vsel %vm1312_vm6, %v3532_v63, 0.0  ;;  %v3421_v36 = vmul.f32 %v11758_v28, %v9713_v47  ;;  %v2953_v41 = vadd.f32 %v11759_v45, %v2731_v21  ;;  %v2732_v32 = vadd.f32 %v9162_v1, %v2572_v42  ;;  %v11760_v26 = vld [vmem:[#allocation74_spill] sm:$0xff]  ;;  %v11761_v63 = vld [vmem:[#allocation44_spill] sm:$0xff] }
 0x321   : > { %v9743_v62 = vsel %vm2225_vm5, %v11757_v61, %v2297_v2  ;;  %v3465_v27 = vsel %vm1312_vm6, %v3420_v35, 0.0  ;;  %v3578_v59 = vsel %vm1312_vm6, %v3533_v29, 0.0  ;;  %v2573_v52 = vadd.f32 %v11760_v26, %v9152_v18  ;;  %v11764_v29 = vld [vmem:[#allocation111_spill] sm:$0xff]  ;;  %v11766_v61 = vld [vmem:[#allocation45_spill] sm:$0xff] }
 0x322   : > { %v2072_v16 = vpop.permute.xlu1 %2071  ;;  %v3422_v40 = vmul.f32 %v11761_v63, %v9730_v13  ;;  %v9759_v43 = vadd.f32 %v9638_v24, %v2952_v38  ;;  %v2574_v1 = vadd.f32 %v9170_v39, %v9160_v56  ;;  %v2954_v4 = vadd.f32 %v9179_v23, %v2732_v32  ;;  %v9773_v38 = vld [vmem:[#allocation4 + $0x298] sm:$0xff] }
 0x323   : > { %v9750_v53 = vpop.permute.xlu0 %2887  ;;  %v2147_v2 = vadd.f32 %v2072_v16, %v1987_v33  ;;  %v3577_v6 = vadd.f32 %v3576_v46, %v3575_v50  ;;  %v2733_v35 = vadd.f32 %v11763_v31, %v2573_v52  ;;  %v3092_v21 = vrot.slane %v2997_v3, 6  ;;  %v11769_v32 = vld [vmem:[#allocation47_spill] sm:$0xff]  ;;  %v11770_v3 = vld [vmem:[#allocation38_spill] sm:$0xff] }
 0x324   : > { %11762 = vst [vmem:[#allocation34_spill] sm:$0xff] %v9759_v43  ;;  %v3466_v18 = vadd.f32 %v3465_v27, %v3464_v12  ;;  %v3534_v33 = vmul.f32 %v3421_v36, %v9713_v47  ;;  %v9770_v51 = vadd.f32 %v9641_v55, %v2953_v41  ;;  %v2734_v24 = vadd.f32 %v9209_v5, %v2574_v1  ;;  %v11767_v55 = vld [vmem:[#allocation53_spill] sm:$0xff] }
 0x325   : > { %v9766_v42 = vadd.f32 %v11764_v29, %v2147_v2  ;;  %v3579_v23 = vadd.f32 %v3578_v59, %v3577_v6  ;;  %v3467_v50 = vsel %vm1312_vm6, %v3421_v36, 0.0  ;;  %v2955_v46 = vadd.f32 %v11766_v61, %v2733_v35  ;;  %v11775_v6 = vld [vmem:[#allocation93_spill] sm:$0xff] }
 0x326   : > { %11765 = vst [vmem:[#allocation13_spill] sm:$0xff] %v9770_v51  ;;  %v9777_v39 = vpop.permute.xlu1 %2667  ;;  %v1766_v12 = vadd.f32 %v9599_v44, %v9683_v9  ;;  %v3535_v28 = vmul.f32 %v3422_v40, %v9730_v13  ;;  %v3423_v45 = vmul.f32 %v11767_v55, %v9759_v43  ;;  %v9787_v5 = vadd.f32 %v9652_v25, %v2954_v4  ;;  %v11771_v25 = vld [vmem:[#allocation52_spill] sm:$0xff]  ;;  %v11774_v4 = vld [vmem:[#allocation51_spill] sm:$0xff] }
 0x327   : > { %v9775_v56 = vpop.permute.xlu0 %1695  ;;  %v2956_v41 = vadd.f32 %v9225_v8, %v2734_v24  ;;  %v2575_v16 = vadd.f32 %v11770_v3, %v11769_v32  ;;  %v9793_v36 = vsel %vm859_vm1, %v3090_v30, %v3092_v21  ;;  %v11371_v27 = vrot.slane %v9773_v38, 6  ;;  %v11773_v30 = vld [vmem:[#allocation19_spill] sm:$0xff]  ;;  %v11778_v24 = vld [vmem:[#allocation94_spill] sm:$0xff]  ;;  %v11782_v32 = vld [vmem:[#allocation112_spill] sm:$0xff] }
 0x328   : > { %11768 = vst [vmem:[#allocation21_spill] sm:$0xff] %v9787_v5  ;;  %v1988_v44 = vadd.f32 %v9689_v10, %v1766_v12  ;;  %v3468_v9 = vadd.f32 %v3467_v50, %v3466_v18  ;;  %v3580_v59 = vsel %vm1312_vm6, %v3534_v33, 0.0  ;;  %v3469_v26 = vsel %vm1312_vm6, %v3422_v40, 0.0  ;;  %v11776_v40 = vld [vmem:[#allocation55_spill] sm:$0xff] }
 0x329   : > { %v3424_v52 = vmul.f32 %v11771_v25, %v9770_v51  ;;  %v9804_v63 = vadd.f32 %v9655_v49, %v2955_v46  ;;  %v2735_v1 = vadd.f32 %v11773_v30, %v2575_v16  ;;  %v2576_v31 = vadd.f32 %v11775_v6, %v11774_v4  ;;  %v11779_v49 = vld [vmem:[#allocation59_spill] sm:$0xff]  ;;  %v11780_v46 = vld [vmem:[#allocation96_spill] sm:$0xff]  ;;  %v11783_v30 = vld [vmem:[#allocation54_spill] sm:$0xff] }
 0x32a   : > { %v9801_v8 = vpop.permute.xlu1 %3382  ;;  %v3582_v35 = vsel %vm1312_vm6, %v3535_v28, 0.0  ;;  %v3536_v29 = vmul.f32 %v3423_v45, %v9759_v43  ;;  %v3425_v18 = vmul.f32 %v11776_v40, %v9787_v5  ;;  %v9814_v33 = vadd.f32 %v9696_v57, %v2956_v41  ;;  %v11781_v12 = vld [vmem:[#allocation95_spill] sm:$0xff]  ;;  %v11784_v4 = vld [vmem:[#allocation41_spill] sm:$0xff] }
 0x32b   : > { %v2074_v2 = vpop.permute.xlu0 %2073  ;;  %11772 = vst [vmem:[#allocation35_spill] sm:$0xff] %v9804_v63  ;;  %v2957_v50 = vadd.f32 %v11778_v24, %v2735_v1  ;;  %v2736_v61 = vadd.f32 %v11779_v49, %v2576_v31  ;;  %v2577_v55 = vadd.f32 %v11781_v12, %v11780_v46  ;;  %v3581_v16 = vadd.f32 %v3580_v59, %v3579_v23  ;;  %v11785_v31 = vld [vmem:[#allocation67_spill] sm:$0xff]  ;;  %v11788_v49 = vld [vmem:[#allocation58_spill] sm:$0xff] }
 0x32c   : > { %v2148_v10 = vadd.f32 %v2074_v2, %v1988_v44  ;;  %11777 = vst [vmem:[#allocation37_spill] sm:$0xff] %v9814_v33  ;;  %v3470_v28 = vadd.f32 %v3469_v26, %v3468_v9  ;;  %v3537_v44 = vmul.f32 %v3424_v52, %v9770_v51  ;;  %v9827_v25 = vsel %vm859_vm1, %v3092_v21, %v11371_v27  ;;  %v2999_v9 = vld [vmem:[#allocation4 + $0x2b0] sm:$0xff]  ;;  %v11786_v21 = vld [vmem:[#allocation60_spill] sm:$0xff] }
 0x32d   : > { %v3471_v2 = vsel %vm1312_vm6, %v3423_v45, 0.0  ;;  %v3426_v1 = vmul.f32 %v11783_v30, %v9804_v63  ;;  %v2737_v6 = vadd.f32 %v11784_v4, %v2577_v55  ;;  %v2958_v23 = vadd.f32 %v11785_v31, %v2736_v61  ;;  %v11789_v46 = vld [vmem:[#allocation11_spill] sm:$0xff]  ;;  %v11790_v55 = vld [vmem:[#allocation68_spill] sm:$0xff]  ;;  %v11824_v51 = vld [vmem:[#allocation130_spill] sm:$0xff] }
 0x32e   : > { %v9821_v3 = vadd.f32 %v11782_v32, %v2148_v10  ;;  %v1916_v41 = vpop.permute.xlu1 %1915  ;;  %v3583_v59 = vadd.f32 %v3582_v35, %v3581_v16  ;;  %v3584_v26 = vsel %vm1312_vm6, %v3536_v29, 0.0  ;;  %v3538_v10 = vmul.f32 %v3425_v18, %v9787_v5  ;;  %v11796_v27 = vld [vmem:[#allocation99_spill] sm:$0xff] }
 0x32f   : > { %v9829_v57 = vpop.permute.xlu0 %2669  ;;  %v3427_v40 = vmul.f32 %v11786_v21, %v9814_v33  ;;  %v3473_v24 = vsel %vm1312_vm6, %v3424_v52, 0.0  ;;  %v9842_v45 = vadd.f32 %v9699_v58, %v2957_v50  ;;  %v2578_v12 = vadd.f32 %v11789_v46, %v11788_v49  ;;  %v11792_v50 = vld [vmem:[#allocation76_spill] sm:$0xff]  ;;  %v3000_v21 = vld [vmem:[#allocation4 + $0x2c8] sm:$0xff] }
 0x330   : > { %v2959_v32 = vadd.f32 %v11790_v55, %v2737_v6  ;;  %v3472_v61 = vadd.f32 %v3471_v2, %v3470_v28  ;;  %v3586_v35 = vsel %vm1312_vm6, %v3537_v44, 0.0  ;;  %v3475_v29 = vsel %vm1312_vm6, %v3425_v18, 0.0 }
 0x331   : > { %11787 = vst [vmem:[#allocation14_spill] sm:$0xff] %v9842_v45  ;;  %v3096_v16 = vrot.slane %v2999_v9, 6  ;;  %v3539_v52 = vmul.f32 %v3426_v1, %v9804_v63  ;;  %v9855_v58 = vadd.f32 %v9724_v37, %v2958_v23  ;;  %v2738_v31 = vadd.f32 %v11792_v50, %v2578_v12  ;;  %v11793_v9 = vld [vmem:[#allocation57_spill] sm:$0xff]  ;;  %v11797_v63 = vld [vmem:[#allocation48_spill] sm:$0xff] }
 0x332   : > { %v9851_v4 = vpop.permute.xlu1 %2511  ;;  %v1767_v28 = vadd.f32 %v9720_v48, %v9709_v60  ;;  %v3585_v2 = vadd.f32 %v3584_v26, %v3583_v59  ;;  %v3474_v44 = vadd.f32 %v3473_v24, %v3472_v61  ;;  %v3588_v18 = vsel %vm1312_vm6, %v3538_v10, 0.0  ;;  %v11795_v37 = vld [vmem:[#allocation121_spill] sm:$0xff]  ;;  %v11798_v61 = vld [vmem:[#allocation62_spill] sm:$0xff] }
 0x333   : > { %v9849_v30 = vpop.permute.xlu0 %3387  ;;  %11791 = vst [vmem:[#allocation92_spill] sm:$0xff] %v9855_v58  ;;  %v3540_v6 = vmul.f32 %v3427_v40, %v9814_v33  ;;  %v3428_v49 = vmul.f32 %v11793_v9, %v9842_v45  ;;  %v9865_v46 = vadd.f32 %v9737_v22, %v2959_v32  ;;  %v2960_v23 = vadd.f32 %v11795_v37, %v2738_v31  ;;  %v11813_v33 = vld [vmem:[#allocation126_spill] sm:$0xff] }
 0x334   : > { %v1989_v55 = vadd.f32 %v1916_v41, %v1767_v28  ;;  %v3587_v12 = vadd.f32 %v3586_v35, %v3585_v2  ;;  %v3476_v50 = vadd.f32 %v3475_v29, %v3474_v44  ;;  %v2579_v60 = vadd.f32 %v11797_v63, %v11796_v27  ;;  %v11799_v29 = vld [vmem:[#allocation77_spill] sm:$0xff]  ;;  %v3002_v63 = vld [vmem:[#allocation4 + $0x2f8] sm:$0xff]  ;;  %v11802_v2 = vld [vmem:[#allocation118_spill] sm:$0xff] }
 0x335   : > { %11794 = vst [vmem:[#allocation18_spill] sm:$0xff] %v9865_v46  ;;  %v3098_v48 = vrot.slane %v3000_v21, 6  ;;  %v3477_v10 = vsel %vm1312_vm6, %v3426_v1, 0.0  ;;  %v3590_v24 = vsel %vm1312_vm6, %v3539_v52, 0.0  ;;  %v3429_v22 = vmul.f32 %v11798_v61, %v9855_v58  ;;  %v3001_v27 = vld [vmem:[#allocation4 + $0x2e0] sm:$0xff] }
 0x336   : > { %v9870_v26 = vpop.permute.xlu1 %2889  ;;  %v3589_v9 = vadd.f32 %v3588_v18, %v3587_v12  ;;  %v3479_v41 = vsel %vm1312_vm6, %v3427_v40, 0.0  ;;  %v3592_v35 = vsel %vm1312_vm6, %v3540_v6, 0.0  ;;  %v2739_v31 = vadd.f32 %v11799_v29, %v2579_v60  ;;  %v11800_v28 = vld [vmem:[#allocation61_spill] sm:$0xff]  ;;  %v11803_v40 = vld [vmem:[#allocation122_spill] sm:$0xff] }
 0x337   : > { %v2076_v59 = vpop.permute.xlu0 %2075  ;;  %v3541_v21 = vmul.f32 %v3428_v49, %v9842_v45  ;;  %v3430_v1 = vmul.f32 %v11800_v28, %v9865_v46  ;;  %v9883_v52 = vadd.f32 %v9793_v36, %v2960_v23  ;;  %v3478_v18 = vadd.f32 %v3477_v10, %v3476_v50  ;;  %v3003_v60 = vld [vmem:[#allocation4 + $0x310] sm:$0xff] }
 0x338   : > { %v2149_v32 = vadd.f32 %v2076_v59, %v1989_v55  ;;  %v3591_v37 = vadd.f32 %v3590_v24, %v3589_v9  ;;  %v2961_v55 = vadd.f32 %v11803_v40, %v2739_v31  ;;  %v11804_v6 = vrot.slane %v9773_v38, 6  ;;  %v11805_v10 = vld [vmem:[#allocation50_spill] sm:$0xff]  ;;  %v11806_v24 = vld [vmem:[#allocation119_spill] sm:$0xff] }
 0x339   : > { %11801 = vst [vmem:[#allocation9_spill] sm:$0xff] %v9883_v52  ;;  %v3542_v29 = vmul.f32 %v3429_v22, %v9855_v58  ;;  %v3099_v36 = vsel %vm859_vm1, %v3096_v16, %v3098_v48  ;;  %v3100_v23 = vrot.slane %v3001_v27, 6  ;;  %v3102_v28 = vrot.slane %v3002_v63, 6  ;;  %v3004_v38 = vld [vmem:[#allocation4 + $0x328] sm:$0xff]  ;;  %v11811_v63 = vld [vmem:[#allocation120_spill] sm:$0xff] }
 0x33a   : > { %v9886_v44 = vadd.f32 %v11802_v2, %v2149_v32  ;;  %v3097_v12 = vsel %vm859_vm1, %v11804_v6, %v3096_v16  ;;  %v1918_v61 = vpop.permute.xlu1 %1917  ;;  %v3480_v32 = vadd.f32 %v3479_v41, %v3478_v18  ;;  %v3593_v2 = vadd.f32 %v3592_v35, %v3591_v37  ;;  %v11807_v6 = vld [vmem:[#allocation64_spill] sm:$0xff] }
 0x33b   : > { %v9892_v59 = vpop.permute.xlu0 %2671  ;;  %v3481_v50 = vsel %vm1312_vm6, %v3428_v49, 0.0  ;;  %v2580_v9 = vadd.f32 %v11806_v24, %v11805_v10  ;;  %v3594_v31 = vsel %vm1312_vm6, %v3541_v21, 0.0  ;;  %v3543_v40 = vmul.f32 %v3430_v1, %v9865_v46  ;;  %v11809_v41 = vld [vmem:[#allocation88_spill] sm:$0xff]  ;;  %v11810_v49 = vld [vmem:[#allocation87_spill] sm:$0xff] }
 0x33c   : > { %v3431_v45 = vmul.f32 %v11807_v6, %v9883_v52  ;;  %v3104_v58 = vrot.slane %v3003_v60, 6  ;;  %v3483_v16 = vsel %vm1312_vm6, %v3429_v22, 0.0  ;;  %v9905_v27 = vadd.f32 %v9827_v25, %v2961_v55  ;;  %v11812_v25 = vld [vmem:[#allocation123_spill] sm:$0xff] }
 0x33d   : > { %v2740_v35 = vadd.f32 %v11809_v41, %v2580_v9  ;;  %v2581_v18 = vadd.f32 %v11811_v63, %v11810_v49  ;;  %v3482_v21 = vadd.f32 %v3481_v50, %v3480_v32  ;;  %v3596_v24 = vsel %vm1312_vm6, %v3542_v29, 0.0  ;;  %v9922_v32 = vld [vmem:[#allocation4 + $0x340] sm:$0xff] }
 0x33e   : > { %11808 = vst [vmem:[#allocation16_spill] sm:$0xff] %v9905_v27  ;;  %v9912_v10 = vpop.permute.xlu1 %2513  ;;  %v3101_v6 = vsel %vm859_vm1, %v3098_v48, %v3100_v23  ;;  %v3106_v60 = vrot.slane %v3004_v38, 6  ;;  %v3595_v46 = vadd.f32 %v3594_v31, %v3593_v2  ;;  %v3485_v22 = vsel %vm1312_vm6, %v3430_v1, 0.0  ;;  %v11814_v48 = vld [vmem:[#allocation63_spill] sm:$0xff] }
 0x33f   : > { %v9910_v37 = vpop.permute.xlu0 %3392  ;;  %v2741_v55 = vadd.f32 %v11812_v25, %v2581_v18  ;;  %v2962_v9 = vadd.f32 %v11813_v33, %v2740_v35  ;;  %v3484_v41 = vadd.f32 %v3483_v16, %v3482_v21  ;;  %v3598_v49 = vsel %vm1312_vm6, %v3543_v40, 0.0  ;;  %v11815_v2 = vld [vmem:[#allocation127_spill] sm:$0xff]  ;;  %v11816_v40 = vld [vmem:[#allocation109_spill] sm:$0xff]  ;;  %v11817_v35 = vld [vmem:[#allocation124_spill] sm:$0xff] }
 0x340   : > { %v3544_v63 = vmul.f32 %v3431_v45, %v9883_v52  ;;  %v3103_v5 = vsel %vm859_vm1, %v3100_v23, %v3102_v28  ;;  %v3597_v29 = vadd.f32 %v3596_v24, %v3595_v46  ;;  %v3432_v50 = vmul.f32 %v11814_v48, %v9905_v27  ;;  %v11818_v48 = vld [vmem:[#allocation128_spill] sm:$0xff] }
 0x341   : > { %v2963_v38 = vadd.f32 %v11815_v2, %v2741_v55  ;;  %v3105_v1 = vsel %vm859_vm1, %v3102_v28, %v3104_v58  ;;  %v3486_v16 = vadd.f32 %v3485_v22, %v3484_v41  ;;  %v2582_v18 = vadd.f32 %v11817_v35, %v11816_v40  ;;  %v11819_v41 = vld [vmem:[#allocation90_spill] sm:$0xff]  ;;  %v11820_v2 = vld [vmem:[#allocation125_spill] sm:$0xff] }
 0x342   : > { %v9930_v33 = vpop.permute.xlu1 %2891  ;;  %v9935_v23 = vsel %vm859_vm1, %v3104_v58, %v3106_v60  ;;  %v1768_v46 = vadd.f32 %v9775_v56, %v9727_v7  ;;  %v3599_v21 = vadd.f32 %v3598_v49, %v3597_v29  ;;  %v3487_v24 = vsel %vm1312_vm6, %v3431_v45, 0.0  ;;  %v11821_v56 = vld [vmem:[#allocation42_spill] sm:$0xff]  ;;  %v11822_v45 = vld [vmem:[#allocation129_spill] sm:$0xff]  ;;  %v11823_v29 = vld [vmem:[#allocation71_spill] sm:$0xff] }
 0x343   : > { %v9928_v31 = vpop.permute.xlu0 %2515  ;;  %v9940_v25 = vadd.f32 %v3097_v12, %v2962_v9  ;;  %v3108_v28 = vrot.slane %v9922_v32, 6  ;;  %v3600_v55 = vsel %vm1312_vm6, %v3544_v63, 0.0  ;;  %v2742_v22 = vadd.f32 %v11818_v48, %v2582_v18 }
 0x344   : > { %v2583_v40 = vadd.f32 %v11820_v2, %v11819_v41  ;;  %v1990_v35 = vadd.f32 %v1918_v61, %v1768_v46  ;;  %v3489_v58 = vsel %vm1312_vm6, %v3432_v50, 0.0  ;;  %v3545_v52 = vmul.f32 %v3432_v50, %v9905_v27  ;;  %v11825_v61 = vld [vmem:[#allocation66_spill] sm:$0xff]  ;;  %v11826_v41 = vld [vmem:[#allocation33_spill] sm:$0xff]  ;;  %v3006_v50 = vld [vmem:[#allocation4 + $0x358] sm:$0xff] }
 0x345   : > { %v9949_v7 = vadd.f32 %v3099_v36, %v2963_v38  ;;  %v2584_v12 = vadd.f32 %v11822_v45, %v11821_v56  ;;  %v3488_v32 = vadd.f32 %v3487_v24, %v3486_v16  ;;  %v2964_v18 = vadd.f32 %v11824_v51, %v2742_v22  ;;  %v3007_v38 = vld [vmem:[#allocation4 + $0x370] sm:$0xff]  ;;  %v11827_v56 = vld [vmem:[#allocation100_spill] sm:$0xff]  ;;  %v11829_v16 = vld [vmem:[#allocation89_spill] sm:$0xff] }
 0x346   : > { %v2078_v49 = vpop.permute.xlu1 %2077  ;;  %v2743_v63 = vadd.f32 %v11823_v29, %v2583_v40  ;;  %v3601_v43 = vadd.f32 %v3600_v55, %v3599_v21  ;;  %v3433_v46 = vmul.f32 %v11825_v61, %v9940_v25  ;;  %v3109_v36 = vsel %vm859_vm1, %v3106_v60, %v3108_v28  ;;  %v11828_v45 = vld [vmem:[#allocation83_spill] sm:$0xff]  ;;  %v9962_v40 = vld [vmem:[#allocation4 + $0x388] sm:$0xff] }
 0x347   : > { %v2894_v9 = vpop.permute.xlu0 %2893  ;;  %v2150_v48 = vadd.f32 %v2078_v49, %v1990_v35  ;;  %v2744_v2 = vadd.f32 %v11826_v41, %v2584_v12  ;;  %v3490_v27 = vadd.f32 %v3489_v58, %v3488_v32  ;;  %v2585_v13 = vadd.f32 %v11828_v45, %v11827_v56  ;;  %v11830_v55 = vld [vmem:[#allocation65_spill] sm:$0xff] }
 0x348   : > { %v2965_v24 = vadd.f32 %v11829_v16, %v2743_v63  ;;  %v3602_v21 = vsel %vm1312_vm6, %v3545_v52, 0.0  ;;  %v3434_v22 = vmul.f32 %v11830_v55, %v9949_v7  ;;  %v11831_v35 = vld [vmem:[#allocation101_spill] sm:$0xff]  ;;  %v9975_v32 = vadd.f32 %v3101_v6, %v2964_v18  ;;  %v11832_v52 = vld [vmem:[#allocation80_spill] sm:$0xff] }
 0x349   : > { %v9965_v51 = vadd.f32 %v9743_v62, %v2150_v48  ;;  %v2586_v60 = vadd.f32 %v9668_v15, %v11831_v35  ;;  %v2966_v58 = vadd.f32 %v9691_v17, %v2744_v2  ;;  %v2745_v29 = vadd.f32 %v9643_v19, %v2585_v13  ;;  %v11834_v16 = vld [vmem:[#allocation69_spill] sm:$0xff] }
 0x34a   : > { %v2674_v49 = vpop.permute.xlu1 %2673  ;;  %v3110_v63 = vrot.slane %v3006_v50, 6  ;;  %v3112_v62 = vrot.slane %v3007_v38, 6  ;;  %v3546_v48 = vmul.f32 %v3433_v46, %v9940_v25  ;;  %v2587_v61 = vadd.f32 %v9718_v0, %v11832_v52 }
 0x34b   : > { %v9973_v12 = vpop.permute.xlu0 %2517  ;;  %v2746_v41 = vadd.f32 %v9777_v39, %v2586_v60  ;;  %v3114_v15 = vrot.slane %v9962_v40, 6  ;;  %v3603_v56 = vadd.f32 %v3602_v21, %v3601_v43  ;;  %v3491_v17 = vsel %vm1312_vm6, %v3433_v46, 0.0  ;;  %v11833_v39 = vld [vmem:[#allocation70_spill] sm:$0xff] }
 0x34c   : > { %v9984_v2 = vadd.f32 %v3103_v5, %v2965_v24  ;;  %v2967_v6 = vadd.f32 %v9750_v53, %v2745_v29  ;;  %v3547_v19 = vmul.f32 %v3434_v22, %v9949_v7  ;;  %v9988_v13 = vadd.f32 %v3105_v1, %v2966_v58 }
 0x34d   : > { %v2747_v18 = vadd.f32 %v9829_v57, %v2587_v61  ;;  %v2968_v50 = vadd.f32 %v9870_v26, %v2746_v41  ;;  %v3435_v43 = vmul.f32 %v11833_v39, %v9975_v32  ;;  %v2588_v5 = vadd.f32 %v9851_v4, %v9633_v11  ;;  %v10011_v4 = vld [vmem:[#allocation4 + $0x3a0] sm:$0xff] }
 0x34e   : > { %v9992_v38 = vpop.permute.xlu1 %3397  ;;  %v3111_v46 = vsel %vm859_vm1, %v3108_v28, %v3110_v63  ;;  %v3113_v53 = vsel %vm859_vm1, %v3110_v63, %v3112_v62  ;;  %v3492_v45 = vadd.f32 %v3491_v17, %v3490_v27  ;;  %v3604_v1 = vsel %vm1312_vm6, %v3546_v48, 0.0  ;;  %v10029_v17 = vld [vmem:[#allocation4 + $0x3b8] sm:$0xff] }
 0x34f   : > { %v2896_v0 = vpop.permute.xlu0 %2895  ;;  %v2969_v57 = vadd.f32 %v9930_v33, %v2747_v18  ;;  %v3115_v26 = vsel %vm859_vm1, %v3112_v62, %v3114_v15  ;;  %v3436_v24 = vmul.f32 %v11834_v16, %v9984_v2  ;;  %v10006_v40 = vadd.f32 %v9935_v23, %v2967_v6  ;;  %v11835_v33 = vld [vmem:[#allocation75_spill] sm:$0xff] }
 0x350   : > { %v2748_v21 = vadd.f32 %v9892_v59, %v2588_v5  ;;  %v2589_v11 = vadd.f32 %v9912_v10, %v9766_v42  ;;  %v3493_v27 = vsel %vm1312_vm6, %v3434_v22, 0.0  ;;  %v3606_v28 = vsel %vm1312_vm6, %v3547_v19, 0.0 }
 0x351   : > { %v3437_v55 = vmul.f32 %v11835_v33, %v9988_v13  ;;  %v10017_v35 = vadd.f32 %v3109_v36, %v2968_v50  ;;  %v3548_v23 = vmul.f32 %v3435_v43, %v9975_v32  ;;  %v2590_v59 = vadd.f32 %v9928_v31, %v9821_v3  ;;  %v11836_v36 = vld [vmem:[#allocation12_spill] sm:$0xff] }
 0x352   : > { %v2676_v58 = vpop.permute.xlu1 %2675  ;;  %v2970_v29 = vadd.f32 %v2894_v9, %v2748_v21  ;;  %v2749_v42 = vadd.f32 %v2674_v49, %v2589_v11  ;;  %v3605_v10 = vadd.f32 %v3604_v1, %v3603_v56  ;;  %v3495_v63 = vsel %vm1312_vm6, %v3435_v43, 0.0 }
 0x353   : > { %v2520_v60 = vpop.permute.xlu0 %2519  ;;  %v10023_v22 = vadd.f32 %v3111_v46, %v2969_v57  ;;  %v3116_v62 = vrot.slane %v10011_v4, 6  ;;  %v3549_v48 = vmul.f32 %v3436_v24, %v9984_v2  ;;  %v3438_v52 = vmul.f32 %v11836_v36, %v10006_v40 }
 0x354   : > { %v2971_v61 = vadd.f32 %v2896_v0, %v2749_v42  ;;  %v2750_v41 = vadd.f32 %v2676_v58, %v2590_v59  ;;  %v3494_v6 = vadd.f32 %v3493_v27, %v3492_v45  ;;  %v3607_v3 = vadd.f32 %v3606_v28, %v3605_v10 }
 0x355   : > { %v3550_v31 = vmul.f32 %v3437_v55, %v9988_v13  ;;  %v3439_v9 = vmul.f32 %v9666_v14, %v10017_v35  ;;  %v3608_v19 = vsel %vm1312_vm6, %v3548_v23, 0.0  ;;  %v3497_v18 = vsel %vm1312_vm6, %v3436_v24, 0.0 }
 0x356   : > { %v10034_v56 = vpop.permute.xlu1 %3402  ;;  %v10038_v50 = vadd.f32 %v3113_v53, %v2970_v29  ;;  %v3496_v39 = vadd.f32 %v3495_v63, %v3494_v6  ;;  %v3440_v43 = vmul.f32 %v9801_v8, %v10023_v22  ;;  %v3117_v5 = vsel %vm859_vm1, %v3114_v15, %v3116_v62  ;;  %v3011_v53 = vld [vmem:[#allocation4 + $0x3d0] sm:$0x3f] }
 0x357   : > { %v2898_v49 = vpop.permute.xlu0 %2897  ;;  %v3118_v14 = vrot.slane %v10029_v17, 6  ;;  %v3610_v46 = vsel %vm1312_vm6, %v3549_v48, 0.0  ;;  %v3499_v45 = vsel %vm1312_vm6, %v3437_v55, 0.0  ;;  %v3551_v1 = vmul.f32 %v3438_v52, %v10006_v40 }
 0x358   : > { %v2972_v0 = vadd.f32 %v2898_v49, %v2750_v41  ;;  %v10049_v57 = vadd.f32 %v3115_v26, %v2971_v61  ;;  %v3609_v16 = vadd.f32 %v3608_v19, %v3607_v3  ;;  %v3498_v24 = vadd.f32 %v3497_v18, %v3496_v39 }
 0x359   : > { %v3612_v21 = vsel %vm1312_vm6, %v3550_v31, 0.0  ;;  %v3552_v8 = vmul.f32 %v3439_v9, %v10017_v35  ;;  %v3501_v15 = vsel %vm1312_vm6, %v3438_v52, 0.0  ;;  %v3441_v28 = vmul.f32 %v9849_v30, %v10038_v50 }
 0x35a   : > { %v2678_v27 = vpop.permute.xlu1 %2677  ;;  %v2592_v33 = vadd.f32 %v2520_v60, %v9965_v51  ;;  %v10057_v55 = vadd.f32 %v3117_v5, %v2972_v0  ;;  %v3611_v26 = vadd.f32 %v3610_v46, %v3609_v16  ;;  %v3500_v58 = vadd.f32 %v3499_v45, %v3498_v24 }
 0x35b   : > { %v2680_v11 = vpop.permute.xlu0 %2679  ;;  %v3553_v23 = vmul.f32 %v3440_v43, %v10023_v22  ;;  %v3120_v59 = vrot.slane %v3011_v53, 6  ;;  %v3614_v29 = vsel %vm1312_vm6, %v3551_v1, 0.0  ;;  %v3503_v42 = vsel %vm1312_vm6, %v3439_v9, 0.0 }
 0x35c   : > { %v3442_v10 = vmul.f32 %v9910_v37, %v10049_v57  ;;  %v2752_v63 = vadd.f32 %v2680_v11, %v2592_v33  ;;  %v3613_v48 = vadd.f32 %v3612_v21, %v3611_v26  ;;  %v3502_v36 = vadd.f32 %v3501_v15, %v3500_v58 }
 0x35d   : > { %v3616_v30 = vsel %vm1312_vm6, %v3552_v8, 0.0  ;;  %v3505_v51 = vsel %vm1312_vm6, %v3440_v43, 0.0  ;;  %v3554_v61 = vmul.f32 %v3441_v28, %v10038_v50  ;;  %v2591_v41 = vadd.f32 %v9973_v12, %v9886_v44 }
 0x35e   : > { %v3408_v52 = vpop.permute.xlu1 %3407  ;;  %v3443_v17 = vmul.f32 %v9992_v38, %v10057_v55  ;;  %v3615_v3 = vadd.f32 %v3614_v29, %v3613_v48  ;;  %v3504_v37 = vadd.f32 %v3503_v42, %v3502_v36  ;;  %v3618_v31 = vsel %vm1312_vm6, %v3553_v23, 0.0 }
 0x35f   : > { %v2902_v60 = vpop.permute.xlu0 %2901  ;;  %v3121_v9 = vsel %vm859_vm1, %v3118_v14, %v3120_v59  ;;  %v3507_v49 = vsel %vm1312_vm6, %v3441_v28, 0.0  ;;  %v3555_v19 = vmul.f32 %v3442_v10, %v10049_v57  ;;  %v2751_v18 = vadd.f32 %v2678_v27, %v2591_v41 }
 0x360   : > { %v2974_v6 = vadd.f32 %v2902_v60, %v2752_v63  ;;  %v3617_v39 = vadd.f32 %v3616_v30, %v3615_v3  ;;  %v3506_v43 = vadd.f32 %v3505_v51, %v3504_v37  ;;  %v3620_v12 = vsel %vm1312_vm6, %v3554_v61, 0.0 }
 0x361   : > { %v3509_v38 = vsel %vm1312_vm6, %v3442_v10, 0.0  ;;  %v3556_v5 = vmul.f32 %v3443_v17, %v10057_v55  ;;  %v3119_v53 = vsel %vm859_vm1, %v3116_v62, %v3118_v14  ;;  %v3622_v16 = vsel %vm1312_vm6, %v3555_v19, 0.0  ;;  %v7199_v19 = vld [vmem:[%s11306_s2 + $0x20] ss:$12 sps:$4 sm:$0xff]  }
 0x362   : > { %v10075_v0 = vadd.f32 %v3121_v9, %v2974_v6  ;;  %v2900_v44 = vpop.permute.xlu1 %2899  ;;  %v3619_v45 = vadd.f32 %v3618_v31, %v3617_v39  ;;  %v3508_v1 = vadd.f32 %v3507_v49, %v3506_v43  ;;  %v3511_v24 = vsel %vm1312_vm6, %v3443_v17, 0.0  ;;  %v7198_v49 = vld [vmem:[%s11306_s2 + $0x8] ss:$12 sps:$4 sm:$0xff]   ;;  %v4830_v43 = vld [vmem:[%s11311_s7] sm:$0xff] }
 0x363   : > { %v2973_v46 = vadd.f32 %v2900_v44, %v2751_v18  ;;  %v3624_v15 = vsel %vm1312_vm6, %v3556_v5, 0.0  ;;  %v11837_v9 = vmov 0.0   ;;  %v10108_v18 = vld [vmem:[#allocation3] sm:$0xff]  ;;  %v4831_v39 = vld [vmem:[%s11311_s7 + $0x8] sm:$0xff]  ;;  %v7332_v44 = vmov 1   ;;  %v4833_v5 = vld [vmem:[%s11311_s7 + $0x18] sm:$0xff] }
 0x364   : > { %v3445_v21 = vmul.f32 %v3408_v52, %v10075_v0  ;;  %v3621_v11 = vadd.f32 %v3620_v12, %v3619_v45  ;;  %v3510_v27 = vadd.f32 %v3509_v38, %v3508_v1  ;;  %5106 = vst.msk [vmem:[#allocation3] sm:$0xff] %vm1312_vm6, %v11837_v9  ;;  %7082 = vset.pattern.permute.xlu1 %v7332_v44  ;;  %v4832_v12 = vld [vmem:[%s11311_s7 + $0x10] sm:$0xff]  ;;  %v4834_v38 = vld [vmem:[%s11311_s7 + $0x20] sm:$0xff] }
 0x365   : > { %v10086_v8 = vadd.f32 %v3119_v53, %v2973_v46  ;;  %7081 = vset.pattern.permute.xlu0 %v7332_v44  ;;  %4847 = vperm.xlu1 %7082, %v4831_v39   ;;  %v4837_v46 = vld [vmem:[%s11311_s7 + $0x38] sm:$0xff]  ;;  %v11844_v39 = vld [vmem:[#allocation84_spill] sm:$0xff] }
 0x366   : > { %v3623_v33 = vadd.f32 %v3622_v16, %v3621_v11  ;;  %v3512_v26 = vadd.f32 %v3511_v24, %v3510_v27  ;;  %v3558_v4 = vmul.f32 %v3445_v21, %v10075_v0  ;;  %v3515_v59 = vsel %vm1312_vm6, %v3445_v21, 0.0  ;;  %4842 = vperm.xlu0 %7081, %v4830_v43   ;;  %v4835_v24 = vld [vmem:[%s11311_s7 + $0x28] sm:$0xff]  ;;  %v4838_v21 = vld [vmem:[%s11311_s7 + $0x40] sm:$0xff]  ;;  %v11845_v44 = vld [vmem:[#allocation85_spill] sm:$0xff] }
 0x367   : > { %v3444_v28 = vmul.f32 %v10034_v56, %v10086_v8 }
 0x368   : > { %v3625_v58 = vadd.f32 %v3624_v15, %v3623_v33  ;;  %v3628_v63 = vsel %vm1312_vm6, %v3558_v4, 0.0  ;;  %v4836_v15 = vld [vmem:[%s11311_s7 + $0x30] sm:$0xff]  ;;  %v3735_v4 = vlaneseq }
 0x369   : > { %v3513_v62 = vsel %vm1312_vm6, %v3444_v28, 0.0  ;;  %v3557_v14 = vmul.f32 %v3444_v28, %v10086_v8  ;;  %4852 = vperm.xlu1 %7082, %v4832_v12   ;;  %v4839_v28 = vld [vmem:[%s11311_s7 + $0x48] sm:$0xff] }
 0x36a   : > { %v3514_v23 = vadd.f32 %v3513_v62, %v3512_v26  ;;  %4862 = vperm.xlu0 %7081, %v4834_v38   ;;  %v3724_v62 = vld [vmem:[%s11308_s4] sm:$0x1] }
 0x36b   : > { %v3626_v29 = vsel %vm1312_vm6, %v3557_v14, 0.0  ;;  %v3736_v14 = vshrl.u32 %v3735_v4, 7  ;;  %v11852_v4 = vld [vmem:[#allocation14_spill] sm:$0xff] }
 0x36c   : > { %v3516_v42 = vadd.f32 %v3515_v59, %v3514_v23  ;;  %v3627_v10 = vadd.f32 %v3626_v29, %v3625_v58  ;;  %v3726_v58 = vrot.slane %v3724_v62, 7  ;;  %v11853_v62 = vld [vmem:[#allocation92_spill] sm:$0xff] }
 0x36d   : > { %4857 = vperm.xlu1 %7082, %v4833_v5   ;;  %v10145_v23 = vsub.s32 1, %v3736_v14 }
 0x36e   : > { %v3517_v48 = vrot.slane %v3516_v42, 4  ;;  %v3629_v56 = vadd.f32 %v3628_v63, %v3627_v10  ;;  %4877 = vperm.xlu0 %7081, %v4837_v46   ;;  %v3729_v63 = vld [vmem:[%s11309_s5] sm:$0x1] }
 0x370   : > { %v3518_v36 = vadd.f32 %v3517_v48, %v3516_v42  ;;  %v3630_v30 = vrot.slane %v3629_v56, 4  ;;  %v10151_v48 = vsub.s32 0, %v3736_v14  ;;  %v11854_v14 = vld [vmem:[#allocation18_spill] sm:$0xff] }
 0x371   : > { %4867 = vperm.xlu1 %7082, %v4835_v24  }
 0x372   : > { %v3631_v51 = vadd.f32 %v3630_v30, %v3629_v56  ;;  %v3519_v60 = vrot.slane %v3518_v36, 2  ;;  %4882 = vperm.xlu0 %7081, %v4838_v21   ;;  %v11848_v21 = vld [vmem:[#allocation13_spill] sm:$0xff] }
 0x374   : > { %v3520_v52 = vadd.f32 %v3519_v60, %v3518_v36  ;;  %v3632_v61 = vrot.slane %v3631_v51, 2  ;;  %v11838_v36 = vld [vmem:[#allocation72_spill] sm:$0xff] }
 0x375   : > { %4872 = vperm.xlu1 %7082, %v4836_v15   ;;  %v11850_v15 = vld [vmem:[#allocation35_spill] sm:$0xff] }
 0x376   : > { %v3521_v41 = vrot.slane %v3520_v52, 1  ;;  %v3633_v17 = vadd.f32 %v3632_v61, %v3631_v51  ;;  %4887 = vperm.xlu0 %7081, %v4839_v28   ;;  %v11839_v51 = vld [vmem:[#allocation78_spill] sm:$0xff] }
 0x378   : > { %v3634_v6 = vrot.slane %v3633_v17, 1  ;;  %v3522_v3 = vadd.f32 %v3521_v41, %v3520_v52  ;;  %v11840_v52 = vld [vmem:[#allocation79_spill] sm:$0xff]  ;;  %v11841_v41 = vld [vmem:[#allocation82_spill] sm:$0xff] }
 0x37a   : > { %v3635_v37 = vadd.f32 %v3634_v6, %v3633_v17  ;;  %v11842_v6 = vld [vmem:[#allocation81_spill] sm:$0xff] }
 0x37c   : > { %v3637_v31 = vsel %vm3636_vm10, %v3522_v3, %v3635_v37  ;;  %v11843_v37 = vld [vmem:[#allocation86_spill] sm:$0xff] }
 0x37d   : > { %6871 = vmatmul.mubr.msk.f32.vlgmr.msra.gmra.mrb[84].mxu0 %vm1312_vm6, %v3637_v31 }
 0x37e   : > { %6877 = vmatprep.mubr.msk.bf16.mxu0 %vm7330_vm9, %v11837_v9  ;;  %6874 = vmatpush3.bf16.msra.mxu0 %v7198_v49 }
 0x37f   : > { %6875 = vmatprep.subr.bf16.mxu0 %v11837_v9 }
 0x382   : > { %6876 = vmatpush3.bf16.msra.mxu0 %v7199_v19 }
 0x450   : > { %v3711_v45 = vpop.f32.mrb[84].mxu0 }
 0x451   : > { %v3715_v1 = vmul.f32 0.00048828125, %v3711_v45  ;;  %v6872_v53 = vpop.f32.mrb[85].mxu0  ;;  %v11846_v45 = vld [vmem:[#allocation8_spill] sm:$0xff] }
 0x452   : > { %v11847_v53 = vld [vmem:[#allocation34_spill] sm:$0xff] }
 0x453   : > { %v3716_v16 = vmul.f32 %v3715_v1, %v3715_v1 }
 0x455   : > { %v3718_v11 = vrot.slane %v3716_v16, 7 }
 0x457   : > { %v3720_v27 = vsub.f32 %v3715_v1, %v3718_v11 }
 0x459   : > { %v3721_v33 = vmax.f32 %v3720_v27, 0.0 }
 0x45b   : > { %v3722_v26 = vadd.f32 1e-05, %v3721_v33  ;;  %v11851_v33 = vld [vmem:[#allocation37_spill] sm:$0xff] }
 0x45d   : > { %7224 = vrsqrt.f32 %v3722_v26 }
 0x467   : > { %v7225_v59 = vpop.eup %7224 }
 0x468   : > { %v3728_v29 = vmul.f32 %v7225_v59, %v3726_v58  ;;  %v11855_v58 = vld [vmem:[#allocation9_spill] sm:$0xff] }
 0x46a   : > { %v3731_v42 = vrot.slane %v3728_v29, 1  ;;  %v3738_v10 = vrot.slane %v3728_v29, %v10145_v23  ;;  %v11856_v29 = vld [vmem:[#allocation16_spill] sm:$0xff] }
 0x46c   : > { %v3733_v56 = vmul.f32 %v3731_v42, %v3715_v1  ;;  %v3739_v30 = vmul.f32 %v3738_v10, %v11838_v36  ;;  %v3740_v60 = vmul.f32 %v3738_v10, %v11839_v51  ;;  %v3741_v61 = vmul.f32 %v3738_v10, %v11840_v52 }
 0x46d   : > { %v3742_v17 = vmul.f32 %v3738_v10, %v11841_v41  ;;  %v3743_v3 = vmul.f32 %v3738_v10, %v11842_v6  ;;  %v3744_v31 = vmul.f32 %v3738_v10, %v11843_v37  ;;  %v3745_v49 = vmul.f32 %v3738_v10, %v9580_v34  ;;  %v11849_v34 = vld [vmem:[#allocation21_spill] sm:$0xff] }
 0x46e   : > { %v3734_v19 = vsub.f32 %v3729_v63, %v3733_v56  ;;  %v3746_v43 = vmul.f32 %v3738_v10, %v11844_v39  ;;  %v3747_v12 = vmul.f32 %v3738_v10, %v11845_v44  ;;  %v3748_v38 = vmul.f32 %v3738_v10, %v9662_v20 }
 0x46f   : > { %v3749_v5 = vmul.f32 %v3738_v10, %v9673_v54  ;;  %v3750_v46 = vmul.f32 %v3738_v10, %v9713_v47  ;;  %v3751_v1 = vmul.f32 %v3738_v10, %v11846_v45  ;;  %v3752_v16 = vmul.f32 %v3738_v10, %v11847_v53 }
 0x470   : > { %v3778_v24 = vrot.slane %v3734_v19, %v10151_v48  ;;  %v3753_v11 = vmul.f32 %v3738_v10, %v11848_v21  ;;  %v3754_v27 = vmul.f32 %v3738_v10, %v11849_v34  ;;  %v3755_v28 = vmul.f32 %v3738_v10, %v11850_v15 }
 0x471   : > { %v3756_v26 = vmul.f32 %v3738_v10, %v11851_v33  ;;  %v3757_v20 = vmul.f32 %v3738_v10, %v11852_v4  ;;  %v3758_v54 = vmul.f32 %v3738_v10, %v11853_v62  ;;  %v3759_v47 = vmul.f32 %v3738_v10, %v11854_v14 }
 0x472   : > { %v3760_v59 = vmul.f32 %v3738_v10, %v11855_v58  ;;  %v3761_v42 = vmul.f32 %v3738_v10, %v11856_v29  ;;  %v3762_v63 = vmul.f32 %v3738_v10, %v9940_v25  ;;  %v3763_v56 = vmul.f32 %v3738_v10, %v9949_v7 }
 0x473   : > { %v3764_v36 = vmul.f32 %v3738_v10, %v9975_v32  ;;  %v3765_v51 = vmul.f32 %v3738_v10, %v9984_v2  ;;  %v3766_v52 = vmul.f32 %v3738_v10, %v9988_v13  ;;  %v3767_v41 = vmul.f32 %v3738_v10, %v10006_v40 }
 0x474   : > { %v3768_v6 = vmul.f32 %v3738_v10, %v10017_v35  ;;  %v3769_v37 = vmul.f32 %v3738_v10, %v10023_v22  ;;  %v3770_v19 = vmul.f32 %v3738_v10, %v10038_v50  ;;  %v3771_v39 = vmul.f32 %v3738_v10, %v10049_v57 }
 0x475   : > { %v3772_v25 = vmul.f32 %v3738_v10, %v10057_v55  ;;  %v3773_v7 = vmul.f32 %v3738_v10, %v10086_v8  ;;  %v3774_v32 = vmul.f32 %v3738_v10, %v10075_v0  ;;  %v3779_v44 = vadd.f32 %v3778_v24, %v3739_v30 }
 0x476   : > { %v3780_v2 = vadd.f32 %v3778_v24, %v3740_v60  ;;  %v3781_v45 = vadd.f32 %v3778_v24, %v3741_v61  ;;  %v3782_v13 = vadd.f32 %v3778_v24, %v3742_v17  ;;  %v3783_v53 = vadd.f32 %v3778_v24, %v3743_v3 }
 0x477   : > { %v3784_v40 = vadd.f32 %v3778_v24, %v3744_v31  ;;  %v3785_v21 = vadd.f32 %v3778_v24, %v3745_v49  ;;  %v3786_v35 = vadd.f32 %v3778_v24, %v3746_v43  ;;  %v3787_v34 = vadd.f32 %v3778_v24, %v3747_v12 }
 0x478   : > { %v3788_v22 = vadd.f32 %v3778_v24, %v3748_v38  ;;  %v3789_v15 = vadd.f32 %v3778_v24, %v3749_v5  ;;  %v3790_v50 = vadd.f32 %v3778_v24, %v3750_v46  ;;  %v3791_v33 = vadd.f32 %v3778_v24, %v3751_v1 }
 0x479   : > { %v3792_v57 = vadd.f32 %v3778_v24, %v3752_v16  ;;  %v3793_v4 = vadd.f32 %v3778_v24, %v3753_v11  ;;  %v3794_v55 = vadd.f32 %v3778_v24, %v3754_v27  ;;  %v3795_v62 = vadd.f32 %v3778_v24, %v3755_v28 }
 0x47a   : > { %v10190_v8 = vadd.f32 %v3778_v24, %v3756_v26  ;;  %v10192_v0 = vadd.f32 %v3778_v24, %v3757_v20  ;;  %v10194_v10 = vadd.f32 %v3778_v24, %v3758_v54  ;;  %v10196_v30 = vadd.f32 %v3778_v24, %v3759_v47 }
 0x47b   : > { %v10198_v60 = vadd.f32 %v3778_v24, %v3760_v59  ;;  %v10200_v61 = vadd.f32 %v3778_v24, %v3761_v42  ;;  %v10202_v17 = vadd.f32 %v3778_v24, %v3762_v63  ;;  %v10204_v3 = vadd.f32 %v3778_v24, %v3763_v56 }
 0x47c   : > { %v10206_v31 = vadd.f32 %v3778_v24, %v3764_v36  ;;  %v10208_v49 = vadd.f32 %v3778_v24, %v3765_v51  ;;  %v10210_v43 = vadd.f32 %v3778_v24, %v3766_v52  ;;  %v10212_v12 = vadd.f32 %v3778_v24, %v3767_v41 }
 0x47d   : > { %v10214_v38 = vadd.f32 %v3778_v24, %v3768_v6  ;;  %v10216_v5 = vadd.f32 %v3778_v24, %v3769_v37  ;;  %v10218_v46 = vadd.f32 %v3778_v24, %v3770_v19  ;;  %v10220_v1 = vadd.f32 %v3778_v24, %v3771_v39 }
 0x47e   : > { %v10222_v16 = vadd.f32 %v3778_v24, %v3772_v25  ;;  %v10224_v11 = vadd.f32 %v3778_v24, %v3773_v7  ;;  %v10226_v27 = vadd.f32 %v3778_v24, %v3774_v32  ;;  %v3815_v28 = vmax.f32 %v3779_v44, 0.0 }
 0x47f   : > { %v3816_v26 = vmax.f32 %v3780_v2, 0.0  ;;  %v3817_v20 = vmax.f32 %v3781_v45, 0.0  ;;  %v3818_v54 = vmax.f32 %v3782_v13, 0.0  ;;  %v3819_v14 = vmax.f32 %v3783_v53, 0.0 }
 0x480   : > { %v3820_v47 = vmax.f32 %v3784_v40, 0.0  ;;  %v3821_v58 = vmax.f32 %v3785_v21, 0.0  ;;  %v3822_v59 = vmax.f32 %v3786_v35, 0.0  ;;  %v3823_v29 = vmax.f32 %v3787_v34, 0.0  ;;  %3851 = vst.msk [vmem:[#allocation2] sm:$0xff] %vm1312_vm6, %v3815_v28 }
 0x481   : > { %v3824_v42 = vmax.f32 %v3788_v22, 0.0  ;;  %v3825_v63 = vmax.f32 %v3789_v15, 0.0  ;;  %v3826_v56 = vmax.f32 %v3790_v50, 0.0  ;;  %v3827_v36 = vmax.f32 %v3791_v33, 0.0  ;;  %3852 = vst.msk [vmem:[#allocation2 + $0x8] sm:$0xff] %vm1312_vm6, %v3816_v26  ;;  %3853 = vst.msk [vmem:[#allocation2 + $0x10] sm:$0xff] %vm1312_vm6, %v3817_v20 }
 0x482   : > { %3854 = vst.msk [vmem:[#allocation2 + $0x18] sm:$0xff] %vm1312_vm6, %v3818_v54  ;;  %3855 = vst.msk [vmem:[#allocation2 + $0x20] sm:$0xff] %vm1312_vm6, %v3819_v14  ;;  %v3828_v24 = vmax.f32 %v3792_v57, 0.0  ;;  %v3829_v51 = vmax.f32 %v3793_v4, 0.0  ;;  %v3830_v52 = vmax.f32 %v3794_v55, 0.0  ;;  %v3831_v41 = vmax.f32 %v3795_v62, 0.0 }
 0x483   : > { %3856 = vst.msk [vmem:[#allocation2 + $0x28] sm:$0xff] %vm1312_vm6, %v3820_v47  ;;  %3857 = vst.msk [vmem:[#allocation2 + $0x30] sm:$0xff] %vm1312_vm6, %v3821_v58  ;;  %v3832_v6 = vmax.f32 %v10190_v8, 0.0  ;;  %v3833_v37 = vmax.f32 %v10192_v0, 0.0  ;;  %v3834_v19 = vmax.f32 %v10194_v10, 0.0  ;;  %v3835_v39 = vmax.f32 %v10196_v30, 0.0 }
 0x484   : > { %3858 = vst.msk [vmem:[#allocation2 + $0x38] sm:$0xff] %vm1312_vm6, %v3822_v59  ;;  %3859 = vst.msk [vmem:[#allocation2 + $0x40] sm:$0xff] %vm1312_vm6, %v3823_v29  ;;  %v3836_v25 = vmax.f32 %v10198_v60, 0.0  ;;  %v3837_v7 = vmax.f32 %v10200_v61, 0.0  ;;  %v3838_v32 = vmax.f32 %v10202_v17, 0.0  ;;  %v3839_v44 = vmax.f32 %v10204_v3, 0.0 }
 0x485   : > { %3860 = vst.msk [vmem:[#allocation2 + $0x48] sm:$0xff] %vm1312_vm6, %v3824_v42  ;;  %3861 = vst.msk [vmem:[#allocation2 + $0x50] sm:$0xff] %vm1312_vm6, %v3825_v63  ;;  %v3840_v2 = vmax.f32 %v10206_v31, 0.0  ;;  %v3841_v45 = vmax.f32 %v10208_v49, 0.0  ;;  %v3842_v13 = vmax.f32 %v10210_v43, 0.0  ;;  %v3843_v53 = vmax.f32 %v10212_v12, 0.0 }
 0x486   : > { %3862 = vst.msk [vmem:[#allocation2 + $0x58] sm:$0xff] %vm1312_vm6, %v3826_v56  ;;  %3863 = vst.msk [vmem:[#allocation2 + $0x60] sm:$0xff] %vm1312_vm6, %v3827_v36  ;;  %v3844_v40 = vmax.f32 %v10214_v38, 0.0  ;;  %v3845_v21 = vmax.f32 %v10216_v5, 0.0  ;;  %v3846_v35 = vmax.f32 %v10218_v46, 0.0  ;;  %v3847_v34 = vmax.f32 %v10220_v1, 0.0 }
 0x487   : > { %3864 = vst.msk [vmem:[#allocation2 + $0x68] sm:$0xff] %vm1312_vm6, %v3828_v24  ;;  %3865 = vst.msk [vmem:[#allocation2 + $0x70] sm:$0xff] %vm1312_vm6, %v3829_v51  ;;  %v3848_v22 = vmax.f32 %v10222_v16, 0.0  ;;  %v3849_v15 = vmax.f32 %v10224_v11, 0.0  ;;  %v3850_v50 = vmax.f32 %v10226_v27, 0.0 }
 0x488   : > { %3866 = vst.msk [vmem:[#allocation2 + $0x78] sm:$0xff] %vm1312_vm6, %v3830_v52  ;;  %3867 = vst.msk [vmem:[#allocation2 + $0x80] sm:$0xff] %vm1312_vm6, %v3831_v41  ;;  %v3902_v33 = vld [vmem:[#allocation2] ss:$2 sm:$0xff]  ;;  %v3904_v57 = vld [vmem:[#allocation2 + $0x1] ss:$2 sm:$0xff] }
 0x489   : > { %3868 = vst.msk [vmem:[#allocation2 + $0x88] sm:$0xff] %vm1312_vm6, %v3832_v6  ;;  %3869 = vst.msk [vmem:[#allocation2 + $0x90] sm:$0xff] %vm1312_vm6, %v3833_v37  ;;  %v3907_v4 = vld [vmem:[#allocation2 + $0x12] ss:$2 sm:$0xff]  ;;  %v3909_v55 = vld [vmem:[#allocation2 + $0x13] ss:$2 sm:$0xff]  ;;  %v3905_v62 = vmax.f32 %v3902_v33, %v3904_v57 }
 0x48a   : > { %3870 = vst.msk [vmem:[#allocation2 + $0x98] sm:$0xff] %vm1312_vm6, %v3834_v19  ;;  %3871 = vst.msk [vmem:[#allocation2 + $0xa0] sm:$0xff] %vm1312_vm6, %v3835_v39  ;;  %v3914_v8 = vld [vmem:[#allocation2 + $0x24] ss:$2 sm:$0xff]  ;;  %v3916_v0 = vld [vmem:[#allocation2 + $0x25] ss:$2 sm:$0xff]  ;;  %v3910_v10 = vmax.f32 %v3907_v4, %v3909_v55 }
 0x48b   : > { %3872 = vst.msk [vmem:[#allocation2 + $0xa8] sm:$0xff] %vm1312_vm6, %v3836_v25  ;;  %3873 = vst.msk [vmem:[#allocation2 + $0xb0] sm:$0xff] %vm1312_vm6, %v3837_v7  ;;  %v3917_v30 = vmax.f32 %v3914_v8, %v3916_v0  ;;  %v3919_v60 = vld [vmem:[#allocation2 + $0x36] ss:$2 sm:$0xff]  ;;  %v3921_v61 = vld [vmem:[#allocation2 + $0x37] ss:$2 sm:$0xff] }
 0x48c   : > { %3874 = vst.msk [vmem:[#allocation2 + $0xb8] sm:$0xff] %vm1312_vm6, %v3838_v32  ;;  %3875 = vst.msk [vmem:[#allocation2 + $0xc0] sm:$0xff] %vm1312_vm6, %v3839_v44  ;;  %v3926_v17 = vld [vmem:[#allocation2 + $0x48] ss:$2 sm:$0xff]  ;;  %v3922_v3 = vmax.f32 %v3919_v60, %v3921_v61  ;;  %v3928_v31 = vld [vmem:[#allocation2 + $0x49] ss:$2 sm:$0xff]  ;;  %v3911_v12 = vmax.f32 %v3905_v62, %v3910_v10 }
 0x48d   : > { %3876 = vst.msk [vmem:[#allocation2 + $0xc8] sm:$0xff] %vm1312_vm6, %v3840_v2  ;;  %3877 = vst.msk [vmem:[#allocation2 + $0xd0] sm:$0xff] %vm1312_vm6, %v3841_v45  ;;  %v3929_v38 = vmax.f32 %v3926_v17, %v3928_v31  ;;  %v4009_v31 = vld [vmem:[#allocation3 + $0x60] sm:$0x3f] }
 0x48e   : > { %3878 = vst.msk [vmem:[#allocation2 + $0xd8] sm:$0xff] %vm1312_vm6, %v3842_v13  ;;  %3879 = vst.msk [vmem:[#allocation2 + $0xe0] sm:$0xff] %vm1312_vm6, %v3843_v53  ;;  %v3931_v49 = vld [vmem:[#allocation2 + $0x5a] ss:$2 sm:$0xff]  ;;  %v3933_v43 = vld [vmem:[#allocation2 + $0x5b] ss:$2 sm:$0xff]  ;;  %v3923_v28 = vmax.f32 %v3917_v30, %v3922_v3 }
 0x48f   : > { %3880 = vst.msk [vmem:[#allocation2 + $0xe8] sm:$0xff] %vm1312_vm6, %v3844_v40  ;;  %3881 = vst.msk [vmem:[#allocation2 + $0xf0] sm:$0xff] %vm1312_vm6, %v3845_v21  ;;  %v3934_v5 = vmax.f32 %v3931_v49, %v3933_v43  ;;  %v3938_v46 = vld [vmem:[#allocation2 + $0x6c] ss:$2 sm:$0xff]  ;;  %v3940_v1 = vld [vmem:[#allocation2 + $0x6d] ss:$2 sm:$0xff]  ;;  %v4016_v49 = vpack.c.bf16 %v4009_v31, %v4009_v31 }
 0x490   : > { %3882 = vst.msk [vmem:[#allocation2 + $0xf8] sm:$0xff] %vm1312_vm6, %v3846_v35  ;;  %3883 = vst.msk [vmem:[#allocation2 + $0x100] sm:$0xff] %vm1312_vm6, %v3847_v34  ;;  %v3943_v16 = vld [vmem:[#allocation2 + $0x7e] ss:$2 sm:$0xff]  ;;  %v3941_v26 = vmax.f32 %v3938_v46, %v3940_v1  ;;  %v3945_v20 = vld [vmem:[#allocation2 + $0x7f] ss:$2 sm:$0xff] }
 0x491   : > { %3884 = vst.msk [vmem:[#allocation2 + $0x108] sm:$0xff] %vm1312_vm6, %v3848_v22  ;;  %3885 = vst.msk [vmem:[#allocation2 + $0x110] sm:$0xff] %vm1312_vm6, %v3849_v15  ;;  %v3935_v59 = vmax.f32 %v3929_v38, %v3934_v5  ;;  %v3946_v29 = vmax.f32 %v3943_v16, %v3945_v20  ;;  %v3950_v25 = vld [vmem:[#allocation2 + $0x90] ss:$2 sm:$0xff]  ;;  %v3952_v7 = vld [vmem:[#allocation2 + $0x91] ss:$2 sm:$0xff] }
 0x492   : > { %3886 = vst.msk [vmem:[#allocation2 + $0x118] sm:$0xff] %vm1312_vm6, %v3850_v50  ;;  %3912 = vst.msk [vmem:[#allocation3 + $0xb] sm:$0xff] %vm1312_vm6, %v3911_v12  ;;  %v3953_v45 = vmax.f32 %v3950_v25, %v3952_v7  ;;  %v3955_v13 = vld [vmem:[#allocation2 + $0xa2] ss:$2 sm:$0xff]  ;;  %v3957_v53 = vld [vmem:[#allocation2 + $0xa3] ss:$2 sm:$0xff] }
 0x493   : > { %v3962_v11 = vld [vmem:[#allocation2 + $0xb4] ss:$2 sm:$0xff]  ;;  %v3964_v27 = vld [vmem:[#allocation2 + $0xb5] ss:$2 sm:$0xff]  ;;  %3924 = vst.msk [vmem:[#allocation3 + $0x15] sm:$0xff] %vm1312_vm6, %v3923_v28  ;;  %3936 = vst.msk [vmem:[#allocation3 + $0x1f] sm:$0xff] %vm1312_vm6, %v3935_v59  ;;  %v3947_v37 = vmax.f32 %v3941_v26, %v3946_v29  ;;  %v3958_v40 = vmax.f32 %v3955_v13, %v3957_v53 }
 0x494   : > { %v3967_v54 = vld [vmem:[#allocation2 + $0xc6] ss:$2 sm:$0xff]  ;;  %v3969_v14 = vld [vmem:[#allocation2 + $0xc7] ss:$2 sm:$0xff]  ;;  %v3965_v58 = vmax.f32 %v3962_v11, %v3964_v27 }
 0x495   : > { %v3974_v47 = vld [vmem:[#allocation2 + $0xd8] ss:$2 sm:$0xff]  ;;  %v3976_v42 = vld [vmem:[#allocation2 + $0xd9] ss:$2 sm:$0xff]  ;;  %v3970_v36 = vmax.f32 %v3967_v54, %v3969_v14  ;;  %3948 = vst.msk [vmem:[#allocation3 + $0x29] sm:$0xff] %vm1312_vm6, %v3947_v37  ;;  %v3959_v34 = vmax.f32 %v3953_v45, %v3958_v40 }
 0x496   : > { %v3977_v41 = vmax.f32 %v3974_v47, %v3976_v42 }
 0x497   : > { %v3979_v63 = vld [vmem:[#allocation2 + $0xea] ss:$2 sm:$0xff]  ;;  %v3981_v56 = vld [vmem:[#allocation2 + $0xeb] ss:$2 sm:$0xff]  ;;  %v3971_v32 = vmax.f32 %v3965_v58, %v3970_v36  ;;  %3960 = vst.msk [vmem:[#allocation3 + $0x33] sm:$0xff] %vm1312_vm6, %v3959_v34 }
 0x498   : > { %v3986_v24 = vld [vmem:[#allocation2 + $0xfc] ss:$2 sm:$0xff]  ;;  %v3988_v51 = vld [vmem:[#allocation2 + $0xfd] ss:$2 sm:$0xff]  ;;  %v3982_v6 = vmax.f32 %v3979_v63, %v3981_v56 }
 0x499   : > { %v3991_v52 = vld [vmem:[#allocation2 + $0x10e] ss:$2 sm:$0xff]  ;;  %v3993_v19 = vld [vmem:[#allocation2 + $0x10f] ss:$2 sm:$0xff]  ;;  %v3989_v39 = vmax.f32 %v3986_v24, %v3988_v51  ;;  %3972 = vst.msk [vmem:[#allocation3 + $0x3d] sm:$0xff] %vm1312_vm6, %v3971_v32 }
 0x49a   : > { %v3994_v44 = vmax.f32 %v3991_v52, %v3993_v19  ;;  %v3983_v2 = vmax.f32 %v3977_v41, %v3982_v6  ;;  %v3998_v35 = vld [vmem:[#allocation3 + $0x8] sm:$0xff]  ;;  %v3999_v15 = vld [vmem:[#allocation3 + $0x10] sm:$0xff]  ;;  %v4000_v50 = vld [vmem:[#allocation3 + $0x18] sm:$0xff] }
 0x49b   : > { %v4010_v22 = vpack.c.bf16 %v3998_v35, %v10108_v18  ;;  %5107 = vst.msk [vmem:[#allocation3 + $0x8] sm:$0xff] %vm1312_vm6, %v11837_v9  ;;  %5108 = vst.msk [vmem:[#allocation3 + $0x10] sm:$0xff] %vm1312_vm6, %v11837_v9  ;;  %v4001_v33 = vld [vmem:[#allocation3 + $0x20] sm:$0xff]  ;;  %v11857_v18 = vmov 0   ;;  %v4011_v4 = vpack.c.bf16 %v4000_v50, %v3999_v15 }
 0x49c   : > { %v3995_v21 = vmax.f32 %v3989_v39, %v3994_v44  ;;  %3984 = vst.msk [vmem:[#allocation3 + $0x47] sm:$0xff] %vm1312_vm6, %v3983_v2  ;;  %5109 = vst.msk [vmem:[#allocation3 + $0x18] sm:$0xff] %vm1312_vm6, %v11837_v9  ;;  %v4002_v57 = vld [vmem:[#allocation3 + $0x28] sm:$0xff] }
 0x49d   : > { %6730 = vmatmul.mubr.msk.bf16.vlgmr.msra.gmra.mrb[84].mxu1 %vm1312_vm6, %v4010_v22  ;;  %6878 = vmatmul.mubr.msk.bf16.vlgmr.msra.gmra.mrb[88].mxu0 %vm1312_vm6, %v4010_v22  ;;  %5110 = vst.msk [vmem:[#allocation3 + $0x20] sm:$0xff] %vm1312_vm6, %v11837_v9  ;;  %v4012_v55 = vpack.c.bf16 %v4002_v57, %v4001_v33 }
 0x49e   : > { %3996 = vst.msk [vmem:[#allocation3 + $0x51] sm:$0xff] %vm1312_vm6, %v3995_v21  ;;  %4120 = vmatprep.mubr.bf16.mxu1 %v11857_v18  ;;  %6881 = vmatprep.mubr.msk.bf16.mxu0 %vm7330_vm9, %v11837_v9  ;;  %v4003_v62 = vld [vmem:[#allocation3 + $0x30] sm:$0xff] }
 0x49f   : > { %5111 = vst.msk [vmem:[#allocation3 + $0x28] sm:$0xf] %vm3900_vm11, %v11837_v9 }
 0x4a0   : > { %v4004_v8 = vld [vmem:[#allocation3 + $0x38] sm:$0xff] }
 0x4a1   : > { %v4013_v0 = vpack.c.bf16 %v4004_v8, %v4003_v62 }
 0x4a3   : > { %v4005_v10 = vld [vmem:[#allocation3 + $0x40] sm:$0xff]  ;;  %v4006_v30 = vld [vmem:[#allocation3 + $0x48] sm:$0xff] }
 0x4a4   : > { %v4014_v60 = vpack.c.bf16 %v4006_v30, %v4005_v10 }
 0x4a5   : > { %6731 = vmatmul.mubr.msk.bf16.gmra.mrb[88].mxu1 %vm1312_vm6, %v4011_v4  ;;  %6882 = vmatmul.mubr.msk.bf16.gmra.mrb[92].mxu0 %vm1312_vm6, %v4011_v4  ;;  %v4007_v61 = vld [vmem:[#allocation3 + $0x50] sm:$0xff]  ;;  %v4008_v17 = vld [vmem:[#allocation3 + $0x58] sm:$0xff] }
 0x4a6   : > { %4130 = vmatprep.mubr.bf16.mxu1 %v11857_v18  ;;  %6885 = vmatprep.mubr.msk.bf16.mxu0 %vm7330_vm9, %v11837_v9  ;;  %v4015_v3 = vpack.c.bf16 %v4008_v17, %v4007_v61 }
 0x4ad   : > { %6732 = vmatmul.mubr.msk.bf16.gmra.mrb[92].mxu1 %vm1312_vm6, %v4012_v55  ;;  %6886 = vmatmul.mubr.msk.bf16.gmra.mrb[96].mxu0 %vm1312_vm6, %v4012_v55 }
 0x4ae   : > { %4140 = vmatprep.mubr.bf16.mxu1 %v11857_v18  ;;  %6889 = vmatprep.mubr.msk.bf16.mxu0 %vm7330_vm9, %v11837_v9 }
 0x4b5   : > { %6733 = vmatmul.mubr.msk.bf16.gmra.mrb[96].mxu1 %vm1312_vm6, %v4013_v0  ;;  %6890 = vmatmul.mubr.msk.bf16.gmra.mrb[100].mxu0 %vm1312_vm6, %v4013_v0 }
 0x4b6   : > { %4150 = vmatprep.mubr.bf16.mxu1 %v11857_v18  ;;  %6893 = vmatprep.mubr.msk.bf16.mxu0 %vm7330_vm9, %v11837_v9 }
 0x4bd   : > { %6734 = vmatmul.mubr.msk.bf16.gmra.mrb[100].mxu1 %vm1312_vm6, %v4014_v60  ;;  %6894 = vmatmul.mubr.msk.bf16.gmra.mrb[104].mxu0 %vm1312_vm6, %v4014_v60 }
 0x4be   : > { %4160 = vmatprep.mubr.bf16.mxu1 %v11857_v18  ;;  %6897 = vmatprep.mubr.msk.bf16.mxu0 %vm7330_vm9, %v11837_v9 }
 0x4c5   : > { %6735 = vmatmul.mubr.msk.bf16.gmra.mrb[104].mxu1 %vm1312_vm6, %v4015_v3  ;;  %6898 = vmatmul.mubr.msk.bf16.gmra.mrb[108].mxu0 %vm1312_vm6, %v4015_v3 }
 0x4c6   : > { %4170 = vmatprep.mubr.bf16.mxu1 %v11857_v18  ;;  %6901 = vmatprep.mubr.msk.bf16.mxu0 %vm7330_vm9, %v11837_v9 }
 0x4cd   : > { %6736 = vmatmul.mubr.msk.bf16.gmra.mrb[108].mxu1 %vm1312_vm6, %v4016_v49  ;;  %6902 = vmatmul.mubr.msk.bf16.gmra.mrb[112].mxu0 %vm1312_vm6, %v4016_v49 }
 0x4ce   : > { %6913 = vmatprep.mubr.msk.f32.mxu1 %vm7330_vm9, %v11837_v9  ;;  %5248 = vmatprep.mubr.bf16.mxu0 %v11857_v18 }
 0x570   : > { %v10337_v43 = vpop.f32.mrb[84].mxu1  ;;  %v4213_v12 = vpop.f32.mrb[88].mxu0 }
 0x571   : > { %4267 = vst [vmem:[#allocation4] sm:$0xff] %v10337_v43  ;;  %v4114_v38 = vpop.f32.mrb[85].mxu1  ;;  %v6879_v5 = vpop.f32.mrb[89].mxu0 }
 0x572   : > { %v10340_v46 = vpop.f32.mrb[86].mxu1  ;;  %v4216_v1 = vpop.f32.mrb[90].mxu0 }
 0x573   : > { %4270 = vst [vmem:[#allocation4 + $0x18] sm:$0xff] %v10340_v46  ;;  %4272 = vst.msk [vmem:[#allocation4 + $0x28] sm:$0xff] %vm1312_vm6, %v4216_v1  ;;  %v4118_v16 = vpop.f32.mrb[87].mxu1  ;;  %v6880_v11 = vpop.f32.mrb[91].mxu0  ;;  %v4410_v27 = vrot.slane %v10340_v46, 2  ;;  %v4345_v28 = vrot.slane %v10340_v46, 1 }
 0x574   : > { %4271 = vst [vmem:[#allocation4 + $0x20] sm:$0xff] %v4118_v16 }
 0x578   : > { %v10346_v26 = vpop.f32.mrb[88].mxu1  ;;  %v4221_v20 = vpop.f32.mrb[92].mxu0  ;;  %v4405_v54 = vld [vmem:[#allocation4] sm:$0xfc] }
 0x579   : > { %v4331_v14 = vld [vmem:[#allocation4] sm:$0xfe]  ;;  %4275 = vst.msk [vmem:[#allocation4 + $0x40] sm:$0xff] %vm1312_vm6, %v4221_v20  ;;  %v10349_v47 = vpop.f32.mrb[89].mxu1  ;;  %v6883_v58 = vpop.f32.mrb[93].mxu0  ;;  %v4409_v59 = vrot.slane %v4405_v54, 2 }
 0x57a   : > { %v4344_v29 = vrot.slane %v4331_v14, 1  ;;  %v4412_v42 = vrot.slane %v10346_v26, 2  ;;  %v4347_v63 = vrot.slane %v10346_v26, 1  ;;  %4274 = vst [vmem:[#allocation4 + $0x38] sm:$0xff] %v10349_v47  ;;  %v10354_v56 = vpop.f32.mrb[90].mxu1  ;;  %v4224_v36 = vpop.f32.mrb[94].mxu0 }
 0x57b   : > { %4278 = vst.msk [vmem:[#allocation4 + $0x58] sm:$0xff] %vm1312_vm6, %v4224_v36  ;;  %v10357_v24 = vpop.f32.mrb[91].mxu1  ;;  %v6884_v51 = vpop.f32.mrb[95].mxu0  ;;  %v4411_v52 = vsel %vm1773_vm2, %v4409_v59, %v4410_v27  ;;  %v4470_v19 = vld [vmem:[#allocation4 + $0x18] sm:$0xfc]  ;;  %v4349_v39 = vrot.slane %v10354_v56, 1 }
 0x57c   : > { %v4346_v41 = vsel %vm1551_vm3, %v4344_v29, %v4345_v28  ;;  %v4413_v6 = vsel %vm1773_vm2, %v4410_v27, %v4412_v42  ;;  %v4348_v37 = vsel %vm1551_vm3, %v4345_v28, %v4347_v63  ;;  %4430 = vrot.lane.b32.xlu0 %v4411_v52, %s11390_s18  ;;  %v4414_v25 = vrot.slane %v10354_v56, 2  ;;  %v4585_v13 = vld [vmem:[#allocation4 + $0x20] sm:$0xf0] }
 0x57d   : > { %4365 = vrot.lane.b32.xlu1 %v4346_v41, %s11392_s28  ;;  %v4590_v7 = vrot.slane %v10349_v47, 4  ;;  %v10369_v32 = vrot.slane %v10357_v24, 4  ;;  %v4350_v44 = vsel %vm1551_vm3, %v4347_v63, %v4349_v39  ;;  %v4476_v45 = vrot.slane %v4470_v19, 2 }
 0x57e   : > { %v10373_v2 = vsel %vm1773_vm2, %v4412_v42, %v4414_v25  ;;  %v11384_v40 = vrot.slane %v10349_v47, 3  ;;  %v4547_v21 = vrot.slane %v10357_v24, 3  ;;  %v4589_v62 = vrot.slane %v4585_v13, 4 }
 0x57f   : > { %v10377_v53 = vsel %vm2375_vm4, %v4590_v7, %v10369_v32  ;;  %v4707_v0 = vrot.slane %v10357_v24, 5  ;;  %v4477_v60 = vsel %vm1773_vm2, %v4476_v45, %v4412_v42 }
 0x580   : > { %v10381_v35 = vpop.f32.mrb[92].mxu1  ;;  %v4229_v34 = vpop.f32.mrb[96].mxu0  ;;  %4367 = vrot.lane.b32.xlu0 %v4348_v37, %s11392_s28  ;;  %v10391_v57 = vsel %vm2225_vm5, %v11384_v40, %v4547_v21  ;;  %v4591_v28 = vsel %vm2375_vm4, %v4589_v62, %v4590_v7 }
 0x581   : > { %4432 = vrot.lane.b32.xlu1 %v4413_v6, %s11390_s18  ;;  %4281 = vst.msk [vmem:[#allocation4 + $0x70] sm:$0xff] %vm1312_vm6, %v4229_v34  ;;  %v4134_v22 = vpop.f32.mrb[93].mxu1  ;;  %v6887_v15 = vpop.f32.mrb[97].mxu0  ;;  %v4351_v50 = vrot.slane %v10381_v35, 1  ;;  %v4416_v33 = vrot.slane %v10381_v35, 2 }
 0x582   : > { %4280 = vst [vmem:[#allocation4 + $0x68] sm:$0xff] %v4134_v22  ;;  %v10393_v4 = vpop.f32.mrb[94].mxu1  ;;  %v4232_v55 = vpop.f32.mrb[98].mxu0  ;;  %v4594_v8 = vrot.slane %v4134_v22, 4  ;;  %v4709_v3 = vrot.slane %v4134_v22, 5  ;;  %v4549_v27 = vrot.slane %v4134_v22, 3 }
 0x583   : > { %4284 = vst.msk [vmem:[#allocation4 + $0x88] sm:$0xff] %vm1312_vm6, %v4232_v55  ;;  %v4138_v10 = vpop.f32.mrb[95].mxu1  ;;  %v6888_v30 = vpop.f32.mrb[99].mxu0  ;;  %v4352_v61 = vsel %vm1551_vm3, %v4349_v39, %v4351_v50  ;;  %v10400_v17 = vsel %vm1773_vm2, %v4414_v25, %v4416_v33  ;;  %v4418_v49 = vrot.slane %v10393_v4, 2  ;;  %v4353_v12 = vrot.slane %v10393_v4, 1 }
 0x584   : > { %4482 = vrot.lane.b32.xlu0 %v4477_v60, %s11388_s29  ;;  %v10406_v31 = vsel %vm2375_vm4, %v10369_v32, %v4594_v8  ;;  %v10413_v38 = vsel %vm2757_vm7, %v4707_v0, %v4709_v3  ;;  %v4596_v5 = vrot.slane %v4138_v10, 4  ;;  %v4711_v1 = vrot.slane %v4138_v10, 5 }
 0x585   : > { %4369 = vrot.lane.b32.xlu1 %v4350_v44, %s11392_s28  ;;  %v10416_v16 = vsel %vm1773_vm2, %v4416_v33, %v4418_v49  ;;  %v10419_v11 = vsel %vm1551_vm3, %v4351_v50, %v4353_v12  ;;  %v4551_v14 = vrot.slane %v4138_v10, 3  ;;  %v10434_v29 = vsel %vm2225_vm5, %v4547_v21, %v4549_v27  ;;  %v4650_v44 = vld [vmem:[#allocation4 + $0x38] sm:$0xf0] }
 0x586   : > { %v10423_v20 = vsel %vm2375_vm4, %v4594_v8, %v4596_v5  ;;  %v10426_v54 = vsel %vm2757_vm7, %v4709_v3, %v4711_v1  ;;  %v4656_v8 = vrot.slane %v4650_v44, 4  ;;  %v4702_v10 = vld [vmem:[#allocation4 + $0x38] sm:$0xe0] }
 0x587   : > { %v10442_v19 = vsel %vm2225_vm5, %v4549_v27, %v4551_v14 }
 0x588   : > { %v10428_v58 = vpop.f32.mrb[96].mxu1  ;;  %v4237_v59 = vpop.f32.mrb[100].mxu0  ;;  %4610 = vrot.lane.b32.xlu0 %v4591_v28, %s11392_s28 }
 0x589   : > { %4434 = vrot.lane.b32.xlu1 %v10373_v2, %s11390_s18  ;;  %4287 = vst.msk [vmem:[#allocation4 + $0xa0] sm:$0xff] %vm1312_vm6, %v4237_v59  ;;  %v4144_v42 = vpop.f32.mrb[97].mxu1  ;;  %v6891_v63 = vpop.f32.mrb[101].mxu0  ;;  %v4420_v36 = vrot.slane %v10428_v58, 2  ;;  %v4355_v51 = vrot.slane %v10428_v58, 1 }
 0x58a   : > { %v10439_v52 = vpop.f32.mrb[98].mxu1  ;;  %v4240_v41 = vpop.f32.mrb[102].mxu0  ;;  %v4598_v6 = vrot.slane %v4144_v42, 4  ;;  %v4713_v37 = vrot.slane %v4144_v42, 5  ;;  %v4553_v39 = vrot.slane %v4144_v42, 3 }
 0x58b   : > { %4290 = vst.msk [vmem:[#allocation4 + $0xb8] sm:$0xff] %vm1312_vm6, %v4240_v41  ;;  %v4148_v25 = vpop.f32.mrb[99].mxu1  ;;  %v6892_v7 = vpop.f32.mrb[103].mxu0  ;;  %v10446_v45 = vsel %vm1773_vm2, %v4418_v49, %v4420_v36  ;;  %v10449_v13 = vsel %vm1551_vm3, %v4353_v12, %v4355_v51  ;;  %v4422_v21 = vrot.slane %v10439_v52, 2  ;;  %v4357_v34 = vrot.slane %v10439_v52, 1 }
 0x58c   : > { %4371 = vrot.lane.b32.xlu0 %v4352_v61, %s11392_s28  ;;  %v10457_v22 = vsel %vm2375_vm4, %v4596_v5, %v4598_v6  ;;  %v10460_v15 = vsel %vm2757_vm7, %v4711_v1, %v4713_v37  ;;  %v4600_v50 = vrot.slane %v4148_v25, 4  ;;  %v4715_v33 = vrot.slane %v4148_v25, 5 }
 0x58d   : > { %4484 = vrot.lane.b32.xlu1 %v10373_v2, %s11388_s29  ;;  %v10463_v55 = vsel %vm1773_vm2, %v4420_v36, %v4422_v21  ;;  %v10466_v62 = vsel %vm1551_vm3, %v4355_v51, %v4357_v34  ;;  %v10475_v60 = vsel %vm2225_vm5, %v4551_v14, %v4553_v39  ;;  %v4555_v61 = vrot.slane %v4148_v25, 3 }
 0x58e   : > { %v10469_v2 = vsel %vm2375_vm4, %v4598_v6, %v4600_v50  ;;  %v10472_v30 = vsel %vm2757_vm7, %v4713_v37, %v4715_v33  ;;  %v4706_v1 = vrot.slane %v4702_v10, 5 }
 0x58f   : > { %v10487_v14 = vsel %vm2225_vm5, %v4553_v39, %v4555_v61 }
 0x590   : > { %v10477_v3 = vpop.f32.mrb[100].mxu1  ;;  %v4245_v49 = vpop.f32.mrb[104].mxu0  ;;  %4486 = vrot.lane.b32.xlu0 %v10400_v17, %s11388_s29 }
 0x591   : > { %4612 = vrot.lane.b32.xlu1 %v10377_v53, %s11392_s28  ;;  %4293 = vst.msk [vmem:[#allocation4 + $0xd0] sm:$0xff] %vm1312_vm6, %v4245_v49  ;;  %v4154_v12 = vpop.f32.mrb[101].mxu1  ;;  %v6895_v5 = vpop.f32.mrb[105].mxu0  ;;  %v4424_v27 = vrot.slane %v10477_v3, 2  ;;  %v4359_v28 = vrot.slane %v10477_v3, 1  ;;  %v4657_v53 = vsel %vm2375_vm4, %v4656_v8, %v10369_v32 }
 0x592   : > { %v10489_v59 = vpop.f32.mrb[102].mxu1  ;;  %v4248_v42 = vpop.f32.mrb[106].mxu0  ;;  %v4602_v63 = vrot.slane %v4154_v12, 4  ;;  %v4717_v36 = vrot.slane %v4154_v12, 5  ;;  %v4557_v51 = vrot.slane %v4154_v12, 3  ;;  %v4708_v5 = vsel %vm2757_vm7, %v4706_v1, %v4707_v0 }
 0x593   : > { %4296 = vst.msk [vmem:[#allocation4 + $0xe8] sm:$0xff] %vm1312_vm6, %v4248_v42  ;;  %v4158_v41 = vpop.f32.mrb[103].mxu1  ;;  %v6896_v6 = vpop.f32.mrb[107].mxu0  ;;  %v10495_v37 = vsel %vm1773_vm2, %v4422_v21, %v4424_v27  ;;  %v10498_v25 = vsel %vm1551_vm3, %v4357_v34, %v4359_v28  ;;  %v10501_v39 = vrot.slane %v10489_v59, 2  ;;  %v4361_v7 = vrot.slane %v10489_v59, 1 }
 0x594   : > { %4614 = vrot.lane.b32.xlu0 %v10406_v31, %s11392_s28  ;;  %v10508_v32 = vsel %vm2375_vm4, %v4600_v50, %v4602_v63  ;;  %v10511_v44 = vsel %vm2757_vm7, %v4715_v33, %v4717_v36  ;;  %v4604_v21 = vrot.slane %v4158_v41, 4  ;;  %v4719_v8 = vrot.slane %v4158_v41, 5 }
 0x595   : > { %4662 = vrot.lane.b32.xlu1 %v4657_v53, %s11390_s18  ;;  %v10515_v34 = vsel %vm1773_vm2, %v4424_v27, %v10501_v39  ;;  %v10520_v10 = vsel %vm1551_vm3, %v4359_v28, %v4361_v7  ;;  %v10529_v33 = vsel %vm2225_vm5, %v4555_v61, %v4557_v51  ;;  %v4559_v12 = vrot.slane %v4158_v41, 3 }
 0x596   : > { %v10523_v49 = vsel %vm2375_vm4, %v4602_v63, %v4604_v21  ;;  %v10526_v50 = vsel %vm2757_vm7, %v4717_v36, %v4719_v8 }
 0x597   : > { %v10540_v28 = vsel %vm2225_vm5, %v4557_v51, %v4559_v12 }
 0x598   : > { %v10534_v27 = vpop.f32.mrb[104].mxu1  ;;  %v4253_v42 = vpop.f32.mrb[108].mxu0  ;;  %4664 = vrot.lane.b32.xlu0 %v10406_v31, %s11390_s18 }
 0x599   : > { %4727 = vrot.lane.b32.xlu1 %v4708_v5, %s11388_s29  ;;  %4297 = vst [vmem:[#allocation4 + $0xf0] sm:$0xff] %v10534_v27  ;;  %4299 = vst.msk [vmem:[#allocation4 + $0x100] sm:$0xff] %vm1312_vm6, %v4253_v42  ;;  %v10544_v61 = vpop.f32.mrb[105].mxu1  ;;  %v6899_v24 = vpop.f32.mrb[109].mxu0  ;;  %v11386_v0 = vrot.slane %v10534_v27, 2 }
 0x59a   : > { %v4166_v1 = vpop.f32.mrb[106].mxu1  ;;  %v4256_v53 = vpop.f32.mrb[110].mxu0  ;;  %v10548_v63 = vrot.slane %v10544_v61, 4  ;;  %v4721_v36 = vrot.slane %v10544_v61, 5  ;;  %v11383_v31 = vrot.slane %v10544_v61, 3 }
 0x59b   : > { %4300 = vst [vmem:[#allocation4 + $0x108] sm:$0xff] %v4166_v1  ;;  %4302 = vst.msk [vmem:[#allocation4 + $0x118] sm:$0xff] %vm1312_vm6, %v4256_v53  ;;  %v10553_v51 = vpop.f32.mrb[107].mxu1  ;;  %v6900_v41 = vpop.f32.mrb[111].mxu0  ;;  %v10559_v6 = vsel %vm1773_vm2, %v10501_v39, %v11386_v0 }
 0x59c   : > { %4301 = vst [vmem:[#allocation4 + $0x110] sm:$0xff] %v10553_v51  ;;  %4729 = vrot.lane.b32.xlu0 %v10413_v38, %s11388_s29  ;;  %v10568_v5 = vsel %vm2375_vm4, %v4604_v21, %v10548_v63  ;;  %v10571_v42 = vsel %vm2757_vm7, %v4719_v8, %v4721_v36  ;;  %v11385_v24 = vrot.slane %v10553_v51, 4  ;;  %v4723_v1 = vrot.slane %v10553_v51, 5 }
 0x59d   : > { %4436 = vrot.lane.b32.xlu1 %v10400_v17, %s11390_s18  ;;  %v10578_v53 = vsel %vm2225_vm5, %v4559_v12, %v11383_v31 }
 0x59e   : > { %v10584_v17 = vsel %vm2375_vm4, %v10548_v63, %v11385_v24  ;;  %v10589_v38 = vsel %vm2757_vm7, %v4721_v36, %v4723_v1  ;;  %v4963_v36 = vld [vmem:[%s11310_s6 + $0x10] sm:$0xff] }
 0x5a0   : > { %v4172_v21 = vpop.f32.mrb[108].mxu1  ;;  %v4261_v8 = vpop.f32.mrb[112].mxu0  ;;  %4373 = vrot.lane.b32.xlu0 %v10419_v11, %s11392_s28 }
 0x5a1   : > { %4488 = vrot.lane.b32.xlu1 %v10416_v16, %s11388_s29  ;;  %4303 = vst [vmem:[#allocation4 + $0x120] sm:$0x3f] %v4172_v21  ;;  %4305 = vst.msk [vmem:[#allocation4 + $0x130] sm:$0x3f] %vm1433_vm8, %v4261_v8  ;;  %v4174_v12 = vpop.f32.mrb[109].mxu1  ;;  %v6903_v41 = vpop.f32.mrb[113].mxu0 }
 0x5a2   : > { %4304 = vst [vmem:[#allocation4 + $0x128] sm:$0x3f] %v4174_v12  ;;  %v4176_v31 = vpop.f32.mrb[110].mxu1  ;;  %v4264_v40 = vpop.f32.mrb[114].mxu0 }
 0x5a3   : > { %v4177_v24 = vpop.f32.mrb[111].mxu1  ;;  %v6904_v0 = vpop.f32.mrb[115].mxu0  ;;  %v4961_v40 = vld [vmem:[%s11310_s6] sm:$0xff]  ;;  %v4964_v31 = vld [vmem:[%s11310_s6 + $0x18] sm:$0xff] }
 0x5a4   : > { %4438 = vrot.lane.b32.xlu0 %v10416_v16, %s11390_s18  ;;  %v4962_v16 = vld [vmem:[%s11310_s6 + $0x8] sm:$0xff] }
 0x5a5   : > { %4616 = vrot.lane.b32.xlu1 %v10423_v20, %s11392_s28  ;;  %v10642_v11 = vpack.c.bf16 %v4962_v16, %v4961_v40 }
 0x5a7   : > { %7000 = vmatpush3.bf16.msra.mxu1 %v10642_v11 }
 0x5a8   : > { %4666 = vrot.lane.b32.xlu0 %v10423_v20, %s11390_s18  ;;  %v11858_v20 = vmov 0.0|0.0  }
 0x5a9   : > { %4731 = vrot.lane.b32.xlu1 %v10426_v54, %s11388_s29  ;;  %7001 = vmatprep.subr.bf16.mxu1 %v11858_v20  ;;  %v10654_v54 = vpop.permute.xlu1 %4847  ;;  %v4703_v8 = vld [vmem:[#allocation4 + $0x128] sm:$0x1f] }
 0x5ac   : > { %4440 = vrot.lane.b32.xlu0 %v10446_v45, %s11390_s18 }
 0x5ad   : > { %4375 = vrot.lane.b32.xlu1 %v10449_v13, %s11392_s28  ;;  %v4406_v13 = vld [vmem:[#allocation4 + $0xf0] sm:$0x3] }
 0x5b0   : > { %4668 = vrot.lane.b32.xlu0 %v10457_v22, %s11390_s18 }
 0x5b1   : > { %4490 = vrot.lane.b32.xlu1 %v10446_v45, %s11388_s29  ;;  %v10656_v45 = vpop.permute.xlu0 %4842 }
 0x5b4   : > { %4733 = vrot.lane.b32.xlu0 %v10460_v15, %s11388_s29  ;;  %v4428_v15 = vrot.slane %v4406_v13, 2  ;;  %v11861_v13 = vrot.slane %v10553_v51, 4 }
 0x5b5   : > { %4618 = vrot.lane.b32.xlu1 %v10457_v22, %s11392_s28  ;;  %v4332_v22 = vld [vmem:[#allocation4 + $0xf0] sm:$0x1] }
 0x5b8   : > { %4492 = vrot.lane.b32.xlu0 %v10463_v55, %s11388_s29 }
 0x5b9   : > { %4377 = vrot.lane.b32.xlu1 %v10466_v62, %s11392_s28  ;;  %v10662_v62 = vpop.permute.xlu1 %4852 }
 0x5bc   : > { %4620 = vrot.lane.b32.xlu0 %v10469_v2, %s11392_s28 }
 0x5bd   : > { %4442 = vrot.lane.b32.xlu1 %v10463_v55, %s11390_s18  ;;  %v4363_v55 = vrot.slane %v4332_v22, 1  ;;  %v4725_v22 = vrot.slane %v4703_v8, 5 }
 0x5c0   : > { %4735 = vrot.lane.b32.xlu0 %v10472_v30, %s11388_s29  ;;  %v4429_v30 = vsel %vm1773_vm2, %v10501_v39, %v4428_v15  ;;  %v11859_v39 = vrot.slane %v10534_v27, 2  ;;  %v4652_v27 = vld [vmem:[#allocation4 + $0x128] sm:$0xf] }
 0x5c1   : > { %4670 = vrot.lane.b32.xlu1 %v10469_v2, %s11390_s18  ;;  %v10664_v2 = vpop.permute.xlu0 %4862  ;;  %v4660_v21 = vrot.slane %v4652_v27, 4 }
 0x5c4   : > { %4379 = vrot.lane.b32.xlu0 %v10498_v25, %s11392_s28  ;;  %v4472_v25 = vld [vmem:[#allocation4 + $0x108] sm:$0x3] }
 0x5c5   : > { %4444 = vrot.lane.b32.xlu1 %v10495_v37, %s11390_s18 }
 0x5c8   : > { %4494 = vrot.lane.b32.xlu0 %v10495_v37, %s11388_s29  ;;  %v4364_v37 = vsel %vm1551_vm3, %v4361_v7, %v4363_v55  ;;  %v4522_v55 = vld [vmem:[#allocation4 + $0x20] sm:$0xf8] }
 0x5c9   : > { %4672 = vrot.lane.b32.xlu1 %v10508_v32, %s11390_s18 }
 0x5cc   : > { %4622 = vrot.lane.b32.xlu0 %v10508_v32, %s11392_s28  ;;  %v10677_v32 = vpop.permute.xlu1 %4857 }
 0x5cd   : > { %4737 = vrot.lane.b32.xlu1 %v10511_v44, %s11388_s29  ;;  %v10679_v44 = vpop.permute.xlu0 %4877 }
 0x5d0   : > { %4381 = vrot.lane.b32.xlu0 %v10520_v10, %s11392_s28  ;;  %v10688_v10 = vpop.permute.xlu1 %4867 }
 0x5d1   : > { %4496 = vrot.lane.b32.xlu1 %v10515_v34, %s11388_s29 }
 0x5d4   : > { %4446 = vrot.lane.b32.xlu0 %v10515_v34, %s11390_s18  ;;  %v4480_v34 = vrot.slane %v4472_v25, 2  ;;  %v4726_v25 = vsel %vm2757_vm7, %v4723_v1, %v4725_v22 }
 0x5d5   : > { %4624 = vrot.lane.b32.xlu1 %v10523_v49, %s11392_s28 }
 0x5d6   : > { %v4481_v7 = vsel %vm1773_vm2, %v11859_v39, %v4480_v34  ;;  %v4544_v34 = vrot.slane %v4522_v55, 3 }
 0x5d8   : > { %4674 = vrot.lane.b32.xlu0 %v10523_v49, %s11390_s18  ;;  %v10690_v49 = vpop.permute.xlu0 %4882 }
 0x5d9   : > { %4739 = vrot.lane.b32.xlu1 %v10526_v50, %s11388_s29  ;;  %v4586_v50 = vld [vmem:[#allocation4 + $0x110] sm:$0xf] }
 0x5da   : > { %v4608_v0 = vrot.slane %v4586_v50, 4 }
 0x5dc   : > { %4448 = vrot.lane.b32.xlu0 %v4429_v30, %s11390_s18  ;;  %v10709_v24 = vpop.permute.xlu0 %4887 }
 0x5dd   : > { %4383 = vrot.lane.b32.xlu1 %v4364_v37, %s11392_s28 }
 0x5e0   : > { %4676 = vrot.lane.b32.xlu0 %v10568_v5, %s11390_s18 }
 0x5e1   : > { %4498 = vrot.lane.b32.xlu1 %v10559_v6, %s11388_s29  ;;  %v10705_v6 = vpack.c.bf16 %v4964_v31, %v4963_v36  ;;  %v11862_v36 = vrot.slane %v10349_v47, 3 }
 0x5e3   : > { %11860 = vst [vmem:[#allocation43_spill] sm:$0xff] %v10705_v6  ;;  %7003 = vmatpush3.bf16.msra.mxu1 %v10705_v6  ;;  %v4546_v31 = vsel %vm2225_vm5, %v4544_v34, %v11862_v36 }
 0x5e4   : > { %4500 = vrot.lane.b32.xlu0 %v4481_v7, %s11388_s29  ;;  %6916 = vmatprep.subr.bf16.mxu1 %v11837_v9 }
 0x5e5   : > { %4626 = vrot.lane.b32.xlu1 %v10568_v5, %s11392_s28  ;;  %v10707_v5 = vpop.permute.xlu1 %4872 }
 0x5e8   : > { %4678 = vrot.lane.b32.xlu0 %v10584_v17, %s11390_s18  ;;  %v4609_v17 = vsel %vm2375_vm4, %v10548_v63, %v4608_v0  ;;  %v4661_v63 = vsel %vm2375_vm4, %v11861_v13, %v4660_v21 }
 0x5e9   : > { %4741 = vrot.lane.b32.xlu1 %v10571_v42, %s11388_s29  ;;  %v10714_v42 = vld [vmem:[%s11307_s3 + $0x1] ss:$0 sm:$0xff] }
 0x5ea   : > { %v4321_v12 = vadd.f32 %v10714_v42, %v10337_v43  ;;  %v4323_v39 = vadd.f32 %v10714_v42, %v10346_v26 }
 0x5ec   : > { %4743 = vrot.lane.b32.xlu0 %v10589_v38, %s11388_s29  ;;  %v4322_v38 = vadd.f32 %v10714_v42, %v10340_v46 }
 0x5ed   : > { %4628 = vrot.lane.b32.xlu1 %v4609_v17, %s11392_s28 }
 0x5ee   : > { %v4431_v41 = vpop.permute.xlu0 %4430 }
 0x5ef   : > { %v4366_v40 = vpop.permute.xlu1 %4365 }
 0x5f0   : > { %v4395_v16 = vadd.f32 %v4366_v40, %v4321_v12  ;;  %v4324_v12 = vadd.f32 %v10714_v42, %v10354_v56 }
 0x5f1   : > { %4680 = vrot.lane.b32.xlu1 %v4661_v63, %s11390_s18  ;;  %s11262_s18 = scalar_lea.hbm %s11314_s10, %s6808_s0 }
 0x5f2   : > { %v4460_v15 = vadd.f32 %v4431_v41, %v4395_v16  ;;  %v4368_v37 = vpop.permute.xlu0 %4367 }
 0x5f3   : > { %v4433_v30 = vpop.permute.xlu1 %4432  ;;  %v4396_v43 = vadd.f32 %v4368_v37, %v4322_v38 }
 0x5f5   : > { %4745 = vrot.lane.b32.xlu1 %v4726_v25, %s11388_s29  ;;  %v4461_v7 = vadd.f32 %v4433_v30, %v4396_v43 }
 0x5f6   : > { %v4483_v50 = vpop.permute.xlu0 %4482 }
 0x5f7   : > { %v4370_v0 = vpop.permute.xlu1 %4369  ;;  %v4512_v27 = vadd.f32 %v4483_v50, %v4460_v15 }
 0x5f8   : > { %v4397_v46 = vadd.f32 %v4370_v0, %v4323_v39 }
 0x5f9   : > { %v4575_v17 = vadd.f32 %v4546_v31, %v4512_v27 }
 0x5fa   : > { %v4611_v21 = vpop.permute.xlu0 %4610 }
 0x5fb   : > { %v4435_v51 = vpop.permute.xlu1 %4434  ;;  %v4640_v8 = vadd.f32 %v4611_v21, %v4575_v17 }
 0x5fc   : > { %v4462_v1 = vadd.f32 %v4435_v51, %v4397_v46 }
 0x5fe   : > { %v4372_v40 = vpop.permute.xlu0 %4371 }
 0x5ff   : > { %v4485_v41 = vpop.permute.xlu1 %4484  ;;  %v4398_v16 = vadd.f32 %v4372_v40, %v4324_v12 }
 0x600   : > { %v4513_v26 = vadd.f32 %v4485_v41, %v4461_v7 }
 0x602   : > { %v4576_v13 = vadd.f32 %v10391_v57, %v4513_v26  ;;  %v4487_v22 = vpop.permute.xlu0 %4486 }
 0x603   : > { %v4613_v63 = vpop.permute.xlu1 %4612  ;;  %v4514_v47 = vadd.f32 %v4487_v22, %v4462_v1  ;;  %v4325_v1 = vadd.f32 %v10714_v42, %v10381_v35 }
 0x604   : > { %v4641_v38 = vadd.f32 %v4613_v63, %v4576_v13  ;;  %v4326_v63 = vadd.f32 %v10714_v42, %v10393_v4 }
 0x605   : > { %v4577_v15 = vadd.f32 %v10434_v29, %v4514_v47 }
 0x606   : > { %v4615_v30 = vpop.permute.xlu0 %4614 }
 0x607   : > { %v4663_v55 = vpop.permute.xlu1 %4662  ;;  %v10744_v43 = vadd.f32 %v4615_v30, %v4577_v15 }
 0x608   : > { %v4692_v37 = vadd.f32 %v4663_v55, %v4640_v8 }
 0x60a   : > { %v4665_v34 = vpop.permute.xlu0 %4664 }
 0x60b   : > { %v4728_v25 = vpop.permute.xlu1 %4727  ;;  %v4693_v39 = vadd.f32 %v4665_v34, %v4641_v38 }
 0x60c   : > { %v10746_v56 = vadd.f32 %v4728_v25, %v4692_v37 }
 0x60e   : > { %v4730_v50 = vpop.permute.xlu0 %4729 }
 0x60f   : > { %v4437_v7 = vpop.permute.xlu1 %4436  ;;  %v10748_v57 = vadd.f32 %v4730_v50, %v4693_v39 }
 0x610   : > { %v4463_v0 = vadd.f32 %v4437_v7, %v4398_v16 }
 0x612   : > { %v4374_v46 = vpop.permute.xlu0 %4373 }
 0x613   : > { %v4489_v27 = vpop.permute.xlu1 %4488  ;;  %v4399_v40 = vadd.f32 %v4374_v46, %v4325_v1 }
 0x614   : > { %v4515_v36 = vadd.f32 %v4489_v27, %v4463_v0  ;;  %v4327_v0 = vadd.f32 %v10714_v42, %v10428_v58 }
 0x616   : > { %v4578_v29 = vadd.f32 %v10442_v19, %v4515_v36  ;;  %v4439_v31 = vpop.permute.xlu0 %4438 }
 0x617   : > { %v4617_v17 = vpop.permute.xlu1 %4616  ;;  %v4464_v26 = vadd.f32 %v4439_v31, %v4399_v40  ;;  %v4328_v31 = vadd.f32 %v10714_v42, %v10439_v52 }
 0x618   : > { %v4643_v21 = vadd.f32 %v4617_v17, %v4578_v29 }
 0x61a   : > { %v4667_v51 = vpop.permute.xlu0 %4666 }
 0x61b   : > { %v10751_v8 = vpop.permute.xlu1 %4731 }
 0x61e   : > { %v4441_v12 = vpop.permute.xlu0 %4440 }
 0x61f   : > { %v4376_v41 = vpop.permute.xlu1 %4375 }
 0x620   : > { %v4400_v19 = vadd.f32 %v4376_v41, %v4326_v63 }
 0x622   : > { %v4669_v13 = vpop.permute.xlu0 %4668  ;;  %v4465_v55 = vadd.f32 %v4441_v12, %v4400_v19 }
 0x623   : > { %v4491_v16 = vpop.permute.xlu1 %4490 }
 0x624   : > { %v4516_v22 = vadd.f32 %v4491_v16, %v4464_v26 }
 0x626   : > { %v4579_v38 = vadd.f32 %v10475_v60, %v4516_v22  ;;  %v4734_v47 = vpop.permute.xlu0 %4733 }
 0x627   : > { %v4619_v15 = vpop.permute.xlu1 %4618 }
 0x62a   : > { %v4493_v30 = vpop.permute.xlu0 %4492 }
 0x62b   : > { %v4378_v37 = vpop.permute.xlu1 %4377  ;;  %v4517_v25 = vadd.f32 %v4493_v30, %v4465_v55  ;;  %v4768_v55 = vld [vmem:[#allocation4 + $0x58] sm:$0xff]  ;;  %v4769_v30 = vld [vmem:[#allocation4 + $0x70] sm:$0xff] }
 0x62c   : > { %v4401_v46 = vadd.f32 %v4378_v37, %v4327_v0  ;;  %v4767_v37 = vld [vmem:[#allocation4 + $0x40] sm:$0xc0]  ;;  %v4790_v52 = vrot.slane %v4768_v55, 6 }
 0x62d   : > { %v4580_v35 = vadd.f32 %v10487_v14, %v4517_v25  ;;  %v4770_v25 = vld [vmem:[#allocation4 + $0x88] sm:$0xff] }
 0x62e   : > { %v4621_v39 = vpop.permute.xlu0 %4620 }
 0x62f   : > { %v4443_v34 = vpop.permute.xlu1 %4442 }
 0x630   : > { %v4466_v36 = vadd.f32 %v4443_v34, %v4401_v46  ;;  %v4771_v46 = vld [vmem:[#allocation4 + $0xa0] sm:$0xff] }
 0x632   : > { %v4736_v50 = vpop.permute.xlu0 %4735 }
 0x633   : > { %v4671_v7 = vpop.permute.xlu1 %4670 }
 0x636   : > { %v4380_v27 = vpop.permute.xlu0 %4379 }
 0x637   : > { %v4445_v4 = vpop.permute.xlu1 %4444  ;;  %v4402_v1 = vadd.f32 %v4380_v27, %v4328_v31  ;;  %v4792_v27 = vrot.slane %v4769_v30, 6  ;;  %v4772_v31 = vld [vmem:[#allocation4 + $0xb8] sm:$0xff] }
 0x639   : > { %v4467_v40 = vadd.f32 %v4445_v4, %v4402_v1  ;;  %v4789_v4 = vrot.slane %v4767_v37, 6  ;;  %v4695_v1 = vadd.f32 %v4669_v13, %v4643_v21  ;;  %v4793_v6 = vsel %vm859_vm1, %v4790_v52, %v4792_v27 }
 0x63a   : > { %v4495_v60 = vpop.permute.xlu0 %4494  ;;  %v4798_v21 = vrot.slane %v4772_v31, 6  ;;  %v4645_v13 = vadd.f32 %v4621_v39, %v4580_v35  ;;  %v4775_v31 = vld [vmem:[#allocation4 + $0x100] sm:$0xff] }
 0x63b   : > { %v4673_v29 = vpop.permute.xlu1 %4672  ;;  %v4518_v17 = vadd.f32 %v4495_v60, %v4466_v36  ;;  %v4794_v36 = vrot.slane %v4770_v25, 6  ;;  %v4644_v60 = vadd.f32 %v4619_v15, %v4579_v38  ;;  %v4330_v38 = vadd.f32 %v10714_v42, %v10489_v59  ;;  %v4774_v59 = vld [vmem:[#allocation4 + $0xe8] sm:$0xff] }
 0x63c   : > { %v10776_v15 = vadd.f32 %v4793_v6, %v10748_v57  ;;  %v4760_v37 = vadd.f32 %v4734_v47, %v4695_v1 }
 0x63d   : > { %v4581_v14 = vadd.f32 %v10529_v33, %v4518_v17  ;;  %v4694_v33 = vadd.f32 %v4667_v51, %v10744_v43  ;;  %v4791_v17 = vsel %vm859_vm1, %v4789_v4, %v4790_v52  ;;  %v4773_v43 = vld [vmem:[#allocation4 + $0xd0] sm:$0xff] }
 0x63e   : > { %v4623_v41 = vpop.permute.xlu0 %4622  ;;  %v4532_v4 = vld [vmem:[#allocation4 + $0x110] sm:$0x7]  ;;  %v10780_v52 = vadd.f32 %v4791_v17, %v10746_v56  ;;  %v4891_v35 = vmul.f32 %v10654_v54, %v10776_v15 }
 0x63f   : > { %v4738_v12 = vpop.permute.xlu1 %4737  ;;  %v4759_v30 = vadd.f32 %v10751_v8, %v4694_v33  ;;  %v4800_v33 = vrot.slane %v4773_v43, 6 }
 0x642   : > { %v4382_v16 = vpop.permute.xlu0 %4381 }
 0x643   : > { %v4497_v26 = vpop.permute.xlu1 %4496 }
 0x644   : > { %v4519_v63 = vadd.f32 %v4497_v26, %v4467_v40  ;;  %v4796_v40 = vrot.slane %v4771_v46, 6  ;;  %v4696_v26 = vadd.f32 %v4671_v7, %v4644_v60  ;;  %v4646_v7 = vadd.f32 %v4623_v41, %v4581_v14 }
 0x645   : > { %v4563_v14 = vrot.slane %v4532_v4, 3 }
 0x646   : > { %v10765_v58 = vadd.f32 %v10540_v28, %v4519_v63  ;;  %v4447_v22 = vpop.permute.xlu0 %4446  ;;  %v4329_v28 = vadd.f32 %v10714_v42, %v10477_v3  ;;  %v4795_v3 = vsel %vm859_vm1, %v4792_v27, %v4794_v36  ;;  %v4797_v8 = vsel %vm859_vm1, %v4794_v36, %v4796_v40 }
 0x647   : > { %v4625_v19 = vpop.permute.xlu1 %4624  ;;  %v10783_v57 = vadd.f32 %v4795_v3, %v4759_v30  ;;  %v4697_v27 = vadd.f32 %v4673_v29, %v4645_v13  ;;  %v10787_v39 = vadd.f32 %v4797_v8, %v4760_v37  ;;  %v4799_v56 = vsel %vm859_vm1, %v4796_v40, %v4798_v21 }
 0x648   : > { %v4403_v51 = vadd.f32 %v4382_v16, %v4329_v28  ;;  %v4761_v16 = vadd.f32 %v4736_v50, %v4696_v26  ;;  %v4890_v28 = vmul.f32 %v10656_v45, %v10780_v52  ;;  %v4647_v40 = vadd.f32 %v4625_v19, %v10765_v58 }
 0x649   : > { %v4762_v41 = vadd.f32 %v4738_v12, %v4697_v27  ;;  %v4892_v1 = vmul.f32 %v10662_v62, %v10783_v57  ;;  %v4893_v45 = vmul.f32 %v10677_v32, %v10787_v39  ;;  %v11863_v30 = vrot.slane %v10544_v61, 3 }
 0x64a   : > { %v4675_v34 = vpop.permute.xlu0 %4674  ;;  %v4468_v25 = vadd.f32 %v4447_v22, %v4403_v51  ;;  %v4802_v22 = vrot.slane %v4774_v59, 6  ;;  %v10793_v29 = vadd.f32 %v4799_v56, %v4761_v16  ;;  %v4925_v19 = vmul.f32 %v4890_v28, %v10780_v52 }
 0x64b   : > { %v4740_v0 = vpop.permute.xlu1 %4739  ;;  %v4698_v47 = vadd.f32 %v4675_v34, %v4646_v7  ;;  %v4801_v34 = vsel %vm859_vm1, %v4798_v21, %v4800_v33  ;;  %v4564_v43 = vsel %vm2225_vm5, %v11863_v30, %v4563_v14  ;;  %v4927_v61 = vmul.f32 %v4892_v1, %v10783_v57 }
 0x64c   : > { %v10807_v51 = vadd.f32 %v4801_v34, %v4762_v41  ;;  %v4803_v62 = vsel %vm859_vm1, %v4800_v33, %v4802_v22  ;;  %v4894_v3 = vmul.f32 %v10664_v2, %v10793_v29  ;;  %v4928_v8 = vmul.f32 %v4893_v45, %v10787_v39 }
 0x64d   : > { %v4763_v12 = vadd.f32 %v4740_v0, %v4698_v47  ;;  %v4901_v0 = vsel %vm1312_vm6, %v4891_v35, 0.0  ;;  %v4903_v2 = vsel %vm1312_vm6, %v4892_v1, 0.0  ;;  %v4938_v56 = vsel %vm1312_vm6, %v4927_v61, 0.0  ;;  %v4777_v1 = vld [vmem:[#allocation4 + $0x130] sm:$0x3f] }
 0x64e   : > { %v4449_v63 = vpop.permute.xlu0 %4448  ;;  %v4895_v33 = vmul.f32 %v10688_v10, %v10807_v51  ;;  %v4929_v47 = vmul.f32 %v4894_v3, %v10793_v29  ;;  %v4905_v14 = vsel %vm1312_vm6, %v4893_v45, 0.0 }
 0x64f   : > { %v4384_v55 = vpop.permute.xlu1 %4383  ;;  %v10816_v13 = vadd.f32 %v4803_v62, %v4763_v12  ;;  %v4808_v62 = vrot.slane %v4777_v1, 6 }
 0x650   : > { %v4404_v46 = vadd.f32 %v4384_v55, %v4330_v38  ;;  %v10799_v55 = vld [vmem:[#allocation4 + $0x118] sm:$0xff]  ;;  %v4930_v34 = vmul.f32 %v4895_v33, %v10807_v51 }
 0x651   : > { %v4806_v21 = vrot.slane %v10799_v55, 6  ;;  %v4896_v41 = vmul.f32 %v10707_v5, %v10816_v13  ;;  %v4942_v5 = vsel %vm1312_vm6, %v4929_v47, 0.0  ;;  %v4909_v55 = vsel %vm1312_vm6, %v4895_v33, 0.0 }
 0x652   : > { %v4677_v6 = vpop.permute.xlu0 %4676  ;;  %v4469_v36 = vadd.f32 %v4449_v63, %v4404_v46  ;;  %v4804_v63 = vrot.slane %v4775_v31, 6  ;;  %v4900_v46 = vsel %vm1312_vm6, %v4890_v28, 0.0  ;;  %v4907_v28 = vsel %vm1312_vm6, %v4894_v3, 0.0 }
 0x653   : > { %v4499_v42 = vpop.permute.xlu1 %4498  ;;  %v4699_v38 = vadd.f32 %v4677_v6, %v4647_v40  ;;  %v4935_v6 = vsel %vm1312_vm6, %v4925_v19, 0.0  ;;  %v4902_v27 = vadd.f32 %v4901_v0, %v4900_v46 }
 0x654   : > { %v4520_v60 = vadd.f32 %v4499_v42, %v4468_v25  ;;  %v4805_v16 = vsel %vm859_vm1, %v4802_v22, %v4804_v63  ;;  %v4807_v31 = vsel %vm859_vm1, %v4804_v63, %v4806_v21 }
 0x655   : > { %v4904_v10 = vadd.f32 %v4903_v2, %v4902_v27 }
 0x656   : > { %v4583_v50 = vadd.f32 %v10578_v53, %v4520_v60  ;;  %v4501_v54 = vpop.permute.xlu0 %4500  ;;  %v4926_v53 = vmul.f32 %v4891_v35, %v10776_v15 }
 0x657   : > { %v4627_v17 = vpop.permute.xlu1 %4626  ;;  %v4521_v26 = vadd.f32 %v4501_v54, %v4469_v36  ;;  %v4940_v36 = vsel %vm1312_vm6, %v4928_v8, 0.0  ;;  %v4906_v12 = vadd.f32 %v4905_v14, %v4904_v10 }
 0x658   : > { %v4648_v7 = vadd.f32 %v4627_v17, %v4583_v50  ;;  %v4936_v4 = vsel %vm1312_vm6, %v4926_v53, 0.0  ;;  %v4931_v53 = vmul.f32 %v4896_v41, %v10816_v13 }
 0x659   : > { %v4584_v58 = vadd.f32 %v4564_v43, %v4521_v26  ;;  %v4937_v50 = vadd.f32 %v4936_v4, %v4935_v6  ;;  %v4908_v43 = vadd.f32 %v4907_v28, %v4906_v12  ;;  %v4809_v4 = vsel %vm859_vm1, %v4806_v21, %v4808_v62  ;;  %v10890_v62 = vld [vmem:[%s11311_s7] sm:$0xff] }
 0x65a   : > { %v4679_v32 = vpop.permute.xlu0 %4678  ;;  %v4946_v61 = vsel %vm1312_vm6, %v4931_v53, 0.0  ;;  %v7202_v53 = vld [vmem:[%s11306_s2 + $0x34] ss:$12 sps:$4 sm:$0xff]  }
 0x65b   : > { %v4742_v37 = vpop.permute.xlu1 %4741  ;;  %v4700_v42 = vadd.f32 %v4679_v32, %v4648_v7  ;;  %v4939_v40 = vadd.f32 %v4938_v56, %v4937_v50  ;;  %5216 = vmatprep.subr.bf16.mxu0 %v7202_v53 }
 0x65c   : > { %v4764_v25 = vadd.f32 %v4742_v37, %v4699_v38  ;;  %v4911_v38 = vsel %vm1312_vm6, %v4896_v41, 0.0  ;;  %v4910_v37 = vadd.f32 %v4909_v55, %v4908_v43  ;;  %v7200_v55 = vld [vmem:[%s11306_s2 + $0x30] ss:$12 sps:$4 sm:$0xff]  }
 0x65d   : > { %v4941_v30 = vadd.f32 %v4940_v36, %v4939_v40  ;;  %5217 = vmatpush1.bf16.msra.mxu0 %v7200_v55  ;;  %v7207_v43 = vld [vmem:[%s11306_s2 + $0x50] ss:$12 sps:$4 sm:$0xff]  }
 0x65e   : > { %v10825_v59 = vadd.f32 %v4805_v16, %v4764_v25  ;;  %v4744_v60 = vpop.permute.xlu0 %4743  ;;  %v4912_v46 = vadd.f32 %v4911_v38, %v4910_v37  ;;  %v7333_v38 = vmov 2  }
 0x65f   : > { %v4629_v35 = vpop.permute.xlu1 %4628  ;;  %v4765_v22 = vadd.f32 %v4744_v60, %v4700_v42  ;;  %v4943_v3 = vadd.f32 %v4942_v5, %v4941_v30  ;;  %v7203_v30 = vld [vmem:[%s11306_s2 + $0x48] ss:$12 sps:$4 sm:$0xff]   ;;  %7083 = vset.pattern.permute.xlu1 %v7333_v38  ;;  %7084 = vset.pattern.permute.xlu0 %v7333_v38 }
 0x660   : > { %v4897_v17 = vmul.f32 %v10679_v44, %v10825_v59  ;;  %v4649_v63 = vadd.f32 %v4629_v35, %v4584_v58  ;;  %v4944_v44 = vsel %vm1312_vm6, %v4930_v34, 0.0  ;;  %5537 = vperm.xlu1 %7083, %v10890_v62  }
 0x661   : > { %v10839_v54 = vadd.f32 %v4807_v31, %v4765_v22  ;;  %v4945_v25 = vadd.f32 %v4944_v44, %v4943_v3  ;;  %v5533_v44 = vld [vmem:[%s11311_s7 + $0x8] sm:$0xff] }
 0x662   : > { %v4932_v19 = vmul.f32 %v4897_v17, %v10825_v59  ;;  %v4913_v7 = vsel %vm1312_vm6, %v4897_v17, 0.0  ;;  %5542 = vperm.xlu0 %7084, %v5533_v44  }
 0x663   : > { %v4681_v26 = vpop.permute.xlu1 %4680  ;;  %v4898_v45 = vmul.f32 %v10690_v49, %v10839_v54  ;;  %v4947_v33 = vadd.f32 %v4946_v61, %v4945_v25  ;;  %v4914_v42 = vadd.f32 %v4913_v7, %v4912_v46 }
 0x664   : > { %v4701_v0 = vadd.f32 %v4681_v26, %v4649_v63  ;;  %v4948_v8 = vsel %vm1312_vm6, %v4932_v19, 0.0  ;;  %v7206_v63 = vld [vmem:[%s11306_s2 + $0x38] ss:$12 sps:$4 sm:$0xff]  }
 0x665   : > { %v4933_v49 = vmul.f32 %v4898_v45, %v10839_v54  ;;  %v4915_v16 = vsel %vm1312_vm6, %v4898_v45, 0.0  ;;  %v4949_v47 = vadd.f32 %v4948_v8, %v4947_v33  ;;  %v7205_v45 = vld [vmem:[%s11306_s2 + $0x4c] ss:$12 sps:$4 sm:$0xff]  }
 0x666   : > { %v4916_v60 = vadd.f32 %v4915_v16, %v4914_v42  ;;  %5218 = vmatprep.subr.bf16.mxu0 %v7205_v45  ;;  %v5052_v16 = vld [vmem:[%s11309_s5 + $0x1] sm:$0x1] }
 0x667   : > { %v4746_v32 = vpop.permute.xlu1 %4745  ;;  %v4950_v6 = vsel %vm1312_vm6, %v4933_v49, 0.0  ;;  %5219 = vmatpush1.bf16.msra.mxu0 %v7203_v30 }
 0x668   : > { %v4766_v58 = vadd.f32 %v4746_v32, %v4701_v0  ;;  %v4951_v21 = vadd.f32 %v4950_v6, %v4949_v47  ;;  %7004 = vmatprep.subr.bf16.mxu0 %v11858_v20 }
 0x66a   : > { %v10855_v2 = vadd.f32 %v4809_v4, %v4766_v58  ;;  %v5047_v58 = vld [vmem:[%s11308_s4 + $0x1] sm:$0x1] }
 0x66b   : > { %v5049_v25 = vrot.slane %v5047_v58, 7 }
 0x66c   : > { %v4899_v27 = vmul.f32 %v10709_v24, %v10855_v2 }
 0x66e   : > { %v4917_v35 = vsel %vm1312_vm6, %v4899_v27, 0.0  ;;  %v4934_v56 = vmul.f32 %v4899_v27, %v10855_v2 }
 0x66f   : > { %v4918_v14 = vadd.f32 %v4917_v35, %v4916_v60 }
 0x670   : > { %v4952_v41 = vsel %vm1312_vm6, %v4934_v56, 0.0 }
 0x671   : > { %v4919_v22 = vrot.slane %v4918_v14, 4  ;;  %v4953_v50 = vadd.f32 %v4952_v41, %v4951_v21 }
 0x673   : > { %v4920_v10 = vadd.f32 %v4919_v22, %v4918_v14  ;;  %v4954_v36 = vrot.slane %v4953_v50, 4 }
 0x675   : > { %v4921_v31 = vrot.slane %v4920_v10, 2  ;;  %v4955_v28 = vadd.f32 %v4954_v36, %v4953_v50 }
 0x677   : > { %v4922_v34 = vadd.f32 %v4921_v31, %v4920_v10  ;;  %v4956_v17 = vrot.slane %v4955_v28, 2 }
 0x679   : > { %v4957_v1 = vadd.f32 %v4956_v17, %v4955_v28  ;;  %v4923_v24 = vrot.slane %v4922_v34, 1 }
 0x67b   : > { %v4958_v40 = vrot.slane %v4957_v1, 1  ;;  %v4924_v12 = vadd.f32 %v4923_v24, %v4922_v34 }
 0x67d   : > { %v4959_v5 = vadd.f32 %v4958_v40, %v4957_v1 }
 0x67f   : > { %v4960_v26 = vsel %vm3636_vm10, %v4924_v12, %v4959_v5 }
 0x680   : > { %6914 = vmatmul.mubr.msk.f32.vlgmr.msra.gmra.mrb[112].mxu1 %vm1312_vm6, %v4960_v26 }
 0x681   : > { %6920 = vmatprep.mubr.msk.bf16.mxu1 %vm7330_vm9, %v11837_v9  ;;  %6917 = vmatpush3.bf16.msra.mxu1 %v7206_v63 }
 0x682   : > { %6918 = vmatprep.subr.bf16.mxu1 %v11837_v9 }
 0x685   : > { %6919 = vmatpush3.bf16.msra.mxu1 %v7207_v43 }
 0x753   : > { %v5034_v19 = vpop.f32.mrb[112].mxu1 }
 0x754   : > { %v5038_v0 = vmul.f32 0.001953125, %v5034_v19  ;;  %v6915_v3 = vpop.f32.mrb[113].mxu1 }
 0x756   : > { %v5039_v37 = vmul.f32 %v5038_v0, %v5038_v0 }
 0x758   : > { %v5041_v32 = vrot.slane %v5039_v37, 7 }
 0x75a   : > { %v5043_v61 = vsub.f32 %v5038_v0, %v5041_v32 }
 0x75c   : > { %v5044_v7 = vmax.f32 %v5043_v61, 0.0 }
 0x75e   : > { %v5045_v49 = vadd.f32 1e-05, %v5044_v7 }
 0x760   : > { %7226 = vrsqrt.f32 %v5045_v49 }
 0x76a   : > { %v7227_v46 = vpop.eup %7226 }
 0x76b   : > { %v5051_v4 = vmul.f32 %v7227_v46, %v5049_v25 }
 0x76d   : > { %v5054_v8 = vrot.slane %v5051_v4, 1  ;;  %v5061_v33 = vrot.slane %v5051_v4, %v10145_v23 }
 0x76f   : > { %v5056_v42 = vmul.f32 %v5054_v8, %v5038_v0  ;;  %v5062_v27 = vmul.f32 %v5061_v33, %v10780_v52  ;;  %v5063_v47 = vmul.f32 %v5061_v33, %v10776_v15  ;;  %v5064_v60 = vmul.f32 %v5061_v33, %v10783_v57 }
 0x770   : > { %v5065_v35 = vmul.f32 %v5061_v33, %v10787_v39  ;;  %v5066_v56 = vmul.f32 %v5061_v33, %v10793_v29  ;;  %v5067_v21 = vmul.f32 %v5061_v33, %v10807_v51  ;;  %v5068_v41 = vmul.f32 %v5061_v33, %v10816_v13 }
 0x771   : > { %v5057_v6 = vsub.f32 %v5052_v16, %v5056_v42  ;;  %v5069_v22 = vmul.f32 %v5061_v33, %v10825_v59  ;;  %v5070_v50 = vmul.f32 %v5061_v33, %v10839_v54  ;;  %v5071_v52 = vmul.f32 %v5061_v33, %v10855_v2 }
 0x773   : > { %v5075_v14 = vrot.slane %v5057_v6, %v10151_v48 }
 0x775   : > { %v5076_v10 = vadd.f32 %v5075_v14, %v5062_v27  ;;  %v5077_v15 = vadd.f32 %v5075_v14, %v5063_v47  ;;  %v5078_v36 = vadd.f32 %v5075_v14, %v5064_v60  ;;  %v5079_v57 = vadd.f32 %v5075_v14, %v5065_v35 }
 0x776   : > { %v5080_v31 = vadd.f32 %v5075_v14, %v5066_v56  ;;  %v5081_v39 = vadd.f32 %v5075_v14, %v5067_v21  ;;  %v5082_v28 = vadd.f32 %v5075_v14, %v5068_v41  ;;  %v5083_v29 = vadd.f32 %v5075_v14, %v5069_v22  ;;  %v11864_v22 = vld [vmem:[#allocation43_spill] sm:$0xff] }
 0x777   : > { %v5084_v34 = vadd.f32 %v5075_v14, %v5070_v50  ;;  %v5085_v51 = vadd.f32 %v5075_v14, %v5071_v52  ;;  %v5086_v17 = vmax.f32 %v5076_v10, 0.0  ;;  %v5087_v1 = vmax.f32 %v5077_v15, 0.0  ;;  %v5162_v50 = vld [vmem:[#allocation3 + $0x20] sm:$0x3f] }
 0x778   : > { %v5088_v24 = vmax.f32 %v5078_v36, 0.0  ;;  %v5089_v13 = vmax.f32 %v5079_v57, 0.0  ;;  %v5090_v40 = vmax.f32 %v5080_v31, 0.0  ;;  %v5091_v59 = vmax.f32 %v5081_v39, 0.0 }
 0x779   : > { %v5092_v12 = vmax.f32 %v5082_v28, 0.0  ;;  %v5093_v54 = vmax.f32 %v5083_v29, 0.0  ;;  %v5094_v5 = vmax.f32 %v5084_v34, 0.0  ;;  %v5095_v2 = vmax.f32 %v5085_v51, 0.0  ;;  %5096 = vst.msk [vmem:[#allocation2] sm:$0xff] %vm1312_vm6, %v5086_v17  ;;  %5097 = vst.msk [vmem:[#allocation2 + $0x8] sm:$0xff] %vm1312_vm6, %v5087_v1 }
 0x77a   : > { %5098 = vst.msk [vmem:[#allocation2 + $0x10] sm:$0xff] %vm1312_vm6, %v5088_v24  ;;  %5099 = vst.msk [vmem:[#allocation2 + $0x18] sm:$0xff] %vm1312_vm6, %v5089_v13  ;;  %v5165_v52 = vpack.c.bf16 %v5162_v50, %v5162_v50 }
 0x77b   : > { %5101 = vst.msk [vmem:[#allocation2 + $0x28] sm:$0xff] %vm1312_vm6, %v5091_v59  ;;  %5100 = vst.msk [vmem:[#allocation2 + $0x20] sm:$0xff] %vm1312_vm6, %v5090_v40 }
 0x77c   : > { %5103 = vst.msk [vmem:[#allocation2 + $0x38] sm:$0xff] %vm1312_vm6, %v5093_v54  ;;  %5104 = vst.msk [vmem:[#allocation2 + $0x40] sm:$0xff] %vm1312_vm6, %v5094_v5 }
 0x77d   : > { %5105 = vst.msk [vmem:[#allocation2 + $0x48] sm:$0xff] %vm1312_vm6, %v5095_v2  ;;  %5102 = vst.msk [vmem:[#allocation2 + $0x30] sm:$0xff] %vm1312_vm6, %v5092_v12 }
 0x780   : > { %v5112_v26 = vld [vmem:[#allocation2] ss:$2 sm:$0xf]  ;;  %v5113_v55 = vld [vmem:[#allocation2 + $0x1] ss:$2 sm:$0xf] }
 0x781   : > { %v5114_v53 = vmax.f32 %v5112_v26, %v5113_v55  ;;  %v5116_v45 = vld [vmem:[#allocation2 + $0xa] ss:$2 sm:$0xf]  ;;  %v5118_v63 = vld [vmem:[#allocation2 + $0xb] ss:$2 sm:$0xf] }
 0x782   : > { %v5119_v30 = vmax.f32 %v5116_v45, %v5118_v63  ;;  %v5123_v43 = vld [vmem:[#allocation2 + $0x14] ss:$2 sm:$0xf]  ;;  %v5125_v44 = vld [vmem:[#allocation2 + $0x15] ss:$2 sm:$0xf] }
 0x783   : > { %v5126_v38 = vmax.f32 %v5123_v43, %v5125_v44  ;;  %v5128_v19 = vld [vmem:[#allocation2 + $0x1e] ss:$2 sm:$0xf]  ;;  %v5130_v0 = vld [vmem:[#allocation2 + $0x1f] ss:$2 sm:$0xf] }
 0x784   : > { %v5120_v3 = vmax.f32 %v5114_v53, %v5119_v30  ;;  %v5131_v37 = vmax.f32 %v5128_v19, %v5130_v0  ;;  %v5135_v32 = vld [vmem:[#allocation2 + $0x28] ss:$2 sm:$0xf]  ;;  %v5137_v61 = vld [vmem:[#allocation2 + $0x29] ss:$2 sm:$0xf] }
 0x785   : > { %v5138_v7 = vmax.f32 %v5135_v32, %v5137_v61  ;;  %v5140_v49 = vld [vmem:[#allocation2 + $0x32] ss:$2 sm:$0xf]  ;;  %v5142_v58 = vld [vmem:[#allocation2 + $0x33] ss:$2 sm:$0xf] }
 0x786   : > { %5121 = vst.msk [vmem:[#allocation3 + $0x7] sm:$0xf] %vm3900_vm11, %v5120_v3  ;;  %v5132_v25 = vmax.f32 %v5126_v38, %v5131_v37  ;;  %v5143_v46 = vmax.f32 %v5140_v49, %v5142_v58  ;;  %v5147_v4 = vld [vmem:[#allocation2 + $0x3c] ss:$2 sm:$0xf] }
 0x787   : > { %v5149_v8 = vld [vmem:[#allocation2 + $0x3d] ss:$2 sm:$0xf]  ;;  %v5152_v33 = vld [vmem:[#allocation2 + $0x46] ss:$2 sm:$0xf] }
 0x788   : > { %v5150_v16 = vmax.f32 %v5147_v4, %v5149_v8  ;;  %v5154_v42 = vld [vmem:[#allocation2 + $0x47] ss:$2 sm:$0xf]  ;;  %5133 = vst.msk [vmem:[#allocation3 + $0xd] sm:$0xf] %vm3900_vm11, %v5132_v25  ;;  %v5144_v6 = vmax.f32 %v5138_v7, %v5143_v46 }
 0x789   : > { %v5155_v27 = vmax.f32 %v5152_v33, %v5154_v42 }
 0x78a   : > { %5145 = vst.msk [vmem:[#allocation3 + $0x13] sm:$0xf] %vm3900_vm11, %v5144_v6 }
 0x78b   : > { %v5156_v47 = vmax.f32 %v5150_v16, %v5155_v27 }
 0x78d   : > { %5157 = vst.msk [vmem:[#allocation3 + $0x19] sm:$0xf] %vm3900_vm11, %v5156_v47  ;;  %v5158_v60 = vld [vmem:[#allocation3] sm:$0xff] }
 0x78e   : > { %5696 = vst.msk [vmem:[#allocation3] sm:$0xff] %vm1312_vm6, %v11837_v9 }
 0x78f   : > { %v5159_v35 = vld [vmem:[#allocation3 + $0x8] sm:$0xff] }
 0x790   : > { %v5163_v56 = vpack.c.bf16 %v5159_v35, %v5158_v60  ;;  %5697 = vst.msk [vmem:[#allocation3 + $0x8] sm:$0xff] %vm1312_vm6, %v11837_v9 }
 0x791   : > { %v5160_v21 = vld [vmem:[#allocation3 + $0x10] sm:$0xff] }
 0x792   : > { %6760 = vmatmul.mubr.msk.bf16.vlgmr.msra.gmra.mrb[116].mxu0 %vm1312_vm6, %v5163_v56  ;;  %6921 = vmatmul.mubr.msk.bf16.vlgmr.msra.gmra.mrb[116].mxu1 %vm1312_vm6, %v5163_v56  ;;  %5698 = vst.msk [vmem:[#allocation3 + $0x10] sm:$0xff] %vm1312_vm6, %v11837_v9 }
 0x793   : > { %5258 = vmatprep.mubr.bf16.mxu0 %v11857_v18  ;;  %6924 = vmatprep.mubr.msk.bf16.mxu1 %vm7330_vm9, %v11837_v9 }
 0x794   : > { %7006 = vmatpush3.bf16.msra.mxu0 %v10642_v11  ;;  %v5161_v14 = vld [vmem:[#allocation3 + $0x18] sm:$0xff] }
 0x795   : > { %7007 = vmatprep.subr.bf16.mxu0 %v11858_v20  ;;  %v5164_v41 = vpack.c.bf16 %v5161_v14, %v5160_v21 }
 0x798   : > { %7009 = vmatpush3.bf16.msra.mxu0 %v11864_v22 }
 0x79a   : > { %6761 = vmatmul.mubr.msk.bf16.gmra.mrb[120].mxu0 %vm1312_vm6, %v5164_v41  ;;  %6925 = vmatmul.mubr.msk.bf16.gmra.mrb[120].mxu1 %vm1312_vm6, %v5164_v41 }
 0x79b   : > { %5268 = vmatprep.mubr.bf16.mxu0 %v11857_v18  ;;  %6928 = vmatprep.mubr.msk.bf16.mxu1 %vm7330_vm9, %v11837_v9 }
 0x7a2   : > { %6762 = vmatmul.mubr.msk.bf16.gmra.mrb[124].mxu0 %vm1312_vm6, %v5165_v52  ;;  %6929 = vmatmul.mubr.msk.bf16.gmra.mrb[124].mxu1 %vm1312_vm6, %v5165_v52 }
 0x7a3   : > { %6940 = vmatprep.mubr.msk.f32.mxu0 %vm7330_vm9, %v11837_v9  ;;  %5804 = vmatprep.mubr.bf16.mxu1 %v11857_v18 }
 0x865   : > { %v10952_v11 = vpop.f32.mrb[116].mxu0  ;;  %v5311_v10 = vpop.f32.mrb[116].mxu1 }
 0x866   : > { %5333 = vst [vmem:[#allocation4] sm:$0xff] %v10952_v11  ;;  %v5252_v15 = vpop.f32.mrb[117].mxu0  ;;  %v6922_v36 = vpop.f32.mrb[117].mxu1 }
 0x867   : > { %5334 = vst [vmem:[#allocation4 + $0x8] sm:$0xff] %v5252_v15  ;;  %v10955_v57 = vpop.f32.mrb[118].mxu0  ;;  %v5314_v31 = vpop.f32.mrb[118].mxu1 }
 0x868   : > { %5338 = vst.msk [vmem:[#allocation4 + $0x28] sm:$0xff] %vm1312_vm6, %v5314_v31  ;;  %v10958_v39 = vpop.f32.mrb[119].mxu0  ;;  %v6923_v28 = vpop.f32.mrb[119].mxu1  ;;  %v5366_v29 = vrot.slane %v10955_v57, 1  ;;  %v5389_v34 = vrot.slane %v10955_v57, 2  ;;  %v5412_v26 = vrot.slane %v10955_v57, 6 }
 0x869   : > { %5337 = vst [vmem:[#allocation4 + $0x20] sm:$0xff] %v10958_v39  ;;  %5453 = vrot.lane.b32.xlu1 %v10958_v39, %s11392_s28  ;;  %v5439_v49 = vrot.slane %v10958_v39, 7 }
 0x86d   : > { %v10965_v51 = vpop.f32.mrb[120].mxu0  ;;  %v5319_v17 = vpop.f32.mrb[120].mxu1  ;;  %v5359_v1 = vld [vmem:[#allocation4] sm:$0xfe] }
 0x86e   : > { %v5384_v24 = vld [vmem:[#allocation4] sm:$0xfc]  ;;  %5339 = vst [vmem:[#allocation4 + $0x30] sm:$0xff] %v10965_v51  ;;  %5341 = vst.msk [vmem:[#allocation4 + $0x40] sm:$0xff] %vm1312_vm6, %v5319_v17  ;;  %v10969_v13 = vpop.f32.mrb[121].mxu0  ;;  %v6926_v40 = vpop.f32.mrb[121].mxu1 }
 0x86f   : > { %v5365_v59 = vrot.slane %v5359_v1, 1  ;;  %v5388_v12 = vrot.slane %v5384_v24, 2  ;;  %v5407_v54 = vld [vmem:[#allocation4] sm:$0xc0]  ;;  %5340 = vst [vmem:[#allocation4 + $0x38] sm:$0xff] %v10969_v13  ;;  %v5264_v5 = vpop.f32.mrb[122].mxu0 }
 0x870   : > { %v5322_v2 = vpop.f32.mrb[122].mxu1  ;;  %v5368_v55 = vrot.slane %v10965_v51, 1  ;;  %v5414_v53 = vrot.slane %v10965_v51, 6  ;;  %v5391_v45 = vrot.slane %v10965_v51, 2  ;;  %5342 = vst [vmem:[#allocation4 + $0x48] sm:$0xff] %v5264_v5  ;;  %v10977_v63 = vpop.f32.mrb[123].mxu0 }
 0x871   : > { %5344 = vst.msk [vmem:[#allocation4 + $0x58] sm:$0xff] %vm1312_vm6, %v5322_v2  ;;  %v6927_v30 = vpop.f32.mrb[123].mxu1  ;;  %v5367_v43 = vsel %vm1551_vm3, %v5365_v59, %v5366_v29  ;;  %v5390_v44 = vsel %vm1773_vm2, %v5388_v12, %v5389_v34  ;;  %v5411_v38 = vrot.slane %v5407_v54, 6  ;;  %5343 = vst [vmem:[#allocation4 + $0x50] sm:$0xff] %v10977_v63  ;;  %v5472_v3 = vrot.slane %v10977_v63, 4  ;;  %v5534_v17 = vld [vmem:[%s11311_s7 + $0x10] sm:$0xff]  ;;  %v11031_v2 = vpop.permute.xlu1 %5537 }
 0x872   : > { %5372 = vrot.lane.b32.xlu0 %v5367_v43, %s11392_s28  ;;  %5395 = vrot.lane.b32.xlu1 %v5390_v44, %s11865_s25  ;;  %v5369_v19 = vsel %vm1551_vm3, %v5366_v29, %v5368_v55  ;;  %v5415_v0 = vsel %vm859_vm1, %v5412_v26, %v5414_v53  ;;  %v5470_v37 = vrot.slane %v10969_v13, 4  ;;  %v5392_v32 = vsel %vm1773_vm2, %v5389_v34, %v5391_v45  ;;  %v5465_v60 = vld [vmem:[#allocation4 + $0x20] sm:$0xf0] }
 0x873   : > { %v5495_v61 = vrot.slane %v10977_v63, 5  ;;  %v5493_v7 = vrot.slane %v10969_v13, 5  ;;  %v5441_v25 = vrot.slane %v10969_v13, 7  ;;  %v5413_v46 = vsel %vm859_vm1, %v5411_v38, %v5412_v26  ;;  %v5488_v34 = vld [vmem:[#allocation4 + $0x20] sm:$0xe0]  ;;  %v5543_v26 = vpop.permute.xlu0 %5542 }
 0x874   : > { %v5473_v58 = vsel %vm2375_vm4, %v5470_v37, %v5472_v3  ;;  %v5469_v41 = vrot.slane %v5465_v60, 4  ;;  %v5492_v24 = vrot.slane %v5488_v34, 5 }
 0x875   : > { %v5496_v4 = vsel %vm2757_vm7, %v5493_v7, %v5495_v61  ;;  %v5327_v8 = vpop.f32.mrb[124].mxu1  ;;  %v5270_v16 = vpop.f32.mrb[124].mxu0  ;;  %v11003_v33 = vsel %vm3636_vm10, %v5439_v49, %v5441_v25 }
 0x876   : > { %5418 = vrot.lane.b32.xlu0 %v5413_v46, %s11866_s26  ;;  %5374 = vrot.lane.b32.xlu1 %v5369_v19, %s11392_s28  ;;  %5347 = vst.msk [vmem:[#allocation4 + $0x70] sm:$0x3f] %vm1433_vm8, %v5327_v8  ;;  %v5272_v42 = vpop.f32.mrb[125].mxu0  ;;  %v6930_v6 = vpop.f32.mrb[125].mxu1  ;;  %v5471_v10 = vsel %vm2375_vm4, %v5469_v41, %v5470_v37  ;;  %v5494_v12 = vsel %vm2757_vm7, %v5492_v24, %v5493_v7 }
 0x877   : > { %5346 = vst [vmem:[#allocation4 + $0x68] sm:$0x3f] %v5272_v42  ;;  %v5274_v27 = vpop.f32.mrb[126].mxu0  ;;  %v5360_v47 = vld [vmem:[#allocation4 + $0x48] sm:$0x1]  ;;  %v5330_v56 = vpop.f32.mrb[126].mxu1 }
 0x878   : > { %v5275_v35 = vpop.f32.mrb[127].mxu0  ;;  %v6931_v21 = vpop.f32.mrb[127].mxu1  ;;  %v5370_v14 = vrot.slane %v5360_v47, 1  ;;  %v5408_v22 = vld [vmem:[#allocation4 + $0x48] sm:$0x3f] }
 0x879   : > { %v5385_v50 = vld [vmem:[#allocation4 + $0x48] sm:$0x3]  ;;  %v5416_v15 = vrot.slane %v5408_v22, 6  ;;  %v5433_v35 = vld [vmem:[#allocation4 + $0x50] sm:$0x7f] }
 0x87a   : > { %5455 = vrot.lane.b32.xlu0 %v10969_v13, %s11392_s28  ;;  %5420 = vrot.lane.b32.xlu1 %v5415_v0, %s11866_s26  ;;  %v5371_v52 = vsel %vm1551_vm3, %v5368_v55, %v5370_v14  ;;  %v5393_v36 = vrot.slane %v5385_v50, 2  ;;  %v5443_v21 = vrot.slane %v5433_v35, 7 }
 0x87b   : > { %v5417_v31 = vsel %vm859_vm1, %v5414_v53, %v5416_v15  ;;  %v6766_v53 = vld [vmem:[%s11307_s3 + $0x2] ss:$0 sm:$0xff]  ;;  %v5513_v15 = vld [vmem:[#allocation4 + $0x58] sm:$0xff] }
 0x87c   : > { %v5394_v28 = vsel %vm1773_vm2, %v5391_v45, %v5393_v36  ;;  %v5356_v45 = vadd.f32 %v6766_v53, %v10952_v11  ;;  %v5357_v46 = vadd.f32 %v6766_v53, %v10955_v57  ;;  %v5358_v47 = vadd.f32 %v6766_v53, %v10965_v51 }
 0x87d   : > { %v5444_v57 = vsel %vm3636_vm10, %v5441_v25, %v5443_v21  ;;  %v5514_v25 = vld [vmem:[#allocation4 + $0x70] sm:$0x3f] }
 0x87e   : > { %5397 = vrot.lane.b32.xlu0 %v5392_v32, %s11865_s25  ;;  %5457 = vrot.lane.b32.xlu1 %v10977_v63, %s11392_s28  ;;  %v5466_v29 = vld [vmem:[#allocation4 + $0x68] sm:$0xf]  ;;  %v5430_v63 = vld [vmem:[#allocation4 + $0x8] sm:$0x80] }
 0x87f   : > { %v5474_v1 = vrot.slane %v5466_v29, 4  ;;  %v5489_v40 = vld [vmem:[#allocation4 + $0x68] sm:$0x1f]  ;;  %v5438_v38 = vrot.slane %v5430_v63, 7 }
 0x880   : > { %v5497_v54 = vrot.slane %v5489_v40, 5 }
 0x881   : > { %v5475_v59 = vsel %vm2375_vm4, %v5472_v3, %v5474_v1  ;;  %v5440_v32 = vsel %vm3636_vm10, %v5438_v38, %v5439_v49  ;;  %v5511_v1 = vld [vmem:[#allocation4 + $0x28] sm:$0xc0] }
 0x882   : > { %5376 = vrot.lane.b32.xlu0 %v5371_v52, %s11392_s28  ;;  %5476 = vrot.lane.b32.xlu1 %v5471_v10, %s11865_s25  ;;  %v5498_v5 = vsel %vm2757_vm7, %v5495_v61, %v5497_v54 }
 0x886   : > { %5422 = vrot.lane.b32.xlu0 %v5417_v31, %s11866_s26  ;;  %5399 = vrot.lane.b32.xlu1 %v5394_v28, %s11865_s25  ;;  %v5512_v31 = vld [vmem:[#allocation4 + $0x40] sm:$0xff] }
 0x887   : > { %v5520_v29 = vrot.slane %v5512_v31, 6  ;;  %v7215_v31 = vld [vmem:[%s11306_s2 + $0x80] ss:$12 sps:$4 sm:$0xff]  }
 0x88a   : > { %5478 = vrot.lane.b32.xlu0 %v5473_v58, %s11865_s25  ;;  %5547 = vperm.xlu1 %7083, %v5534_v17  }
 0x88e   : > { %5480 = vrot.lane.b32.xlu0 %v5475_v59, %s11865_s25  ;;  %5499 = vrot.lane.b32.xlu1 %v5494_v12, %s11866_s26  ;;  %v5519_v12 = vrot.slane %v5511_v1, 6 }
 0x890   : > { %v5521_v53 = vsel %vm859_vm1, %v5519_v12, %v5520_v29 }
 0x892   : > { %5501 = vrot.lane.b32.xlu0 %v5496_v4, %s11866_s26  ;;  %5503 = vrot.lane.b32.xlu1 %v5498_v5, %s11866_s26 }
 0x8db   : > { %v5454_v55 = vpop.permute.xlu1 %5453 }
 0x8e4   : > { %v5373_v30 = vpop.permute.xlu0 %5372  ;;  %v5396_v43 = vpop.permute.xlu1 %5395 }
 0x8e5   : > { %v5381_v44 = vadd.f32 %v5373_v30, %v5356_v45  ;;  %v5524_v45 = vrot.slane %v5514_v25, 6 }
 0x8e7   : > { %v5404_v19 = vadd.f32 %v5396_v43, %v5381_v44 }
 0x8e8   : > { %v5419_v0 = vpop.permute.xlu0 %5418  ;;  %v5375_v3 = vpop.permute.xlu1 %5374 }
 0x8e9   : > { %v5427_v37 = vadd.f32 %v5419_v0, %v5404_v19  ;;  %v5382_v4 = vadd.f32 %v5375_v3, %v5357_v46 }
 0x8eb   : > { %v5448_v61 = vadd.f32 %v5440_v32, %v5427_v37 }
 0x8ec   : > { %v5456_v7 = vpop.permute.xlu0 %5455  ;;  %v5421_v58 = vpop.permute.xlu1 %5420 }
 0x8ed   : > { %v5462_v17 = vadd.f32 %v5454_v55, %v5448_v61 }
 0x8f0   : > { %v5398_v11 = vpop.permute.xlu0 %5397  ;;  %v5458_v8 = vpop.permute.xlu1 %5457 }
 0x8f1   : > { %v5405_v16 = vadd.f32 %v5398_v11, %v5382_v4 }
 0x8f3   : > { %v5428_v42 = vadd.f32 %v5421_v58, %v5405_v16 }
 0x8f4   : > { %v5377_v6 = vpop.permute.xlu0 %5376  ;;  %v5477_v27 = vpop.permute.xlu1 %5476 }
 0x8f5   : > { %v5449_v60 = vadd.f32 %v11003_v33, %v5428_v42  ;;  %v5383_v39 = vadd.f32 %v5377_v6, %v5358_v47  ;;  %v5522_v33 = vrot.slane %v5513_v15, 6  ;;  %v5485_v40 = vadd.f32 %v5477_v27, %v5462_v17  ;;  %v7211_v15 = vld [vmem:[%s11306_s2 + $0x78] ss:$12 sps:$4 sm:$0xff]  }
 0x8f7   : > { %v5463_v10 = vadd.f32 %v5456_v7, %v5449_v60  ;;  %v5523_v24 = vsel %vm859_vm1, %v5520_v29, %v5522_v33  ;;  %v5525_v19 = vsel %vm859_vm1, %v5522_v33, %v5524_v45 }
 0x8f8   : > { %v5423_v56 = vpop.permute.xlu0 %5422  ;;  %v5400_v49 = vpop.permute.xlu1 %5399 }
 0x8f9   : > { %v5406_v14 = vadd.f32 %v5400_v49, %v5383_v39 }
 0x8fb   : > { %v5429_v41 = vadd.f32 %v5423_v56, %v5406_v14 }
 0x8fc   : > { %v5479_v22 = vpop.permute.xlu0 %5478 }
 0x8fd   : > { %v5450_v50 = vadd.f32 %v5444_v57, %v5429_v41  ;;  %v5486_v51 = vadd.f32 %v5479_v22, %v5463_v10  ;;  %v7213_v10 = vld [vmem:[%s11306_s2 + $0x7c] ss:$12 sps:$4 sm:$0xff]  }
 0x8ff   : > { %v5464_v59 = vadd.f32 %v5458_v8, %v5450_v50  ;;  %v7208_v50 = vld [vmem:[%s11306_s2 + $0x60] ss:$12 sps:$4 sm:$0xff]  }
 0x900   : > { %v5481_v52 = vpop.permute.xlu0 %5480 }
 0x901   : > { %v5487_v63 = vadd.f32 %v5481_v52, %v5464_v59  ;;  %v7210_v52 = vld [vmem:[%s11306_s2 + $0x64] ss:$12 sps:$4 sm:$0xff]   ;;  %v5665_v59 = vld [vmem:[%s11308_s4 + $0x2] sm:$0x1] }
 0x902   : > { %5772 = vmatprep.subr.bf16.mxu1 %v7210_v52  ;;  %v5667_v25 = vrot.slane %v5665_v59, 7 }
 0x903   : > { %5773 = vmatpush1.bf16.msra.mxu1 %v7208_v50 }
 0x904   : > { %v5502_v36 = vpop.permute.xlu0 %5501  ;;  %5774 = vmatprep.subr.bf16.mxu1 %v7213_v10 }
 0x905   : > { %v5509_v28 = vadd.f32 %v5502_v36, %v5486_v51  ;;  %v11082_v36 = vld [vmem:[#allocation3 + $0x10] sm:$0x3]  ;;  %v7214_v51 = vld [vmem:[%s11306_s2 + $0x68] ss:$12 sps:$4 sm:$0xff]  }
 0x906   : > { %6101 = vst.msk [vmem:[#allocation3 + $0x10] sm:$0x1] %vm6100_vm12, %v11837_v9  ;;  %6943 = vmatprep.subr.bf16.mxu0 %v7214_v51 }
 0x907   : > { %v11047_v13 = vadd.f32 %v5523_v24, %v5509_v28  ;;  %5775 = vmatpush1.bf16.msra.mxu1 %v7211_v15 }
 0x909   : > { %v5548_v34 = vpop.permute.xlu1 %5547  ;;  %v5551_v30 = vmul.f32 %v5543_v26, %v11047_v13 }
 0x90b   : > { %v5565_v0 = vmul.f32 %v5551_v30, %v11047_v13  ;;  %v5554_v61 = vsel %vm1312_vm6, %v5551_v30, 0.0 }
 0x90d   : > { %v5500_v54 = vpop.permute.xlu1 %5499 }
 0x90e   : > { %v5508_v5 = vadd.f32 %v5500_v54, %v5485_v40 }
 0x910   : > { %v11051_v43 = vadd.f32 %v5521_v53, %v5508_v5  ;;  %v5670_v53 = vld [vmem:[%s11309_s5 + $0x2] sm:$0x1] }
 0x911   : > { %v5504_v55 = vpop.permute.xlu1 %5503 }
 0x912   : > { %v5550_v44 = vmul.f32 %v11031_v2, %v11051_v43  ;;  %v5510_v38 = vadd.f32 %v5504_v55, %v5487_v63  ;;  %v5568_v2 = vsel %vm1312_vm6, %v5565_v0, 0.0 }
 0x914   : > { %v5553_v3 = vsel %vm1312_vm6, %v5550_v44, 0.0  ;;  %v5564_v37 = vmul.f32 %v5550_v44, %v11051_v43  ;;  %v11059_v32 = vadd.f32 %v5525_v19, %v5510_v38 }
 0x915   : > { %v5555_v58 = vadd.f32 %v5554_v61, %v5553_v3 }
 0x916   : > { %v5567_v26 = vsel %vm1312_vm6, %v5564_v37, 0.0  ;;  %v5552_v7 = vmul.f32 %v5548_v34, %v11059_v32 }
 0x917   : > { %v5569_v11 = vadd.f32 %v5568_v2, %v5567_v26 }
 0x918   : > { %v5556_v46 = vsel %vm1312_vm6, %v5552_v7, 0.0  ;;  %v5566_v4 = vmul.f32 %v5552_v7, %v11059_v32 }
 0x919   : > { %v5557_v8 = vadd.f32 %v5556_v46, %v5555_v58 }
 0x91a   : > { %v5570_v16 = vsel %vm1312_vm6, %v5566_v4, 0.0 }
 0x91b   : > { %v5558_v42 = vrot.slane %v5557_v8, 4  ;;  %v5571_v6 = vadd.f32 %v5570_v16, %v5569_v11 }
 0x91d   : > { %v5559_v27 = vadd.f32 %v5558_v42, %v5557_v8  ;;  %v5572_v47 = vrot.slane %v5571_v6, 4 }
 0x91f   : > { %v5560_v60 = vrot.slane %v5559_v27, 2  ;;  %v5573_v35 = vadd.f32 %v5572_v47, %v5571_v6 }
 0x921   : > { %v5561_v39 = vadd.f32 %v5560_v60, %v5559_v27  ;;  %v5574_v56 = vrot.slane %v5573_v35, 2 }
 0x923   : > { %v5575_v49 = vadd.f32 %v5574_v56, %v5573_v35  ;;  %v5562_v21 = vrot.slane %v5561_v39, 1  ;;  %v5724_v56 = vpack.c.bf16 %v11082_v36, %v11082_v36 }
 0x925   : > { %v5576_v14 = vrot.slane %v5575_v49, 1  ;;  %v5563_v41 = vadd.f32 %v5562_v21, %v5561_v39 }
 0x927   : > { %v5577_v22 = vadd.f32 %v5576_v14, %v5575_v49  ;;  %v7334_v49 = vmov 3  }
 0x928   : > { %7085 = vset.pattern.permute.xlu0 %v7334_v49 }
 0x929   : > { %v5578_v57 = vsel %vm3636_vm10, %v5563_v41, %v5577_v22 }
 0x92a   : > { %6941 = vmatmul.mubr.msk.f32.vlgmr.msra.gmra.mrb[86].mxu0 %vm1312_vm6, %v5578_v57 }
 0x92b   : > { %6944 = vmatpush3.bf16.msra.mxu0 %v7214_v51 }
 0x92c   : > { %6945 = vmatprep.subr.bf16.mxu0 %v7215_v31 }
 0x92f   : > { %6946 = vmatpush3.bf16.msra.mxu0 %v7215_v31 }
 0x930   : > { %7010 = vmatprep.subr.bf16.mxu0 %v11858_v20 }
 0x9fd   : > { %v5652_v33 = vpop.f32.mrb[86].mxu0 }
 0x9fe   : > { %v5656_v28 = vmul.f32 0.0078125, %v5652_v33  ;;  %v6942_v29 = vpop.f32.mrb[87].mxu0 }
 0xa00   : > { %v5657_v34 = vmul.f32 %v5656_v28, %v5656_v28 }
 0xa02   : > { %v5659_v17 = vrot.slane %v5657_v34, 7 }
 0xa04   : > { %v5661_v1 = vsub.f32 %v5656_v28, %v5659_v17 }
 0xa06   : > { %v5662_v24 = vmax.f32 %v5661_v1, 0.0 }
 0xa08   : > { %v5663_v40 = vadd.f32 1e-05, %v5662_v24 }
 0xa0a   : > { %7228 = vrsqrt.f32 %v5663_v40 }
 0xa14   : > { %v7229_v12 = vpop.eup %7228 }
 0xa15   : > { %v5669_v54 = vmul.f32 %v7229_v12, %v5667_v25 }
 0xa17   : > { %v5672_v5 = vrot.slane %v5669_v54, 1  ;;  %v5679_v63 = vrot.slane %v5669_v54, %v10145_v23 }
 0xa19   : > { %v5674_v45 = vmul.f32 %v5672_v5, %v5656_v28  ;;  %v5680_v55 = vmul.f32 %v5679_v63, %v11051_v43  ;;  %v5681_v44 = vmul.f32 %v5679_v63, %v11047_v13  ;;  %v5682_v38 = vmul.f32 %v5679_v63, %v11059_v32 }
 0xa1b   : > { %v5675_v30 = vsub.f32 %v5670_v53, %v5674_v45 }
 0xa1d   : > { %v5686_v19 = vrot.slane %v5675_v30, %v10151_v48 }
 0xa1f   : > { %v5687_v0 = vadd.f32 %v5686_v19, %v5680_v55  ;;  %v5688_v3 = vadd.f32 %v5686_v19, %v5681_v44  ;;  %v5689_v37 = vadd.f32 %v5686_v19, %v5682_v38 }
 0xa21   : > { %v5690_v61 = vmax.f32 %v5687_v0, 0.0  ;;  %v5691_v26 = vmax.f32 %v5688_v3, 0.0  ;;  %v5692_v7 = vmax.f32 %v5689_v37, 0.0 }
 0xa23   : > { %5693 = vst.msk [vmem:[#allocation2] sm:$0xff] %vm1312_vm6, %v5690_v61  ;;  %5694 = vst.msk [vmem:[#allocation2 + $0x8] sm:$0xff] %vm1312_vm6, %v5691_v26  ;;  %v5989_v61 = vld [vmem:[%s11310_s6] sm:$0xff]  ;;  %v5990_v26 = vld [vmem:[%s11310_s6 + $0x8] sm:$0xff] }
 0xa24   : > { %5695 = vst.msk [vmem:[#allocation2 + $0x10] sm:$0xff] %vm1312_vm6, %v5692_v7  ;;  %v11146_v7 = vpack.c.bf16 %v5990_v26, %v5989_v61 }
 0xa2a   : > { %v5699_v43 = vld [vmem:[#allocation2] ss:$2 sm:$0x3]  ;;  %v5700_v58 = vld [vmem:[#allocation2 + $0x1] ss:$2 sm:$0x3] }
 0xa2b   : > { %v5701_v13 = vmax.f32 %v5699_v43, %v5700_v58  ;;  %v5703_v2 = vld [vmem:[#allocation2 + $0x6] ss:$2 sm:$0x3]  ;;  %v5705_v32 = vld [vmem:[#allocation2 + $0x7] ss:$2 sm:$0x3] }
 0xa2c   : > { %v5706_v46 = vmax.f32 %v5703_v2, %v5705_v32  ;;  %v5711_v4 = vld [vmem:[#allocation2 + $0xc] ss:$2 sm:$0x3]  ;;  %v5713_v11 = vld [vmem:[#allocation2 + $0xd] ss:$2 sm:$0x3] }
 0xa2d   : > { %v5714_v8 = vmax.f32 %v5711_v4, %v5713_v11  ;;  %v5715_v16 = vld [vmem:[#allocation2 + $0x12] ss:$2 sm:$0x3]  ;;  %v5716_v42 = vld [vmem:[#allocation2 + $0x13] ss:$2 sm:$0x3] }
 0xa2e   : > { %v5707_v6 = vmax.f32 %v5701_v13, %v5706_v46  ;;  %v5717_v27 = vmax.f32 %v5715_v16, %v5716_v42  ;;  %v5992_v43 = vld [vmem:[%s11310_s6 + $0x18] sm:$0xff]  ;;  %v6786_v13 = vld [vmem:[%s11307_s3 + $0x3] ss:$0 sm:$0xff] }
 0xa30   : > { %5709 = vst.msk [vmem:[#allocation3 + $0x5] sm:$0x3] %vm5708_vm13, %v5707_v6  ;;  %v5718_v47 = vmax.f32 %v5714_v8, %v5717_v27 }
 0xa32   : > { %5719 = vst.msk [vmem:[#allocation3 + $0x9] sm:$0x3] %vm5708_vm13, %v5718_v47 }
 0xa37   : > { %v5720_v60 = vld [vmem:[#allocation3] sm:$0xff] }
 0xa38   : > { %6098 = vst.msk [vmem:[#allocation3] sm:$0xff] %vm1312_vm6, %v11837_v9 }
 0xa39   : > { %v5721_v35 = vld [vmem:[#allocation3 + $0x8] sm:$0xff] }
 0xa3a   : > { %v5723_v39 = vpack.c.bf16 %v5721_v35, %v5720_v60  ;;  %6099 = vst.msk [vmem:[#allocation3 + $0x8] sm:$0xff] %vm1312_vm6, %v11837_v9 }
 0xa3c   : > { %6782 = vmatmul.mubr.msk.bf16.vlgmr.msra.gmra.mrb[128].mxu1 %vm1312_vm6, %v5723_v39  ;;  %6947 = vmatprep.mubr.msk.bf16.mxu0 %vm1312_vm6, %v5723_v39 }
 0xa3d   : > { %5814 = vmatprep.mubr.bf16.mxu1 %v11857_v18  ;;  %6948 = vmatmul.mubr.msk.bf16.vlgmr.msra.gmra.mrb[128].mxu0 %vm1312_vm6, %v5724_v56 }
 0xa3e   : > { %6959 = vmatprep.mubr.msk.f32.mxu0 %vm7330_vm9, %v11837_v9  ;;  %7012 = vmatpush3.bf16.msra.mxu0 %v11146_v7 }
 0xa3f   : > { %7013 = vmatprep.subr.bf16.mxu0 %v11858_v20 }
 0xa44   : > { %6783 = vmatmul.mubr.msk.bf16.gmra.mrb[132].mxu1 %vm1312_vm6, %v5724_v56 }
 0xa45   : > { %6189 = vmatprep.mubr.bf16.mxu1 %v11857_v18 }
 0xb0f   : > { %v11123_v21 = vpop.f32.mrb[128].mxu1 }
 0xb10   : > { %5871 = vst [vmem:[#allocation4] sm:$0xff] %v11123_v21  ;;  %v5808_v14 = vpop.f32.mrb[129].mxu1  ;;  %v6949_v41 = vpop.f32.mrb[128].mxu0  ;;  %v5886_v2 = vadd.f32 %v6786_v13, %v11123_v21  ;;  %v6075_v13 = vld [vmem:[%s11308_s4 + $0x3] sm:$0x1] }
 0xb11   : > { %5872 = vst [vmem:[#allocation4 + $0x8] sm:$0xff] %v5808_v14  ;;  %v5810_v22 = vpop.f32.mrb[130].mxu1  ;;  %5879 = vst.msk [vmem:[#allocation4 + $0x40] sm:$0x3] %vm5708_vm13, %v6949_v41  ;;  %v5857_v57 = vpop.f32.mrb[129].mxu0 }
 0xb12   : > { %5874 = vst [vmem:[#allocation4 + $0x18] sm:$0xff] %v5810_v22  ;;  %v5812_v50 = vpop.f32.mrb[131].mxu1  ;;  %v6950_v52 = vpop.f32.mrb[130].mxu0 }
 0xb13   : > { %5875 = vst [vmem:[#allocation4 + $0x20] sm:$0xff] %v5812_v50  ;;  %v5860_v10 = vpop.f32.mrb[131].mxu0 }
 0xb14   : > { %5876 = vst.msk [vmem:[#allocation4 + $0x28] sm:$0xff] %vm1312_vm6, %v5860_v10 }
 0xb17   : > { %v5816_v18 = vpop.f32.mrb[132].mxu1  ;;  %v5898_v15 = vld [vmem:[#allocation4] sm:$0xfc] }
 0xb18   : > { %v5887_v36 = vld [vmem:[#allocation4] sm:$0xfe]  ;;  %5877 = vst [vmem:[#allocation4 + $0x30] sm:$0x3] %v5816_v18  ;;  %v5818_v51 = vpop.f32.mrb[133].mxu1  ;;  %v5902_v33 = vrot.slane %v5898_v15, 2 }
 0xb19   : > { %5878 = vst [vmem:[#allocation4 + $0x38] sm:$0x3] %v5818_v51  ;;  %v5899_v31 = vld [vmem:[#allocation4 + $0x18] sm:$0x3]  ;;  %v5820_v29 = vpop.f32.mrb[134].mxu1  ;;  %v5891_v17 = vrot.slane %v5887_v36, 1 }
 0xb1a   : > { %v5888_v28 = vld [vmem:[#allocation4 + $0x18] sm:$0x1]  ;;  %v5903_v34 = vrot.slane %v5899_v31, 2  ;;  %v5821_v40 = vpop.f32.mrb[135].mxu1  ;;  %v5909_v59 = vld [vmem:[#allocation4] sm:$0xf0] }
 0xb1b   : > { %v5892_v1 = vrot.slane %v5888_v28, 1  ;;  %v5910_v24 = vld [vmem:[#allocation4 + $0x18] sm:$0xf]  ;;  %v5930_v5 = vld [vmem:[#allocation4 + $0x20] sm:$0x3f]  ;;  %v5913_v53 = vrot.slane %v5909_v59, 4 }
 0xb1c   : > { %v5904_v25 = vsel %vm1773_vm2, %v5902_v33, %v5903_v34  ;;  %v5914_v54 = vrot.slane %v5910_v24, 4  ;;  %v5929_v45 = vld [vmem:[#allocation4 + $0x8] sm:$0xc0]  ;;  %v5934_v30 = vrot.slane %v5930_v5, 6  ;;  %v5946_v38 = vld [vmem:[#allocation4 + $0x20] sm:$0xfe] }
 0xb1d   : > { %v5893_v12 = vsel %vm1551_vm3, %v5891_v17, %v5892_v1  ;;  %5905 = vrot.lane.b32.xlu1 %v5904_v25, %s11865_s25  ;;  %v5933_v44 = vrot.slane %v5929_v45, 6  ;;  %v5950_v3 = vrot.slane %v5946_v38, 1  ;;  %v5921_v32 = vld [vmem:[#allocation4 + $0x20] sm:$0x1f]  ;;  %v5920_v8 = vld [vmem:[#allocation4 + $0x8] sm:$0xe0] }
 0xb1e   : > { %5894 = vrot.lane.b32.xlu0 %v5893_v12, %s11392_s28  ;;  %v5915_v63 = vsel %vm2375_vm4, %v5913_v53, %v5914_v54  ;;  %v5925_v16 = vrot.slane %v5921_v32, 5  ;;  %v5924_v47 = vrot.slane %v5920_v8, 5  ;;  %v5957_v14 = vld [vmem:[#allocation4 + $0x28] sm:$0xfc]  ;;  %v5958_v41 = vld [vmem:[#allocation4 + $0x40] sm:$0x3] }
 0xb1f   : > { %v5935_v19 = vsel %vm859_vm1, %v5933_v44, %v5934_v30  ;;  %v5961_v57 = vrot.slane %v5957_v14, 2  ;;  %v7216_v45 = vld [vmem:[%s11306_s2 + $0x90] ss:$12 sps:$4 sm:$0xff]   ;;  %v7221_v30 = vld [vmem:[%s11306_s2 + $0xac] ss:$12 sps:$4 sm:$0xff]  }
 0xb20   : > { %v5947_v55 = vld [vmem:[#allocation4 + $0x38] sm:$0x1]  ;;  %v5926_v35 = vsel %vm2757_vm7, %v5924_v47, %v5925_v16  ;;  %v7223_v38 = vld [vmem:[%s11306_s2 + $0xb0] ss:$12 sps:$4 sm:$0xff]  }
 0xb21   : > { %5942 = vrot.lane.b32.xlu1 %v5812_v50, %s11865_s25  ;;  %v5951_v0 = vrot.slane %v5947_v55, 1  ;;  %v5962_v50 = vrot.slane %v5958_v41, 2  ;;  %v7222_v55 = vld [vmem:[%s11306_s2 + $0x98] ss:$12 sps:$4 sm:$0xff]   ;;  %v7219_v44 = vld [vmem:[%s11306_s2 + $0xa8] ss:$12 sps:$4 sm:$0xff]  }
 0xb22   : > { %5916 = vrot.lane.b32.xlu0 %v5915_v63, %s11866_s26  ;;  %v7218_v63 = vld [vmem:[%s11306_s2 + $0x94] ss:$12 sps:$4 sm:$0xff]  }
 0xb23   : > { %v5952_v37 = vsel %vm1551_vm3, %v5950_v3, %v5951_v0  ;;  %v5963_v10 = vsel %vm1773_vm2, %v5961_v57, %v5962_v50  ;;  %6157 = vmatprep.subr.bf16.mxu1 %v7218_v63 }
 0xb24   : > { %6158 = vmatpush1.bf16.msra.mxu1 %v7216_v45 }
 0xb25   : > { %5936 = vrot.lane.b32.xlu1 %v5935_v19, %s11392_s28  ;;  %6159 = vmatprep.subr.bf16.mxu1 %v7221_v30 }
 0xb26   : > { %5969 = vperm.xlu0 %7085, %v10890_v62   ;;  %v5991_v62 = vld [vmem:[%s11310_s6 + $0x10] sm:$0xff] }
 0xb27   : > { %v11156_v58 = vpack.c.bf16 %v5992_v43, %v5991_v62 }
 0xb28   : > { %6160 = vmatpush1.bf16.msra.mxu1 %v7219_v44  ;;  %v6804_v44 = vld [vmem:[%s11307_s3 + $0x4] ss:$0 sm:$0xff] }
 0xb29   : > { %5953 = vrot.lane.b32.xlu1 %v5952_v37, %s11866_s26  ;;  %7015 = vmatpush3.bf16.msra.mxu0 %v11156_v58 }
 0xb2a   : > { %6962 = vmatprep.subr.bf16.mxu0 %v11837_v9  ;;  %7016 = vmatprep.subr.bf16.mxu1 %v11858_v20 }
 0xb8f   : > { %v5906_v46 = vpop.permute.xlu1 %5905 }
 0xb90   : > { %v5895_v4 = vpop.permute.xlu0 %5894 }
 0xb91   : > { %v5897_v11 = vadd.f32 %v5895_v4, %v5886_v2  ;;  %v6077_v2 = vrot.slane %v6075_v13, 7 }
 0xb93   : > { %v5908_v42 = vadd.f32 %v5906_v46, %v5897_v11  ;;  %v5943_v27 = vpop.permute.xlu1 %5942  ;;  %v6080_v11 = vld [vmem:[%s11309_s5 + $0x3] sm:$0x1] }
 0xb94   : > { %v5917_v6 = vpop.permute.xlu0 %5916 }
 0xb95   : > { %v5919_v60 = vadd.f32 %v5917_v6, %v5908_v42 }
 0xb97   : > { %v5928_v39 = vadd.f32 %v5926_v35, %v5919_v60  ;;  %v5937_v56 = vpop.permute.xlu1 %5936 }
 0xb99   : > { %v5939_v49 = vadd.f32 %v5937_v56, %v5928_v39 }
 0xb9b   : > { %v5945_v22 = vadd.f32 %v5943_v27, %v5939_v49  ;;  %v5954_v21 = vpop.permute.xlu1 %5953 }
 0xb9d   : > { %v5956_v52 = vadd.f32 %v5954_v21, %v5945_v22  ;;  %v6111_v21 = vld [vmem:[#allocation3 + $0x8] sm:$0x7] }
 0xb9f   : > { %v5965_v18 = vadd.f32 %v5963_v10, %v5956_v52  ;;  %v7335_v52 = vmov 4  }
 0xba0   : > { %7086 = vset.pattern.permute.xlu0 %v7335_v52 }
 0xba5   : > { %v5970_v15 = vpop.permute.xlu0 %5969 }
 0xba6   : > { %v5972_v36 = vmul.f32 %v5970_v15, %v5965_v18 }
 0xba8   : > { %v5973_v51 = vsel %vm1312_vm6, %v5972_v36, 0.0  ;;  %v5980_v31 = vmul.f32 %v5972_v36, %v5965_v18 }
 0xba9   : > { %v5974_v33 = vrot.slane %v5973_v51, 4 }
 0xbaa   : > { %v5981_v28 = vsel %vm1312_vm6, %v5980_v31, 0.0 }
 0xbab   : > { %v5975_v29 = vadd.f32 %v5974_v33, %v5973_v51  ;;  %v5982_v34 = vrot.slane %v5981_v28, 4 }
 0xbad   : > { %v5976_v17 = vrot.slane %v5975_v29, 2  ;;  %v5983_v1 = vadd.f32 %v5982_v34, %v5981_v28 }
 0xbaf   : > { %v5977_v24 = vadd.f32 %v5976_v17, %v5975_v29  ;;  %v5984_v40 = vrot.slane %v5983_v1, 2 }
 0xbb1   : > { %v5978_v59 = vrot.slane %v5977_v24, 1  ;;  %v5985_v25 = vadd.f32 %v5984_v40, %v5983_v1 }
 0xbb3   : > { %v5986_v12 = vrot.slane %v5985_v25, 1  ;;  %v5979_v54 = vadd.f32 %v5978_v59, %v5977_v24 }
 0xbb5   : > { %v5987_v5 = vadd.f32 %v5986_v12, %v5985_v25 }
 0xbb7   : > { %v5988_v53 = vsel %vm3636_vm10, %v5979_v54, %v5987_v5  ;;  %v6312_v54 = vld [vmem:[%s11311_s7] sm:$0x7] }
 0xbb8   : > { %6960 = vmatmul.mubr.msk.f32.vlgmr.msra.gmra.mrb[132].mxu0 %vm1312_vm6, %v5988_v53 }
 0xbb9   : > { %6966 = vmatprep.mubr.msk.bf16.mxu0 %vm7330_vm9, %v11837_v9  ;;  %6963 = vmatpush3.bf16.msra.mxu0 %v7222_v55 }
 0xbba   : > { %6964 = vmatprep.subr.bf16.mxu0 %v11837_v9 }
 0xbbd   : > { %6965 = vmatpush3.bf16.msra.mxu0 %v7223_v38 }
 0xbbe   : > { %7022 = vmatprep.subr.bf16.mxu0 %v11858_v20 }
 0xc8b   : > { %v6062_v19 = vpop.f32.mrb[132].mxu0 }
 0xc8c   : > { %v6066_v0 = vmul.f32 0.03125, %v6062_v19  ;;  %v6961_v3 = vpop.f32.mrb[133].mxu0 }
 0xc8e   : > { %v6067_v37 = vmul.f32 %v6066_v0, %v6066_v0 }
 0xc90   : > { %v6069_v61 = vrot.slane %v6067_v37, 7 }
 0xc92   : > { %v6071_v26 = vsub.f32 %v6066_v0, %v6069_v61 }
 0xc94   : > { %v6072_v62 = vmax.f32 %v6071_v26, 0.0 }
 0xc96   : > { %v6073_v43 = vadd.f32 1e-05, %v6072_v62 }
 0xc98   : > { %7230 = vrsqrt.f32 %v6073_v43 }
 0xca2   : > { %v7231_v32 = vpop.eup %7230 }
 0xca3   : > { %v6079_v46 = vmul.f32 %v7231_v32, %v6077_v2 }
 0xca5   : > { %v6082_v4 = vrot.slane %v6079_v46, 1  ;;  %v6089_v16 = vrot.slane %v6079_v46, %v10145_v23 }
 0xca7   : > { %v6084_v8 = vmul.f32 %v6082_v4, %v6066_v0  ;;  %v6090_v6 = vmul.f32 %v6089_v16, %v5965_v18 }
 0xca9   : > { %v6085_v42 = vsub.f32 %v6080_v11, %v6084_v8 }
 0xcab   : > { %v6094_v27 = vrot.slane %v6085_v42, %v10151_v48 }
 0xcad   : > { %v6095_v47 = vadd.f32 %v6094_v27, %v6090_v6 }
 0xcaf   : > { %v6096_v60 = vmax.f32 %v6095_v47, 0.0 }
 0xcb1   : > { %6097 = vst.msk [vmem:[#allocation2] sm:$0xff] %vm1312_vm6, %v6096_v60 }
 0xcb8   : > { %v6102_v35 = vld [vmem:[#allocation2] sm:$0x1]  ;;  %v6103_v39 = vld [vmem:[#allocation2 + $0x1] sm:$0x1]  ;;  %v6105_v56 = vld [vmem:[#allocation2 + $0x4] sm:$0x1] }
 0xcb9   : > { %v6104_v49 = vmax.f32 %v6102_v35, %v6103_v39  ;;  %v6106_v14 = vld [vmem:[#allocation2 + $0x5] sm:$0x1] }
 0xcba   : > { %v6107_v41 = vmax.f32 %v6105_v56, %v6106_v14 }
 0xcbc   : > { %v6108_v22 = vmax.f32 %v6104_v49, %v6107_v41 }
 0xcbe   : > { %6109 = vst.msk [vmem:[#allocation3 + $0x4] sm:$0x1] %vm6100_vm12, %v6108_v22 }
 0xcc5   : > { %v6110_v57 = vld [vmem:[#allocation3] sm:$0xff] }
 0xcc6   : > { %v6112_v50 = vpack.c.bf16 %v6111_v21, %v6110_v57 }
 0xcc8   : > { %6802 = vmatmul.mubr.msk.bf16.vlgmr.msra.gmra.mrb[136].mxu1 %vm1312_vm6, %v6112_v50  ;;  %6967 = vmatmul.mubr.msk.bf16.vlgmr.msra.gmra.mrb[136].mxu0 %vm1312_vm6, %v6112_v50 }
 0xcc9   : > { %7018 = vmatpush3.bf16.msra.mxu1 %v11146_v7  ;;  %6978 = vmatprep.mubr.msk.f32.mxu1 %vm7330_vm9, %v11837_v9 }
 0xcca   : > { %7019 = vmatprep.subr.bf16.mxu1 %v11858_v20  ;;  %6989 = vmatprep.mubr.msk.f32.mxu0 %vm7330_vm9, %v11837_v9 }
 0xccd   : > { %7021 = vmatpush3.bf16.msra.mxu1 %v11156_v58 }
 0xd9b   : > { %v6191_v10 = vpop.f32.mrb[136].mxu1  ;;  %v6234_v18 = vpop.f32.mrb[136].mxu0 }
 0xd9c   : > { %6241 = vst [vmem:[#allocation4] sm:$0xff] %v6191_v10  ;;  %v6193_v15 = vpop.f32.mrb[137].mxu1  ;;  %v6968_v36 = vpop.f32.mrb[137].mxu0 }
 0xd9d   : > { %6242 = vst [vmem:[#allocation4 + $0x8] sm:$0xff] %v6193_v15  ;;  %v6195_v7 = vpop.f32.mrb[138].mxu1  ;;  %v6237_v51 = vpop.f32.mrb[138].mxu0 }
 0xd9e   : > { %6244 = vst [vmem:[#allocation4 + $0x18] sm:$0x7] %v6195_v7  ;;  %6247 = vst.msk [vmem:[#allocation4 + $0x28] sm:$0x7] %vm6246_vm14, %v6237_v51  ;;  %v6197_v31 = vpop.f32.mrb[139].mxu1  ;;  %v6969_v33 = vpop.f32.mrb[139].mxu0 }
 0xd9f   : > { %6245 = vst [vmem:[#allocation4 + $0x20] sm:$0x7] %v6197_v31  ;;  %v6445_v7 = vld [vmem:[%s11312_s8] sm:$0xff]  ;;  %v6446_v51 = vld [vmem:[%s11312_s8 + $0x8] sm:$0xff]  ;;  %v6447_v31 = vld [vmem:[%s11312_s8 + $0x10] sm:$0xff] }
 0xda0   : > { %v7023_v33 = vpack.c.bf16 %v6446_v51, %v6445_v7 }
 0xda2   : > { %7024 = vmatpush3.bf16.msra.mxu0 %v7023_v33 }
 0xda3   : > { %v6262_v9 = vld [vmem:[#allocation4] sm:$0x1c]  ;;  %7025 = vmatprep.subr.bf16.mxu0 %v11858_v20 }
 0xda4   : > { %v6255_v28 = vld [vmem:[#allocation4] sm:$0xe]  ;;  %v6264_v58 = vrot.slane %v6262_v9, 2  ;;  %v6281_v17 = vld [vmem:[#allocation4 + $0x8] sm:$0xe0] }
 0xda5   : > { %v6257_v29 = vrot.slane %v6255_v28, 1  ;;  %v6269_v34 = vld [vmem:[#allocation4] sm:$0x38]  ;;  %v6283_v40 = vrot.slane %v6281_v17, 5  ;;  %v6288_v59 = vld [vmem:[#allocation4 + $0x8] sm:$0xc0] }
 0xda6   : > { %6265 = vrot.lane.b32.xlu1 %v6264_v58, %s11865_s25  ;;  %v6289_v1 = vld [vmem:[#allocation4 + $0x20] sm:$0x1]  ;;  %v6271_v24 = vrot.slane %v6269_v34, 3  ;;  %v6292_v5 = vrot.slane %v6288_v59, 6  ;;  %v6299_v53 = vld [vmem:[#allocation4 + $0x8] sm:$0x80] }
 0xda7   : > { %6258 = vrot.lane.b32.xlu0 %v6257_v29, %s11867_s27  ;;  %v6293_v25 = vrot.slane %v6289_v1, 6  ;;  %v6300_v12 = vld [vmem:[#allocation4 + $0x20] sm:$0x3]  ;;  %v6303_v30 = vrot.slane %v6299_v53, 7  ;;  %v6276_v61 = vld [vmem:[#allocation4 + $0x8] sm:$0x70] }
 0xda8   : > { %v6304_v63 = vrot.slane %v6300_v12, 7  ;;  %v6249_v38 = vld [vmem:[#allocation4] sm:$0x7]  ;;  %v6278_v2 = vrot.slane %v6276_v61, 4  ;;  %v6310_v42 = vld [vmem:[#allocation4 + $0x28] sm:$0x7] }
 0xda9   : > { %v6294_v45 = vsel %vm859_vm1, %v6292_v5, %v6293_v25  ;;  %v6254_v19 = vadd.f32 %v6804_v44, %v6249_v38  ;;  %v6448_v9 = vld [vmem:[%s11312_s8 + $0x18] sm:$0xff]  ;;  %v6421_v25 = vld [vmem:[%s11308_s4 + $0x4] sm:$0x1] }
 0xdaa   : > { %6284 = vrot.lane.b32.xlu1 %v6283_v40, %s11867_s27  ;;  %v6305_v55 = vsel %vm3636_vm10, %v6303_v30, %v6304_v63  ;;  %v7026_v28 = vpack.c.bf16 %v6448_v9, %v6447_v31  ;;  %v6423_v12 = vrot.slane %v6421_v25, 7  ;;  %v6426_v53 = vld [vmem:[%s11309_s5 + $0x4] sm:$0x1] }
 0xdab   : > { %6272 = vrot.lane.b32.xlu0 %v6271_v24, %s11866_s26 }
 0xdac   : > { %7027 = vmatpush3.bf16.msra.mxu0 %v7026_v28 }
 0xdae   : > { %6295 = vrot.lane.b32.xlu1 %v6294_v45, %s11865_s25  ;;  %s350_s25 = sand.u32 1, %s7315_s14  }
 0xdaf   : > { %6315 = vperm.xlu0 %7086, %v6312_v54   ;;  %s351_s28 = scalar_lea.vmem [#allocation5], %s350_s25  ;;  %s6532_s29 = scalar_lea.sflag [#allocation6], %s350_s25 }
 0xdb0   : > { %s6544_s21 = sshll.u32 %s351_s28, 4  ;;  %s11264_s21 = int_to_ptr.vmem [resolvable:$true] %s6544_s21 }
 0xdb1   : > { %s7261_s11 = scalar_lea.vmem %s11264_s21, 16  ;;  %p7268_p0 = scmp.lt.s32.totalorder %s11264_s21, %s7266_s12 }
 0xdb2   : > { %6306 = vrot.lane.b32.xlu1 %v6305_v55, %s11866_s26  ;;  %p7262_p11 = scmp.ne.s32.totalorder %s11264_s21, %s7261_s11  ;;  %s7267_s26 = scalar_lea.vmem %s7266_s12, 32 }
 0xdb3   : > { %p7269_p1 = scmp.lt.s32.totalorder %s7267_s26, %s7261_s11 }
 0xdb4   : > { %p7263_p12 = pnand %p7262_p11, %p7430_p5 }
 0xdb5   : > { %p7270_p2 = por %p7269_p1, %p7268_p0 }
 0xdb6   : > { %p7264_p13 = pneg %p7263_p12 }
 0xdb8   : > { %p7271_p3 = pnand %p7270_p2, %p7264_p13 }
 0xe18   : > { %v6266_v0 = vpop.permute.xlu1 %6265 }
 0xe19   : > { %v6259_v3 = vpop.permute.xlu0 %6258 }
 0xe1a   : > { %v6261_v37 = vadd.f32 %v6259_v3, %v6254_v19  ;;  %v6806_v3 = vld [vmem:[%s11313_s9] ss:$0 sm:$0xff] }
 0xe1c   : > { %v6268_v26 = vadd.f32 %v6266_v0, %v6261_v37  ;;  %v6285_v43 = vpop.permute.xlu1 %6284 }
 0xe1d   : > { %v6273_v62 = vpop.permute.xlu0 %6272 }
 0xe1e   : > { %v6275_v13 = vadd.f32 %v6273_v62, %v6268_v26 }
 0xe20   : > { %v6280_v32 = vadd.f32 %v6278_v2, %v6275_v13  ;;  %v6296_v46 = vpop.permute.xlu1 %6295 }
 0xe22   : > { %v6287_v4 = vadd.f32 %v6285_v43, %v6280_v32 }
 0xe24   : > { %v6298_v11 = vadd.f32 %v6296_v46, %v6287_v4  ;;  %v6307_v8 = vpop.permute.xlu1 %6306 }
 0xe26   : > { %v6309_v16 = vadd.f32 %v6307_v8, %v6298_v11 }
 0xe28   : > { %v6311_v6 = vadd.f32 %v6310_v42, %v6309_v16 }
 0xe2e   : > { %v6316_v27 = vpop.permute.xlu0 %6315 }
 0xe2f   : > { %v6318_v47 = vmul.f32 %v6316_v27, %v6311_v6 }
 0xe31   : > { %v6319_v60 = vsel %vm6246_vm14, %v6318_v47, 0.0  ;;  %v6326_v35 = vmul.f32 %v6318_v47, %v6311_v6 }
 0xe32   : > { %v6320_v39 = vrot.slane %v6319_v60, 4 }
 0xe33   : > { %v6327_v56 = vsel %vm6246_vm14, %v6326_v35, 0.0 }
 0xe34   : > { %v6321_v49 = vadd.f32 %v6320_v39, %v6319_v60  ;;  %v6328_v14 = vrot.slane %v6327_v56, 4 }
 0xe36   : > { %v6322_v41 = vrot.slane %v6321_v49, 2  ;;  %v6329_v22 = vadd.f32 %v6328_v14, %v6327_v56 }
 0xe38   : > { %v6323_v21 = vadd.f32 %v6322_v41, %v6321_v49  ;;  %v6330_v57 = vrot.slane %v6329_v22, 2 }
 0xe3a   : > { %v6324_v50 = vrot.slane %v6323_v21, 1  ;;  %v6331_v52 = vadd.f32 %v6330_v57, %v6329_v22 }
 0xe3c   : > { %v6332_v10 = vrot.slane %v6331_v52, 1  ;;  %v6325_v18 = vadd.f32 %v6324_v50, %v6323_v21 }
 0xe3e   : > { %v6333_v15 = vadd.f32 %v6332_v10, %v6331_v52 }
 0xe40   : > { %v6334_v36 = vsel %vm3636_vm10, %v6325_v18, %v6333_v15 }
 0xe41   : > { %6979 = vmatmul.mubr.msk.f32.vlgmr.msra.gmra.mrb[114].mxu1 %vm1312_vm6, %v6334_v36 }
 0xf14   : > { %v6408_v58 = vpop.f32.mrb[114].mxu1 }
 0xf15   : > { %v6412_v29 = vmul.f32 0.125, %v6408_v58  ;;  %v6980_v34 = vpop.f32.mrb[115].mxu1 }
 0xf17   : > { %v6413_v17 = vmul.f32 %v6412_v29, %v6412_v29 }
 0xf19   : > { %v6415_v1 = vrot.slane %v6413_v17, 7 }
 0xf1b   : > { %v6417_v24 = vsub.f32 %v6412_v29, %v6415_v1 }
 0xf1d   : > { %v6418_v40 = vmax.f32 %v6417_v24, 0.0 }
 0xf1f   : > { %v6419_v59 = vadd.f32 1e-05, %v6418_v40 }
 0xf21   : > { %7232 = vrsqrt.f32 %v6419_v59 }
 0xf2b   : > { %v7233_v54 = vpop.eup %7232 }
 0xf2c   : > { %v6425_v5 = vmul.f32 %v7233_v54, %v6423_v12 }
 0xf2e   : > { %v6428_v20 = vrot.slane %v6425_v5, 1  ;;  %v6435_v63 = vrot.slane %v6425_v5, %v10145_v23 }
 0xf30   : > { %v6430_v45 = vmul.f32 %v6428_v20, %v6412_v29  ;;  %v6436_v55 = vmul.f32 %v6435_v63, %v6311_v6 }
 0xf32   : > { %v6431_v30 = vsub.f32 %v6426_v53, %v6430_v45 }
 0xf34   : > { %v6440_v44 = vrot.slane %v6431_v30, %v10151_v48 }
 0xf36   : > { %v6441_v38 = vadd.f32 %v6440_v44, %v6436_v55 }
 0xf38   : > { %v6442_v19 = vmax.f32 %v6441_v38, 0.0 }
 0xf3a   : > { %6443 = vst.msk [vmem:[#allocation2] sm:$0x7] %vm6246_vm14, %v6442_v19 }
 0xf41   : > { %v6444_v0 = vld [vmem:[#allocation2] sm:$0x7] }
 0xf42   : > { %6990 = vmatmul.mubr.msk.f32.vlgmr.msra.gmra.mrb[134].mxu0 %vm1312_vm6, %v6444_v0 }
0x1015   : > { %v6525_v23 = vpop.f32.mrb[134].mxu0 }
0x1016   : > { %v6526_v37 = vadd.f32 %v6806_v3, %v6525_v23  ;;  %v6991_v48 = vpop.f32.mrb[135].mxu0 }
0x1018   : > { %6530 = vst.msk [vmem:[%s351_s28] sm:$0x1] %vm6529_vm15, %v6526_v37 }
0x1019   : > { %7274 = shalt.err (!%p7271_p3)
}
0x101a   : > { %s7275_s25 = scalar_lea.hbm %s11262_s18, 16  ;;  %s7279_s28 = scalar_lea.hbm %s11314_s10, 32 }
0x101b   : > { %p7276_p4 = scmp.ne.s32.totalorder %s11262_s18, %s7275_s25  ;;  %p7280_p9 = scmp.lt.u32.totalorder %s11262_s18, %s11314_s10 }
0x101c   : > { %p7281_p10 = scmp.lt.u32.totalorder %s7279_s28, %s7275_s25  ;;  %p7283_p12 = scmp.lt.u32.totalorder %s7275_s25, %s11262_s18 }
0x101d   : > { %p7277_p7 = pnand %p7276_p4, %p7430_p5 }
0x101e   : > { %p7282_p11 = por %p7281_p10, %p7280_p9 }
0x101f   : > { %p7278_p8 = pneg %p7277_p7 }
0x1020   : > { %p7284_p13 = por %p7283_p12, %p7282_p11 }
0x1022   : > { %p7285_p0 = pnand %p7284_p13, %p7278_p8 }
0x1024   : > { %7288 = shalt.err (!%p7285_p0)
}
0x1025   : > { %7029 = dma.vmem_to_hbm [thread:$0]  (%p7430_p5), %s11264_s21, 16, %s11262_s18, %s6532_s29  }
0x1026 PF: > { %p7035_p1 = scmp.ge.s32.totalorder %s7323_s16, 2  ;;  %s6556_s11 = sand.u32 1, %s7311_s13  }
0x1027   : > { %s6557_s17 = scalar_lea.sflag [#allocation6], %s6556_s11 }
0x1028   : > { %p7032_p2 = pnand %p7035_p1, %p7434_p6 }
0x102a   : > { %7306 = dma.done.wait (!%p7032_p2), %s6557_s17, 16  }
0x102b   : > { %7308 = vsyncadd (!%p7032_p2), %s6557_s17, 4294967280  ;;  %p20_p3 = scmp.ge.s32.totalorder %s7417_s19, 4   ;;  %s11868_s13 = smov %s7315_s14 }
0x102c   : > { %s11869_s14 = smov %s7319_s15  ;;  %s11870_s15 = smov %s7428_s22 }
0x102d   : > { %s11871_s16 = smov %s7417_s19  ;;  %22 = sbr.rel (!%p20_p3) target bundleno = 5 (0x5), region = 147 }
0x1034   :  { %6561 = vsyncpa [#allocation6], 1 }
0x1035   :  { %6563 = vsyncpa [#allocation6 + $0x1], 1 }

</bundles_post_ra>
